<compile_context>
chip_gen: v6e
topology: v6e:2x2x1
jax: 0.10.0
libtpu: 0.0.40
codegen_flags: <defaults>
</compile_context>

<pallas_src>
import math

import jax
import jax.numpy as jnp
from jax.experimental import pallas as pl
from jax.experimental.pallas import tpu as pltpu

# ----------------------------- model hyper-parameters -----------------------------
BATCH = 2
NUM_JET = 4            # jet feature dimension
NUM_COND = 3           # conditioning feature dimension
NUM_EMBED = 32         # time-embedding width (projection has NUM_EMBED // 2 entries)
PROJ_DIM = 128         # DeepSetsAtt projection_dim (fixed by the module)
NUM_LAYERS = 6         # num_transformer (fixed by the module)
NUM_HEADS = 2          # fixed by the module; inert for seq_len == 1 (see kernel comment)
COND_FF_DIM = NUM_COND * 9


def _round_up(x, m):
    return ((x + m - 1) // m) * m


# ----------------------------- small math helpers (in-kernel) -----------------------------
def _leaky(x):
    # activation passed to ModelJet: LeakyReLU(0.01), as in the GSGM reference.
    return jnp.where(x > 0, x, 0.01 * x)


def _gelu(x):
    # tanh-approximate GELU (EUP-friendly).
    # TODO(synk): switch to exact-erf GELU if the reference DeepSetsAtt port uses erf GELU.
    c = 0.7978845608028654
    return 0.5 * x * (1.0 + jnp.tanh(c * (x + 0.044715 * x * x * x)))


def _layernorm(x, g, b, eps=1e-5):
    # GroupNormalization(groups=1) over the channel axis; with seq_len == 1 this is exactly
    # a per-sample layer norm over the PROJ_DIM channels.
    # TODO(synk): eps=1e-5 matches PyTorch GroupNorm/LayerNorm defaults; Keras
    # GroupNormalization uses 1e-3 -- match the actual reference if parity matters.
    mu = jnp.mean(x, axis=-1, keepdims=True)
    var = jnp.mean(jnp.square(x - mu), axis=-1, keepdims=True)
    return (x - mu) * jax.lax.rsqrt(var + eps) * g + b


def _dot(x_f32, w_low):
    # bf16 weights feed the MXU in its native input dtype; accumulation stays f32.
    return jnp.dot(x_f32.astype(w_low.dtype), w_low, preferred_element_type=jnp.float32)


# ----------------------------- fused Pallas kernel -----------------------------
def model_jet_kernel(jet_ref, t_base_ref, cond_ff_ref,
                     ew1, eb1, ew2, eb2,
                     cw1, cb1, cw2, cb2,
                     jcw, jcb,
                     tw1, tb1, tw2, tb2,
                     iw1, ib1, iw2, ib2,
                     ln1g, ln1b, wv, bv, wo, bo,
                     ln2g, ln2b, wm1, bm1, wm2, bm2,
                     ln3g, ln3b, ow, ob,
                     out_ref):
    """Fused ModelJet forward for one batch tile.

    Conditioning:
       t_emb           = act(act(t_base @ emb_fc1) @ emb_fc2)
       cond_dense      = act((cond_ff @ cond_fc1) @ cond_fc2)
       jet_conditional = act(concat([t_emb, cond_dense]) @ jet_cond_fc)
       (the concat+matmul is expressed with the full weight split in-register:
        t_emb @ W[:E] + cond_dense @ W[E:])

    DeepSetsAtt specialized to sequence length 1 (one jet token per event): the multi-head
    attention softmax is over a single key, so every attention weight is identically 1 and
    the per-head context equals the value projection. The Q/K projections therefore cannot
    influence the output and are omitted (exact, not an approximation)."""
    f32 = jnp.float32
    x = jet_ref[...].astype(f32)               # [TB, NUM_JET]
    t_base = t_base_ref[...].astype(f32)       # [TB, NUM_EMBED]
    cond_ff = cond_ff_ref[...].astype(f32)     # [TB, 9*NUM_COND]

    # --- time embedding MLP ---
    h = _leaky(_dot(t_base, ew1[...]) + eb1[...])
    t_emb = _leaky(_dot(h, ew2[...]) + eb2[...])

    # --- conditioning MLP (first Dense has no activation, as in the torch module) ---
    c = _dot(cond_ff, cw1[...]) + cb1[...]
    cond_dense = _leaky(_dot(c, cw2[...]) + cb2[...])

    # --- jet_cond_fc on concat([t_emb, cond_dense]) ---
    jw = jcw[...]                              # [2E, 2E] bf16, single operand DMA
    cond = _leaky(_dot(t_emb, jw[:NUM_EMBED])
                  + _dot(cond_dense, jw[NUM_EMBED:])
                  + jcb[...])                  # [TB, 2*NUM_EMBED]

    # --- DeepSetsAtt: time-conditioning branch Dense(2P) -> LeakyReLU -> Dense(P) ---
    t = _leaky(_dot(cond, tw1[...]) + tb1[...])
    time = _dot(t, tw2[...]) + tb2[...]        # [TB, P]

    # --- per-particle input projection: Dense(P) -> LeakyReLU -> Dense(P) ---
    h2 = _leaky(_dot(x, iw1[...]) + ib1[...])
    enc = _dot(h2, iw2[...]) + ib2[...]        # [TB, P]

    # --- transformer stack (static unroll; tiny per-layer compute) ---
    for l in range(NUM_LAYERS):
        cl = enc + time
        x1 = _layernorm(cl, ln1g[l], ln1b[l])
        # MHA with a single token: context == V projection (softmax over one key == 1).
        v = _dot(x1, wv[l]) + bv[l]
        attn_out = _dot(v, wo[l]) + bo[l]
        x2 = attn_out + enc
        x3 = _layernorm(x2, ln2g[l], ln2b[l])
        x3 = _gelu(_dot(x3, wm1[l]) + bm1[l])
        x3 = _gelu(_dot(x3, wm2[l]) + bm2[l])
        enc = x3 + x2

    rep = _layernorm(enc + time, ln3g[...], ln3b[...])
    out_ref[...] = (_dot(rep, ow[...]) + ob[...]).astype(out_ref.dtype)  # [TB, NUM_JET]


# ----------------------------- plain-JAX glue (feature prep) -----------------------------
def ff(features, min_proj=4, max_proj=8):
    """Fourier-feature expansion, exact port of FF()."""
    if features.ndim == 1:
        features = features[:, None]
    features = features.astype(jnp.float32)
    freq = (2.0 ** jnp.arange(min_proj, max_proj, dtype=jnp.float32)) * 2.0 * jnp.pi
    num_freq = max_proj - min_proj
    d = features.shape[-1]
    h = jnp.tile(features, (1, num_freq))              # [B, d*num_freq]
    f = jnp.tile(freq[None, :], (1, d))                # [1, num_freq*d]
    angle = h * f
    return jnp.concatenate([features, jnp.sin(angle), jnp.cos(angle)], axis=-1)


def base_embedding(t, projection):
    """Exact port of base_Embedding(): t is [B, 1], projection is [NUM_EMBED//2]."""
    angle = t.astype(jnp.float32) * projection[None, :] * 1000.0
    return jnp.concatenate([jnp.sin(angle), jnp.cos(angle)], axis=-1)


# ----------------------------- parameters -----------------------------
def _dense(key, fan_in, fan_out):
    kw, kb = jax.random.split(key)
    s = 1.0 / math.sqrt(fan_in)
    # Weights stored in bf16 (halves HBM->VMEM DMA); biases stay f32.
    w = jax.random.uniform(kw, (fan_in, fan_out), jnp.float32, -s, s).astype(jnp.bfloat16)
    b = jax.random.uniform(kb, (1, fan_out), jnp.float32, -s, s)
    return w, b


def init_params(key):
    keys = list(jax.random.split(key, 64))
    it = iter(keys)
    p = {}
    # Gaussian Fourier projection vector (fixed, non-trainable in the reference).
    p['projection'] = jax.random.normal(next(it), (NUM_EMBED // 2,), jnp.float32) * 16.0

    p['emb_w1'], p['emb_b1'] = _dense(next(it), NUM_EMBED, 2 * NUM_EMBED)
    p['emb_w2'], p['emb_b2'] = _dense(next(it), 2 * NUM_EMBED, NUM_EMBED)
    p['cond_w1'], p['cond_b1'] = _dense(next(it), COND_FF_DIM, 2 * NUM_EMBED)
    p['cond_w2'], p['cond_b2'] = _dense(next(it), 2 * NUM_EMBED, NUM_EMBED)
    p['jc_w'], p['jc_b'] = _dense(next(it), 2 * NUM_EMBED, 2 * NUM_EMBED)

    # DeepSetsAtt
    p['time_w1'], p['time_b1'] = _dense(next(it), 2 * NUM_EMBED, 2 * PROJ_DIM)
    p['time_w2'], p['time_b2'] = _dense(next(it), 2 * PROJ_DIM, PROJ_DIM)
    p['in_w1'], p['in_b1'] = _dense(next(it), NUM_JET, PROJ_DIM)
    p['in_w2'], p['in_b2'] = _dense(next(it), PROJ_DIM, PROJ_DIM)

    def stack(fan_in, fan_out):
        ws, bs = [], []
        for _ in range(NUM_LAYERS):
            w, b = _dense(next(it), fan_in, fan_out)
            ws.append(w)
            bs.append(b)
        return jnp.stack(ws), jnp.stack(bs)

    # (Q/K projection params omitted: mathematically inert for seq_len == 1.)
    p['wv'], p['bv'] = stack(PROJ_DIM, PROJ_DIM)
    p['wo'], p['bo'] = stack(PROJ_DIM, PROJ_DIM)
    p['wm1'], p['bm1'] = stack(PROJ_DIM, 4 * PROJ_DIM)
    p['wm2'], p['bm2'] = stack(4 * PROJ_DIM, PROJ_DIM)

    p['ln1_g'] = jnp.ones((NUM_LAYERS, 1, PROJ_DIM), jnp.float32)
    p['ln1_b'] = jnp.zeros((NUM_LAYERS, 1, PROJ_DIM), jnp.float32)
    p['ln2_g'] = jnp.ones((NUM_LAYERS, 1, PROJ_DIM), jnp.float32)
    p['ln2_b'] = jnp.zeros((NUM_LAYERS, 1, PROJ_DIM), jnp.float32)
    p['ln3_g'] = jnp.ones((1, PROJ_DIM), jnp.float32)
    p['ln3_b'] = jnp.zeros((1, PROJ_DIM), jnp.float32)

    p['out_w'], p['out_b'] = _dense(next(it), PROJ_DIM, NUM_JET)
    return p


# Kernel weight-argument order (must match model_jet_kernel signature).
WEIGHT_ORDER = [
    'emb_w1', 'emb_b1', 'emb_w2', 'emb_b2',
    'cond_w1', 'cond_b1', 'cond_w2', 'cond_b2',
    'jc_w', 'jc_b',
    'time_w1', 'time_b1', 'time_w2', 'time_b2',
    'in_w1', 'in_b1', 'in_w2', 'in_b2',
    'ln1_g', 'ln1_b', 'wv', 'bv', 'wo', 'bo',
    'ln2_g', 'ln2_b', 'wm1', 'bm1', 'wm2', 'bm2',
    'ln3_g', 'ln3_b', 'out_w', 'out_b',
]


# ----------------------------- forward wrapper -----------------------------
def model_jet_forward(params, jet, t, cond):
    B = jet.shape[0]

    # elementwise feature prep (glue)
    t_base = base_embedding(t, params['projection'])     # [B, NUM_EMBED]
    cond_ff = ff(cond)                                    # [B, 9*NUM_COND]

    # jet is [B, 1, NUM_JET]; the attention sequence has a single token, and the module
    # squeezes dim 1 at the end, so we operate directly on [B, NUM_JET] rows.
    jet_flat = jet.reshape(B, NUM_JET).astype(jnp.float32)

    # Batch tiling: pad rows to a sublane-aligned tile; a "parallel" grid axis over batch
    # tiles lets larger batches shard across v7x's 2 TensorCores and pipeline activations.
    tile_b = 128 if B >= 128 else _round_up(B, 8)
    b_pad = _round_up(B, tile_b)
    pad = b_pad - B
    if pad:
        jet_flat = jnp.pad(jet_flat, ((0, pad), (0, 0)))
        t_base = jnp.pad(t_base, ((0, pad), (0, 0)))
        cond_ff = jnp.pad(cond_ff, ((0, pad), (0, 0)))

    grid = (b_pad // tile_b,)

    def batch_spec(f):
        return pl.BlockSpec((tile_b, f), lambda i: (i, 0))

    def full_spec(arr):
        nd = arr.ndim
        # Whole-array block; block index never changes across the batch grid, so the
        # weight is DMA'd once and stays VMEM-resident.
        return pl.BlockSpec(arr.shape, lambda i, _nd=nd: (0,) * _nd)

    weight_args = [params[k] for k in WEIGHT_ORDER]
    in_specs = ([batch_spec(NUM_JET), batch_spec(NUM_EMBED), batch_spec(COND_FF_DIM)]
                + [full_spec(w) for w in weight_args])

    out = pl.pallas_call(
        model_jet_kernel,
        out_shape=jax.ShapeDtypeStruct((b_pad, NUM_JET), jnp.float32),
        grid=grid,
        in_specs=in_specs,
        out_specs=pl.BlockSpec((tile_b, NUM_JET), lambda i: (i, 0)),
        compiler_params=pltpu.CompilerParams(
            dimension_semantics=("parallel",),
            vmem_limit_bytes=16 * 1024 * 1024,   # actual footprint ~5 MiB; safe on v5e/v6e/v7x
        ),
    )(jet_flat, t_base, cond_ff, *weight_args)

    return out[:B]   # [B, NUM_JET]  (== jet_out.squeeze(1) in the PyTorch module)


# ----------------------------- main -----------------------------
if __name__ == "__main__":
    key = jax.random.PRNGKey(0)
    kj, kt, kc, kp = jax.random.split(key, 4)

    jet = jax.random.normal(kj, (BATCH, 1, NUM_JET), jnp.float32)     # [B, 1, num_jet]
    t = jax.random.uniform(kt, (BATCH, 1), jnp.float32)               # diffusion time
    cond = jax.random.normal(kc, (BATCH, NUM_COND), jnp.float32)      # conditioning feats

    params = init_params(kp)

    fwd = jax.jit(lambda j, tt, c: model_jet_forward(params, j, tt, c))
    out = fwd(jet, t, cond)
    out = jax.block_until_ready(out)

    assert out.shape == (BATCH, NUM_JET), out.shape
    assert bool(jnp.all(jnp.isfinite(out)))
    print("KERNEL_OK")
</pallas_src>

<mosaic_0001>
module attributes {stable_mosaic.version = 11 : i64} {
  func.func @model_jet_kernel(%arg0: i32, %arg1: memref<8x4xf32, #tpu.memory_space<vmem>>, %arg2: memref<8x32xf32, #tpu.memory_space<vmem>>, %arg3: memref<8x27xf32, #tpu.memory_space<vmem>>, %arg4: memref<32x64xbf16, #tpu.memory_space<vmem>>, %arg5: memref<1x64xf32, #tpu.memory_space<vmem>>, %arg6: memref<64x32xbf16, #tpu.memory_space<vmem>>, %arg7: memref<1x32xf32, #tpu.memory_space<vmem>>, %arg8: memref<27x64xbf16, #tpu.memory_space<vmem>>, %arg9: memref<1x64xf32, #tpu.memory_space<vmem>>, %arg10: memref<64x32xbf16, #tpu.memory_space<vmem>>, %arg11: memref<1x32xf32, #tpu.memory_space<vmem>>, %arg12: memref<64x64xbf16, #tpu.memory_space<vmem>>, %arg13: memref<1x64xf32, #tpu.memory_space<vmem>>, %arg14: memref<64x256xbf16, #tpu.memory_space<vmem>>, %arg15: memref<1x256xf32, #tpu.memory_space<vmem>>, %arg16: memref<256x128xbf16, #tpu.memory_space<vmem>>, %arg17: memref<1x128xf32, #tpu.memory_space<vmem>>, %arg18: memref<4x128xbf16, #tpu.memory_space<vmem>>, %arg19: memref<1x128xf32, #tpu.memory_space<vmem>>, %arg20: memref<128x128xbf16, #tpu.memory_space<vmem>>, %arg21: memref<1x128xf32, #tpu.memory_space<vmem>>, %arg22: memref<6x1x128xf32, #tpu.memory_space<vmem>>, %arg23: memref<6x1x128xf32, #tpu.memory_space<vmem>>, %arg24: memref<6x128x128xbf16, #tpu.memory_space<vmem>>, %arg25: memref<6x1x128xf32, #tpu.memory_space<vmem>>, %arg26: memref<6x128x128xbf16, #tpu.memory_space<vmem>>, %arg27: memref<6x1x128xf32, #tpu.memory_space<vmem>>, %arg28: memref<6x1x128xf32, #tpu.memory_space<vmem>>, %arg29: memref<6x1x128xf32, #tpu.memory_space<vmem>>, %arg30: memref<6x128x512xbf16, #tpu.memory_space<vmem>>, %arg31: memref<6x1x512xf32, #tpu.memory_space<vmem>>, %arg32: memref<6x512x128xbf16, #tpu.memory_space<vmem>>, %arg33: memref<6x1x128xf32, #tpu.memory_space<vmem>>, %arg34: memref<1x128xf32, #tpu.memory_space<vmem>>, %arg35: memref<1x128xf32, #tpu.memory_space<vmem>>, %arg36: memref<128x4xbf16, #tpu.memory_space<vmem>>, %arg37: memref<1x4xf32, #tpu.memory_space<vmem>>, %arg38: memref<8x4xf32, #tpu.memory_space<vmem>>) attributes {dimension_semantics = [#tpu.dimension_semantics<parallel>], iteration_bounds = array<i64: 1>, scalar_prefetch = 0 : i64, scratch_operands = 0 : i64, tpu.core_type = #tpu.core_type<tc>, window_params = [{transform_indices = @transform_0, window_bounds = array<i64: 8, 4>}, {transform_indices = @transform_1, window_bounds = array<i64: 8, 32>}, {transform_indices = @transform_2, window_bounds = array<i64: 8, 27>}, {pipeline_mode = #tpu.pipeline_mode<synchronous>, transform_indices = @transform_3, window_bounds = array<i64: 32, 64>}, {pipeline_mode = #tpu.pipeline_mode<synchronous>, transform_indices = @transform_4, window_bounds = array<i64: 1, 64>}, {pipeline_mode = #tpu.pipeline_mode<synchronous>, transform_indices = @transform_5, window_bounds = array<i64: 64, 32>}, {pipeline_mode = #tpu.pipeline_mode<synchronous>, transform_indices = @transform_6, window_bounds = array<i64: 1, 32>}, {pipeline_mode = #tpu.pipeline_mode<synchronous>, transform_indices = @transform_7, window_bounds = array<i64: 27, 64>}, {pipeline_mode = #tpu.pipeline_mode<synchronous>, transform_indices = @transform_8, window_bounds = array<i64: 1, 64>}, {pipeline_mode = #tpu.pipeline_mode<synchronous>, transform_indices = @transform_9, window_bounds = array<i64: 64, 32>}, {pipeline_mode = #tpu.pipeline_mode<synchronous>, transform_indices = @transform_10, window_bounds = array<i64: 1, 32>}, {pipeline_mode = #tpu.pipeline_mode<synchronous>, transform_indices = @transform_11, window_bounds = array<i64: 64, 64>}, {pipeline_mode = #tpu.pipeline_mode<synchronous>, transform_indices = @transform_12, window_bounds = array<i64: 1, 64>}, {pipeline_mode = #tpu.pipeline_mode<synchronous>, transform_indices = @transform_13, window_bounds = array<i64: 64, 256>}, {pipeline_mode = #tpu.pipeline_mode<synchronous>, transform_indices = @transform_14, window_bounds = array<i64: 1, 256>}, {pipeline_mode = #tpu.pipeline_mode<synchronous>, transform_indices = @transform_15, window_bounds = array<i64: 256, 128>}, {pipeline_mode = #tpu.pipeline_mode<synchronous>, transform_indices = @transform_16, window_bounds = array<i64: 1, 128>}, {pipeline_mode = #tpu.pipeline_mode<synchronous>, transform_indices = @transform_17, window_bounds = array<i64: 4, 128>}, {pipeline_mode = #tpu.pipeline_mode<synchronous>, transform_indices = @transform_18, window_bounds = array<i64: 1, 128>}, {pipeline_mode = #tpu.pipeline_mode<synchronous>, transform_indices = @transform_19, window_bounds = array<i64: 128, 128>}, {pipeline_mode = #tpu.pipeline_mode<synchronous>, transform_indices = @transform_20, window_bounds = array<i64: 1, 128>}, {pipeline_mode = #tpu.pipeline_mode<synchronous>, transform_indices = @transform_21, window_bounds = array<i64: 6, 1, 128>}, {pipeline_mode = #tpu.pipeline_mode<synchronous>, transform_indices = @transform_22, window_bounds = array<i64: 6, 1, 128>}, {pipeline_mode = #tpu.pipeline_mode<synchronous>, transform_indices = @transform_23, window_bounds = array<i64: 6, 128, 128>}, {pipeline_mode = #tpu.pipeline_mode<synchronous>, transform_indices = @transform_24, window_bounds = array<i64: 6, 1, 128>}, {pipeline_mode = #tpu.pipeline_mode<synchronous>, transform_indices = @transform_25, window_bounds = array<i64: 6, 128, 128>}, {pipeline_mode = #tpu.pipeline_mode<synchronous>, transform_indices = @transform_26, window_bounds = array<i64: 6, 1, 128>}, {pipeline_mode = #tpu.pipeline_mode<synchronous>, transform_indices = @transform_27, window_bounds = array<i64: 6, 1, 128>}, {pipeline_mode = #tpu.pipeline_mode<synchronous>, transform_indices = @transform_28, window_bounds = array<i64: 6, 1, 128>}, {pipeline_mode = #tpu.pipeline_mode<synchronous>, transform_indices = @transform_29, window_bounds = array<i64: 6, 128, 512>}, {pipeline_mode = #tpu.pipeline_mode<synchronous>, transform_indices = @transform_30, window_bounds = array<i64: 6, 1, 512>}, {pipeline_mode = #tpu.pipeline_mode<synchronous>, transform_indices = @transform_31, window_bounds = array<i64: 6, 512, 128>}, {pipeline_mode = #tpu.pipeline_mode<synchronous>, transform_indices = @transform_32, window_bounds = array<i64: 6, 1, 128>}, {pipeline_mode = #tpu.pipeline_mode<synchronous>, transform_indices = @transform_33, window_bounds = array<i64: 1, 128>}, {pipeline_mode = #tpu.pipeline_mode<synchronous>, transform_indices = @transform_34, window_bounds = array<i64: 1, 128>}, {pipeline_mode = #tpu.pipeline_mode<synchronous>, transform_indices = @transform_35, window_bounds = array<i64: 128, 4>}, {pipeline_mode = #tpu.pipeline_mode<synchronous>, transform_indices = @transform_36, window_bounds = array<i64: 1, 4>}, {transform_indices = @transform_37, window_bounds = array<i64: 8, 4>}]} {
    %c0 = arith.constant 0 : index
    %c0_0 = arith.constant 0 : index
    %0 = vector.load %arg1[%c0, %c0_0] : memref<8x4xf32, #tpu.memory_space<vmem>>, vector<8x4xf32>
    %c0_1 = arith.constant 0 : index
    %c0_2 = arith.constant 0 : index
    %1 = vector.load %arg2[%c0_1, %c0_2] : memref<8x32xf32, #tpu.memory_space<vmem>>, vector<8x32xf32>
    %c0_3 = arith.constant 0 : index
    %c0_4 = arith.constant 0 : index
    %2 = vector.load %arg3[%c0_3, %c0_4] : memref<8x27xf32, #tpu.memory_space<vmem>>, vector<8x27xf32>
    %c0_5 = arith.constant 0 : index
    %c0_6 = arith.constant 0 : index
    %3 = vector.load %arg4[%c0_5, %c0_6] : memref<32x64xbf16, #tpu.memory_space<vmem>>, vector<32x64xbf16>
    %4 = arith.truncf %1 : vector<8x32xf32> to vector<8x32xbf16>
    %cst = arith.constant dense<0.000000e+00> : vector<8x64xf32>
    %5 = tpu.matmul %4, %3, %cst {dimension_numbers = #tpu.dot_dimension_numbers<[1], [0], [0], [1], [0, 0, 1, 1], [], []>} : vector<8x32xbf16>, vector<32x64xbf16>, vector<8x64xf32> -> vector<8x64xf32>
    %c0_7 = arith.constant 0 : index
    %c0_8 = arith.constant 0 : index
    %6 = vector.load %arg5[%c0_7, %c0_8] : memref<1x64xf32, #tpu.memory_space<vmem>>, vector<1x64xf32>
    %7 = vector.broadcast %6 : vector<1x64xf32> to vector<8x64xf32>
    %8 = arith.addf %5, %7 : vector<8x64xf32>
    %cst_9 = arith.constant 0.000000e+00 : f32
    %9 = vector.broadcast %cst_9 : f32 to vector<8x64xf32>
    %10 = arith.cmpf ogt, %8, %9 : vector<8x64xf32>
    %cst_10 = arith.constant 0.00999999977 : f32
    %11 = vector.broadcast %cst_10 : f32 to vector<8x64xf32>
    %12 = arith.mulf %11, %8 : vector<8x64xf32>
    %13 = arith.select %10, %8, %12 : vector<8x64xi1>, vector<8x64xf32>
    %c0_11 = arith.constant 0 : index
    %c0_12 = arith.constant 0 : index
    %14 = vector.load %arg6[%c0_11, %c0_12] : memref<64x32xbf16, #tpu.memory_space<vmem>>, vector<64x32xbf16>
    %15 = arith.truncf %13 : vector<8x64xf32> to vector<8x64xbf16>
    %cst_13 = arith.constant dense<0.000000e+00> : vector<8x32xf32>
    %16 = tpu.matmul %15, %14, %cst_13 {dimension_numbers = #tpu.dot_dimension_numbers<[1], [0], [0], [1], [0, 0, 1, 1], [], []>} : vector<8x64xbf16>, vector<64x32xbf16>, vector<8x32xf32> -> vector<8x32xf32>
    %c0_14 = arith.constant 0 : index
    %c0_15 = arith.constant 0 : index
    %17 = vector.load %arg7[%c0_14, %c0_15] : memref<1x32xf32, #tpu.memory_space<vmem>>, vector<1x32xf32>
    %18 = vector.broadcast %17 : vector<1x32xf32> to vector<8x32xf32>
    %19 = arith.addf %16, %18 : vector<8x32xf32>
    %cst_16 = arith.constant 0.000000e+00 : f32
    %20 = vector.broadcast %cst_16 : f32 to vector<8x32xf32>
    %21 = arith.cmpf ogt, %19, %20 : vector<8x32xf32>
    %cst_17 = arith.constant 0.00999999977 : f32
    %22 = vector.broadcast %cst_17 : f32 to vector<8x32xf32>
    %23 = arith.mulf %22, %19 : vector<8x32xf32>
    %24 = arith.select %21, %19, %23 : vector<8x32xi1>, vector<8x32xf32>
    %c0_18 = arith.constant 0 : index
    %c0_19 = arith.constant 0 : index
    %25 = vector.load %arg8[%c0_18, %c0_19] : memref<27x64xbf16, #tpu.memory_space<vmem>>, vector<27x64xbf16>
    %26 = arith.truncf %2 : vector<8x27xf32> to vector<8x27xbf16>
    %cst_20 = arith.constant dense<0.000000e+00> : vector<8x64xf32>
    %27 = tpu.matmul %26, %25, %cst_20 {dimension_numbers = #tpu.dot_dimension_numbers<[1], [0], [0], [1], [0, 0, 1, 1], [], []>} : vector<8x27xbf16>, vector<27x64xbf16>, vector<8x64xf32> -> vector<8x64xf32>
    %c0_21 = arith.constant 0 : index
    %c0_22 = arith.constant 0 : index
    %28 = vector.load %arg9[%c0_21, %c0_22] : memref<1x64xf32, #tpu.memory_space<vmem>>, vector<1x64xf32>
    %29 = vector.broadcast %28 : vector<1x64xf32> to vector<8x64xf32>
    %30 = arith.addf %27, %29 : vector<8x64xf32>
    %c0_23 = arith.constant 0 : index
    %c0_24 = arith.constant 0 : index
    %31 = vector.load %arg10[%c0_23, %c0_24] : memref<64x32xbf16, #tpu.memory_space<vmem>>, vector<64x32xbf16>
    %32 = arith.truncf %30 : vector<8x64xf32> to vector<8x64xbf16>
    %cst_25 = arith.constant dense<0.000000e+00> : vector<8x32xf32>
    %33 = tpu.matmul %32, %31, %cst_25 {dimension_numbers = #tpu.dot_dimension_numbers<[1], [0], [0], [1], [0, 0, 1, 1], [], []>} : vector<8x64xbf16>, vector<64x32xbf16>, vector<8x32xf32> -> vector<8x32xf32>
    %c0_26 = arith.constant 0 : index
    %c0_27 = arith.constant 0 : index
    %34 = vector.load %arg11[%c0_26, %c0_27] : memref<1x32xf32, #tpu.memory_space<vmem>>, vector<1x32xf32>
    %35 = vector.broadcast %34 : vector<1x32xf32> to vector<8x32xf32>
    %36 = arith.addf %33, %35 : vector<8x32xf32>
    %cst_28 = arith.constant 0.000000e+00 : f32
    %37 = vector.broadcast %cst_28 : f32 to vector<8x32xf32>
    %38 = arith.cmpf ogt, %36, %37 : vector<8x32xf32>
    %cst_29 = arith.constant 0.00999999977 : f32
    %39 = vector.broadcast %cst_29 : f32 to vector<8x32xf32>
    %40 = arith.mulf %39, %36 : vector<8x32xf32>
    %41 = arith.select %38, %36, %40 : vector<8x32xi1>, vector<8x32xf32>
    %c0_30 = arith.constant 0 : index
    %c0_31 = arith.constant 0 : index
    %42 = vector.load %arg12[%c0_30, %c0_31] : memref<64x64xbf16, #tpu.memory_space<vmem>>, vector<64x64xbf16>
    %43 = vector.extract_strided_slice %42 {offsets = [0, 0], sizes = [32, 64], strides = [1, 1]} : vector<64x64xbf16> to vector<32x64xbf16>
    %44 = arith.truncf %24 : vector<8x32xf32> to vector<8x32xbf16>
    %cst_32 = arith.constant dense<0.000000e+00> : vector<8x64xf32>
    %45 = tpu.matmul %44, %43, %cst_32 {dimension_numbers = #tpu.dot_dimension_numbers<[1], [0], [0], [1], [0, 0, 1, 1], [], []>} : vector<8x32xbf16>, vector<32x64xbf16>, vector<8x64xf32> -> vector<8x64xf32>
    %46 = vector.extract_strided_slice %42 {offsets = [32, 0], sizes = [32, 64], strides = [1, 1]} : vector<64x64xbf16> to vector<32x64xbf16>
    %47 = arith.truncf %41 : vector<8x32xf32> to vector<8x32xbf16>
    %cst_33 = arith.constant dense<0.000000e+00> : vector<8x64xf32>
    %48 = tpu.matmul %47, %46, %cst_33 {dimension_numbers = #tpu.dot_dimension_numbers<[1], [0], [0], [1], [0, 0, 1, 1], [], []>} : vector<8x32xbf16>, vector<32x64xbf16>, vector<8x64xf32> -> vector<8x64xf32>
    %49 = arith.addf %45, %48 : vector<8x64xf32>
    %c0_34 = arith.constant 0 : index
    %c0_35 = arith.constant 0 : index
    %50 = vector.load %arg13[%c0_34, %c0_35] : memref<1x64xf32, #tpu.memory_space<vmem>>, vector<1x64xf32>
    %51 = vector.broadcast %50 : vector<1x64xf32> to vector<8x64xf32>
    %52 = arith.addf %49, %51 : vector<8x64xf32>
    %cst_36 = arith.constant 0.000000e+00 : f32
    %53 = vector.broadcast %cst_36 : f32 to vector<8x64xf32>
    %54 = arith.cmpf ogt, %52, %53 : vector<8x64xf32>
    %cst_37 = arith.constant 0.00999999977 : f32
    %55 = vector.broadcast %cst_37 : f32 to vector<8x64xf32>
    %56 = arith.mulf %55, %52 : vector<8x64xf32>
    %57 = arith.select %54, %52, %56 : vector<8x64xi1>, vector<8x64xf32>
    %c0_38 = arith.constant 0 : index
    %c0_39 = arith.constant 0 : index
    %58 = vector.load %arg14[%c0_38, %c0_39] : memref<64x256xbf16, #tpu.memory_space<vmem>>, vector<64x256xbf16>
    %59 = arith.truncf %57 : vector<8x64xf32> to vector<8x64xbf16>
    %cst_40 = arith.constant dense<0.000000e+00> : vector<8x256xf32>
    %60 = tpu.matmul %59, %58, %cst_40 {dimension_numbers = #tpu.dot_dimension_numbers<[1], [0], [0], [1], [0, 0, 1, 1], [], []>} : vector<8x64xbf16>, vector<64x256xbf16>, vector<8x256xf32> -> vector<8x256xf32>
    %c0_41 = arith.constant 0 : index
    %c0_42 = arith.constant 0 : index
    %61 = vector.load %arg15[%c0_41, %c0_42] : memref<1x256xf32, #tpu.memory_space<vmem>>, vector<1x256xf32>
    %62 = vector.broadcast %61 : vector<1x256xf32> to vector<8x256xf32>
    %63 = arith.addf %60, %62 : vector<8x256xf32>
    %cst_43 = arith.constant 0.000000e+00 : f32
    %64 = vector.broadcast %cst_43 : f32 to vector<8x256xf32>
    %65 = arith.cmpf ogt, %63, %64 : vector<8x256xf32>
    %cst_44 = arith.constant 0.00999999977 : f32
    %66 = vector.broadcast %cst_44 : f32 to vector<8x256xf32>
    %67 = arith.mulf %66, %63 : vector<8x256xf32>
    %68 = arith.select %65, %63, %67 : vector<8x256xi1>, vector<8x256xf32>
    %c0_45 = arith.constant 0 : index
    %c0_46 = arith.constant 0 : index
    %69 = vector.load %arg16[%c0_45, %c0_46] : memref<256x128xbf16, #tpu.memory_space<vmem>>, vector<256x128xbf16>
    %70 = arith.truncf %68 : vector<8x256xf32> to vector<8x256xbf16>
    %cst_47 = arith.constant dense<0.000000e+00> : vector<8x128xf32>
    %71 = tpu.matmul %70, %69, %cst_47 {dimension_numbers = #tpu.dot_dimension_numbers<[1], [0], [0], [1], [0, 0, 1, 1], [], []>} : vector<8x256xbf16>, vector<256x128xbf16>, vector<8x128xf32> -> vector<8x128xf32>
    %c0_48 = arith.constant 0 : index
    %c0_49 = arith.constant 0 : index
    %72 = vector.load %arg17[%c0_48, %c0_49] : memref<1x128xf32, #tpu.memory_space<vmem>>, vector<1x128xf32>
    %73 = vector.broadcast %72 : vector<1x128xf32> to vector<8x128xf32>
    %74 = arith.addf %71, %73 : vector<8x128xf32>
    %c0_50 = arith.constant 0 : index
    %c0_51 = arith.constant 0 : index
    %75 = vector.load %arg18[%c0_50, %c0_51] : memref<4x128xbf16, #tpu.memory_space<vmem>>, vector<4x128xbf16>
    %76 = arith.truncf %0 : vector<8x4xf32> to vector<8x4xbf16>
    %cst_52 = arith.constant dense<0.000000e+00> : vector<8x128xf32>
    %77 = tpu.matmul %76, %75, %cst_52 {dimension_numbers = #tpu.dot_dimension_numbers<[1], [0], [0], [1], [0, 0, 1, 1], [], []>} : vector<8x4xbf16>, vector<4x128xbf16>, vector<8x128xf32> -> vector<8x128xf32>
    %c0_53 = arith.constant 0 : index
    %c0_54 = arith.constant 0 : index
    %78 = vector.load %arg19[%c0_53, %c0_54] : memref<1x128xf32, #tpu.memory_space<vmem>>, vector<1x128xf32>
    %79 = vector.broadcast %78 : vector<1x128xf32> to vector<8x128xf32>
    %80 = arith.addf %77, %79 : vector<8x128xf32>
    %cst_55 = arith.constant 0.000000e+00 : f32
    %81 = vector.broadcast %cst_55 : f32 to vector<8x128xf32>
    %82 = arith.cmpf ogt, %80, %81 : vector<8x128xf32>
    %cst_56 = arith.constant 0.00999999977 : f32
    %83 = vector.broadcast %cst_56 : f32 to vector<8x128xf32>
    %84 = arith.mulf %83, %80 : vector<8x128xf32>
    %85 = arith.select %82, %80, %84 : vector<8x128xi1>, vector<8x128xf32>
    %c0_57 = arith.constant 0 : index
    %c0_58 = arith.constant 0 : index
    %86 = vector.load %arg20[%c0_57, %c0_58] : memref<128x128xbf16, #tpu.memory_space<vmem>>, vector<128x128xbf16>
    %87 = arith.truncf %85 : vector<8x128xf32> to vector<8x128xbf16>
    %cst_59 = arith.constant dense<0.000000e+00> : vector<8x128xf32>
    %88 = tpu.matmul %87, %86, %cst_59 {dimension_numbers = #tpu.dot_dimension_numbers<[1], [0], [0], [1], [0, 0, 1, 1], [], []>} : vector<8x128xbf16>, vector<128x128xbf16>, vector<8x128xf32> -> vector<8x128xf32>
    %c0_60 = arith.constant 0 : index
    %c0_61 = arith.constant 0 : index
    %89 = vector.load %arg21[%c0_60, %c0_61] : memref<1x128xf32, #tpu.memory_space<vmem>>, vector<1x128xf32>
    %90 = vector.broadcast %89 : vector<1x128xf32> to vector<8x128xf32>
    %91 = arith.addf %88, %90 : vector<8x128xf32>
    %92 = arith.addf %91, %74 : vector<8x128xf32>
    %c0_62 = arith.constant 0 : index
    %c0_63 = arith.constant 0 : index
    %c0_64 = arith.constant 0 : index
    %93 = vector.load %arg22[%c0_62, %c0_63, %c0_64] : memref<6x1x128xf32, #tpu.memory_space<vmem>>, vector<1x1x128xf32>
    %94 = vector.shape_cast %93 : vector<1x1x128xf32> to vector<1x128xf32>
    %c0_65 = arith.constant 0 : index
    %c0_66 = arith.constant 0 : index
    %c0_67 = arith.constant 0 : index
    %95 = vector.load %arg23[%c0_65, %c0_66, %c0_67] : memref<6x1x128xf32, #tpu.memory_space<vmem>>, vector<1x1x128xf32>
    %96 = vector.shape_cast %95 : vector<1x1x128xf32> to vector<1x128xf32>
    %cst_68 = arith.constant dense<0.000000e+00> : vector<8xf32>
    %97 = vector.multi_reduction <add>, %92, %cst_68 [1] : vector<8x128xf32> to vector<8xf32>
    %98 = vector.shape_cast %97 : vector<8xf32> to vector<8x1xf32>
    %cst_69 = arith.constant 1.280000e+02 : f32
    %99 = vector.broadcast %cst_69 : f32 to vector<8x1xf32>
    %100 = arith.divf %98, %99 : vector<8x1xf32>
    %101 = vector.broadcast %100 : vector<8x1xf32> to vector<8x128xf32>
    %102 = arith.subf %92, %101 : vector<8x128xf32>
    %103 = arith.mulf %102, %102 : vector<8x128xf32>
    %cst_70 = arith.constant dense<0.000000e+00> : vector<8xf32>
    %104 = vector.multi_reduction <add>, %103, %cst_70 [1] : vector<8x128xf32> to vector<8xf32>
    %105 = vector.shape_cast %104 : vector<8xf32> to vector<8x1xf32>
    %cst_71 = arith.constant 1.280000e+02 : f32
    %106 = vector.broadcast %cst_71 : f32 to vector<8x1xf32>
    %107 = arith.divf %105, %106 : vector<8x1xf32>
    %108 = vector.broadcast %100 : vector<8x1xf32> to vector<8x128xf32>
    %109 = arith.subf %92, %108 : vector<8x128xf32>
    %cst_72 = arith.constant 9.99999974E-6 : f32
    %110 = vector.broadcast %cst_72 : f32 to vector<8x1xf32>
    %111 = arith.addf %107, %110 : vector<8x1xf32>
    %112 = math.rsqrt %111 : vector<8x1xf32>
    %113 = vector.broadcast %112 : vector<8x1xf32> to vector<8x128xf32>
    %114 = arith.mulf %109, %113 : vector<8x128xf32>
    %115 = vector.broadcast %94 : vector<1x128xf32> to vector<8x128xf32>
    %116 = arith.mulf %114, %115 : vector<8x128xf32>
    %117 = vector.broadcast %96 : vector<1x128xf32> to vector<8x128xf32>
    %118 = arith.addf %116, %117 : vector<8x128xf32>
    %c0_73 = arith.constant 0 : index
    %c0_74 = arith.constant 0 : index
    %c0_75 = arith.constant 0 : index
    %119 = vector.load %arg24[%c0_73, %c0_74, %c0_75] : memref<6x128x128xbf16, #tpu.memory_space<vmem>>, vector<1x128x128xbf16>
    %120 = vector.shape_cast %119 : vector<1x128x128xbf16> to vector<128x128xbf16>
    %121 = arith.truncf %118 : vector<8x128xf32> to vector<8x128xbf16>
    %cst_76 = arith.constant dense<0.000000e+00> : vector<8x128xf32>
    %122 = tpu.matmul %121, %120, %cst_76 {dimension_numbers = #tpu.dot_dimension_numbers<[1], [0], [0], [1], [0, 0, 1, 1], [], []>} : vector<8x128xbf16>, vector<128x128xbf16>, vector<8x128xf32> -> vector<8x128xf32>
    %c0_77 = arith.constant 0 : index
    %c0_78 = arith.constant 0 : index
    %c0_79 = arith.constant 0 : index
    %123 = vector.load %arg25[%c0_77, %c0_78, %c0_79] : memref<6x1x128xf32, #tpu.memory_space<vmem>>, vector<1x1x128xf32>
    %124 = vector.shape_cast %123 : vector<1x1x128xf32> to vector<1x128xf32>
    %125 = vector.broadcast %124 : vector<1x128xf32> to vector<8x128xf32>
    %126 = arith.addf %122, %125 : vector<8x128xf32>
    %c0_80 = arith.constant 0 : index
    %c0_81 = arith.constant 0 : index
    %c0_82 = arith.constant 0 : index
    %127 = vector.load %arg26[%c0_80, %c0_81, %c0_82] : memref<6x128x128xbf16, #tpu.memory_space<vmem>>, vector<1x128x128xbf16>
    %128 = vector.shape_cast %127 : vector<1x128x128xbf16> to vector<128x128xbf16>
    %129 = arith.truncf %126 : vector<8x128xf32> to vector<8x128xbf16>
    %cst_83 = arith.constant dense<0.000000e+00> : vector<8x128xf32>
    %130 = tpu.matmul %129, %128, %cst_83 {dimension_numbers = #tpu.dot_dimension_numbers<[1], [0], [0], [1], [0, 0, 1, 1], [], []>} : vector<8x128xbf16>, vector<128x128xbf16>, vector<8x128xf32> -> vector<8x128xf32>
    %c0_84 = arith.constant 0 : index
    %c0_85 = arith.constant 0 : index
    %c0_86 = arith.constant 0 : index
    %131 = vector.load %arg27[%c0_84, %c0_85, %c0_86] : memref<6x1x128xf32, #tpu.memory_space<vmem>>, vector<1x1x128xf32>
    %132 = vector.shape_cast %131 : vector<1x1x128xf32> to vector<1x128xf32>
    %133 = vector.broadcast %132 : vector<1x128xf32> to vector<8x128xf32>
    %134 = arith.addf %130, %133 : vector<8x128xf32>
    %135 = arith.addf %134, %91 : vector<8x128xf32>
    %c0_87 = arith.constant 0 : index
    %c0_88 = arith.constant 0 : index
    %c0_89 = arith.constant 0 : index
    %136 = vector.load %arg28[%c0_87, %c0_88, %c0_89] : memref<6x1x128xf32, #tpu.memory_space<vmem>>, vector<1x1x128xf32>
    %137 = vector.shape_cast %136 : vector<1x1x128xf32> to vector<1x128xf32>
    %c0_90 = arith.constant 0 : index
    %c0_91 = arith.constant 0 : index
    %c0_92 = arith.constant 0 : index
    %138 = vector.load %arg29[%c0_90, %c0_91, %c0_92] : memref<6x1x128xf32, #tpu.memory_space<vmem>>, vector<1x1x128xf32>
    %139 = vector.shape_cast %138 : vector<1x1x128xf32> to vector<1x128xf32>
    %cst_93 = arith.constant dense<0.000000e+00> : vector<8xf32>
    %140 = vector.multi_reduction <add>, %135, %cst_93 [1] : vector<8x128xf32> to vector<8xf32>
    %141 = vector.shape_cast %140 : vector<8xf32> to vector<8x1xf32>
    %cst_94 = arith.constant 1.280000e+02 : f32
    %142 = vector.broadcast %cst_94 : f32 to vector<8x1xf32>
    %143 = arith.divf %141, %142 : vector<8x1xf32>
    %144 = vector.broadcast %143 : vector<8x1xf32> to vector<8x128xf32>
    %145 = arith.subf %135, %144 : vector<8x128xf32>
    %146 = arith.mulf %145, %145 : vector<8x128xf32>
    %cst_95 = arith.constant dense<0.000000e+00> : vector<8xf32>
    %147 = vector.multi_reduction <add>, %146, %cst_95 [1] : vector<8x128xf32> to vector<8xf32>
    %148 = vector.shape_cast %147 : vector<8xf32> to vector<8x1xf32>
    %cst_96 = arith.constant 1.280000e+02 : f32
    %149 = vector.broadcast %cst_96 : f32 to vector<8x1xf32>
    %150 = arith.divf %148, %149 : vector<8x1xf32>
    %151 = vector.broadcast %143 : vector<8x1xf32> to vector<8x128xf32>
    %152 = arith.subf %135, %151 : vector<8x128xf32>
    %cst_97 = arith.constant 9.99999974E-6 : f32
    %153 = vector.broadcast %cst_97 : f32 to vector<8x1xf32>
    %154 = arith.addf %150, %153 : vector<8x1xf32>
    %155 = math.rsqrt %154 : vector<8x1xf32>
    %156 = vector.broadcast %155 : vector<8x1xf32> to vector<8x128xf32>
    %157 = arith.mulf %152, %156 : vector<8x128xf32>
    %158 = vector.broadcast %137 : vector<1x128xf32> to vector<8x128xf32>
    %159 = arith.mulf %157, %158 : vector<8x128xf32>
    %160 = vector.broadcast %139 : vector<1x128xf32> to vector<8x128xf32>
    %161 = arith.addf %159, %160 : vector<8x128xf32>
    %c0_98 = arith.constant 0 : index
    %c0_99 = arith.constant 0 : index
    %c0_100 = arith.constant 0 : index
    %162 = vector.load %arg30[%c0_98, %c0_99, %c0_100] : memref<6x128x512xbf16, #tpu.memory_space<vmem>>, vector<1x128x512xbf16>
    %163 = vector.shape_cast %162 : vector<1x128x512xbf16> to vector<128x512xbf16>
    %164 = arith.truncf %161 : vector<8x128xf32> to vector<8x128xbf16>
    %cst_101 = arith.constant dense<0.000000e+00> : vector<8x512xf32>
    %165 = tpu.matmul %164, %163, %cst_101 {dimension_numbers = #tpu.dot_dimension_numbers<[1], [0], [0], [1], [0, 0, 1, 1], [], []>} : vector<8x128xbf16>, vector<128x512xbf16>, vector<8x512xf32> -> vector<8x512xf32>
    %c0_102 = arith.constant 0 : index
    %c0_103 = arith.constant 0 : index
    %c0_104 = arith.constant 0 : index
    %166 = vector.load %arg31[%c0_102, %c0_103, %c0_104] : memref<6x1x512xf32, #tpu.memory_space<vmem>>, vector<1x1x512xf32>
    %167 = vector.shape_cast %166 : vector<1x1x512xf32> to vector<1x512xf32>
    %168 = vector.broadcast %167 : vector<1x512xf32> to vector<8x512xf32>
    %169 = arith.addf %165, %168 : vector<8x512xf32>
    %cst_105 = arith.constant 5.000000e-01 : f32
    %170 = vector.broadcast %cst_105 : f32 to vector<8x512xf32>
    %171 = arith.mulf %170, %169 : vector<8x512xf32>
    %cst_106 = arith.constant 4.471500e-02 : f32
    %172 = vector.broadcast %cst_106 : f32 to vector<8x512xf32>
    %173 = arith.mulf %172, %169 : vector<8x512xf32>
    %174 = arith.mulf %173, %169 : vector<8x512xf32>
    %175 = arith.mulf %174, %169 : vector<8x512xf32>
    %176 = arith.addf %169, %175 : vector<8x512xf32>
    %cst_107 = arith.constant 0.797884583 : f32
    %177 = vector.broadcast %cst_107 : f32 to vector<8x512xf32>
    %178 = arith.mulf %177, %176 : vector<8x512xf32>
    %179 = math.tanh %178 : vector<8x512xf32>
    %cst_108 = arith.constant 1.000000e+00 : f32
    %180 = vector.broadcast %cst_108 : f32 to vector<8x512xf32>
    %181 = arith.addf %180, %179 : vector<8x512xf32>
    %182 = arith.mulf %171, %181 : vector<8x512xf32>
    %c0_109 = arith.constant 0 : index
    %c0_110 = arith.constant 0 : index
    %c0_111 = arith.constant 0 : index
    %183 = vector.load %arg32[%c0_109, %c0_110, %c0_111] : memref<6x512x128xbf16, #tpu.memory_space<vmem>>, vector<1x512x128xbf16>
    %184 = vector.shape_cast %183 : vector<1x512x128xbf16> to vector<512x128xbf16>
    %185 = arith.truncf %182 : vector<8x512xf32> to vector<8x512xbf16>
    %cst_112 = arith.constant dense<0.000000e+00> : vector<8x128xf32>
    %186 = tpu.matmul %185, %184, %cst_112 {dimension_numbers = #tpu.dot_dimension_numbers<[1], [0], [0], [1], [0, 0, 1, 1], [], []>} : vector<8x512xbf16>, vector<512x128xbf16>, vector<8x128xf32> -> vector<8x128xf32>
    %c0_113 = arith.constant 0 : index
    %c0_114 = arith.constant 0 : index
    %c0_115 = arith.constant 0 : index
    %187 = vector.load %arg33[%c0_113, %c0_114, %c0_115] : memref<6x1x128xf32, #tpu.memory_space<vmem>>, vector<1x1x128xf32>
    %188 = vector.shape_cast %187 : vector<1x1x128xf32> to vector<1x128xf32>
    %189 = vector.broadcast %188 : vector<1x128xf32> to vector<8x128xf32>
    %190 = arith.addf %186, %189 : vector<8x128xf32>
    %cst_116 = arith.constant 5.000000e-01 : f32
    %191 = vector.broadcast %cst_116 : f32 to vector<8x128xf32>
    %192 = arith.mulf %191, %190 : vector<8x128xf32>
    %cst_117 = arith.constant 4.471500e-02 : f32
    %193 = vector.broadcast %cst_117 : f32 to vector<8x128xf32>
    %194 = arith.mulf %193, %190 : vector<8x128xf32>
    %195 = arith.mulf %194, %190 : vector<8x128xf32>
    %196 = arith.mulf %195, %190 : vector<8x128xf32>
    %197 = arith.addf %190, %196 : vector<8x128xf32>
    %cst_118 = arith.constant 0.797884583 : f32
    %198 = vector.broadcast %cst_118 : f32 to vector<8x128xf32>
    %199 = arith.mulf %198, %197 : vector<8x128xf32>
    %200 = math.tanh %199 : vector<8x128xf32>
    %cst_119 = arith.constant 1.000000e+00 : f32
    %201 = vector.broadcast %cst_119 : f32 to vector<8x128xf32>
    %202 = arith.addf %201, %200 : vector<8x128xf32>
    %203 = arith.mulf %192, %202 : vector<8x128xf32>
    %204 = arith.addf %203, %135 : vector<8x128xf32>
    %205 = arith.addf %204, %74 : vector<8x128xf32>
    %c1 = arith.constant 1 : index
    %c0_120 = arith.constant 0 : index
    %c0_121 = arith.constant 0 : index
    %206 = vector.load %arg22[%c1, %c0_120, %c0_121] : memref<6x1x128xf32, #tpu.memory_space<vmem>>, vector<1x1x128xf32>
    %207 = vector.shape_cast %206 : vector<1x1x128xf32> to vector<1x128xf32>
    %c1_122 = arith.constant 1 : index
    %c0_123 = arith.constant 0 : index
    %c0_124 = arith.constant 0 : index
    %208 = vector.load %arg23[%c1_122, %c0_123, %c0_124] : memref<6x1x128xf32, #tpu.memory_space<vmem>>, vector<1x1x128xf32>
    %209 = vector.shape_cast %208 : vector<1x1x128xf32> to vector<1x128xf32>
    %cst_125 = arith.constant dense<0.000000e+00> : vector<8xf32>
    %210 = vector.multi_reduction <add>, %205, %cst_125 [1] : vector<8x128xf32> to vector<8xf32>
    %211 = vector.shape_cast %210 : vector<8xf32> to vector<8x1xf32>
    %cst_126 = arith.constant 1.280000e+02 : f32
    %212 = vector.broadcast %cst_126 : f32 to vector<8x1xf32>
    %213 = arith.divf %211, %212 : vector<8x1xf32>
    %214 = vector.broadcast %213 : vector<8x1xf32> to vector<8x128xf32>
    %215 = arith.subf %205, %214 : vector<8x128xf32>
    %216 = arith.mulf %215, %215 : vector<8x128xf32>
    %cst_127 = arith.constant dense<0.000000e+00> : vector<8xf32>
    %217 = vector.multi_reduction <add>, %216, %cst_127 [1] : vector<8x128xf32> to vector<8xf32>
    %218 = vector.shape_cast %217 : vector<8xf32> to vector<8x1xf32>
    %cst_128 = arith.constant 1.280000e+02 : f32
    %219 = vector.broadcast %cst_128 : f32 to vector<8x1xf32>
    %220 = arith.divf %218, %219 : vector<8x1xf32>
    %221 = vector.broadcast %213 : vector<8x1xf32> to vector<8x128xf32>
    %222 = arith.subf %205, %221 : vector<8x128xf32>
    %cst_129 = arith.constant 9.99999974E-6 : f32
    %223 = vector.broadcast %cst_129 : f32 to vector<8x1xf32>
    %224 = arith.addf %220, %223 : vector<8x1xf32>
    %225 = math.rsqrt %224 : vector<8x1xf32>
    %226 = vector.broadcast %225 : vector<8x1xf32> to vector<8x128xf32>
    %227 = arith.mulf %222, %226 : vector<8x128xf32>
    %228 = vector.broadcast %207 : vector<1x128xf32> to vector<8x128xf32>
    %229 = arith.mulf %227, %228 : vector<8x128xf32>
    %230 = vector.broadcast %209 : vector<1x128xf32> to vector<8x128xf32>
    %231 = arith.addf %229, %230 : vector<8x128xf32>
    %c1_130 = arith.constant 1 : index
    %c0_131 = arith.constant 0 : index
    %c0_132 = arith.constant 0 : index
    %232 = vector.load %arg24[%c1_130, %c0_131, %c0_132] : memref<6x128x128xbf16, #tpu.memory_space<vmem>>, vector<1x128x128xbf16>
    %233 = vector.shape_cast %232 : vector<1x128x128xbf16> to vector<128x128xbf16>
    %234 = arith.truncf %231 : vector<8x128xf32> to vector<8x128xbf16>
    %cst_133 = arith.constant dense<0.000000e+00> : vector<8x128xf32>
    %235 = tpu.matmul %234, %233, %cst_133 {dimension_numbers = #tpu.dot_dimension_numbers<[1], [0], [0], [1], [0, 0, 1, 1], [], []>} : vector<8x128xbf16>, vector<128x128xbf16>, vector<8x128xf32> -> vector<8x128xf32>
    %c1_134 = arith.constant 1 : index
    %c0_135 = arith.constant 0 : index
    %c0_136 = arith.constant 0 : index
    %236 = vector.load %arg25[%c1_134, %c0_135, %c0_136] : memref<6x1x128xf32, #tpu.memory_space<vmem>>, vector<1x1x128xf32>
    %237 = vector.shape_cast %236 : vector<1x1x128xf32> to vector<1x128xf32>
    %238 = vector.broadcast %237 : vector<1x128xf32> to vector<8x128xf32>
    %239 = arith.addf %235, %238 : vector<8x128xf32>
    %c1_137 = arith.constant 1 : index
    %c0_138 = arith.constant 0 : index
    %c0_139 = arith.constant 0 : index
    %240 = vector.load %arg26[%c1_137, %c0_138, %c0_139] : memref<6x128x128xbf16, #tpu.memory_space<vmem>>, vector<1x128x128xbf16>
    %241 = vector.shape_cast %240 : vector<1x128x128xbf16> to vector<128x128xbf16>
    %242 = arith.truncf %239 : vector<8x128xf32> to vector<8x128xbf16>
    %cst_140 = arith.constant dense<0.000000e+00> : vector<8x128xf32>
    %243 = tpu.matmul %242, %241, %cst_140 {dimension_numbers = #tpu.dot_dimension_numbers<[1], [0], [0], [1], [0, 0, 1, 1], [], []>} : vector<8x128xbf16>, vector<128x128xbf16>, vector<8x128xf32> -> vector<8x128xf32>
    %c1_141 = arith.constant 1 : index
    %c0_142 = arith.constant 0 : index
    %c0_143 = arith.constant 0 : index
    %244 = vector.load %arg27[%c1_141, %c0_142, %c0_143] : memref<6x1x128xf32, #tpu.memory_space<vmem>>, vector<1x1x128xf32>
    %245 = vector.shape_cast %244 : vector<1x1x128xf32> to vector<1x128xf32>
    %246 = vector.broadcast %245 : vector<1x128xf32> to vector<8x128xf32>
    %247 = arith.addf %243, %246 : vector<8x128xf32>
    %248 = arith.addf %247, %204 : vector<8x128xf32>
    %c1_144 = arith.constant 1 : index
    %c0_145 = arith.constant 0 : index
    %c0_146 = arith.constant 0 : index
    %249 = vector.load %arg28[%c1_144, %c0_145, %c0_146] : memref<6x1x128xf32, #tpu.memory_space<vmem>>, vector<1x1x128xf32>
    %250 = vector.shape_cast %249 : vector<1x1x128xf32> to vector<1x128xf32>
    %c1_147 = arith.constant 1 : index
    %c0_148 = arith.constant 0 : index
    %c0_149 = arith.constant 0 : index
    %251 = vector.load %arg29[%c1_147, %c0_148, %c0_149] : memref<6x1x128xf32, #tpu.memory_space<vmem>>, vector<1x1x128xf32>
    %252 = vector.shape_cast %251 : vector<1x1x128xf32> to vector<1x128xf32>
    %cst_150 = arith.constant dense<0.000000e+00> : vector<8xf32>
    %253 = vector.multi_reduction <add>, %248, %cst_150 [1] : vector<8x128xf32> to vector<8xf32>
    %254 = vector.shape_cast %253 : vector<8xf32> to vector<8x1xf32>
    %cst_151 = arith.constant 1.280000e+02 : f32
    %255 = vector.broadcast %cst_151 : f32 to vector<8x1xf32>
    %256 = arith.divf %254, %255 : vector<8x1xf32>
    %257 = vector.broadcast %256 : vector<8x1xf32> to vector<8x128xf32>
    %258 = arith.subf %248, %257 : vector<8x128xf32>
    %259 = arith.mulf %258, %258 : vector<8x128xf32>
    %cst_152 = arith.constant dense<0.000000e+00> : vector<8xf32>
    %260 = vector.multi_reduction <add>, %259, %cst_152 [1] : vector<8x128xf32> to vector<8xf32>
    %261 = vector.shape_cast %260 : vector<8xf32> to vector<8x1xf32>
    %cst_153 = arith.constant 1.280000e+02 : f32
    %262 = vector.broadcast %cst_153 : f32 to vector<8x1xf32>
    %263 = arith.divf %261, %262 : vector<8x1xf32>
    %264 = vector.broadcast %256 : vector<8x1xf32> to vector<8x128xf32>
    %265 = arith.subf %248, %264 : vector<8x128xf32>
    %cst_154 = arith.constant 9.99999974E-6 : f32
    %266 = vector.broadcast %cst_154 : f32 to vector<8x1xf32>
    %267 = arith.addf %263, %266 : vector<8x1xf32>
    %268 = math.rsqrt %267 : vector<8x1xf32>
    %269 = vector.broadcast %268 : vector<8x1xf32> to vector<8x128xf32>
    %270 = arith.mulf %265, %269 : vector<8x128xf32>
    %271 = vector.broadcast %250 : vector<1x128xf32> to vector<8x128xf32>
    %272 = arith.mulf %270, %271 : vector<8x128xf32>
    %273 = vector.broadcast %252 : vector<1x128xf32> to vector<8x128xf32>
    %274 = arith.addf %272, %273 : vector<8x128xf32>
    %c1_155 = arith.constant 1 : index
    %c0_156 = arith.constant 0 : index
    %c0_157 = arith.constant 0 : index
    %275 = vector.load %arg30[%c1_155, %c0_156, %c0_157] : memref<6x128x512xbf16, #tpu.memory_space<vmem>>, vector<1x128x512xbf16>
    %276 = vector.shape_cast %275 : vector<1x128x512xbf16> to vector<128x512xbf16>
    %277 = arith.truncf %274 : vector<8x128xf32> to vector<8x128xbf16>
    %cst_158 = arith.constant dense<0.000000e+00> : vector<8x512xf32>
    %278 = tpu.matmul %277, %276, %cst_158 {dimension_numbers = #tpu.dot_dimension_numbers<[1], [0], [0], [1], [0, 0, 1, 1], [], []>} : vector<8x128xbf16>, vector<128x512xbf16>, vector<8x512xf32> -> vector<8x512xf32>
    %c1_159 = arith.constant 1 : index
    %c0_160 = arith.constant 0 : index
    %c0_161 = arith.constant 0 : index
    %279 = vector.load %arg31[%c1_159, %c0_160, %c0_161] : memref<6x1x512xf32, #tpu.memory_space<vmem>>, vector<1x1x512xf32>
    %280 = vector.shape_cast %279 : vector<1x1x512xf32> to vector<1x512xf32>
    %281 = vector.broadcast %280 : vector<1x512xf32> to vector<8x512xf32>
    %282 = arith.addf %278, %281 : vector<8x512xf32>
    %cst_162 = arith.constant 5.000000e-01 : f32
    %283 = vector.broadcast %cst_162 : f32 to vector<8x512xf32>
    %284 = arith.mulf %283, %282 : vector<8x512xf32>
    %cst_163 = arith.constant 4.471500e-02 : f32
    %285 = vector.broadcast %cst_163 : f32 to vector<8x512xf32>
    %286 = arith.mulf %285, %282 : vector<8x512xf32>
    %287 = arith.mulf %286, %282 : vector<8x512xf32>
    %288 = arith.mulf %287, %282 : vector<8x512xf32>
    %289 = arith.addf %282, %288 : vector<8x512xf32>
    %cst_164 = arith.constant 0.797884583 : f32
    %290 = vector.broadcast %cst_164 : f32 to vector<8x512xf32>
    %291 = arith.mulf %290, %289 : vector<8x512xf32>
    %292 = math.tanh %291 : vector<8x512xf32>
    %cst_165 = arith.constant 1.000000e+00 : f32
    %293 = vector.broadcast %cst_165 : f32 to vector<8x512xf32>
    %294 = arith.addf %293, %292 : vector<8x512xf32>
    %295 = arith.mulf %284, %294 : vector<8x512xf32>
    %c1_166 = arith.constant 1 : index
    %c0_167 = arith.constant 0 : index
    %c0_168 = arith.constant 0 : index
    %296 = vector.load %arg32[%c1_166, %c0_167, %c0_168] : memref<6x512x128xbf16, #tpu.memory_space<vmem>>, vector<1x512x128xbf16>
    %297 = vector.shape_cast %296 : vector<1x512x128xbf16> to vector<512x128xbf16>
    %298 = arith.truncf %295 : vector<8x512xf32> to vector<8x512xbf16>
    %cst_169 = arith.constant dense<0.000000e+00> : vector<8x128xf32>
    %299 = tpu.matmul %298, %297, %cst_169 {dimension_numbers = #tpu.dot_dimension_numbers<[1], [0], [0], [1], [0, 0, 1, 1], [], []>} : vector<8x512xbf16>, vector<512x128xbf16>, vector<8x128xf32> -> vector<8x128xf32>
    %c1_170 = arith.constant 1 : index
    %c0_171 = arith.constant 0 : index
    %c0_172 = arith.constant 0 : index
    %300 = vector.load %arg33[%c1_170, %c0_171, %c0_172] : memref<6x1x128xf32, #tpu.memory_space<vmem>>, vector<1x1x128xf32>
    %301 = vector.shape_cast %300 : vector<1x1x128xf32> to vector<1x128xf32>
    %302 = vector.broadcast %301 : vector<1x128xf32> to vector<8x128xf32>
    %303 = arith.addf %299, %302 : vector<8x128xf32>
    %cst_173 = arith.constant 5.000000e-01 : f32
    %304 = vector.broadcast %cst_173 : f32 to vector<8x128xf32>
    %305 = arith.mulf %304, %303 : vector<8x128xf32>
    %cst_174 = arith.constant 4.471500e-02 : f32
    %306 = vector.broadcast %cst_174 : f32 to vector<8x128xf32>
    %307 = arith.mulf %306, %303 : vector<8x128xf32>
    %308 = arith.mulf %307, %303 : vector<8x128xf32>
    %309 = arith.mulf %308, %303 : vector<8x128xf32>
    %310 = arith.addf %303, %309 : vector<8x128xf32>
    %cst_175 = arith.constant 0.797884583 : f32
    %311 = vector.broadcast %cst_175 : f32 to vector<8x128xf32>
    %312 = arith.mulf %311, %310 : vector<8x128xf32>
    %313 = math.tanh %312 : vector<8x128xf32>
    %cst_176 = arith.constant 1.000000e+00 : f32
    %314 = vector.broadcast %cst_176 : f32 to vector<8x128xf32>
    %315 = arith.addf %314, %313 : vector<8x128xf32>
    %316 = arith.mulf %305, %315 : vector<8x128xf32>
    %317 = arith.addf %316, %248 : vector<8x128xf32>
    %318 = arith.addf %317, %74 : vector<8x128xf32>
    %c2 = arith.constant 2 : index
    %c0_177 = arith.constant 0 : index
    %c0_178 = arith.constant 0 : index
    %319 = vector.load %arg22[%c2, %c0_177, %c0_178] : memref<6x1x128xf32, #tpu.memory_space<vmem>>, vector<1x1x128xf32>
    %320 = vector.shape_cast %319 : vector<1x1x128xf32> to vector<1x128xf32>
    %c2_179 = arith.constant 2 : index
    %c0_180 = arith.constant 0 : index
    %c0_181 = arith.constant 0 : index
    %321 = vector.load %arg23[%c2_179, %c0_180, %c0_181] : memref<6x1x128xf32, #tpu.memory_space<vmem>>, vector<1x1x128xf32>
    %322 = vector.shape_cast %321 : vector<1x1x128xf32> to vector<1x128xf32>
    %cst_182 = arith.constant dense<0.000000e+00> : vector<8xf32>
    %323 = vector.multi_reduction <add>, %318, %cst_182 [1] : vector<8x128xf32> to vector<8xf32>
    %324 = vector.shape_cast %323 : vector<8xf32> to vector<8x1xf32>
    %cst_183 = arith.constant 1.280000e+02 : f32
    %325 = vector.broadcast %cst_183 : f32 to vector<8x1xf32>
    %326 = arith.divf %324, %325 : vector<8x1xf32>
    %327 = vector.broadcast %326 : vector<8x1xf32> to vector<8x128xf32>
    %328 = arith.subf %318, %327 : vector<8x128xf32>
    %329 = arith.mulf %328, %328 : vector<8x128xf32>
    %cst_184 = arith.constant dense<0.000000e+00> : vector<8xf32>
    %330 = vector.multi_reduction <add>, %329, %cst_184 [1] : vector<8x128xf32> to vector<8xf32>
    %331 = vector.shape_cast %330 : vector<8xf32> to vector<8x1xf32>
    %cst_185 = arith.constant 1.280000e+02 : f32
    %332 = vector.broadcast %cst_185 : f32 to vector<8x1xf32>
    %333 = arith.divf %331, %332 : vector<8x1xf32>
    %334 = vector.broadcast %326 : vector<8x1xf32> to vector<8x128xf32>
    %335 = arith.subf %318, %334 : vector<8x128xf32>
    %cst_186 = arith.constant 9.99999974E-6 : f32
    %336 = vector.broadcast %cst_186 : f32 to vector<8x1xf32>
    %337 = arith.addf %333, %336 : vector<8x1xf32>
    %338 = math.rsqrt %337 : vector<8x1xf32>
    %339 = vector.broadcast %338 : vector<8x1xf32> to vector<8x128xf32>
    %340 = arith.mulf %335, %339 : vector<8x128xf32>
    %341 = vector.broadcast %320 : vector<1x128xf32> to vector<8x128xf32>
    %342 = arith.mulf %340, %341 : vector<8x128xf32>
    %343 = vector.broadcast %322 : vector<1x128xf32> to vector<8x128xf32>
    %344 = arith.addf %342, %343 : vector<8x128xf32>
    %c2_187 = arith.constant 2 : index
    %c0_188 = arith.constant 0 : index
    %c0_189 = arith.constant 0 : index
    %345 = vector.load %arg24[%c2_187, %c0_188, %c0_189] : memref<6x128x128xbf16, #tpu.memory_space<vmem>>, vector<1x128x128xbf16>
    %346 = vector.shape_cast %345 : vector<1x128x128xbf16> to vector<128x128xbf16>
    %347 = arith.truncf %344 : vector<8x128xf32> to vector<8x128xbf16>
    %cst_190 = arith.constant dense<0.000000e+00> : vector<8x128xf32>
    %348 = tpu.matmul %347, %346, %cst_190 {dimension_numbers = #tpu.dot_dimension_numbers<[1], [0], [0], [1], [0, 0, 1, 1], [], []>} : vector<8x128xbf16>, vector<128x128xbf16>, vector<8x128xf32> -> vector<8x128xf32>
    %c2_191 = arith.constant 2 : index
    %c0_192 = arith.constant 0 : index
    %c0_193 = arith.constant 0 : index
    %349 = vector.load %arg25[%c2_191, %c0_192, %c0_193] : memref<6x1x128xf32, #tpu.memory_space<vmem>>, vector<1x1x128xf32>
    %350 = vector.shape_cast %349 : vector<1x1x128xf32> to vector<1x128xf32>
    %351 = vector.broadcast %350 : vector<1x128xf32> to vector<8x128xf32>
    %352 = arith.addf %348, %351 : vector<8x128xf32>
    %c2_194 = arith.constant 2 : index
    %c0_195 = arith.constant 0 : index
    %c0_196 = arith.constant 0 : index
    %353 = vector.load %arg26[%c2_194, %c0_195, %c0_196] : memref<6x128x128xbf16, #tpu.memory_space<vmem>>, vector<1x128x128xbf16>
    %354 = vector.shape_cast %353 : vector<1x128x128xbf16> to vector<128x128xbf16>
    %355 = arith.truncf %352 : vector<8x128xf32> to vector<8x128xbf16>
    %cst_197 = arith.constant dense<0.000000e+00> : vector<8x128xf32>
    %356 = tpu.matmul %355, %354, %cst_197 {dimension_numbers = #tpu.dot_dimension_numbers<[1], [0], [0], [1], [0, 0, 1, 1], [], []>} : vector<8x128xbf16>, vector<128x128xbf16>, vector<8x128xf32> -> vector<8x128xf32>
    %c2_198 = arith.constant 2 : index
    %c0_199 = arith.constant 0 : index
    %c0_200 = arith.constant 0 : index
    %357 = vector.load %arg27[%c2_198, %c0_199, %c0_200] : memref<6x1x128xf32, #tpu.memory_space<vmem>>, vector<1x1x128xf32>
    %358 = vector.shape_cast %357 : vector<1x1x128xf32> to vector<1x128xf32>
    %359 = vector.broadcast %358 : vector<1x128xf32> to vector<8x128xf32>
    %360 = arith.addf %356, %359 : vector<8x128xf32>
    %361 = arith.addf %360, %317 : vector<8x128xf32>
    %c2_201 = arith.constant 2 : index
    %c0_202 = arith.constant 0 : index
    %c0_203 = arith.constant 0 : index
    %362 = vector.load %arg28[%c2_201, %c0_202, %c0_203] : memref<6x1x128xf32, #tpu.memory_space<vmem>>, vector<1x1x128xf32>
    %363 = vector.shape_cast %362 : vector<1x1x128xf32> to vector<1x128xf32>
    %c2_204 = arith.constant 2 : index
    %c0_205 = arith.constant 0 : index
    %c0_206 = arith.constant 0 : index
    %364 = vector.load %arg29[%c2_204, %c0_205, %c0_206] : memref<6x1x128xf32, #tpu.memory_space<vmem>>, vector<1x1x128xf32>
    %365 = vector.shape_cast %364 : vector<1x1x128xf32> to vector<1x128xf32>
    %cst_207 = arith.constant dense<0.000000e+00> : vector<8xf32>
    %366 = vector.multi_reduction <add>, %361, %cst_207 [1] : vector<8x128xf32> to vector<8xf32>
    %367 = vector.shape_cast %366 : vector<8xf32> to vector<8x1xf32>
    %cst_208 = arith.constant 1.280000e+02 : f32
    %368 = vector.broadcast %cst_208 : f32 to vector<8x1xf32>
    %369 = arith.divf %367, %368 : vector<8x1xf32>
    %370 = vector.broadcast %369 : vector<8x1xf32> to vector<8x128xf32>
    %371 = arith.subf %361, %370 : vector<8x128xf32>
    %372 = arith.mulf %371, %371 : vector<8x128xf32>
    %cst_209 = arith.constant dense<0.000000e+00> : vector<8xf32>
    %373 = vector.multi_reduction <add>, %372, %cst_209 [1] : vector<8x128xf32> to vector<8xf32>
    %374 = vector.shape_cast %373 : vector<8xf32> to vector<8x1xf32>
    %cst_210 = arith.constant 1.280000e+02 : f32
    %375 = vector.broadcast %cst_210 : f32 to vector<8x1xf32>
    %376 = arith.divf %374, %375 : vector<8x1xf32>
    %377 = vector.broadcast %369 : vector<8x1xf32> to vector<8x128xf32>
    %378 = arith.subf %361, %377 : vector<8x128xf32>
    %cst_211 = arith.constant 9.99999974E-6 : f32
    %379 = vector.broadcast %cst_211 : f32 to vector<8x1xf32>
    %380 = arith.addf %376, %379 : vector<8x1xf32>
    %381 = math.rsqrt %380 : vector<8x1xf32>
    %382 = vector.broadcast %381 : vector<8x1xf32> to vector<8x128xf32>
    %383 = arith.mulf %378, %382 : vector<8x128xf32>
    %384 = vector.broadcast %363 : vector<1x128xf32> to vector<8x128xf32>
    %385 = arith.mulf %383, %384 : vector<8x128xf32>
    %386 = vector.broadcast %365 : vector<1x128xf32> to vector<8x128xf32>
    %387 = arith.addf %385, %386 : vector<8x128xf32>
    %c2_212 = arith.constant 2 : index
    %c0_213 = arith.constant 0 : index
    %c0_214 = arith.constant 0 : index
    %388 = vector.load %arg30[%c2_212, %c0_213, %c0_214] : memref<6x128x512xbf16, #tpu.memory_space<vmem>>, vector<1x128x512xbf16>
    %389 = vector.shape_cast %388 : vector<1x128x512xbf16> to vector<128x512xbf16>
    %390 = arith.truncf %387 : vector<8x128xf32> to vector<8x128xbf16>
    %cst_215 = arith.constant dense<0.000000e+00> : vector<8x512xf32>
    %391 = tpu.matmul %390, %389, %cst_215 {dimension_numbers = #tpu.dot_dimension_numbers<[1], [0], [0], [1], [0, 0, 1, 1], [], []>} : vector<8x128xbf16>, vector<128x512xbf16>, vector<8x512xf32> -> vector<8x512xf32>
    %c2_216 = arith.constant 2 : index
    %c0_217 = arith.constant 0 : index
    %c0_218 = arith.constant 0 : index
    %392 = vector.load %arg31[%c2_216, %c0_217, %c0_218] : memref<6x1x512xf32, #tpu.memory_space<vmem>>, vector<1x1x512xf32>
    %393 = vector.shape_cast %392 : vector<1x1x512xf32> to vector<1x512xf32>
    %394 = vector.broadcast %393 : vector<1x512xf32> to vector<8x512xf32>
    %395 = arith.addf %391, %394 : vector<8x512xf32>
    %cst_219 = arith.constant 5.000000e-01 : f32
    %396 = vector.broadcast %cst_219 : f32 to vector<8x512xf32>
    %397 = arith.mulf %396, %395 : vector<8x512xf32>
    %cst_220 = arith.constant 4.471500e-02 : f32
    %398 = vector.broadcast %cst_220 : f32 to vector<8x512xf32>
    %399 = arith.mulf %398, %395 : vector<8x512xf32>
    %400 = arith.mulf %399, %395 : vector<8x512xf32>
    %401 = arith.mulf %400, %395 : vector<8x512xf32>
    %402 = arith.addf %395, %401 : vector<8x512xf32>
    %cst_221 = arith.constant 0.797884583 : f32
    %403 = vector.broadcast %cst_221 : f32 to vector<8x512xf32>
    %404 = arith.mulf %403, %402 : vector<8x512xf32>
    %405 = math.tanh %404 : vector<8x512xf32>
    %cst_222 = arith.constant 1.000000e+00 : f32
    %406 = vector.broadcast %cst_222 : f32 to vector<8x512xf32>
    %407 = arith.addf %406, %405 : vector<8x512xf32>
    %408 = arith.mulf %397, %407 : vector<8x512xf32>
    %c2_223 = arith.constant 2 : index
    %c0_224 = arith.constant 0 : index
    %c0_225 = arith.constant 0 : index
    %409 = vector.load %arg32[%c2_223, %c0_224, %c0_225] : memref<6x512x128xbf16, #tpu.memory_space<vmem>>, vector<1x512x128xbf16>
    %410 = vector.shape_cast %409 : vector<1x512x128xbf16> to vector<512x128xbf16>
    %411 = arith.truncf %408 : vector<8x512xf32> to vector<8x512xbf16>
    %cst_226 = arith.constant dense<0.000000e+00> : vector<8x128xf32>
    %412 = tpu.matmul %411, %410, %cst_226 {dimension_numbers = #tpu.dot_dimension_numbers<[1], [0], [0], [1], [0, 0, 1, 1], [], []>} : vector<8x512xbf16>, vector<512x128xbf16>, vector<8x128xf32> -> vector<8x128xf32>
    %c2_227 = arith.constant 2 : index
    %c0_228 = arith.constant 0 : index
    %c0_229 = arith.constant 0 : index
    %413 = vector.load %arg33[%c2_227, %c0_228, %c0_229] : memref<6x1x128xf32, #tpu.memory_space<vmem>>, vector<1x1x128xf32>
    %414 = vector.shape_cast %413 : vector<1x1x128xf32> to vector<1x128xf32>
    %415 = vector.broadcast %414 : vector<1x128xf32> to vector<8x128xf32>
    %416 = arith.addf %412, %415 : vector<8x128xf32>
    %cst_230 = arith.constant 5.000000e-01 : f32
    %417 = vector.broadcast %cst_230 : f32 to vector<8x128xf32>
    %418 = arith.mulf %417, %416 : vector<8x128xf32>
    %cst_231 = arith.constant 4.471500e-02 : f32
    %419 = vector.broadcast %cst_231 : f32 to vector<8x128xf32>
    %420 = arith.mulf %419, %416 : vector<8x128xf32>
    %421 = arith.mulf %420, %416 : vector<8x128xf32>
    %422 = arith.mulf %421, %416 : vector<8x128xf32>
    %423 = arith.addf %416, %422 : vector<8x128xf32>
    %cst_232 = arith.constant 0.797884583 : f32
    %424 = vector.broadcast %cst_232 : f32 to vector<8x128xf32>
    %425 = arith.mulf %424, %423 : vector<8x128xf32>
    %426 = math.tanh %425 : vector<8x128xf32>
    %cst_233 = arith.constant 1.000000e+00 : f32
    %427 = vector.broadcast %cst_233 : f32 to vector<8x128xf32>
    %428 = arith.addf %427, %426 : vector<8x128xf32>
    %429 = arith.mulf %418, %428 : vector<8x128xf32>
    %430 = arith.addf %429, %361 : vector<8x128xf32>
    %431 = arith.addf %430, %74 : vector<8x128xf32>
    %c3 = arith.constant 3 : index
    %c0_234 = arith.constant 0 : index
    %c0_235 = arith.constant 0 : index
    %432 = vector.load %arg22[%c3, %c0_234, %c0_235] : memref<6x1x128xf32, #tpu.memory_space<vmem>>, vector<1x1x128xf32>
    %433 = vector.shape_cast %432 : vector<1x1x128xf32> to vector<1x128xf32>
    %c3_236 = arith.constant 3 : index
    %c0_237 = arith.constant 0 : index
    %c0_238 = arith.constant 0 : index
    %434 = vector.load %arg23[%c3_236, %c0_237, %c0_238] : memref<6x1x128xf32, #tpu.memory_space<vmem>>, vector<1x1x128xf32>
    %435 = vector.shape_cast %434 : vector<1x1x128xf32> to vector<1x128xf32>
    %cst_239 = arith.constant dense<0.000000e+00> : vector<8xf32>
    %436 = vector.multi_reduction <add>, %431, %cst_239 [1] : vector<8x128xf32> to vector<8xf32>
    %437 = vector.shape_cast %436 : vector<8xf32> to vector<8x1xf32>
    %cst_240 = arith.constant 1.280000e+02 : f32
    %438 = vector.broadcast %cst_240 : f32 to vector<8x1xf32>
    %439 = arith.divf %437, %438 : vector<8x1xf32>
    %440 = vector.broadcast %439 : vector<8x1xf32> to vector<8x128xf32>
    %441 = arith.subf %431, %440 : vector<8x128xf32>
    %442 = arith.mulf %441, %441 : vector<8x128xf32>
    %cst_241 = arith.constant dense<0.000000e+00> : vector<8xf32>
    %443 = vector.multi_reduction <add>, %442, %cst_241 [1] : vector<8x128xf32> to vector<8xf32>
    %444 = vector.shape_cast %443 : vector<8xf32> to vector<8x1xf32>
    %cst_242 = arith.constant 1.280000e+02 : f32
    %445 = vector.broadcast %cst_242 : f32 to vector<8x1xf32>
    %446 = arith.divf %444, %445 : vector<8x1xf32>
    %447 = vector.broadcast %439 : vector<8x1xf32> to vector<8x128xf32>
    %448 = arith.subf %431, %447 : vector<8x128xf32>
    %cst_243 = arith.constant 9.99999974E-6 : f32
    %449 = vector.broadcast %cst_243 : f32 to vector<8x1xf32>
    %450 = arith.addf %446, %449 : vector<8x1xf32>
    %451 = math.rsqrt %450 : vector<8x1xf32>
    %452 = vector.broadcast %451 : vector<8x1xf32> to vector<8x128xf32>
    %453 = arith.mulf %448, %452 : vector<8x128xf32>
    %454 = vector.broadcast %433 : vector<1x128xf32> to vector<8x128xf32>
    %455 = arith.mulf %453, %454 : vector<8x128xf32>
    %456 = vector.broadcast %435 : vector<1x128xf32> to vector<8x128xf32>
    %457 = arith.addf %455, %456 : vector<8x128xf32>
    %c3_244 = arith.constant 3 : index
    %c0_245 = arith.constant 0 : index
    %c0_246 = arith.constant 0 : index
    %458 = vector.load %arg24[%c3_244, %c0_245, %c0_246] : memref<6x128x128xbf16, #tpu.memory_space<vmem>>, vector<1x128x128xbf16>
    %459 = vector.shape_cast %458 : vector<1x128x128xbf16> to vector<128x128xbf16>
    %460 = arith.truncf %457 : vector<8x128xf32> to vector<8x128xbf16>
    %cst_247 = arith.constant dense<0.000000e+00> : vector<8x128xf32>
    %461 = tpu.matmul %460, %459, %cst_247 {dimension_numbers = #tpu.dot_dimension_numbers<[1], [0], [0], [1], [0, 0, 1, 1], [], []>} : vector<8x128xbf16>, vector<128x128xbf16>, vector<8x128xf32> -> vector<8x128xf32>
    %c3_248 = arith.constant 3 : index
    %c0_249 = arith.constant 0 : index
    %c0_250 = arith.constant 0 : index
    %462 = vector.load %arg25[%c3_248, %c0_249, %c0_250] : memref<6x1x128xf32, #tpu.memory_space<vmem>>, vector<1x1x128xf32>
    %463 = vector.shape_cast %462 : vector<1x1x128xf32> to vector<1x128xf32>
    %464 = vector.broadcast %463 : vector<1x128xf32> to vector<8x128xf32>
    %465 = arith.addf %461, %464 : vector<8x128xf32>
    %c3_251 = arith.constant 3 : index
    %c0_252 = arith.constant 0 : index
    %c0_253 = arith.constant 0 : index
    %466 = vector.load %arg26[%c3_251, %c0_252, %c0_253] : memref<6x128x128xbf16, #tpu.memory_space<vmem>>, vector<1x128x128xbf16>
    %467 = vector.shape_cast %466 : vector<1x128x128xbf16> to vector<128x128xbf16>
    %468 = arith.truncf %465 : vector<8x128xf32> to vector<8x128xbf16>
    %cst_254 = arith.constant dense<0.000000e+00> : vector<8x128xf32>
    %469 = tpu.matmul %468, %467, %cst_254 {dimension_numbers = #tpu.dot_dimension_numbers<[1], [0], [0], [1], [0, 0, 1, 1], [], []>} : vector<8x128xbf16>, vector<128x128xbf16>, vector<8x128xf32> -> vector<8x128xf32>
    %c3_255 = arith.constant 3 : index
    %c0_256 = arith.constant 0 : index
    %c0_257 = arith.constant 0 : index
    %470 = vector.load %arg27[%c3_255, %c0_256, %c0_257] : memref<6x1x128xf32, #tpu.memory_space<vmem>>, vector<1x1x128xf32>
    %471 = vector.shape_cast %470 : vector<1x1x128xf32> to vector<1x128xf32>
    %472 = vector.broadcast %471 : vector<1x128xf32> to vector<8x128xf32>
    %473 = arith.addf %469, %472 : vector<8x128xf32>
    %474 = arith.addf %473, %430 : vector<8x128xf32>
    %c3_258 = arith.constant 3 : index
    %c0_259 = arith.constant 0 : index
    %c0_260 = arith.constant 0 : index
    %475 = vector.load %arg28[%c3_258, %c0_259, %c0_260] : memref<6x1x128xf32, #tpu.memory_space<vmem>>, vector<1x1x128xf32>
    %476 = vector.shape_cast %475 : vector<1x1x128xf32> to vector<1x128xf32>
    %c3_261 = arith.constant 3 : index
    %c0_262 = arith.constant 0 : index
    %c0_263 = arith.constant 0 : index
    %477 = vector.load %arg29[%c3_261, %c0_262, %c0_263] : memref<6x1x128xf32, #tpu.memory_space<vmem>>, vector<1x1x128xf32>
    %478 = vector.shape_cast %477 : vector<1x1x128xf32> to vector<1x128xf32>
    %cst_264 = arith.constant dense<0.000000e+00> : vector<8xf32>
    %479 = vector.multi_reduction <add>, %474, %cst_264 [1] : vector<8x128xf32> to vector<8xf32>
    %480 = vector.shape_cast %479 : vector<8xf32> to vector<8x1xf32>
    %cst_265 = arith.constant 1.280000e+02 : f32
    %481 = vector.broadcast %cst_265 : f32 to vector<8x1xf32>
    %482 = arith.divf %480, %481 : vector<8x1xf32>
    %483 = vector.broadcast %482 : vector<8x1xf32> to vector<8x128xf32>
    %484 = arith.subf %474, %483 : vector<8x128xf32>
    %485 = arith.mulf %484, %484 : vector<8x128xf32>
    %cst_266 = arith.constant dense<0.000000e+00> : vector<8xf32>
    %486 = vector.multi_reduction <add>, %485, %cst_266 [1] : vector<8x128xf32> to vector<8xf32>
    %487 = vector.shape_cast %486 : vector<8xf32> to vector<8x1xf32>
    %cst_267 = arith.constant 1.280000e+02 : f32
    %488 = vector.broadcast %cst_267 : f32 to vector<8x1xf32>
    %489 = arith.divf %487, %488 : vector<8x1xf32>
    %490 = vector.broadcast %482 : vector<8x1xf32> to vector<8x128xf32>
    %491 = arith.subf %474, %490 : vector<8x128xf32>
    %cst_268 = arith.constant 9.99999974E-6 : f32
    %492 = vector.broadcast %cst_268 : f32 to vector<8x1xf32>
    %493 = arith.addf %489, %492 : vector<8x1xf32>
    %494 = math.rsqrt %493 : vector<8x1xf32>
    %495 = vector.broadcast %494 : vector<8x1xf32> to vector<8x128xf32>
    %496 = arith.mulf %491, %495 : vector<8x128xf32>
    %497 = vector.broadcast %476 : vector<1x128xf32> to vector<8x128xf32>
    %498 = arith.mulf %496, %497 : vector<8x128xf32>
    %499 = vector.broadcast %478 : vector<1x128xf32> to vector<8x128xf32>
    %500 = arith.addf %498, %499 : vector<8x128xf32>
    %c3_269 = arith.constant 3 : index
    %c0_270 = arith.constant 0 : index
    %c0_271 = arith.constant 0 : index
    %501 = vector.load %arg30[%c3_269, %c0_270, %c0_271] : memref<6x128x512xbf16, #tpu.memory_space<vmem>>, vector<1x128x512xbf16>
    %502 = vector.shape_cast %501 : vector<1x128x512xbf16> to vector<128x512xbf16>
    %503 = arith.truncf %500 : vector<8x128xf32> to vector<8x128xbf16>
    %cst_272 = arith.constant dense<0.000000e+00> : vector<8x512xf32>
    %504 = tpu.matmul %503, %502, %cst_272 {dimension_numbers = #tpu.dot_dimension_numbers<[1], [0], [0], [1], [0, 0, 1, 1], [], []>} : vector<8x128xbf16>, vector<128x512xbf16>, vector<8x512xf32> -> vector<8x512xf32>
    %c3_273 = arith.constant 3 : index
    %c0_274 = arith.constant 0 : index
    %c0_275 = arith.constant 0 : index
    %505 = vector.load %arg31[%c3_273, %c0_274, %c0_275] : memref<6x1x512xf32, #tpu.memory_space<vmem>>, vector<1x1x512xf32>
    %506 = vector.shape_cast %505 : vector<1x1x512xf32> to vector<1x512xf32>
    %507 = vector.broadcast %506 : vector<1x512xf32> to vector<8x512xf32>
    %508 = arith.addf %504, %507 : vector<8x512xf32>
    %cst_276 = arith.constant 5.000000e-01 : f32
    %509 = vector.broadcast %cst_276 : f32 to vector<8x512xf32>
    %510 = arith.mulf %509, %508 : vector<8x512xf32>
    %cst_277 = arith.constant 4.471500e-02 : f32
    %511 = vector.broadcast %cst_277 : f32 to vector<8x512xf32>
    %512 = arith.mulf %511, %508 : vector<8x512xf32>
    %513 = arith.mulf %512, %508 : vector<8x512xf32>
    %514 = arith.mulf %513, %508 : vector<8x512xf32>
    %515 = arith.addf %508, %514 : vector<8x512xf32>
    %cst_278 = arith.constant 0.797884583 : f32
    %516 = vector.broadcast %cst_278 : f32 to vector<8x512xf32>
    %517 = arith.mulf %516, %515 : vector<8x512xf32>
    %518 = math.tanh %517 : vector<8x512xf32>
    %cst_279 = arith.constant 1.000000e+00 : f32
    %519 = vector.broadcast %cst_279 : f32 to vector<8x512xf32>
    %520 = arith.addf %519, %518 : vector<8x512xf32>
    %521 = arith.mulf %510, %520 : vector<8x512xf32>
    %c3_280 = arith.constant 3 : index
    %c0_281 = arith.constant 0 : index
    %c0_282 = arith.constant 0 : index
    %522 = vector.load %arg32[%c3_280, %c0_281, %c0_282] : memref<6x512x128xbf16, #tpu.memory_space<vmem>>, vector<1x512x128xbf16>
    %523 = vector.shape_cast %522 : vector<1x512x128xbf16> to vector<512x128xbf16>
    %524 = arith.truncf %521 : vector<8x512xf32> to vector<8x512xbf16>
    %cst_283 = arith.constant dense<0.000000e+00> : vector<8x128xf32>
    %525 = tpu.matmul %524, %523, %cst_283 {dimension_numbers = #tpu.dot_dimension_numbers<[1], [0], [0], [1], [0, 0, 1, 1], [], []>} : vector<8x512xbf16>, vector<512x128xbf16>, vector<8x128xf32> -> vector<8x128xf32>
    %c3_284 = arith.constant 3 : index
    %c0_285 = arith.constant 0 : index
    %c0_286 = arith.constant 0 : index
    %526 = vector.load %arg33[%c3_284, %c0_285, %c0_286] : memref<6x1x128xf32, #tpu.memory_space<vmem>>, vector<1x1x128xf32>
    %527 = vector.shape_cast %526 : vector<1x1x128xf32> to vector<1x128xf32>
    %528 = vector.broadcast %527 : vector<1x128xf32> to vector<8x128xf32>
    %529 = arith.addf %525, %528 : vector<8x128xf32>
    %cst_287 = arith.constant 5.000000e-01 : f32
    %530 = vector.broadcast %cst_287 : f32 to vector<8x128xf32>
    %531 = arith.mulf %530, %529 : vector<8x128xf32>
    %cst_288 = arith.constant 4.471500e-02 : f32
    %532 = vector.broadcast %cst_288 : f32 to vector<8x128xf32>
    %533 = arith.mulf %532, %529 : vector<8x128xf32>
    %534 = arith.mulf %533, %529 : vector<8x128xf32>
    %535 = arith.mulf %534, %529 : vector<8x128xf32>
    %536 = arith.addf %529, %535 : vector<8x128xf32>
    %cst_289 = arith.constant 0.797884583 : f32
    %537 = vector.broadcast %cst_289 : f32 to vector<8x128xf32>
    %538 = arith.mulf %537, %536 : vector<8x128xf32>
    %539 = math.tanh %538 : vector<8x128xf32>
    %cst_290 = arith.constant 1.000000e+00 : f32
    %540 = vector.broadcast %cst_290 : f32 to vector<8x128xf32>
    %541 = arith.addf %540, %539 : vector<8x128xf32>
    %542 = arith.mulf %531, %541 : vector<8x128xf32>
    %543 = arith.addf %542, %474 : vector<8x128xf32>
    %544 = arith.addf %543, %74 : vector<8x128xf32>
    %c4 = arith.constant 4 : index
    %c0_291 = arith.constant 0 : index
    %c0_292 = arith.constant 0 : index
    %545 = vector.load %arg22[%c4, %c0_291, %c0_292] : memref<6x1x128xf32, #tpu.memory_space<vmem>>, vector<1x1x128xf32>
    %546 = vector.shape_cast %545 : vector<1x1x128xf32> to vector<1x128xf32>
    %c4_293 = arith.constant 4 : index
    %c0_294 = arith.constant 0 : index
    %c0_295 = arith.constant 0 : index
    %547 = vector.load %arg23[%c4_293, %c0_294, %c0_295] : memref<6x1x128xf32, #tpu.memory_space<vmem>>, vector<1x1x128xf32>
    %548 = vector.shape_cast %547 : vector<1x1x128xf32> to vector<1x128xf32>
    %cst_296 = arith.constant dense<0.000000e+00> : vector<8xf32>
    %549 = vector.multi_reduction <add>, %544, %cst_296 [1] : vector<8x128xf32> to vector<8xf32>
    %550 = vector.shape_cast %549 : vector<8xf32> to vector<8x1xf32>
    %cst_297 = arith.constant 1.280000e+02 : f32
    %551 = vector.broadcast %cst_297 : f32 to vector<8x1xf32>
    %552 = arith.divf %550, %551 : vector<8x1xf32>
    %553 = vector.broadcast %552 : vector<8x1xf32> to vector<8x128xf32>
    %554 = arith.subf %544, %553 : vector<8x128xf32>
    %555 = arith.mulf %554, %554 : vector<8x128xf32>
    %cst_298 = arith.constant dense<0.000000e+00> : vector<8xf32>
    %556 = vector.multi_reduction <add>, %555, %cst_298 [1] : vector<8x128xf32> to vector<8xf32>
    %557 = vector.shape_cast %556 : vector<8xf32> to vector<8x1xf32>
    %cst_299 = arith.constant 1.280000e+02 : f32
    %558 = vector.broadcast %cst_299 : f32 to vector<8x1xf32>
    %559 = arith.divf %557, %558 : vector<8x1xf32>
    %560 = vector.broadcast %552 : vector<8x1xf32> to vector<8x128xf32>
    %561 = arith.subf %544, %560 : vector<8x128xf32>
    %cst_300 = arith.constant 9.99999974E-6 : f32
    %562 = vector.broadcast %cst_300 : f32 to vector<8x1xf32>
    %563 = arith.addf %559, %562 : vector<8x1xf32>
    %564 = math.rsqrt %563 : vector<8x1xf32>
    %565 = vector.broadcast %564 : vector<8x1xf32> to vector<8x128xf32>
    %566 = arith.mulf %561, %565 : vector<8x128xf32>
    %567 = vector.broadcast %546 : vector<1x128xf32> to vector<8x128xf32>
    %568 = arith.mulf %566, %567 : vector<8x128xf32>
    %569 = vector.broadcast %548 : vector<1x128xf32> to vector<8x128xf32>
    %570 = arith.addf %568, %569 : vector<8x128xf32>
    %c4_301 = arith.constant 4 : index
    %c0_302 = arith.constant 0 : index
    %c0_303 = arith.constant 0 : index
    %571 = vector.load %arg24[%c4_301, %c0_302, %c0_303] : memref<6x128x128xbf16, #tpu.memory_space<vmem>>, vector<1x128x128xbf16>
    %572 = vector.shape_cast %571 : vector<1x128x128xbf16> to vector<128x128xbf16>
    %573 = arith.truncf %570 : vector<8x128xf32> to vector<8x128xbf16>
    %cst_304 = arith.constant dense<0.000000e+00> : vector<8x128xf32>
    %574 = tpu.matmul %573, %572, %cst_304 {dimension_numbers = #tpu.dot_dimension_numbers<[1], [0], [0], [1], [0, 0, 1, 1], [], []>} : vector<8x128xbf16>, vector<128x128xbf16>, vector<8x128xf32> -> vector<8x128xf32>
    %c4_305 = arith.constant 4 : index
    %c0_306 = arith.constant 0 : index
    %c0_307 = arith.constant 0 : index
    %575 = vector.load %arg25[%c4_305, %c0_306, %c0_307] : memref<6x1x128xf32, #tpu.memory_space<vmem>>, vector<1x1x128xf32>
    %576 = vector.shape_cast %575 : vector<1x1x128xf32> to vector<1x128xf32>
    %577 = vector.broadcast %576 : vector<1x128xf32> to vector<8x128xf32>
    %578 = arith.addf %574, %577 : vector<8x128xf32>
    %c4_308 = arith.constant 4 : index
    %c0_309 = arith.constant 0 : index
    %c0_310 = arith.constant 0 : index
    %579 = vector.load %arg26[%c4_308, %c0_309, %c0_310] : memref<6x128x128xbf16, #tpu.memory_space<vmem>>, vector<1x128x128xbf16>
    %580 = vector.shape_cast %579 : vector<1x128x128xbf16> to vector<128x128xbf16>
    %581 = arith.truncf %578 : vector<8x128xf32> to vector<8x128xbf16>
    %cst_311 = arith.constant dense<0.000000e+00> : vector<8x128xf32>
    %582 = tpu.matmul %581, %580, %cst_311 {dimension_numbers = #tpu.dot_dimension_numbers<[1], [0], [0], [1], [0, 0, 1, 1], [], []>} : vector<8x128xbf16>, vector<128x128xbf16>, vector<8x128xf32> -> vector<8x128xf32>
    %c4_312 = arith.constant 4 : index
    %c0_313 = arith.constant 0 : index
    %c0_314 = arith.constant 0 : index
    %583 = vector.load %arg27[%c4_312, %c0_313, %c0_314] : memref<6x1x128xf32, #tpu.memory_space<vmem>>, vector<1x1x128xf32>
    %584 = vector.shape_cast %583 : vector<1x1x128xf32> to vector<1x128xf32>
    %585 = vector.broadcast %584 : vector<1x128xf32> to vector<8x128xf32>
    %586 = arith.addf %582, %585 : vector<8x128xf32>
    %587 = arith.addf %586, %543 : vector<8x128xf32>
    %c4_315 = arith.constant 4 : index
    %c0_316 = arith.constant 0 : index
    %c0_317 = arith.constant 0 : index
    %588 = vector.load %arg28[%c4_315, %c0_316, %c0_317] : memref<6x1x128xf32, #tpu.memory_space<vmem>>, vector<1x1x128xf32>
    %589 = vector.shape_cast %588 : vector<1x1x128xf32> to vector<1x128xf32>
    %c4_318 = arith.constant 4 : index
    %c0_319 = arith.constant 0 : index
    %c0_320 = arith.constant 0 : index
    %590 = vector.load %arg29[%c4_318, %c0_319, %c0_320] : memref<6x1x128xf32, #tpu.memory_space<vmem>>, vector<1x1x128xf32>
    %591 = vector.shape_cast %590 : vector<1x1x128xf32> to vector<1x128xf32>
    %cst_321 = arith.constant dense<0.000000e+00> : vector<8xf32>
    %592 = vector.multi_reduction <add>, %587, %cst_321 [1] : vector<8x128xf32> to vector<8xf32>
    %593 = vector.shape_cast %592 : vector<8xf32> to vector<8x1xf32>
    %cst_322 = arith.constant 1.280000e+02 : f32
    %594 = vector.broadcast %cst_322 : f32 to vector<8x1xf32>
    %595 = arith.divf %593, %594 : vector<8x1xf32>
    %596 = vector.broadcast %595 : vector<8x1xf32> to vector<8x128xf32>
    %597 = arith.subf %587, %596 : vector<8x128xf32>
    %598 = arith.mulf %597, %597 : vector<8x128xf32>
    %cst_323 = arith.constant dense<0.000000e+00> : vector<8xf32>
    %599 = vector.multi_reduction <add>, %598, %cst_323 [1] : vector<8x128xf32> to vector<8xf32>
    %600 = vector.shape_cast %599 : vector<8xf32> to vector<8x1xf32>
    %cst_324 = arith.constant 1.280000e+02 : f32
    %601 = vector.broadcast %cst_324 : f32 to vector<8x1xf32>
    %602 = arith.divf %600, %601 : vector<8x1xf32>
    %603 = vector.broadcast %595 : vector<8x1xf32> to vector<8x128xf32>
    %604 = arith.subf %587, %603 : vector<8x128xf32>
    %cst_325 = arith.constant 9.99999974E-6 : f32
    %605 = vector.broadcast %cst_325 : f32 to vector<8x1xf32>
    %606 = arith.addf %602, %605 : vector<8x1xf32>
    %607 = math.rsqrt %606 : vector<8x1xf32>
    %608 = vector.broadcast %607 : vector<8x1xf32> to vector<8x128xf32>
    %609 = arith.mulf %604, %608 : vector<8x128xf32>
    %610 = vector.broadcast %589 : vector<1x128xf32> to vector<8x128xf32>
    %611 = arith.mulf %609, %610 : vector<8x128xf32>
    %612 = vector.broadcast %591 : vector<1x128xf32> to vector<8x128xf32>
    %613 = arith.addf %611, %612 : vector<8x128xf32>
    %c4_326 = arith.constant 4 : index
    %c0_327 = arith.constant 0 : index
    %c0_328 = arith.constant 0 : index
    %614 = vector.load %arg30[%c4_326, %c0_327, %c0_328] : memref<6x128x512xbf16, #tpu.memory_space<vmem>>, vector<1x128x512xbf16>
    %615 = vector.shape_cast %614 : vector<1x128x512xbf16> to vector<128x512xbf16>
    %616 = arith.truncf %613 : vector<8x128xf32> to vector<8x128xbf16>
    %cst_329 = arith.constant dense<0.000000e+00> : vector<8x512xf32>
    %617 = tpu.matmul %616, %615, %cst_329 {dimension_numbers = #tpu.dot_dimension_numbers<[1], [0], [0], [1], [0, 0, 1, 1], [], []>} : vector<8x128xbf16>, vector<128x512xbf16>, vector<8x512xf32> -> vector<8x512xf32>
    %c4_330 = arith.constant 4 : index
    %c0_331 = arith.constant 0 : index
    %c0_332 = arith.constant 0 : index
    %618 = vector.load %arg31[%c4_330, %c0_331, %c0_332] : memref<6x1x512xf32, #tpu.memory_space<vmem>>, vector<1x1x512xf32>
    %619 = vector.shape_cast %618 : vector<1x1x512xf32> to vector<1x512xf32>
    %620 = vector.broadcast %619 : vector<1x512xf32> to vector<8x512xf32>
    %621 = arith.addf %617, %620 : vector<8x512xf32>
    %cst_333 = arith.constant 5.000000e-01 : f32
    %622 = vector.broadcast %cst_333 : f32 to vector<8x512xf32>
    %623 = arith.mulf %622, %621 : vector<8x512xf32>
    %cst_334 = arith.constant 4.471500e-02 : f32
    %624 = vector.broadcast %cst_334 : f32 to vector<8x512xf32>
    %625 = arith.mulf %624, %621 : vector<8x512xf32>
    %626 = arith.mulf %625, %621 : vector<8x512xf32>
    %627 = arith.mulf %626, %621 : vector<8x512xf32>
    %628 = arith.addf %621, %627 : vector<8x512xf32>
    %cst_335 = arith.constant 0.797884583 : f32
    %629 = vector.broadcast %cst_335 : f32 to vector<8x512xf32>
    %630 = arith.mulf %629, %628 : vector<8x512xf32>
    %631 = math.tanh %630 : vector<8x512xf32>
    %cst_336 = arith.constant 1.000000e+00 : f32
    %632 = vector.broadcast %cst_336 : f32 to vector<8x512xf32>
    %633 = arith.addf %632, %631 : vector<8x512xf32>
    %634 = arith.mulf %623, %633 : vector<8x512xf32>
    %c4_337 = arith.constant 4 : index
    %c0_338 = arith.constant 0 : index
    %c0_339 = arith.constant 0 : index
    %635 = vector.load %arg32[%c4_337, %c0_338, %c0_339] : memref<6x512x128xbf16, #tpu.memory_space<vmem>>, vector<1x512x128xbf16>
    %636 = vector.shape_cast %635 : vector<1x512x128xbf16> to vector<512x128xbf16>
    %637 = arith.truncf %634 : vector<8x512xf32> to vector<8x512xbf16>
    %cst_340 = arith.constant dense<0.000000e+00> : vector<8x128xf32>
    %638 = tpu.matmul %637, %636, %cst_340 {dimension_numbers = #tpu.dot_dimension_numbers<[1], [0], [0], [1], [0, 0, 1, 1], [], []>} : vector<8x512xbf16>, vector<512x128xbf16>, vector<8x128xf32> -> vector<8x128xf32>
    %c4_341 = arith.constant 4 : index
    %c0_342 = arith.constant 0 : index
    %c0_343 = arith.constant 0 : index
    %639 = vector.load %arg33[%c4_341, %c0_342, %c0_343] : memref<6x1x128xf32, #tpu.memory_space<vmem>>, vector<1x1x128xf32>
    %640 = vector.shape_cast %639 : vector<1x1x128xf32> to vector<1x128xf32>
    %641 = vector.broadcast %640 : vector<1x128xf32> to vector<8x128xf32>
    %642 = arith.addf %638, %641 : vector<8x128xf32>
    %cst_344 = arith.constant 5.000000e-01 : f32
    %643 = vector.broadcast %cst_344 : f32 to vector<8x128xf32>
    %644 = arith.mulf %643, %642 : vector<8x128xf32>
    %cst_345 = arith.constant 4.471500e-02 : f32
    %645 = vector.broadcast %cst_345 : f32 to vector<8x128xf32>
    %646 = arith.mulf %645, %642 : vector<8x128xf32>
    %647 = arith.mulf %646, %642 : vector<8x128xf32>
    %648 = arith.mulf %647, %642 : vector<8x128xf32>
    %649 = arith.addf %642, %648 : vector<8x128xf32>
    %cst_346 = arith.constant 0.797884583 : f32
    %650 = vector.broadcast %cst_346 : f32 to vector<8x128xf32>
    %651 = arith.mulf %650, %649 : vector<8x128xf32>
    %652 = math.tanh %651 : vector<8x128xf32>
    %cst_347 = arith.constant 1.000000e+00 : f32
    %653 = vector.broadcast %cst_347 : f32 to vector<8x128xf32>
    %654 = arith.addf %653, %652 : vector<8x128xf32>
    %655 = arith.mulf %644, %654 : vector<8x128xf32>
    %656 = arith.addf %655, %587 : vector<8x128xf32>
    %657 = arith.addf %656, %74 : vector<8x128xf32>
    %c5 = arith.constant 5 : index
    %c0_348 = arith.constant 0 : index
    %c0_349 = arith.constant 0 : index
    %658 = vector.load %arg22[%c5, %c0_348, %c0_349] : memref<6x1x128xf32, #tpu.memory_space<vmem>>, vector<1x1x128xf32>
    %659 = vector.shape_cast %658 : vector<1x1x128xf32> to vector<1x128xf32>
    %c5_350 = arith.constant 5 : index
    %c0_351 = arith.constant 0 : index
    %c0_352 = arith.constant 0 : index
    %660 = vector.load %arg23[%c5_350, %c0_351, %c0_352] : memref<6x1x128xf32, #tpu.memory_space<vmem>>, vector<1x1x128xf32>
    %661 = vector.shape_cast %660 : vector<1x1x128xf32> to vector<1x128xf32>
    %cst_353 = arith.constant dense<0.000000e+00> : vector<8xf32>
    %662 = vector.multi_reduction <add>, %657, %cst_353 [1] : vector<8x128xf32> to vector<8xf32>
    %663 = vector.shape_cast %662 : vector<8xf32> to vector<8x1xf32>
    %cst_354 = arith.constant 1.280000e+02 : f32
    %664 = vector.broadcast %cst_354 : f32 to vector<8x1xf32>
    %665 = arith.divf %663, %664 : vector<8x1xf32>
    %666 = vector.broadcast %665 : vector<8x1xf32> to vector<8x128xf32>
    %667 = arith.subf %657, %666 : vector<8x128xf32>
    %668 = arith.mulf %667, %667 : vector<8x128xf32>
    %cst_355 = arith.constant dense<0.000000e+00> : vector<8xf32>
    %669 = vector.multi_reduction <add>, %668, %cst_355 [1] : vector<8x128xf32> to vector<8xf32>
    %670 = vector.shape_cast %669 : vector<8xf32> to vector<8x1xf32>
    %cst_356 = arith.constant 1.280000e+02 : f32
    %671 = vector.broadcast %cst_356 : f32 to vector<8x1xf32>
    %672 = arith.divf %670, %671 : vector<8x1xf32>
    %673 = vector.broadcast %665 : vector<8x1xf32> to vector<8x128xf32>
    %674 = arith.subf %657, %673 : vector<8x128xf32>
    %cst_357 = arith.constant 9.99999974E-6 : f32
    %675 = vector.broadcast %cst_357 : f32 to vector<8x1xf32>
    %676 = arith.addf %672, %675 : vector<8x1xf32>
    %677 = math.rsqrt %676 : vector<8x1xf32>
    %678 = vector.broadcast %677 : vector<8x1xf32> to vector<8x128xf32>
    %679 = arith.mulf %674, %678 : vector<8x128xf32>
    %680 = vector.broadcast %659 : vector<1x128xf32> to vector<8x128xf32>
    %681 = arith.mulf %679, %680 : vector<8x128xf32>
    %682 = vector.broadcast %661 : vector<1x128xf32> to vector<8x128xf32>
    %683 = arith.addf %681, %682 : vector<8x128xf32>
    %c5_358 = arith.constant 5 : index
    %c0_359 = arith.constant 0 : index
    %c0_360 = arith.constant 0 : index
    %684 = vector.load %arg24[%c5_358, %c0_359, %c0_360] : memref<6x128x128xbf16, #tpu.memory_space<vmem>>, vector<1x128x128xbf16>
    %685 = vector.shape_cast %684 : vector<1x128x128xbf16> to vector<128x128xbf16>
    %686 = arith.truncf %683 : vector<8x128xf32> to vector<8x128xbf16>
    %cst_361 = arith.constant dense<0.000000e+00> : vector<8x128xf32>
    %687 = tpu.matmul %686, %685, %cst_361 {dimension_numbers = #tpu.dot_dimension_numbers<[1], [0], [0], [1], [0, 0, 1, 1], [], []>} : vector<8x128xbf16>, vector<128x128xbf16>, vector<8x128xf32> -> vector<8x128xf32>
    %c5_362 = arith.constant 5 : index
    %c0_363 = arith.constant 0 : index
    %c0_364 = arith.constant 0 : index
    %688 = vector.load %arg25[%c5_362, %c0_363, %c0_364] : memref<6x1x128xf32, #tpu.memory_space<vmem>>, vector<1x1x128xf32>
    %689 = vector.shape_cast %688 : vector<1x1x128xf32> to vector<1x128xf32>
    %690 = vector.broadcast %689 : vector<1x128xf32> to vector<8x128xf32>
    %691 = arith.addf %687, %690 : vector<8x128xf32>
    %c5_365 = arith.constant 5 : index
    %c0_366 = arith.constant 0 : index
    %c0_367 = arith.constant 0 : index
    %692 = vector.load %arg26[%c5_365, %c0_366, %c0_367] : memref<6x128x128xbf16, #tpu.memory_space<vmem>>, vector<1x128x128xbf16>
    %693 = vector.shape_cast %692 : vector<1x128x128xbf16> to vector<128x128xbf16>
    %694 = arith.truncf %691 : vector<8x128xf32> to vector<8x128xbf16>
    %cst_368 = arith.constant dense<0.000000e+00> : vector<8x128xf32>
    %695 = tpu.matmul %694, %693, %cst_368 {dimension_numbers = #tpu.dot_dimension_numbers<[1], [0], [0], [1], [0, 0, 1, 1], [], []>} : vector<8x128xbf16>, vector<128x128xbf16>, vector<8x128xf32> -> vector<8x128xf32>
    %c5_369 = arith.constant 5 : index
    %c0_370 = arith.constant 0 : index
    %c0_371 = arith.constant 0 : index
    %696 = vector.load %arg27[%c5_369, %c0_370, %c0_371] : memref<6x1x128xf32, #tpu.memory_space<vmem>>, vector<1x1x128xf32>
    %697 = vector.shape_cast %696 : vector<1x1x128xf32> to vector<1x128xf32>
    %698 = vector.broadcast %697 : vector<1x128xf32> to vector<8x128xf32>
    %699 = arith.addf %695, %698 : vector<8x128xf32>
    %700 = arith.addf %699, %656 : vector<8x128xf32>
    %c5_372 = arith.constant 5 : index
    %c0_373 = arith.constant 0 : index
    %c0_374 = arith.constant 0 : index
    %701 = vector.load %arg28[%c5_372, %c0_373, %c0_374] : memref<6x1x128xf32, #tpu.memory_space<vmem>>, vector<1x1x128xf32>
    %702 = vector.shape_cast %701 : vector<1x1x128xf32> to vector<1x128xf32>
    %c5_375 = arith.constant 5 : index
    %c0_376 = arith.constant 0 : index
    %c0_377 = arith.constant 0 : index
    %703 = vector.load %arg29[%c5_375, %c0_376, %c0_377] : memref<6x1x128xf32, #tpu.memory_space<vmem>>, vector<1x1x128xf32>
    %704 = vector.shape_cast %703 : vector<1x1x128xf32> to vector<1x128xf32>
    %cst_378 = arith.constant dense<0.000000e+00> : vector<8xf32>
    %705 = vector.multi_reduction <add>, %700, %cst_378 [1] : vector<8x128xf32> to vector<8xf32>
    %706 = vector.shape_cast %705 : vector<8xf32> to vector<8x1xf32>
    %cst_379 = arith.constant 1.280000e+02 : f32
    %707 = vector.broadcast %cst_379 : f32 to vector<8x1xf32>
    %708 = arith.divf %706, %707 : vector<8x1xf32>
    %709 = vector.broadcast %708 : vector<8x1xf32> to vector<8x128xf32>
    %710 = arith.subf %700, %709 : vector<8x128xf32>
    %711 = arith.mulf %710, %710 : vector<8x128xf32>
    %cst_380 = arith.constant dense<0.000000e+00> : vector<8xf32>
    %712 = vector.multi_reduction <add>, %711, %cst_380 [1] : vector<8x128xf32> to vector<8xf32>
    %713 = vector.shape_cast %712 : vector<8xf32> to vector<8x1xf32>
    %cst_381 = arith.constant 1.280000e+02 : f32
    %714 = vector.broadcast %cst_381 : f32 to vector<8x1xf32>
    %715 = arith.divf %713, %714 : vector<8x1xf32>
    %716 = vector.broadcast %708 : vector<8x1xf32> to vector<8x128xf32>
    %717 = arith.subf %700, %716 : vector<8x128xf32>
    %cst_382 = arith.constant 9.99999974E-6 : f32
    %718 = vector.broadcast %cst_382 : f32 to vector<8x1xf32>
    %719 = arith.addf %715, %718 : vector<8x1xf32>
    %720 = math.rsqrt %719 : vector<8x1xf32>
    %721 = vector.broadcast %720 : vector<8x1xf32> to vector<8x128xf32>
    %722 = arith.mulf %717, %721 : vector<8x128xf32>
    %723 = vector.broadcast %702 : vector<1x128xf32> to vector<8x128xf32>
    %724 = arith.mulf %722, %723 : vector<8x128xf32>
    %725 = vector.broadcast %704 : vector<1x128xf32> to vector<8x128xf32>
    %726 = arith.addf %724, %725 : vector<8x128xf32>
    %c5_383 = arith.constant 5 : index
    %c0_384 = arith.constant 0 : index
    %c0_385 = arith.constant 0 : index
    %727 = vector.load %arg30[%c5_383, %c0_384, %c0_385] : memref<6x128x512xbf16, #tpu.memory_space<vmem>>, vector<1x128x512xbf16>
    %728 = vector.shape_cast %727 : vector<1x128x512xbf16> to vector<128x512xbf16>
    %729 = arith.truncf %726 : vector<8x128xf32> to vector<8x128xbf16>
    %cst_386 = arith.constant dense<0.000000e+00> : vector<8x512xf32>
    %730 = tpu.matmul %729, %728, %cst_386 {dimension_numbers = #tpu.dot_dimension_numbers<[1], [0], [0], [1], [0, 0, 1, 1], [], []>} : vector<8x128xbf16>, vector<128x512xbf16>, vector<8x512xf32> -> vector<8x512xf32>
    %c5_387 = arith.constant 5 : index
    %c0_388 = arith.constant 0 : index
    %c0_389 = arith.constant 0 : index
    %731 = vector.load %arg31[%c5_387, %c0_388, %c0_389] : memref<6x1x512xf32, #tpu.memory_space<vmem>>, vector<1x1x512xf32>
    %732 = vector.shape_cast %731 : vector<1x1x512xf32> to vector<1x512xf32>
    %733 = vector.broadcast %732 : vector<1x512xf32> to vector<8x512xf32>
    %734 = arith.addf %730, %733 : vector<8x512xf32>
    %cst_390 = arith.constant 5.000000e-01 : f32
    %735 = vector.broadcast %cst_390 : f32 to vector<8x512xf32>
    %736 = arith.mulf %735, %734 : vector<8x512xf32>
    %cst_391 = arith.constant 4.471500e-02 : f32
    %737 = vector.broadcast %cst_391 : f32 to vector<8x512xf32>
    %738 = arith.mulf %737, %734 : vector<8x512xf32>
    %739 = arith.mulf %738, %734 : vector<8x512xf32>
    %740 = arith.mulf %739, %734 : vector<8x512xf32>
    %741 = arith.addf %734, %740 : vector<8x512xf32>
    %cst_392 = arith.constant 0.797884583 : f32
    %742 = vector.broadcast %cst_392 : f32 to vector<8x512xf32>
    %743 = arith.mulf %742, %741 : vector<8x512xf32>
    %744 = math.tanh %743 : vector<8x512xf32>
    %cst_393 = arith.constant 1.000000e+00 : f32
    %745 = vector.broadcast %cst_393 : f32 to vector<8x512xf32>
    %746 = arith.addf %745, %744 : vector<8x512xf32>
    %747 = arith.mulf %736, %746 : vector<8x512xf32>
    %c5_394 = arith.constant 5 : index
    %c0_395 = arith.constant 0 : index
    %c0_396 = arith.constant 0 : index
    %748 = vector.load %arg32[%c5_394, %c0_395, %c0_396] : memref<6x512x128xbf16, #tpu.memory_space<vmem>>, vector<1x512x128xbf16>
    %749 = vector.shape_cast %748 : vector<1x512x128xbf16> to vector<512x128xbf16>
    %750 = arith.truncf %747 : vector<8x512xf32> to vector<8x512xbf16>
    %cst_397 = arith.constant dense<0.000000e+00> : vector<8x128xf32>
    %751 = tpu.matmul %750, %749, %cst_397 {dimension_numbers = #tpu.dot_dimension_numbers<[1], [0], [0], [1], [0, 0, 1, 1], [], []>} : vector<8x512xbf16>, vector<512x128xbf16>, vector<8x128xf32> -> vector<8x128xf32>
    %c5_398 = arith.constant 5 : index
    %c0_399 = arith.constant 0 : index
    %c0_400 = arith.constant 0 : index
    %752 = vector.load %arg33[%c5_398, %c0_399, %c0_400] : memref<6x1x128xf32, #tpu.memory_space<vmem>>, vector<1x1x128xf32>
    %753 = vector.shape_cast %752 : vector<1x1x128xf32> to vector<1x128xf32>
    %754 = vector.broadcast %753 : vector<1x128xf32> to vector<8x128xf32>
    %755 = arith.addf %751, %754 : vector<8x128xf32>
    %cst_401 = arith.constant 5.000000e-01 : f32
    %756 = vector.broadcast %cst_401 : f32 to vector<8x128xf32>
    %757 = arith.mulf %756, %755 : vector<8x128xf32>
    %cst_402 = arith.constant 4.471500e-02 : f32
    %758 = vector.broadcast %cst_402 : f32 to vector<8x128xf32>
    %759 = arith.mulf %758, %755 : vector<8x128xf32>
    %760 = arith.mulf %759, %755 : vector<8x128xf32>
    %761 = arith.mulf %760, %755 : vector<8x128xf32>
    %762 = arith.addf %755, %761 : vector<8x128xf32>
    %cst_403 = arith.constant 0.797884583 : f32
    %763 = vector.broadcast %cst_403 : f32 to vector<8x128xf32>
    %764 = arith.mulf %763, %762 : vector<8x128xf32>
    %765 = math.tanh %764 : vector<8x128xf32>
    %cst_404 = arith.constant 1.000000e+00 : f32
    %766 = vector.broadcast %cst_404 : f32 to vector<8x128xf32>
    %767 = arith.addf %766, %765 : vector<8x128xf32>
    %768 = arith.mulf %757, %767 : vector<8x128xf32>
    %769 = arith.addf %768, %700 : vector<8x128xf32>
    %770 = arith.addf %769, %74 : vector<8x128xf32>
    %c0_405 = arith.constant 0 : index
    %c0_406 = arith.constant 0 : index
    %771 = vector.load %arg34[%c0_405, %c0_406] : memref<1x128xf32, #tpu.memory_space<vmem>>, vector<1x128xf32>
    %c0_407 = arith.constant 0 : index
    %c0_408 = arith.constant 0 : index
    %772 = vector.load %arg35[%c0_407, %c0_408] : memref<1x128xf32, #tpu.memory_space<vmem>>, vector<1x128xf32>
    %cst_409 = arith.constant dense<0.000000e+00> : vector<8xf32>
    %773 = vector.multi_reduction <add>, %770, %cst_409 [1] : vector<8x128xf32> to vector<8xf32>
    %774 = vector.shape_cast %773 : vector<8xf32> to vector<8x1xf32>
    %cst_410 = arith.constant 1.280000e+02 : f32
    %775 = vector.broadcast %cst_410 : f32 to vector<8x1xf32>
    %776 = arith.divf %774, %775 : vector<8x1xf32>
    %777 = vector.broadcast %776 : vector<8x1xf32> to vector<8x128xf32>
    %778 = arith.subf %770, %777 : vector<8x128xf32>
    %779 = arith.mulf %778, %778 : vector<8x128xf32>
    %cst_411 = arith.constant dense<0.000000e+00> : vector<8xf32>
    %780 = vector.multi_reduction <add>, %779, %cst_411 [1] : vector<8x128xf32> to vector<8xf32>
    %781 = vector.shape_cast %780 : vector<8xf32> to vector<8x1xf32>
    %cst_412 = arith.constant 1.280000e+02 : f32
    %782 = vector.broadcast %cst_412 : f32 to vector<8x1xf32>
    %783 = arith.divf %781, %782 : vector<8x1xf32>
    %784 = vector.broadcast %776 : vector<8x1xf32> to vector<8x128xf32>
    %785 = arith.subf %770, %784 : vector<8x128xf32>
    %cst_413 = arith.constant 9.99999974E-6 : f32
    %786 = vector.broadcast %cst_413 : f32 to vector<8x1xf32>
    %787 = arith.addf %783, %786 : vector<8x1xf32>
    %788 = math.rsqrt %787 : vector<8x1xf32>
    %789 = vector.broadcast %788 : vector<8x1xf32> to vector<8x128xf32>
    %790 = arith.mulf %785, %789 : vector<8x128xf32>
    %791 = vector.broadcast %771 : vector<1x128xf32> to vector<8x128xf32>
    %792 = arith.mulf %790, %791 : vector<8x128xf32>
    %793 = vector.broadcast %772 : vector<1x128xf32> to vector<8x128xf32>
    %794 = arith.addf %792, %793 : vector<8x128xf32>
    %c0_414 = arith.constant 0 : index
    %c0_415 = arith.constant 0 : index
    %795 = vector.load %arg36[%c0_414, %c0_415] : memref<128x4xbf16, #tpu.memory_space<vmem>>, vector<128x4xbf16>
    %796 = arith.truncf %794 : vector<8x128xf32> to vector<8x128xbf16>
    %cst_416 = arith.constant dense<0.000000e+00> : vector<8x4xf32>
    %797 = tpu.matmul %796, %795, %cst_416 {dimension_numbers = #tpu.dot_dimension_numbers<[1], [0], [0], [1], [0, 0, 1, 1], [], []>} : vector<8x128xbf16>, vector<128x4xbf16>, vector<8x4xf32> -> vector<8x4xf32>
    %c0_417 = arith.constant 0 : index
    %c0_418 = arith.constant 0 : index
    %798 = vector.load %arg37[%c0_417, %c0_418] : memref<1x4xf32, #tpu.memory_space<vmem>>, vector<1x4xf32>
    %799 = vector.broadcast %798 : vector<1x4xf32> to vector<8x4xf32>
    %800 = arith.addf %797, %799 : vector<8x4xf32>
    %c0_419 = arith.constant 0 : index
    %c0_420 = arith.constant 0 : index
    %801 = vector.load %arg38[%c0_419, %c0_420] : memref<8x4xf32, #tpu.memory_space<vmem>>, vector<8x4xf32>
    tpu.vector_store %arg38[%c0_419, %c0_420], %800 {strides = array<i32>} : memref<8x4xf32, #tpu.memory_space<vmem>>, vector<8x4xf32>,
    return
  }
  func.func @transform_0(%arg0: i32) -> (i32, i32) {
    %c0_i32 = arith.constant 0 : i32
    %c0_i32_0 = arith.constant 0 : i32
    return %arg0, %c0_i32 : i32, i32
  }
  func.func @transform_1(%arg0: i32) -> (i32, i32) {
    %c0_i32 = arith.constant 0 : i32
    %c0_i32_0 = arith.constant 0 : i32
    return %arg0, %c0_i32 : i32, i32
  }
  func.func @transform_2(%arg0: i32) -> (i32, i32) {
    %c0_i32 = arith.constant 0 : i32
    %c0_i32_0 = arith.constant 0 : i32
    return %arg0, %c0_i32 : i32, i32
  }
  func.func @transform_3(%arg0: i32) -> (i32, i32) {
    %c0_i32 = arith.constant 0 : i32
    %c0_i32_0 = arith.constant 0 : i32
    %c0_i32_1 = arith.constant 0 : i32
    return %c0_i32, %c0_i32_0 : i32, i32
  }
  func.func @transform_4(%arg0: i32) -> (i32, i32) {
    %c0_i32 = arith.constant 0 : i32
    %c0_i32_0 = arith.constant 0 : i32
    %c0_i32_1 = arith.constant 0 : i32
    return %c0_i32, %c0_i32_0 : i32, i32
  }
  func.func @transform_5(%arg0: i32) -> (i32, i32) {
    %c0_i32 = arith.constant 0 : i32
    %c0_i32_0 = arith.constant 0 : i32
    %c0_i32_1 = arith.constant 0 : i32
    return %c0_i32, %c0_i32_0 : i32, i32
  }
  func.func @transform_6(%arg0: i32) -> (i32, i32) {
    %c0_i32 = arith.constant 0 : i32
    %c0_i32_0 = arith.constant 0 : i32
    %c0_i32_1 = arith.constant 0 : i32
    return %c0_i32, %c0_i32_0 : i32, i32
  }
  func.func @transform_7(%arg0: i32) -> (i32, i32) {
    %c0_i32 = arith.constant 0 : i32
    %c0_i32_0 = arith.constant 0 : i32
    %c0_i32_1 = arith.constant 0 : i32
    return %c0_i32, %c0_i32_0 : i32, i32
  }
  func.func @transform_8(%arg0: i32) -> (i32, i32) {
    %c0_i32 = arith.constant 0 : i32
    %c0_i32_0 = arith.constant 0 : i32
    %c0_i32_1 = arith.constant 0 : i32
    return %c0_i32, %c0_i32_0 : i32, i32
  }
  func.func @transform_9(%arg0: i32) -> (i32, i32) {
    %c0_i32 = arith.constant 0 : i32
    %c0_i32_0 = arith.constant 0 : i32
    %c0_i32_1 = arith.constant 0 : i32
    return %c0_i32, %c0_i32_0 : i32, i32
  }
  func.func @transform_10(%arg0: i32) -> (i32, i32) {
    %c0_i32 = arith.constant 0 : i32
    %c0_i32_0 = arith.constant 0 : i32
    %c0_i32_1 = arith.constant 0 : i32
    return %c0_i32, %c0_i32_0 : i32, i32
  }
  func.func @transform_11(%arg0: i32) -> (i32, i32) {
    %c0_i32 = arith.constant 0 : i32
    %c0_i32_0 = arith.constant 0 : i32
    %c0_i32_1 = arith.constant 0 : i32
    return %c0_i32, %c0_i32_0 : i32, i32
  }
  func.func @transform_12(%arg0: i32) -> (i32, i32) {
    %c0_i32 = arith.constant 0 : i32
    %c0_i32_0 = arith.constant 0 : i32
    %c0_i32_1 = arith.constant 0 : i32
    return %c0_i32, %c0_i32_0 : i32, i32
  }
  func.func @transform_13(%arg0: i32) -> (i32, i32) {
    %c0_i32 = arith.constant 0 : i32
    %c0_i32_0 = arith.constant 0 : i32
    %c0_i32_1 = arith.constant 0 : i32
    return %c0_i32, %c0_i32_0 : i32, i32
  }
  func.func @transform_14(%arg0: i32) -> (i32, i32) {
    %c0_i32 = arith.constant 0 : i32
    %c0_i32_0 = arith.constant 0 : i32
    %c0_i32_1 = arith.constant 0 : i32
    return %c0_i32, %c0_i32_0 : i32, i32
  }
  func.func @transform_15(%arg0: i32) -> (i32, i32) {
    %c0_i32 = arith.constant 0 : i32
    %c0_i32_0 = arith.constant 0 : i32
    %c0_i32_1 = arith.constant 0 : i32
    return %c0_i32, %c0_i32_0 : i32, i32
  }
  func.func @transform_16(%arg0: i32) -> (i32, i32) {
    %c0_i32 = arith.constant 0 : i32
    %c0_i32_0 = arith.constant 0 : i32
    %c0_i32_1 = arith.constant 0 : i32
    return %c0_i32, %c0_i32_0 : i32, i32
  }
  func.func @transform_17(%arg0: i32) -> (i32, i32) {
    %c0_i32 = arith.constant 0 : i32
    %c0_i32_0 = arith.constant 0 : i32
    %c0_i32_1 = arith.constant 0 : i32
    return %c0_i32, %c0_i32_0 : i32, i32
  }
  func.func @transform_18(%arg0: i32) -> (i32, i32) {
    %c0_i32 = arith.constant 0 : i32
    %c0_i32_0 = arith.constant 0 : i32
    %c0_i32_1 = arith.constant 0 : i32
    return %c0_i32, %c0_i32_0 : i32, i32
  }
  func.func @transform_19(%arg0: i32) -> (i32, i32) {
    %c0_i32 = arith.constant 0 : i32
    %c0_i32_0 = arith.constant 0 : i32
    %c0_i32_1 = arith.constant 0 : i32
    return %c0_i32, %c0_i32_0 : i32, i32
  }
  func.func @transform_20(%arg0: i32) -> (i32, i32) {
    %c0_i32 = arith.constant 0 : i32
    %c0_i32_0 = arith.constant 0 : i32
    %c0_i32_1 = arith.constant 0 : i32
    return %c0_i32, %c0_i32_0 : i32, i32
  }
  func.func @transform_21(%arg0: i32) -> (i32, i32, i32) {
    %c0_i32 = arith.constant 0 : i32
    %c0_i32_0 = arith.constant 0 : i32
    %c0_i32_1 = arith.constant 0 : i32
    %c0_i32_2 = arith.constant 0 : i32
    return %c0_i32, %c0_i32_0, %c0_i32_1 : i32, i32, i32
  }
  func.func @transform_22(%arg0: i32) -> (i32, i32, i32) {
    %c0_i32 = arith.constant 0 : i32
    %c0_i32_0 = arith.constant 0 : i32
    %c0_i32_1 = arith.constant 0 : i32
    %c0_i32_2 = arith.constant 0 : i32
    return %c0_i32, %c0_i32_0, %c0_i32_1 : i32, i32, i32
  }
  func.func @transform_23(%arg0: i32) -> (i32, i32, i32) {
    %c0_i32 = arith.constant 0 : i32
    %c0_i32_0 = arith.constant 0 : i32
    %c0_i32_1 = arith.constant 0 : i32
    %c0_i32_2 = arith.constant 0 : i32
    return %c0_i32, %c0_i32_0, %c0_i32_1 : i32, i32, i32
  }
  func.func @transform_24(%arg0: i32) -> (i32, i32, i32) {
    %c0_i32 = arith.constant 0 : i32
    %c0_i32_0 = arith.constant 0 : i32
    %c0_i32_1 = arith.constant 0 : i32
    %c0_i32_2 = arith.constant 0 : i32
    return %c0_i32, %c0_i32_0, %c0_i32_1 : i32, i32, i32
  }
  func.func @transform_25(%arg0: i32) -> (i32, i32, i32) {
    %c0_i32 = arith.constant 0 : i32
    %c0_i32_0 = arith.constant 0 : i32
    %c0_i32_1 = arith.constant 0 : i32
    %c0_i32_2 = arith.constant 0 : i32
    return %c0_i32, %c0_i32_0, %c0_i32_1 : i32, i32, i32
  }
  func.func @transform_26(%arg0: i32) -> (i32, i32, i32) {
    %c0_i32 = arith.constant 0 : i32
    %c0_i32_0 = arith.constant 0 : i32
    %c0_i32_1 = arith.constant 0 : i32
    %c0_i32_2 = arith.constant 0 : i32
    return %c0_i32, %c0_i32_0, %c0_i32_1 : i32, i32, i32
  }
  func.func @transform_27(%arg0: i32) -> (i32, i32, i32) {
    %c0_i32 = arith.constant 0 : i32
    %c0_i32_0 = arith.constant 0 : i32
    %c0_i32_1 = arith.constant 0 : i32
    %c0_i32_2 = arith.constant 0 : i32
    return %c0_i32, %c0_i32_0, %c0_i32_1 : i32, i32, i32
  }
  func.func @transform_28(%arg0: i32) -> (i32, i32, i32) {
    %c0_i32 = arith.constant 0 : i32
    %c0_i32_0 = arith.constant 0 : i32
    %c0_i32_1 = arith.constant 0 : i32
    %c0_i32_2 = arith.constant 0 : i32
    return %c0_i32, %c0_i32_0, %c0_i32_1 : i32, i32, i32
  }
  func.func @transform_29(%arg0: i32) -> (i32, i32, i32) {
    %c0_i32 = arith.constant 0 : i32
    %c0_i32_0 = arith.constant 0 : i32
    %c0_i32_1 = arith.constant 0 : i32
    %c0_i32_2 = arith.constant 0 : i32
    return %c0_i32, %c0_i32_0, %c0_i32_1 : i32, i32, i32
  }
  func.func @transform_30(%arg0: i32) -> (i32, i32, i32) {
    %c0_i32 = arith.constant 0 : i32
    %c0_i32_0 = arith.constant 0 : i32
    %c0_i32_1 = arith.constant 0 : i32
    %c0_i32_2 = arith.constant 0 : i32
    return %c0_i32, %c0_i32_0, %c0_i32_1 : i32, i32, i32
  }
  func.func @transform_31(%arg0: i32) -> (i32, i32, i32) {
    %c0_i32 = arith.constant 0 : i32
    %c0_i32_0 = arith.constant 0 : i32
    %c0_i32_1 = arith.constant 0 : i32
    %c0_i32_2 = arith.constant 0 : i32
    return %c0_i32, %c0_i32_0, %c0_i32_1 : i32, i32, i32
  }
  func.func @transform_32(%arg0: i32) -> (i32, i32, i32) {
    %c0_i32 = arith.constant 0 : i32
    %c0_i32_0 = arith.constant 0 : i32
    %c0_i32_1 = arith.constant 0 : i32
    %c0_i32_2 = arith.constant 0 : i32
    return %c0_i32, %c0_i32_0, %c0_i32_1 : i32, i32, i32
  }
  func.func @transform_33(%arg0: i32) -> (i32, i32) {
    %c0_i32 = arith.constant 0 : i32
    %c0_i32_0 = arith.constant 0 : i32
    %c0_i32_1 = arith.constant 0 : i32
    return %c0_i32, %c0_i32_0 : i32, i32
  }
  func.func @transform_34(%arg0: i32) -> (i32, i32) {
    %c0_i32 = arith.constant 0 : i32
    %c0_i32_0 = arith.constant 0 : i32
    %c0_i32_1 = arith.constant 0 : i32
    return %c0_i32, %c0_i32_0 : i32, i32
  }
  func.func @transform_35(%arg0: i32) -> (i32, i32) {
    %c0_i32 = arith.constant 0 : i32
    %c0_i32_0 = arith.constant 0 : i32
    %c0_i32_1 = arith.constant 0 : i32
    return %c0_i32, %c0_i32_0 : i32, i32
  }
  func.func @transform_36(%arg0: i32) -> (i32, i32) {
    %c0_i32 = arith.constant 0 : i32
    %c0_i32_0 = arith.constant 0 : i32
    %c0_i32_1 = arith.constant 0 : i32
    return %c0_i32, %c0_i32_0 : i32, i32
  }
  func.func @transform_37(%arg0: i32) -> (i32, i32) {
    %c0_i32 = arith.constant 0 : i32
    %c0_i32_0 = arith.constant 0 : i32
    return %arg0, %c0_i32 : i32, i32
  }
}

</mosaic_0001>

<bundles_post_ra>
// kernel: tile.13
= control target key start
LH: loop header
LB: loop body
LE: loop exit
PB: predicated region body
PF: predicated region fallthrough
CT: control target
= control target key end

     0   :  { %s30_s10 = smov 3  ;;  %s11_s11 = smov 3  ;;  %vm13_vm0 = vcmask 23552   ;;  %vm20_vm1 = vcmask 97352   ;;  %vm27_vm2 = vcmask 72752   ;;  %vm34_vm3 = vcmask 48152   ;;  %s70_s0 = inlined_call_operand.vmem [shape: f32[2,4,3], index: 0, kind: input, shape index: {}]   ;;  %s71_s1 = inlined_call_operand.vmem [shape: f32[2,12], index: 1, kind: output, shape index: {}]  }
   0x1   :  { %v44_v0 = vld [vmem:[%s70_s0 + $0x4] sm:$0xf]  ;;  %v9_v1 = vld [vmem:[%s70_s0] sm:$0xf]  ;;  %s16_s0 = smov 3  ;;  %s23_s12 = smov 3 }
   0x2   :  { %8 = vst [vmem:[#allocation1 + $0x8] sm:$0xf] %v44_v0  ;;  %10 = vst [vmem:[#allocation1] sm:$0xf] %v9_v1  ;;  %s48_s13 = smov 9   ;;  %s49_s14 = smov 3  }
   0x3   :  { %s50_s15 = smov 6  }
   0x9   :  { %v17_v2 = vld [vmem:[#allocation1 + $0x3] ss:$8 sm:%s16_s0]   ;;  %v31_v3 = vld [vmem:[#allocation1 + $0x1] ss:$8 sm:%s30_s10]   ;;  %v12_v4 = vld [vmem:[#allocation1] ss:$8 sm:%s11_s11]  }
   0xa   :  { %18 = vrot.lane.b32.xlu0 %v17_v2, %s48_s13  ;;  %32 = vrot.lane.b32.xlu1 %v31_v3, %s49_s14  ;;  %v24_v5 = vld [vmem:[#allocation1 + $0x2] ss:$8 sm:%s23_s12]   ;;  %14 = vst.msk [vmem:[#allocation0] sm:$0x3] %vm13_vm0, %v12_v4  }
   0xe   :  { %25 = vrot.lane.b32.xlu0 %v24_v5, %s50_s15 }
  0x7c   :  { %v19_v6 = vpop.permute.xlu0 %18   ;;  %v33_v7 = vpop.permute.xlu1 %32  }
  0x7d   :  { %21 = vst.msk [vmem:[#allocation0] sm:$0x3] %vm20_vm1, %v19_v6  }
  0x80   :  { %v26_v8 = vpop.permute.xlu0 %25  }
  0x81   :  { %28 = vst.msk [vmem:[#allocation0] sm:$0x3] %vm27_vm2, %v26_v8  }
  0x82   :  { %35 = vst.msk [vmem:[#allocation0] sm:$0x3] %vm34_vm3, %v33_v7  }
  0x89   :  { %v40_v9 = vld [vmem:[#allocation0] sm:$0x3] }
  0x8a   :  { %43 = vst [vmem:[%s71_s1] sm:$0x3] %v40_v9 }

// kernel: _lambda_.1
= control target key start
LH: loop header
LB: loop body
LE: loop exit
PB: predicated region body
PF: predicated region fallthrough
CT: control target
= control target key end

     0   :  { %s10153_s6 = smov 1   ;;  %s10154_s10 = smov 2   ;;  %s10833_s0 = inlined_call_operand.smem [shape: u32[38], index: -1, kind: input, shape index: {}] }
   0x1   :  { %s10233_s5 = sld [smem:[%s10833_s0]]   ;;  %s10155_s14 = smov 3  }
   0x2   :  { %s10238_s9 = sld [smem:[%s10833_s0 + %s10153_s6]]   ;;  %s10156_s18 = smov 4  }
   0x3   :  { %s10243_s13 = sld [smem:[%s10833_s0 + %s10154_s10]]   ;;  %s10157_s22 = smov 5  }
   0x4   :  { %s10248_s17 = sld [smem:[%s10833_s0 + %s10155_s14]]   ;;  %s10158_s26 = smov 6  }
   0x5   :  { %s10253_s21 = sld [smem:[%s10833_s0 + %s10156_s18]]   ;;  %s10159_s30 = smov 7  }
   0x6   :  { %s10258_s25 = sld [smem:[%s10833_s0 + %s10157_s22]]   ;;  %s10160_s4 = smov 8  }
   0x7   :  { %10841 = sst [smem:[#allocation52_spill]] %s10233_s5  ;;  %s10161_s10 = smov 9  }
   0x8   :  { %10842 = sst [smem:[#allocation53_spill]] %s10238_s9  ;;  %s10162_s15 = smov 10  }
   0x9   :  { %10843 = sst [smem:[#allocation54_spill]] %s10243_s13  ;;  %s10163_s20 = smov 11  }
   0xa   :  { %s10263_s29 = sld [smem:[%s10833_s0 + %s10158_s26]]   ;;  %s10164_s26 = smov 12  }
   0xb   :  { %s10268_s3 = sld [smem:[%s10833_s0 + %s10159_s30]]   ;;  %s10165_s1 = smov 13  }
   0xc   :  { %s10273_s8 = sld [smem:[%s10833_s0 + %s10160_s4]]   ;;  %s10166_s7 = smov 14  }
   0xd   :  { %s10278_s14 = sld [smem:[%s10833_s0 + %s10161_s10]]   ;;  %s10168_s22 = smov 16  }
   0xe   :  { %s10283_s19 = sld [smem:[%s10833_s0 + %s10162_s15]]   ;;  %s10167_s15 = smov 15  }
   0xf   :  { %s10288_s24 = sld [smem:[%s10833_s0 + %s10163_s20]]   ;;  %s10169_s28 = smov 17  }
  0x10   :  { %s10293_s30 = sld [smem:[%s10833_s0 + %s10164_s26]]  }
  0x11   :  { %s10298_s6 = sld [smem:[%s10833_s0 + %s10165_s1]]  }
  0x12   :  { %s10303_s12 = sld [smem:[%s10833_s0 + %s10166_s7]]   ;;  %s10170_s7 = smov 18  }
  0x13   :  { %10844 = sst [smem:[#allocation55_spill]] %s10278_s14 }
  0x14   :  { %s10308_s20 = sld [smem:[%s10833_s0 + %s10167_s15]]   ;;  %s10171_s15 = smov 19  }
  0x15   :  { %10845 = sst [smem:[#allocation56_spill]] %s10288_s24 }
  0x16   :  { %s10313_s27 = sld [smem:[%s10833_s0 + %s10168_s22]]   ;;  %s10172_s22 = smov 20  }
  0x17   :  { %10846 = sst [smem:[#allocation57_spill]] %s10298_s6 }
  0x18   :  { %s10318_s4 = sld [smem:[%s10833_s0 + %s10169_s28]]   ;;  %s10173_s28 = smov 21  }
  0x19   :  { %s10323_s5 = sld [smem:[%s10833_s0 + %s10170_s7]]   ;;  %s10174_s7 = smov 22  }
  0x1a   :  { %10847 = sst [smem:[#allocation58_spill]] %s10308_s20 }
  0x1b   :  { %s10328_s20 = sld [smem:[%s10833_s0 + %s10171_s15]]   ;;  %s10175_s15 = smov 23  }
  0x1c   :  { %10848 = sst [smem:[#allocation59_spill]] %s10313_s27 }
  0x1d   :  { %s10333_s13 = sld [smem:[%s10833_s0 + %s10172_s22]]   ;;  %s10176_s22 = smov 24  }
  0x1e   :  { %s10338_s9 = sld [smem:[%s10833_s0 + %s10173_s28]]   ;;  %s10177_s28 = smov 25  }
  0x1f   :  { %10849 = sst [smem:[#allocation60_spill]] %s10323_s5 }
  0x20   :  { %s10343_s5 = sld [smem:[%s10833_s0 + %s10174_s7]]   ;;  %s10178_s7 = smov 26  }
  0x21   :  { %s10348_s27 = sld [smem:[%s10833_s0 + %s10175_s15]]   ;;  %s10179_s15 = smov 27  }
  0x22   :  { %s10368_s6 = sld [smem:[%s10833_s0 + %s10179_s15]]   ;;  %s10183_s15 = smov 31  }
  0x23   :  { %10850 = sst [smem:[#allocation61_spill]] %s10333_s13 }
  0x24   :  { %10851 = sst [smem:[#allocation62_spill]] %s10338_s9 }
  0x25   :  { %s10353_s13 = sld [smem:[%s10833_s0 + %s10176_s22]]   ;;  %s10180_s22 = smov 28  }
  0x26   :  { %10852 = sst [smem:[#allocation63_spill]] %s10343_s5 }
  0x27   :  { %s10358_s9 = sld [smem:[%s10833_s0 + %s10177_s28]]   ;;  %s10181_s28 = smov 29  }
  0x28   :  { %s10363_s5 = sld [smem:[%s10833_s0 + %s10178_s7]]   ;;  %s10182_s7 = smov 30  }
  0x29   :  { %10855 = sst [smem:[#allocation66_spill]] %s10368_s6 }
  0x2a   :  { %s10378_s24 = sld [smem:[%s10833_s0 + %s10181_s28]]   ;;  %s10185_s28 = smov 33  }
  0x2b   :  { %10853 = sst [smem:[#allocation64_spill]] %s10353_s13 }
  0x2c   :  { %s10373_s13 = sld [smem:[%s10833_s0 + %s10180_s22]]   ;;  %s10184_s22 = smov 32  }
  0x2d   :  { %s10388_s6 = sld [smem:[%s10833_s0 + %s10183_s15]]   ;;  %s10187_s15 = smov 35  }
  0x2e   :  { %10854 = sst [smem:[#allocation65_spill]] %s10363_s5 }
  0x2f   :  { %s10383_s5 = sld [smem:[%s10833_s0 + %s10182_s7]]   ;;  %s10186_s7 = smov 34  }
  0x30   :  { %s10398_s14 = sld [smem:[%s10833_s0 + %s10185_s28]]   ;;  %s10189_s28 = smov 37  }
  0x32   :  { %10856 = sst [smem:[#allocation67_spill]] %s10373_s13 }
  0x33   :  { %10858 = sst [smem:[#allocation69_spill]] %s10388_s6 }
  0x34   :  { %s10393_s13 = sld [smem:[%s10833_s0 + %s10184_s22]]   ;;  %s10188_s22 = smov 36  }
  0x35   :  { %10857 = sst [smem:[#allocation68_spill]] %s10383_s5 }
  0x36   :  { %10860 = sst [smem:[#allocation71_spill]] %s10398_s14 }
  0x37   :  { %s10403_s5 = sld [smem:[%s10833_s0 + %s10186_s7]]  }
  0x38   :  { %s10408_s6 = sld [smem:[%s10833_s0 + %s10187_s15]]  }
  0x39   :  { %s10418_s14 = sld [smem:[%s10833_s0 + %s10189_s28]]  }
  0x3a   :  { %10859 = sst [smem:[#allocation70_spill]] %s10393_s13 }
  0x3b   :  { %s10413_s13 = sld [smem:[%s10833_s0 + %s10188_s22]]  }
  0x3c   :  { %80 = vsyncpa [#allocation3], 0 }
  0x3d   :  { %81 = vsyncpa [#allocation5], 0 }
  0x3e   :  { %82 = vsyncpa [#allocation8], 0 }
  0x3f   :  { %83 = vsyncpa [#allocation11], 0 }
  0x40   :  { %84 = vsyncpa [#allocation14], 0 }
  0x41   :  { %85 = vsyncpa [#allocation17], 0 }
  0x42   :  { %86 = vsyncpa [#allocation20], 0 }
  0x43   :  { %87 = vsyncpa [#allocation23], 0 }
  0x44   :  { %88 = vsyncpa [#allocation26], 0 }
  0x45   :  { %89 = vsyncpa [#allocation29], 0 }
  0x46   :  { %90 = vsyncpa [#allocation32], 0 }
  0x47   :  { %91 = vsyncpa [#allocation35], 0 }
  0x48   :  { %92 = vsyncpa [#allocation38], 0  ;;  %s10190_s7 = smov [#allocation4]   ;;  %s10191_s11 = smov [#allocation7]  }
  0x49   :  { %s117_s10 = sshll.u32 %s10190_s7, 4  ;;  %s139_s15 = sshll.u32 %s10191_s11, 4  ;;  %s118_s10 = int_to_ptr.vmem [resolvable:$true] %s117_s10  ;;  %s140_s15 = int_to_ptr.vmem [resolvable:$true] %s139_s15 }
  0x4a   :  { %s9655_s0 = scalar_lea.vmem %s118_s10, 16  ;;  %s9659_s16 = scalar_lea.vmem %s118_s10, 32 }
  0x4b   :  { %p9656_p0 = scmp.ne.s32.totalorder %s118_s10, %s9655_s0  ;;  %p9660_p1 = scmp.lt.s32.totalorder %s118_s10, %s118_s10 }
  0x4c   :  { %p9661_p2 = scmp.lt.s32.totalorder %s9659_s16, %s9655_s0 }
  0x4e   :  { %p9662_p3 = por %p9661_p2, %p9660_p1 }
  0x50   :  { %p9663_p4 = pnand %p9662_p3, %p9656_p0 }
  0x52   :  { %9666 = shalt.err (!%p9663_p4)
}
  0x53   :  { %120 = dma.hbm_to_vmem [thread:$0]  %s10253_s21, 16, %s118_s10, [#allocation5]  }
  0x54   :  { %s9675_s18 = scalar_lea.vmem %s140_s15, 16  ;;  %s9679_s22 = scalar_lea.vmem %s140_s15, 32 }
  0x55   :  { %p9676_p5 = scmp.ne.s32.totalorder %s140_s15, %s9675_s18  ;;  %p9680_p6 = scmp.lt.s32.totalorder %s140_s15, %s140_s15 }
  0x56   :  { %p9681_p7 = scmp.lt.s32.totalorder %s9679_s22, %s9675_s18 }
  0x58   :  { %p9682_p8 = por %p9681_p7, %p9680_p6 }
  0x5a   :  { %p9683_p9 = pnand %p9682_p8, %p9676_p5 }
  0x5c   :  { %9686 = shalt.err (!%p9683_p9)
}
  0x5d   :  { %142 = dma.hbm_to_vmem [thread:$0]  %s10263_s29, 16, %s140_s15, [#allocation8]  }
  0x5e   :  { %s10192_s23 = smov [#allocation10]   ;;  %s10193_s28 = smov [#allocation13]  }
  0x5f   :  { %s161_s26 = sshll.u32 %s10192_s23, 4  ;;  %s183_s1 = sshll.u32 %s10193_s28, 4  ;;  %s162_s26 = int_to_ptr.vmem [resolvable:$true] %s161_s26  ;;  %s184_s1 = int_to_ptr.vmem [resolvable:$true] %s183_s1 }
  0x60   :  { %s9695_s2 = scalar_lea.vmem %s162_s26, 16  ;;  %s9699_s7 = scalar_lea.vmem %s162_s26, 32 }
  0x61   :  { %p9696_p10 = scmp.ne.s32.totalorder %s162_s26, %s9695_s2  ;;  %p9700_p11 = scmp.lt.s32.totalorder %s162_s26, %s162_s26 }
  0x62   :  { %p9701_p12 = scmp.lt.s32.totalorder %s9699_s7, %s9695_s2 }
  0x64   :  { %p9702_p13 = por %p9701_p12, %p9700_p11 }
  0x66   :  { %p9703_p0 = pnand %p9702_p13, %p9696_p10 }
  0x68   :  { %9706 = shalt.err (!%p9703_p0)
}
  0x69   :  { %164 = dma.hbm_to_vmem [thread:$0]  %s10273_s8, 16, %s162_s26, [#allocation11]  }
  0x6a   :  { %s9715_s21 = scalar_lea.vmem %s184_s1, 16  ;;  %s9719_s10 = scalar_lea.vmem %s184_s1, 32 }
  0x6b   :  { %p9716_p1 = scmp.ne.s32.totalorder %s184_s1, %s9715_s21  ;;  %p9720_p2 = scmp.lt.s32.totalorder %s184_s1, %s184_s1 }
  0x6c   :  { %p9721_p3 = scmp.lt.s32.totalorder %s9719_s10, %s9715_s21 }
  0x6e   :  { %p9722_p4 = por %p9721_p3, %p9720_p2 }
  0x70   :  { %p9723_p5 = pnand %p9722_p4, %p9716_p1 }
  0x72   :  { %9726 = shalt.err (!%p9723_p5)
}
  0x73   :  { %186 = dma.hbm_to_vmem [thread:$0]  %s10283_s19, 16, %s184_s1, [#allocation14]  }
  0x74   :  { %s10194_s29 = smov [#allocation16]   ;;  %s10195_s15 = smov [#allocation19]  }
  0x75   :  { %s205_s11 = sshll.u32 %s10194_s29, 4  ;;  %s227_s0 = sshll.u32 %s10195_s15, 4  ;;  %s206_s11 = int_to_ptr.vmem [resolvable:$true] %s205_s11  ;;  %s228_s0 = int_to_ptr.vmem [resolvable:$true] %s227_s0 }
  0x76   :  { %s9735_s16 = scalar_lea.vmem %s206_s11, 16  ;;  %s9739_s18 = scalar_lea.vmem %s206_s11, 32 }
  0x77   :  { %p9736_p6 = scmp.ne.s32.totalorder %s206_s11, %s9735_s16  ;;  %p9740_p7 = scmp.lt.s32.totalorder %s206_s11, %s206_s11 }
  0x78   :  { %p9741_p8 = scmp.lt.s32.totalorder %s9739_s18, %s9735_s16 }
  0x7a   :  { %p9742_p9 = por %p9741_p8, %p9740_p7 }
  0x7c   :  { %p9743_p10 = pnand %p9742_p9, %p9736_p6 }
  0x7e   :  { %9746 = shalt.err (!%p9743_p10)
}
  0x7f   :  { %208 = dma.hbm_to_vmem [thread:$0]  %s10293_s30, 16, %s206_s11, [#allocation17]  }
  0x80   :  { %s9755_s8 = scalar_lea.vmem %s228_s0, 32  ;;  %p9760_p12 = scmp.lt.s32.totalorder %s228_s0, %s228_s0 }
  0x81   :  { %p9756_p11 = scmp.ne.s32.totalorder %s228_s0, %s9755_s8  ;;  %p9761_p13 = scmp.lt.s32.totalorder %s9755_s8, %s9755_s8 }
  0x83   :  { %p9762_p0 = por %p9761_p13, %p9760_p12 }
  0x85   :  { %p9763_p1 = pnand %p9762_p0, %p9756_p11 }
  0x87   :  { %9766 = shalt.err (!%p9763_p1)
}
  0x88   :  { %230 = dma.hbm_to_vmem [thread:$0]  %s10303_s12, 32, %s228_s0, [#allocation20]  }
  0x89   :  { %s10196_s19 = smov [#allocation22]  }
  0x8a   :  { %s249_s22 = sshll.u32 %s10196_s19, 4  ;;  %s250_s22 = int_to_ptr.vmem [resolvable:$true] %s249_s22 }
  0x8b   :  { %s9775_s23 = scalar_lea.vmem %s250_s22, 32  ;;  %p9780_p3 = scmp.lt.s32.totalorder %s250_s22, %s250_s22 }
  0x8c   :  { %p9776_p2 = scmp.ne.s32.totalorder %s250_s22, %s9775_s23  ;;  %p9781_p4 = scmp.lt.s32.totalorder %s9775_s23, %s9775_s23 }
  0x8e   :  { %p9782_p5 = por %p9781_p4, %p9780_p3 }
  0x90   :  { %p9783_p6 = pnand %p9782_p5, %p9776_p2 }
  0x92   :  { %9786 = shalt.err (!%p9783_p6)
}
  0x93   :  { %252 = dma.hbm_to_vmem [thread:$0]  %s10318_s4, 32, %s250_s22, [#allocation23]  }
  0x94   :  { %s10197_s30 = smov [#allocation25]   ;;  %s10198_s28 = smov [#allocation28]  }
  0x95   :  { %s268_s26 = sshll.u32 %s10197_s30, 4  ;;  %s294_s1 = sshll.u32 %s10198_s28, 4  ;;  %s269_s26 = int_to_ptr.vmem [resolvable:$true] %s268_s26  ;;  %s295_s1 = int_to_ptr.vmem [resolvable:$true] %s294_s1 }
  0x96   :  { %s9795_s2 = scalar_lea.vmem %s269_s26, 1024  ;;  %p9800_p8 = scmp.lt.s32.totalorder %s269_s26, %s269_s26 }
  0x97   :  { %p9796_p7 = scmp.ne.s32.totalorder %s269_s26, %s9795_s2  ;;  %p9801_p9 = scmp.lt.s32.totalorder %s9795_s2, %s9795_s2 }
  0x99   :  { %p9802_p10 = por %p9801_p9, %p9800_p8 }
  0x9b   :  { %p9803_p11 = pnand %p9802_p10, %p9796_p7 }
  0x9d   :  { %9806 = shalt.err (!%p9803_p11)
}
  0x9e   :  { %s10199_s12 = smov 64   ;;  %s10200_s7 = smov 4  }
  0x9f   :  { %274 = dma.hbm_to_vmem [thread:$0]  %s10328_s20, 1024, %s269_s26, [#allocation26], %s10199_s12, %s10199_s12, %s10200_s7  }
  0xa0   :  { %s9815_s4 = scalar_lea.vmem %s295_s1, 6144  ;;  %p9820_p13 = scmp.lt.s32.totalorder %s295_s1, %s295_s1 }
  0xa1   :  { %p9816_p12 = scmp.ne.s32.totalorder %s295_s1, %s9815_s4  ;;  %p9821_p0 = scmp.lt.s32.totalorder %s9815_s4, %s9815_s4 }
  0xa3   :  { %p9822_p1 = por %p9821_p0, %p9820_p13 }
  0xa5   :  { %p9823_p2 = pnand %p9822_p1, %p9816_p12 }
  0xa7   :  { %9826 = shalt.err (!%p9823_p2)
}
  0xa8   :  { %300 = dma.hbm_to_vmem [thread:$0]  %s10348_s27, 6144, %s295_s1, [#allocation29], %s10199_s12, %s10199_s12, %s10200_s7  }
  0xa9   :  { %s10201_s21 = smov [#allocation31]  }
  0xaa   :  { %s318_s10 = sshll.u32 %s10201_s21, 4  ;;  %s319_s10 = int_to_ptr.vmem [resolvable:$true] %s318_s10 }
  0xab   :  { %s9835_s29 = scalar_lea.vmem %s319_s10, 6144  ;;  %p9840_p4 = scmp.lt.s32.totalorder %s319_s10, %s319_s10 }
  0xac   :  { %p9836_p3 = scmp.ne.s32.totalorder %s319_s10, %s9835_s29  ;;  %p9841_p5 = scmp.lt.s32.totalorder %s9835_s29, %s9835_s29 }
  0xae   :  { %p9842_p6 = por %p9841_p5, %p9840_p4 }
  0xb0   :  { %p9843_p7 = pnand %p9842_p6, %p9836_p3 }
  0xb2   :  { %9846 = shalt.err (!%p9843_p7)
}
  0xb3   :  { %324 = dma.hbm_to_vmem [thread:$0]  %s10358_s9, 6144, %s319_s10, [#allocation32], %s10199_s12, %s10199_s12, %s10200_s7  }
  0xb4   :  { %s10202_s20 = smov [#allocation34]  }
  0xb5   :  { %s346_s11 = sshll.u32 %s10202_s20, 4  ;;  %s347_s11 = int_to_ptr.vmem [resolvable:$true] %s346_s11 }
  0xb6   :  { %s9855_s15 = scalar_lea.vmem %s347_s11, 24576  ;;  %p9860_p9 = scmp.lt.s32.totalorder %s347_s11, %s347_s11 }
  0xb7   :  { %p9856_p8 = scmp.ne.s32.totalorder %s347_s11, %s9855_s15  ;;  %p9861_p10 = scmp.lt.s32.totalorder %s9855_s15, %s9855_s15 }
  0xb9   :  { %p9862_p11 = por %p9861_p10, %p9860_p9 }
  0xbb   :  { %p9863_p12 = pnand %p9862_p11, %p9856_p8 }
  0xbd   :  { %9866 = shalt.err (!%p9863_p12)
}
  0xbe   :  { %s10203_s27 = smov 256   ;;  %s10204_s0 = smov 16  }
  0xbf   :  { %352 = dma.hbm_to_vmem [thread:$0]  %s10378_s24, 24576, %s347_s11, [#allocation35], %s10203_s27, %s10203_s27, %s10204_s0  }
  0xc0   :  { %s10205_s16 = smov [#allocation2]   ;;  %s10206_s8 = smov [#allocation6]  }
  0xc1   :  { %s104_s18 = sshll.u32 %s10205_s16, 4  ;;  %s126_s9 = sshll.u32 %s10206_s8, 4  ;;  %s105_s18 = int_to_ptr.vmem [resolvable:$true] %s104_s18  ;;  %s127_s9 = int_to_ptr.vmem [resolvable:$true] %s126_s9 }
  0xc2   :  { %s9875_s19 = scalar_lea.vmem %s105_s18, 256  ;;  %p9880_p0 = scmp.lt.s32.totalorder %s105_s18, %s105_s18 }
  0xc3   :  { %p9876_p13 = scmp.ne.s32.totalorder %s105_s18, %s9875_s19  ;;  %p9881_p1 = scmp.lt.s32.totalorder %s9875_s19, %s9875_s19 }
  0xc5   :  { %p9882_p2 = por %p9881_p1, %p9880_p0 }
  0xc7   :  { %p9883_p3 = pnand %p9882_p2, %p9876_p13 }
  0xc9   :  { %9886 = shalt.err (!%p9883_p3)
}
  0xca   :  { %110 = dma.hbm_to_vmem [thread:$0]  %s10248_s17, 256, %s105_s18, [#allocation3], %s10199_s12, %s10199_s12, %s10200_s7  }
  0xcb   :  { %s9895_s22 = scalar_lea.vmem %s127_s9, 512  ;;  %p9900_p5 = scmp.lt.s32.totalorder %s127_s9, %s127_s9 }
  0xcc   :  { %p9896_p4 = scmp.ne.s32.totalorder %s127_s9, %s9895_s22  ;;  %p9901_p6 = scmp.lt.s32.totalorder %s9895_s22, %s9895_s22 }
  0xce   :  { %p9902_p7 = por %p9901_p6, %p9900_p5 }
  0xd0   :  { %p9903_p8 = pnand %p9902_p7, %p9896_p4 }
  0xd2   :  { %9906 = shalt.err (!%p9903_p8)
}
  0xd3   :  { %132 = dma.hbm_to_vmem [thread:$0]  %s10258_s25, 512, %s127_s9, [#allocation5], %s10199_s12, %s10199_s12, %s10200_s7  }
  0xd4   :  { %s10207_s24 = smov [#allocation9]   ;;  %s10208_s30 = smov [#allocation12]  }
  0xd5   :  { %s148_s23 = sshll.u32 %s10207_s24, 4  ;;  %s170_s26 = sshll.u32 %s10208_s30, 4  ;;  %s149_s23 = int_to_ptr.vmem [resolvable:$true] %s148_s23  ;;  %s171_s26 = int_to_ptr.vmem [resolvable:$true] %s170_s26 }
  0xd6   :  { %s9915_s28 = scalar_lea.vmem %s149_s23, 256  ;;  %p9920_p10 = scmp.lt.s32.totalorder %s149_s23, %s149_s23 }
  0xd7   :  { %p9916_p9 = scmp.ne.s32.totalorder %s149_s23, %s9915_s28  ;;  %p9921_p11 = scmp.lt.s32.totalorder %s9915_s28, %s9915_s28 }
  0xd9   :  { %p9922_p12 = por %p9921_p11, %p9920_p10 }
  0xdb   :  { %p9923_p13 = pnand %p9922_p12, %p9916_p9 }
  0xdd   :  { %9926 = shalt.err (!%p9923_p13)
}
  0xde   :  { %154 = dma.hbm_to_vmem [thread:$0]  %s10268_s3, 256, %s149_s23, [#allocation8], %s10199_s12, %s10199_s12, %s10200_s7  }
  0xdf   :  { %s9935_s17 = scalar_lea.vmem %s171_s26, 512  ;;  %p9940_p1 = scmp.lt.s32.totalorder %s171_s26, %s171_s26 }
  0xe0   :  { %p9936_p0 = scmp.ne.s32.totalorder %s171_s26, %s9935_s17  ;;  %p9941_p2 = scmp.lt.s32.totalorder %s9935_s17, %s9935_s17 }
  0xe2   :  { %p9942_p3 = por %p9941_p2, %p9940_p1 }
  0xe4   :  { %p9943_p4 = pnand %p9942_p3, %p9936_p0 }
  0xe6   :  { %9946 = shalt.err (!%p9943_p4)
}
  0xe7   :  { %s10861_s25 = sld [smem:[#allocation55_spill]]  ;;  %s10209_s1 = smov [#allocation15]  }
  0xe8   :  { %s192_s2 = sshll.u32 %s10209_s1, 4  ;;  %s10210_s4 = smov [#allocation18]   ;;  %s193_s2 = int_to_ptr.vmem [resolvable:$true] %s192_s2 }
  0xe9   :  { %s214_s21 = sshll.u32 %s10210_s4, 4  ;;  %s9955_s10 = scalar_lea.vmem %s193_s2, 512  ;;  %s215_s21 = int_to_ptr.vmem [resolvable:$true] %s214_s21 }
  0xea   :  { %p9956_p5 = scmp.ne.s32.totalorder %s193_s2, %s9955_s10  ;;  %p9960_p6 = scmp.lt.s32.totalorder %s193_s2, %s193_s2 }
  0xeb   :  { %p9961_p7 = scmp.lt.s32.totalorder %s9955_s10, %s9955_s10 }
  0xed   :  { %176 = dma.hbm_to_vmem [thread:$0]  %s10861_s25, 512, %s171_s26, [#allocation11], %s10199_s12, %s10199_s12, %s10200_s7  }
  0xee   :  { %p9962_p8 = por %p9961_p7, %p9960_p6 }
  0xf0   :  { %p9963_p9 = pnand %p9962_p8, %p9956_p5 }
  0xf2   :  { %9966 = shalt.err (!%p9963_p9)
}
  0xf3   :  { %s10862_s3 = sld [smem:[#allocation56_spill]]  ;;  %s9975_s29 = scalar_lea.vmem %s215_s21, 1024 }
  0xf4   :  { %p9976_p10 = scmp.ne.s32.totalorder %s215_s21, %s9975_s29  ;;  %p9980_p11 = scmp.lt.s32.totalorder %s215_s21, %s215_s21 }
  0xf5   :  { %p9981_p12 = scmp.lt.s32.totalorder %s9975_s29, %s9975_s29 }
  0xf7   :  { %p9982_p13 = por %p9981_p12, %p9980_p11 }
  0xf9   :  { %198 = dma.hbm_to_vmem [thread:$0]  %s10862_s3, 512, %s193_s2, [#allocation14], %s10199_s12, %s10199_s12, %s10200_s7  }
  0xfa   :  { %p9983_p0 = pnand %p9982_p13, %p9976_p10 }
  0xfc   :  { %9986 = shalt.err (!%p9983_p0)
}
  0xfd   :  { %s10211_s20 = smov 128   ;;  %s10863_s11 = sld [smem:[#allocation57_spill]] }
  0xfe   :  { %s10212_s15 = smov 8   ;;  %s10213_s27 = smov [#allocation21]  }
  0xff   :  { %s239_s16 = sshll.u32 %s10213_s27, 4  ;;  %s10214_s18 = smov [#allocation24]   ;;  %s240_s16 = int_to_ptr.vmem [resolvable:$true] %s239_s16 }
 0x100   :  { %s259_s8 = sshll.u32 %s10214_s18, 4  ;;  %s9995_s9 = scalar_lea.vmem %s240_s16, 16  ;;  %s260_s8 = int_to_ptr.vmem [resolvable:$true] %s259_s8 }
 0x101   :  { %p9996_p1 = scmp.ne.s32.totalorder %s240_s16, %s9995_s9  ;;  %s9999_s19 = scalar_lea.vmem %s240_s16, 32 }
 0x102   :  { %p10000_p2 = scmp.lt.s32.totalorder %s240_s16, %s240_s16  ;;  %p10001_p3 = scmp.lt.s32.totalorder %s9999_s19, %s9995_s9 }
 0x103   :  { %220 = dma.hbm_to_vmem [thread:$0]  %s10863_s11, 1024, %s215_s21, [#allocation17], %s10211_s20, %s10211_s20, %s10212_s15  }
 0x104   :  { %p10002_p4 = por %p10001_p3, %p10000_p2 }
 0x106   :  { %p10003_p5 = pnand %p10002_p4, %p9996_p1 }
 0x108   :  { %10006 = shalt.err (!%p10003_p5)
}
 0x109   :  { %s10864_s22 = sld [smem:[#allocation59_spill]]  ;;  %s10015_s24 = scalar_lea.vmem %s260_s8, 16 }
 0x10a   :  { %p10016_p6 = scmp.ne.s32.totalorder %s260_s8, %s10015_s24  ;;  %s10019_s23 = scalar_lea.vmem %s260_s8, 32 }
 0x10b   :  { %p10020_p7 = scmp.lt.s32.totalorder %s260_s8, %s260_s8  ;;  %p10021_p8 = scmp.lt.s32.totalorder %s10019_s23, %s10015_s24 }
 0x10d   :  { %p10022_p9 = por %p10021_p8, %p10020_p7 }
 0x10f   :  { %242 = dma.hbm_to_vmem [thread:$0]  %s10864_s22, 16, %s240_s16, [#allocation20]  }
 0x110   :  { %p10023_p10 = pnand %p10022_p9, %p10016_p6 }
 0x112   :  { %10026 = shalt.err (!%p10023_p10)
}
 0x113   :  { %s10865_s30 = sld [smem:[#allocation60_spill]]  ;;  %s10215_s26 = smov [#allocation27]  }
 0x114   :  { %s281_s28 = sshll.u32 %s10215_s26, 4  ;;  %s10216_s17 = smov [#allocation30]   ;;  %s282_s28 = int_to_ptr.vmem [resolvable:$true] %s281_s28 }
 0x115   :  { %s306_s25 = sshll.u32 %s10216_s17, 4  ;;  %s10035_s1 = scalar_lea.vmem %s282_s28, 16  ;;  %s307_s25 = int_to_ptr.vmem [resolvable:$true] %s306_s25 }
 0x116   :  { %p10036_p11 = scmp.ne.s32.totalorder %s282_s28, %s10035_s1  ;;  %s10039_s2 = scalar_lea.vmem %s282_s28, 32 }
 0x117   :  { %p10040_p12 = scmp.lt.s32.totalorder %s282_s28, %s282_s28  ;;  %p10041_p13 = scmp.lt.s32.totalorder %s10039_s2, %s10035_s1 }
 0x119   :  { %262 = dma.hbm_to_vmem [thread:$0]  %s10865_s30, 16, %s260_s8, [#allocation23]  }
 0x11a   :  { %p10042_p0 = por %p10041_p13, %p10040_p12 }
 0x11c   :  { %p10043_p1 = pnand %p10042_p0, %p10036_p11 }
 0x11e   :  { %10046 = shalt.err (!%p10043_p1)
}
 0x11f   :  { %s10866_s4 = sld [smem:[#allocation61_spill]]  ;;  %s10055_s21 = scalar_lea.vmem %s307_s25, 96 }
 0x120   :  { %p10056_p2 = scmp.ne.s32.totalorder %s307_s25, %s10055_s21  ;;  %p10060_p3 = scmp.lt.s32.totalorder %s307_s25, %s307_s25 }
 0x121   :  { %p10061_p4 = scmp.lt.s32.totalorder %s10055_s21, %s10055_s21 }
 0x123   :  { %p10062_p5 = por %p10061_p4, %p10060_p3 }
 0x125   :  { %284 = dma.hbm_to_vmem [thread:$0]  %s10866_s4, 16, %s282_s28, [#allocation26]  }
 0x126   :  { %p10063_p6 = pnand %p10062_p5, %p10056_p2 }
 0x128   :  { %10066 = shalt.err (!%p10063_p6)
}
 0x129   :  { %s10217_s10 = smov 1   ;;  %s10867_s3 = sld [smem:[#allocation64_spill]] }
 0x12a   :  { %s10218_s29 = smov [#allocation33]   ;;  %s10219_s11 = smov [#allocation36]  }
 0x12b   :  { %s330_s20 = sshll.u32 %s10218_s29, 4  ;;  %s360_s15 = sshll.u32 %s10219_s11, 4  ;;  %s331_s20 = int_to_ptr.vmem [resolvable:$true] %s330_s20  ;;  %s361_s15 = int_to_ptr.vmem [resolvable:$true] %s360_s15 }
 0x12c   :  { %s10075_s27 = scalar_lea.vmem %s331_s20, 96  ;;  %p10080_p8 = scmp.lt.s32.totalorder %s331_s20, %s331_s20 }
 0x12d   :  { %p10076_p7 = scmp.ne.s32.totalorder %s331_s20, %s10075_s27  ;;  %p10081_p9 = scmp.lt.s32.totalorder %s10075_s27, %s10075_s27 }
 0x12f   :  { %312 = dma.hbm_to_vmem [thread:$0]  %s10867_s3, 96, %s307_s25, [#allocation29], %s10204_s0, %s10204_s0, %s10217_s10  }
 0x130   :  { %p10082_p10 = por %p10081_p9, %p10080_p8 }
 0x132   :  { %p10083_p11 = pnand %p10082_p10, %p10076_p7 }
 0x134   :  { %10086 = shalt.err (!%p10083_p11)
}
 0x135   :  { %s10868_s16 = sld [smem:[#allocation65_spill]]  ;;  %s10095_s18 = scalar_lea.vmem %s361_s15, 24576 }
 0x136   :  { %p10096_p12 = scmp.ne.s32.totalorder %s361_s15, %s10095_s18  ;;  %p10100_p13 = scmp.lt.s32.totalorder %s361_s15, %s361_s15 }
 0x137   :  { %p10101_p0 = scmp.lt.s32.totalorder %s10095_s18, %s10095_s18 }
 0x139   :  { %p10102_p1 = por %p10101_p0, %p10100_p13 }
 0x13b   :  { %336 = dma.hbm_to_vmem [thread:$0]  %s10868_s16, 96, %s331_s20, [#allocation32], %s10204_s0, %s10204_s0, %s10217_s10  }
 0x13c   :  { %p10103_p2 = pnand %p10102_p1, %p10096_p12 }
 0x13e   :  { %10106 = shalt.err (!%p10103_p2)
}
 0x13f   :  { %s10869_s8 = sld [smem:[#allocation69_spill]]  ;;  %s10220_s9 = smov [#allocation37]  }
 0x140   :  { %s378_s19 = sshll.u32 %s10220_s9, 4  ;;  %s379_s19 = int_to_ptr.vmem [resolvable:$true] %s378_s19 }
 0x141   :  { %s10115_s22 = scalar_lea.vmem %s379_s19, 1024  ;;  %p10120_p4 = scmp.lt.s32.totalorder %s379_s19, %s379_s19 }
 0x142   :  { %p10116_p3 = scmp.ne.s32.totalorder %s379_s19, %s10115_s22  ;;  %p10121_p5 = scmp.lt.s32.totalorder %s10115_s22, %s10115_s22 }
 0x144   :  { %p10122_p6 = por %p10121_p5, %p10120_p4 }
 0x145   :  { %366 = dma.hbm_to_vmem [thread:$0]  %s10869_s8, 24576, %s361_s15, [#allocation35], %s10199_s12, %s10199_s12, %s10200_s7  }
 0x146   :  { %p10123_p7 = pnand %p10122_p6, %p10116_p3 }
 0x148   :  { %10126 = shalt.err (!%p10123_p7)
}
 0x149   :  { %384 = dma.hbm_to_vmem [thread:$0]  %s10408_s6, 1024, %s379_s19, [#allocation38], %s10199_s12, %s10199_s12, %s10200_s7  }
 0x14a   :  { %10127 = dma.done.wait [#allocation3], 256  }
 0x14b   :  { %10128 = vsyncadd [#allocation3], 4294967040 }
 0x14c   :  { %10129 = dma.done.wait [#allocation5], 528  }
 0x14d   :  { %10130 = vsyncadd [#allocation5], 4294966768 }
 0x14e   :  { %10131 = dma.done.wait [#allocation8], 272  }
 0x14f   :  { %10132 = vsyncadd [#allocation8], 4294967024 }
 0x150   :  { %10133 = dma.done.wait [#allocation11], 528  }
 0x151   :  { %10134 = vsyncadd [#allocation11], 4294966768 }
 0x152   :  { %10135 = dma.done.wait [#allocation14], 528  }
 0x153   :  { %10136 = vsyncadd [#allocation14], 4294966768 }
 0x154   :  { %10137 = dma.done.wait [#allocation17], 1040  }
 0x155   :  { %10138 = vsyncadd [#allocation17], 4294966256 }
 0x156   :  { %10139 = dma.done.wait [#allocation20], 48  }
 0x157   :  { %10140 = vsyncadd [#allocation20], 4294967248 }
 0x158   :  { %10141 = dma.done.wait [#allocation23], 48  }
 0x159   :  { %10142 = vsyncadd [#allocation23], 4294967248 }
 0x15a   :  { %10143 = dma.done.wait [#allocation26], 1040  }
 0x15b   :  { %10144 = vsyncadd [#allocation26], 4294966256 }
 0x15c   :  { %10145 = dma.done.wait [#allocation29], 6240  }
 0x15d   :  { %10146 = vsyncadd [#allocation29], 4294961056 }
 0x15e   :  { %10147 = dma.done.wait [#allocation32], 6240  }
 0x15f   :  { %10148 = vsyncadd [#allocation32], 4294961056 }
 0x160   :  { %10149 = dma.done.wait [#allocation35], 49152  }
 0x161   :  { %10150 = vsyncadd [#allocation35], 4294918144 }
 0x162   :  { %10151 = dma.done.wait [#allocation38], 1024  }
 0x163   :  { %10152 = vsyncadd [#allocation38], 4294966272  ;;  %s10870_s6 = sld [smem:[#allocation53_spill]]  ;;  %v10221_v0 = vmov 0.0   ;;  %vm10222_vm0 = vmmov 0   ;;  %vm648_vm1 = vcmask 1044480  }
 0x164   :  { %8511 = vmatprep.subr.bf16.mxu0 %v10221_v0  ;;  %8515 = vmatprep.mubr.msk.bf16.mxu0 %vm10222_vm0, %v10221_v0  ;;  %vm649_vm2 = vcmask 1045504   ;;  %v10223_v1 = vmov 65535   ;;  %v8925_v3 = vld [vmem:[#allocation2 + $0x8] sm:$0xff]   ;;  %s10871_s12 = sld [smem:[#allocation54_spill]]  ;;  %v8926_v4 = vld [vmem:[#allocation2] sm:$0xff]   ;;  %vm487_vm3 = vcmask 261120  }
 0x165   :  { %8519 = vmatprep.subr.bf16.mxu1 %v10221_v0  ;;  %8527 = vmatprep.mubr.msk.bf16.mxu1 %vm10222_vm0, %v10221_v0  ;;  %v650_v2 = vsel %vm648_vm1, 4294967295, %v10223_v1  ;;  %v8927_v7 = vld [vmem:[#allocation9 + $0x8] sm:$0x3f]   ;;  %v8929_v9 = vld [vmem:[#allocation6 + $0x18] sm:$0xff]   ;;  %v8930_v11 = vld [vmem:[#allocation6 + $0x10] sm:$0xff]   ;;  %vm644_vm4 = vcmask 220160  }
 0x166   :  { %8512 = vmatpush3.bf16.msra.mxu0 %v8925_v3  ;;  %v651_v6 = vsel %vm649_vm2, %v650_v2, 0  ;;  %8520 = vmatpush3.bf16.msra.mxu1 %v8929_v9  ;;  %v8928_v12 = vld [vmem:[#allocation9] sm:$0xff]   ;;  %v8931_v14 = vld [vmem:[#allocation12 + $0x18] sm:$0xff]   ;;  %v8936_v20 = vld [vmem:[#allocation12] sm:$0xff]   ;;  %vm574_vm5 = vcmask 523264   ;;  %s10872_s7 = sld [smem:[#allocation58_spill]] }
 0x167   :  { %8513 = vmatprep.subr.bf16.mxu0 %v10221_v0  ;;  %v653_v10 = vand.u32 %v8927_v7, %v651_v6  ;;  %8521 = vmatprep.subr.bf16.mxu1 %v10221_v0  ;;  %v8932_v16 = vld [vmem:[#allocation6 + $0x8] sm:$0xff]   ;;  %v8934_v18 = vld [vmem:[#allocation6] sm:$0xff]   ;;  %v7448_v21 = vld [vmem:[#allocation4] ss:$0 sm:$0xff]  ;;  %s10873_s0 = sld [smem:[#allocation52_spill]]  ;;  %vm1213_vm10 = vcmask 1041408  }
 0x168   :  { %v8933_v17 = vld [vmem:[#allocation12 + $0x10] sm:$0xff]   ;;  %v8935_v19 = vld [vmem:[#allocation12 + $0x8] sm:$0xff]   ;;  %v7458_v27 = vld [vmem:[#allocation10] ss:$0 sm:$0xff]  ;;  %vm1209_vm11 = vcmask 31744   ;;  %s10874_s24 = sld [smem:[#allocation62_spill]] }
 0x169   :  { %v461_v5 = vld [vmem:[%s10870_s6] sm:$0xff]  ;;  %v8938_v38 = vld [vmem:[#allocation15 + $0x10] sm:$0xff]   ;;  %v7452_v43 = vld [vmem:[#allocation7] ss:$0 sm:$0xff]  ;;  %s10875_s23 = sld [smem:[#allocation63_spill]] }
 0x16a   :  { %v467_v8 = vpack.c.bf16 %v461_v5, %v461_v5  ;;  %8514 = vmatpush3.bf16.msra.mxu0 %v8926_v4  ;;  %v462_v13 = vld [vmem:[%s10871_s12] sm:$0xff]  ;;  %8522 = vmatpush3.bf16.msra.mxu1 %v8930_v11  ;;  %v8939_v52 = vld [vmem:[#allocation15 + $0x8] sm:$0xff]   ;;  %v8940_v56 = vld [vmem:[#allocation15] sm:$0xff]   ;;  %v10224_v4 = vmov 0   ;;  %s10876_s30 = sld [smem:[#allocation66_spill]] }
 0x16b   :  { %8531 = vmatprep.subr.bf16.mxu0 %v10221_v0  ;;  %8523 = vmatprep.subr.bf16.mxu1 %v10221_v0  ;;  %v625_v15 = vpack.c.bf16 %v462_v13, %v462_v13  ;;  %v8937_v37 = vld [vmem:[#allocation15 + $0x18] sm:$0xff]   ;;  %v8946_v61 = vld [vmem:[#allocation18 + $0x24] ss:$8 sps:$4 sm:$0xff]   ;;  %v8944_v62 = vld [vmem:[#allocation18 + $0x20] ss:$8 sps:$4 sm:$0xff]   ;;  %s10877_s26 = sld [smem:[#allocation67_spill]] }
 0x16c   :  { %v7462_v41 = vld [vmem:[#allocation13] ss:$0 sm:$0xff]  ;;  %v8941_v60 = vld [vmem:[#allocation18 + $0x30] ss:$8 sps:$4 sm:$0xff]   ;;  %v8952_v2 = vld [vmem:[#allocation18 + $0x4] ss:$8 sps:$4 sm:$0xff]  }
 0x16d   :  { %8516 = vmatmul.mubr.msk.bf16.vlgmr.msra.gmra.mxu0 %vm487_vm3, %v467_v8  ;;  %v8943_v59 = vld [vmem:[#allocation18 + $0x34] ss:$8 sps:$4 sm:$0xff]   ;;  %v8947_v1 = vld [vmem:[#allocation18 + $0x10] ss:$8 sps:$4 sm:$0xff]   ;;  %v8950_v3 = vld [vmem:[#allocation18] ss:$8 sps:$4 sm:$0xff]  }
 0x16e   :  { %8532 = vmatpush3.bf16.msra.mxu0 %v653_v10  ;;  %8535 = vmatprep.mubr.msk.bf16.mxu0 %vm10222_vm0, %v10221_v0  ;;  %v8949_v63 = vld [vmem:[#allocation18 + $0x14] ss:$8 sps:$4 sm:$0xff]   ;;  %v8955_v7 = vld [vmem:[%s10872_s7 + $0x70] sm:$0xff]   ;;  %s10878_s28 = sld [smem:[#allocation68_spill]] }
 0x16f   :  { %8533 = vmatprep.subr.bf16.mxu0 %v10221_v0  ;;  %8524 = vmatpush3.bf16.msra.mxu1 %v8932_v16  ;;  %v8953_v5 = vld [vmem:[%s10872_s7 + $0x78] sm:$0xff]   ;;  %v8956_v8 = vld [vmem:[%s10872_s7 + $0x30] sm:$0xff]   ;;  %v8958_v9 = vld [vmem:[%s10872_s7 + $0x68] sm:$0xff]   ;;  %s10879_s17 = sld [smem:[#allocation70_spill]] }
 0x170   :  { %8525 = vmatprep.subr.bf16.mxu1 %v10221_v0  ;;  %v8954_v6 = vld [vmem:[%s10872_s7 + $0x38] sm:$0xff]   ;;  %v8959_v10 = vld [vmem:[%s10872_s7 + $0x28] sm:$0xff]   ;;  %v8961_v11 = vld [vmem:[%s10872_s7 + $0x60] sm:$0xff]   ;;  %s10880_s25 = sld [smem:[#allocation71_spill]] }
 0x171   :  { %v8964_v13 = vld [vmem:[%s10872_s7 + $0x58] sm:$0xff]  }
 0x172   :  { %8534 = vmatpush3.bf16.msra.mxu0 %v8928_v12  ;;  %v8962_v12 = vld [vmem:[%s10872_s7 + $0x20] sm:$0xff]  }
 0x173   :  { %8539 = vmatprep.subr.bf16.mxu0 %v10221_v0  ;;  %8526 = vmatpush3.bf16.msra.mxu1 %v8934_v18 }
 0x174   :  { %8551 = vmatprep.subr.bf16.mxu1 %v10221_v0 }
 0x175   :  { %8536 = vmatmul.mubr.msk.bf16.vlgmr.msra.gmra.mxu0 %vm644_vm4, %v625_v15  ;;  %v8967_v15 = vld [vmem:[%s10872_s7 + $0x50] sm:$0xff]  }
 0x176   :  { %8540 = vmatpush3.bf16.msra.mxu0 %v8931_v14  ;;  %8547 = vmatprep.mubr.msk.bf16.mxu0 %vm10222_vm0, %v10221_v0  ;;  %v8965_v14 = vld [vmem:[%s10872_s7 + $0x18] sm:$0xff]  }
 0x177   :  { %8541 = vmatprep.subr.bf16.mxu0 %v10221_v0 }
 0x17a   :  { %8542 = vmatpush3.bf16.msra.mxu0 %v8933_v17 }
 0x17b   :  { %8543 = vmatprep.subr.bf16.mxu0 %v10221_v0 }
 0x17e   :  { %8544 = vmatpush3.bf16.msra.mxu0 %v8935_v19 }
 0x17f   :  { %8545 = vmatprep.subr.bf16.mxu0 %v10221_v0 }
 0x182   :  { %8546 = vmatpush3.bf16.msra.mxu0 %v8936_v20 }
 0x183   :  { %984 = vmatprep.subr.bf16.mxu0 %v8943_v59 }
 0x22d   :  { %v525_v22 = vpop.f32.mrf.mxu0 }
 0x22e   :  { %v526_v23 = vadd.f32 %v7448_v21, %v525_v22  ;;  %v7474_v21 = vld [vmem:[#allocation16] ss:$0 sm:$0xff] }
 0x22f   :  { %v8517_v24 = vpop.f32.mrf.mxu0 }
 0x230   :  { %vm531_vm6 = vcmp.gt.f32.partialorder %v526_v23, 0.0  ;;  %v532_v25 = vmul.f32 0.01, %v526_v23 }
 0x231   :  { %v528_v26 = vpop.f32.mrf.mxu0 }
 0x232   :  { %v533_v28 = vsel %vm531_vm6, %v526_v23, %v532_v25 }
 0x233   :  { %v542_v29 = vpack.c.bf16 %v533_v28, %v533_v28  ;;  %v8518_v30 = vpop.f32.mrf.mxu0 }
 0x235   :  { %8528 = vmatmul.mubr.msk.bf16.vlgmr.msra.gmra.mxu1 %vm574_vm5, %v542_v29  ;;  %v689_v31 = vpop.f32.mrf.mxu0 }
 0x236   :  { %v690_v32 = vadd.f32 %v7458_v27, %v689_v31  ;;  %8555 = vmatprep.mubr.msk.bf16.mxu1 %vm10222_vm0, %v10221_v0  ;;  %8552 = vmatpush3.bf16.msra.mxu1 %v8937_v37  ;;  %v1200_v27 = vld [vmem:[#allocation22] sm:$0x3]  ;;  %v8966_v37 = vld [vmem:[#allocation25 + $0x20] sm:$0xff]  }
 0x237   :  { %v8537_v33 = vpop.f32.mrf.mxu0  ;;  %8553 = vmatprep.subr.bf16.mxu1 %v10221_v0  ;;  %v1215_v31 = vsel %vm1213_vm10, %v1200_v27, 0  ;;  %v8977_v27 = vld [vmem:[#allocation28 + $0x38] sm:$0xff]  }
 0x238   :  { %v703_v34 = vpack.c.bf16 %v690_v32, %v690_v32  ;;  %v460_v32 = vld [vmem:[%s10873_s0] sm:$0xff] }
 0x239   :  { %v692_v35 = vpop.f32.mrf.mxu0  ;;  %v1201_v33 = vpack.c.bf16 %v460_v32, %v460_v32 }
 0x23a   :  { %8548 = vmatmul.mubr.msk.bf16.vlgmr.msra.gmra.mxu0 %vm574_vm5, %v703_v34  ;;  %8554 = vmatpush3.bf16.msra.mxu1 %v8938_v38  ;;  %v8957_v34 = vld [vmem:[#allocation25 + $0x38] sm:$0xff]   ;;  %v8960_v35 = vld [vmem:[#allocation25 + $0x30] sm:$0xff]  }
 0x23b   :  { %v8538_v36 = vpop.f32.mrf.mxu0  ;;  %8559 = vmatprep.subr.bf16.mxu1 %v10221_v0  ;;  %985 = vmatpush1.bf16.msra.mxu0 %v8941_v60  ;;  %v8968_v38 = vld [vmem:[%s10872_s7 + $0x10] sm:$0xff]  }
 0x23c   :  { %986 = vmatprep.subr.bf16.mxu0 %v8946_v61  ;;  %1008 = vmatprep.mubr.bf16.mxu0 %v10224_v4  ;;  %v8963_v36 = vld [vmem:[#allocation25 + $0x28] sm:$0xff]  }
 0x23f   :  { %987 = vmatpush1.bf16.msra.mxu0 %v8944_v62 }
 0x240   :  { %988 = vmatprep.subr.bf16.mxu0 %v8949_v63  ;;  %v7501_v63 = vld [vmem:[#allocation24] ss:$0 sm:$0xff] }
 0x243   :  { %989 = vmatpush1.bf16.msra.mxu0 %v8947_v1 }
 0x244   :  { %990 = vmatprep.subr.bf16.mxu0 %v8952_v2 }
 0x247   :  { %991 = vmatpush1.bf16.msra.mxu0 %v8950_v3 }
 0x248   :  { %8567 = vmatprep.subr.bf16.mxu0 %v10221_v0 }
 0x2f5   :  { %v612_v39 = vpop.f32.mrf.mxu1 }
 0x2f6   :  { %v613_v48 = vadd.f32 %v7452_v43, %v612_v39  ;;  %v8969_v39 = vld [vmem:[#allocation25 + $0x18] sm:$0xff]   ;;  %v8973_v43 = vld [vmem:[%s10872_s7 + $0x40] sm:$0xff]  }
 0x2f7   :  { %v8529_v40 = vpop.f32.mrf.mxu1 }
 0x2f8   :  { %v619_v55 = vmul.f32 0.01, %v613_v48  ;;  %vm618_vm8 = vcmp.gt.f32.partialorder %v613_v48, 0.0  ;;  %v8970_v40 = vld [vmem:[%s10872_s7 + $0x48] sm:$0xff]  }
 0x2f9   :  { %v615_v42 = vpop.f32.mrf.mxu1 }
 0x2fa   :  { %v772_v44 = vpop.f32.mrf.mxu0  ;;  %v620_v57 = vsel %vm618_vm8, %v613_v48, %v619_v55  ;;  %v8972_v42 = vld [vmem:[#allocation25 + $0x10] sm:$0xff]  }
 0x2fb   :  { %v773_v45 = vadd.f32 %v7462_v41, %v772_v44  ;;  %v8530_v46 = vpop.f32.mrf.mxu1  ;;  %v789_v58 = vpack.c.bf16 %v620_v57, %v620_v57  ;;  %v8971_v41 = vld [vmem:[%s10872_s7 + $0x8] sm:$0xff]   ;;  %v8974_v44 = vld [vmem:[%s10872_s7] sm:$0xff]  }
 0x2fc   :  { %v8549_v47 = vpop.f32.mrf.mxu0  ;;  %v8976_v46 = vld [vmem:[#allocation25] sm:$0xff]  }
 0x2fd   :  { %vm778_vm7 = vcmp.gt.f32.partialorder %v773_v45, 0.0  ;;  %v779_v49 = vmul.f32 0.01, %v773_v45  ;;  %v923_v47 = vlaneseq }
 0x2fe   :  { %v775_v50 = vpop.f32.mrf.mxu0 }
 0x2ff   :  { %v780_v51 = vsel %vm778_vm7, %v773_v45, %v779_v49  ;;  %v8975_v45 = vld [vmem:[#allocation25 + $0x8] sm:$0xff]   ;;  %v10549_v48 = vshrl.u32 %v923_v47, 7  ;;  %v921_v50 = vld [vmem:[#allocation19] sm:$0x3] }
 0x300   :  { %v790_v53 = vpack.c.bf16 %v780_v51, %v780_v51  ;;  %v8550_v54 = vpop.f32.mrf.mxu0 }
 0x301   :  { %v10552_v49 = vsub.s32 0, %v10549_v48  ;;  %v10555_v51 = vsub.s32 1, %v10549_v48 }
 0x302   :  { %8556 = vmatmul.mubr.msk.bf16.vlgmr.msra.gmra.mxu1 %vm487_vm3, %v790_v53 }
 0x303   :  { %8560 = vmatpush3.bf16.msra.mxu1 %v8939_v52  ;;  %8563 = vmatprep.mubr.msk.bf16.mxu1 %vm10222_vm0, %v10221_v0  ;;  %v926_v52 = vrot.slane %v921_v50, %v10552_v49  ;;  %v930_v53 = vrot.slane %v921_v50, %v10555_v51 }
 0x304   :  { %8561 = vmatprep.subr.bf16.mxu1 %v10221_v0 }
 0x307   :  { %8562 = vmatpush3.bf16.msra.mxu1 %v8940_v56 }
 0x308   :  { %8097 = vmatprep.subr.bf16.mxu1 %v8953_v5 }
 0x30a   :  { %8564 = vmatmul.mubr.msk.bf16.vlgmr.msra.gmra.mxu1 %vm487_vm3, %v789_v58 }
 0x30b   :  { %8098 = vmatpush3.bf16.msra.mxu1 %v8954_v6 }
 0x30c   :  { %8099 = vmatprep.subr.bf16.mxu1 %v8955_v7 }
 0x30f   :  { %8100 = vmatpush3.bf16.msra.mxu1 %v8956_v8 }
 0x310   :  { %8101 = vmatprep.subr.bf16.mxu1 %v8958_v9 }
 0x313   :  { %8102 = vmatpush3.bf16.msra.mxu1 %v8959_v10 }
 0x314   :  { %8103 = vmatprep.subr.bf16.mxu1 %v8961_v11 }
 0x317   :  { %8104 = vmatpush3.bf16.msra.mxu1 %v8962_v12 }
 0x318   :  { %8105 = vmatprep.subr.bf16.mxu1 %v8964_v13 }
 0x31b   :  { %8106 = vmatpush3.bf16.msra.mxu1 %v8965_v14  ;;  %v7484_v14 = vld [vmem:[#allocation21] ss:$0 sm:$0xff] }
 0x31c   :  { %8107 = vmatprep.subr.bf16.mxu1 %v8967_v15 }
 0x31f   :  { %8108 = vmatpush3.bf16.msra.mxu1 %v8968_v38  ;;  %v8984_v38 = vld [vmem:[#allocation28] sm:$0xff]  }
 0x320   :  { %8109 = vmatprep.subr.bf16.mxu1 %v8970_v40  ;;  %v8986_v40 = vld [vmem:[#allocation31 + $0x30] sm:$0xff]  }
 0x323   :  { %8110 = vmatpush3.bf16.msra.mxu1 %v8971_v41  ;;  %v8987_v41 = vld [vmem:[#allocation31 + $0x28] sm:$0xff]  }
 0x324   :  { %8111 = vmatprep.subr.bf16.mxu1 %v8973_v43  ;;  %v8989_v43 = vld [vmem:[#allocation31 + $0x18] sm:$0xff]  }
 0x327   :  { %8112 = vmatpush3.bf16.msra.mxu1 %v8974_v44  ;;  %v8990_v44 = vld [vmem:[#allocation31 + $0x10] sm:$0xff]  }
 0x328   :  { %8593 = vmatprep.subr.bf16.mxu1 %v10221_v0 }
 0x3c2   :  { %v840_v16 = vpop.f32.mrf.mxu1 }
 0x3c4   :  { %v8557_v17 = vpop.f32.mrf.mxu1 }
 0x3c5   :  { %v7503_v17 = vld [vmem:[#allocation27] ss:$0 sm:$0xff] }
 0x3c6   :  { %v843_v18 = vpop.f32.mrf.mxu1 }
 0x3c8   :  { %v8558_v19 = vpop.f32.mrf.mxu1 }
 0x3ca   :  { %v895_v20 = vpop.f32.mrf.mxu1 }
 0x3cb   :  { %v896_v22 = vadd.f32 %v895_v20, %v840_v16 }
 0x3cc   :  { %v8565_v23 = vpop.f32.mrf.mxu1 }
 0x3cd   :  { %v908_v24 = vadd.f32 %v7474_v21, %v896_v22 }
 0x3ce   :  { %v898_v25 = vpop.f32.mrf.mxu1 }
 0x3cf   :  { %vm909_vm9 = vcmp.gt.f32.partialorder %v908_v24, 0.0  ;;  %v910_v26 = vmul.f32 0.01, %v908_v24 }
 0x3d0   :  { %v8566_v28 = vpop.f32.mrf.mxu1 }
 0x3d1   :  { %v911_v29 = vsel %vm909_vm9, %v908_v24, %v910_v26  ;;  %v8978_v28 = vld [vmem:[#allocation28 + $0x30] sm:$0xff]  }
 0x3d2   :  { %v920_v30 = vpack.c.bf16 %v911_v29, %v911_v29 }
 0x3d4   :  { %7483 = vmatmul.mubr.msk.bf16.vlgmr.msra.gmra.mxu0 %vm574_vm5, %v920_v30 }
 0x3d5   :  { %8568 = vmatpush3.bf16.msra.mxu0 %v1215_v31  ;;  %8569 = vmatprep.mubr.msk.bf16.mxu0 %vm10222_vm0, %v10221_v0 }
 0x3d6   :  { %8573 = vmatprep.subr.bf16.mxu0 %v10221_v0 }
 0x3dc   :  { %8570 = vmatmul.mubr.msk.bf16.vlgmr.msra.gmra.mxu0 %vm1209_vm11, %v1201_v33  ;;  %v8979_v33 = vld [vmem:[#allocation28 + $0x28] sm:$0xff]  }
 0x3dd   :  { %8574 = vmatpush3.bf16.msra.mxu0 %v8957_v34  ;;  %8589 = vmatprep.mubr.msk.bf16.mxu0 %vm10222_vm0, %v10221_v0  ;;  %v8980_v34 = vld [vmem:[#allocation28 + $0x20] sm:$0xff]  }
 0x3de   :  { %8575 = vmatprep.subr.bf16.mxu0 %v10221_v0 }
 0x3e1   :  { %8576 = vmatpush3.bf16.msra.mxu0 %v8960_v35  ;;  %v8981_v35 = vld [vmem:[#allocation28 + $0x18] sm:$0xff]  }
 0x3e2   :  { %8577 = vmatprep.subr.bf16.mxu0 %v10221_v0 }
 0x3e5   :  { %8578 = vmatpush3.bf16.msra.mxu0 %v8963_v36  ;;  %v8982_v36 = vld [vmem:[#allocation28 + $0x10] sm:$0xff]  }
 0x3e6   :  { %8579 = vmatprep.subr.bf16.mxu0 %v10221_v0 }
 0x3e9   :  { %8580 = vmatpush3.bf16.msra.mxu0 %v8966_v37  ;;  %v8983_v37 = vld [vmem:[#allocation28 + $0x8] sm:$0xff]  }
 0x3ea   :  { %8581 = vmatprep.subr.bf16.mxu0 %v10221_v0 }
 0x3ed   :  { %8582 = vmatpush3.bf16.msra.mxu0 %v8969_v39  ;;  %v8985_v39 = vld [vmem:[#allocation31 + $0x38] sm:$0xff]  }
 0x3ee   :  { %8583 = vmatprep.subr.bf16.mxu0 %v10221_v0 }
 0x3f1   :  { %8584 = vmatpush3.bf16.msra.mxu0 %v8972_v42  ;;  %v8988_v42 = vld [vmem:[#allocation31 + $0x20] sm:$0xff]  }
 0x3f2   :  { %8585 = vmatprep.subr.bf16.mxu0 %v10221_v0 }
 0x3f5   :  { %8586 = vmatpush3.bf16.msra.mxu0 %v8975_v45  ;;  %v8991_v45 = vld [vmem:[#allocation31 + $0x8] sm:$0xff]  }
 0x3f6   :  { %8587 = vmatprep.subr.bf16.mxu0 %v10221_v0 }
 0x3f9   :  { %8588 = vmatpush3.bf16.msra.mxu0 %v8976_v46 }
 0x3fa   :  { %8613 = vmatprep.subr.bf16.mxu0 %v10221_v0 }
 0x494   :  { %v1010_v54 = vpop.f32.mrf.mxu0 }
 0x495   :  { %v1011_v55 = vadd.f32 %v1010_v54, %v926_v52 }
 0x496   :  { %v1012_v56 = vpop.f32.mrf.mxu0 }
 0x497   :  { %vm1017_vm12 = vcmp.gt.f32.partialorder %v1011_v55, 0.0  ;;  %v1019_v57 = vmul.f32 0.01, %v1011_v55  ;;  %v1013_v58 = vadd.f32 %v1012_v56, %v930_v53  ;;  %v7512_v53 = vld [vmem:[%s10874_s24] ss:$0 sm:$0xff] }
 0x498   :  { %v1014_v59 = vpop.f32.mrf.mxu0 }
 0x499   :  { %vm1018_vm13 = vcmp.gt.f32.partialorder %v1013_v58, 0.0  ;;  %v1020_v60 = vmul.f32 0.01, %v1013_v58  ;;  %v1021_v61 = vsel %vm1017_vm12, %v1011_v55, %v1019_v57  ;;  %v7513_v55 = vld [vmem:[%s10875_s23] ss:$0 sm:$0xff] }
 0x49a   :  { %v1015_v62 = vpop.f32.mrf.mxu0  ;;  %v1055_v5 = vpack.c.bf16 %v1021_v61, %v1021_v61  ;;  %v8992_v59 = vld [vmem:[#allocation31] sm:$0xff]  }
 0x49b   :  { %v1022_v1 = vsel %vm1018_vm13, %v1013_v58, %v1020_v60  ;;  %v7514_v60 = vld [vmem:[#allocation30] ss:$0 sm:$0xff] }
 0x49c   :  { %v1251_v2 = vpop.f32.mrf.mxu0  ;;  %v1056_v3 = vpack.c.bf16 %v1022_v1, %v1022_v1 }
 0x49d   :  { %v1252_v6 = vadd.f32 %v7501_v63, %v1251_v2 }
 0x49e   :  { %1192 = vmatprep.mubr.bf16.mxu1 %v1056_v3  ;;  %v8571_v7 = vpop.f32.mrf.mxu0 }
 0x49f   :  { %vm1257_vm14 = vcmp.gt.f32.partialorder %v1252_v6, 0.0  ;;  %v1258_v8 = vmul.f32 0.01, %v1252_v6  ;;  %1193 = vmatmul.mubr.bf16.vlgmr.msra.gmra.mxu1 %v1055_v5  ;;  %v7523_v5 = vld [vmem:[#allocation33] ss:$0 sm:$0xff] }
 0x4a0   :  { %v1254_v9 = vpop.f32.mrf.mxu0  ;;  %8609 = vmatprep.mubr.msk.bf16.mxu1 %vm10222_vm0, %v10221_v0  ;;  %8594 = vmatpush3.bf16.msra.mxu1 %v8977_v27  ;;  %v9005_v27 = vld [vmem:[#allocation34 + $0xa0] ss:$16 sps:$4 sm:$0xff]  }
 0x4a1   :  { %v1259_v10 = vsel %vm1257_vm14, %v1252_v6, %v1258_v8  ;;  %8595 = vmatprep.subr.bf16.mxu1 %v10221_v0 }
 0x4a2   :  { %v1276_v11 = vpack.c.bf16 %v1259_v10, %v1259_v10  ;;  %v8572_v12 = vpop.f32.mrf.mxu0 }
 0x4a3   :  { %v8993_v12 = vld [vmem:[#allocation34 + $0xe0] ss:$16 sps:$4 sm:$0xff]  }
 0x4a4   :  { %8590 = vmatmul.mubr.bf16.vlgmr.msra.gmra.mxu0 %v1276_v11  ;;  %8596 = vmatpush3.bf16.msra.mxu1 %v8978_v28  ;;  %v9008_v28 = vld [vmem:[#allocation34 + $0xa8] ss:$16 sps:$4 sm:$0xff]  }
 0x4a5   :  { %8629 = vmatprep.mubr.msk.bf16.mxu0 %vm10222_vm0, %v10221_v0  ;;  %8597 = vmatprep.subr.bf16.mxu1 %v10221_v0 }
 0x4a6   :  { %8614 = vmatpush3.bf16.msra.mxu0 %v8985_v39  ;;  %v9023_v39 = vld [vmem:[#allocation34 + $0x40] ss:$16 sps:$4 sm:$0xff]  }
 0x4a7   :  { %8615 = vmatprep.subr.bf16.mxu0 %v10221_v0 }
 0x4a8   :  { %8598 = vmatpush3.bf16.msra.mxu1 %v8979_v33  ;;  %v9019_v33 = vld [vmem:[#allocation34 + $0x64] ss:$16 sps:$4 sm:$0xff]  }
 0x4a9   :  { %8599 = vmatprep.subr.bf16.mxu1 %v10221_v0 }
 0x4aa   :  { %8616 = vmatpush3.bf16.msra.mxu0 %v8986_v40  ;;  %v9026_v40 = vld [vmem:[#allocation34 + $0x48] ss:$16 sps:$4 sm:$0xff]  }
 0x4ab   :  { %8617 = vmatprep.subr.bf16.mxu0 %v10221_v0 }
 0x4ac   :  { %8600 = vmatpush3.bf16.msra.mxu1 %v8980_v34  ;;  %v9022_v34 = vld [vmem:[#allocation34 + $0x6c] ss:$16 sps:$4 sm:$0xff]  }
 0x4ad   :  { %8601 = vmatprep.subr.bf16.mxu1 %v10221_v0 }
 0x4ae   :  { %8618 = vmatpush3.bf16.msra.mxu0 %v8987_v41  ;;  %v9031_v41 = vld [vmem:[#allocation34 + $0x24] ss:$16 sps:$4 sm:$0xff]  }
 0x4af   :  { %8619 = vmatprep.subr.bf16.mxu0 %v10221_v0 }
 0x4b0   :  { %8602 = vmatpush3.bf16.msra.mxu1 %v8981_v35  ;;  %v9017_v35 = vld [vmem:[#allocation34 + $0x60] ss:$16 sps:$4 sm:$0xff]  }
 0x4b1   :  { %8603 = vmatprep.subr.bf16.mxu1 %v10221_v0 }
 0x4b2   :  { %8620 = vmatpush3.bf16.msra.mxu0 %v8988_v42  ;;  %v9034_v42 = vld [vmem:[#allocation34 + $0x2c] ss:$16 sps:$4 sm:$0xff]  }
 0x4b3   :  { %8621 = vmatprep.subr.bf16.mxu0 %v10221_v0 }
 0x4b4   :  { %8604 = vmatpush3.bf16.msra.mxu1 %v8982_v36  ;;  %v9020_v36 = vld [vmem:[#allocation34 + $0x68] ss:$16 sps:$4 sm:$0xff]  }
 0x4b5   :  { %8605 = vmatprep.subr.bf16.mxu1 %v10221_v0 }
 0x4b6   :  { %8622 = vmatpush3.bf16.msra.mxu0 %v8989_v43  ;;  %v9029_v43 = vld [vmem:[#allocation34 + $0x20] ss:$16 sps:$4 sm:$0xff]  }
 0x4b7   :  { %8623 = vmatprep.subr.bf16.mxu0 %v10221_v0 }
 0x4b8   :  { %8606 = vmatpush3.bf16.msra.mxu1 %v8983_v37  ;;  %v9025_v37 = vld [vmem:[#allocation34 + $0x44] ss:$16 sps:$4 sm:$0xff]  }
 0x4b9   :  { %8607 = vmatprep.subr.bf16.mxu1 %v10221_v0 }
 0x4ba   :  { %8624 = vmatpush3.bf16.msra.mxu0 %v8990_v44  ;;  %v9032_v44 = vld [vmem:[#allocation34 + $0x28] ss:$16 sps:$4 sm:$0xff]  }
 0x4bb   :  { %8625 = vmatprep.subr.bf16.mxu0 %v10221_v0 }
 0x4bc   :  { %8608 = vmatpush3.bf16.msra.mxu1 %v8984_v38  ;;  %v9028_v38 = vld [vmem:[#allocation34 + $0x4c] ss:$16 sps:$4 sm:$0xff]  }
 0x4be   :  { %8626 = vmatpush3.bf16.msra.mxu0 %v8991_v45  ;;  %v9037_v45 = vld [vmem:[#allocation34 + $0x4] ss:$16 sps:$4 sm:$0xff]  }
 0x4bf   :  { %8627 = vmatprep.subr.bf16.mxu0 %v10221_v0 }
 0x4c2   :  { %8628 = vmatpush3.bf16.msra.mxu0 %v8992_v59 }
 0x55f   :  { %v8113_v13 = vpop.f32.mrf.mxu1 }
 0x561   :  { %v8114_v15 = vpop.f32.mrf.mxu1 }
 0x562   :  { %v8115_v16 = vadd.f32 %v8114_v15, %v8113_v13  ;;  %v8995_v13 = vld [vmem:[#allocation34 + $0xe4] ss:$16 sps:$4 sm:$0xff]   ;;  %v8998_v15 = vld [vmem:[#allocation34 + $0xec] ss:$16 sps:$4 sm:$0xff]  }
 0x563   :  { %v8116_v18 = vpop.f32.mrf.mxu1  ;;  %1868 = vmatprep.subr.bf16.mxu1 %v8995_v13  ;;  %1909 = vmatprep.subr.bf16.mxu0 %v8998_v15  ;;  %v9053_v13 = vld [vmem:[#allocation36 + $0x60] sm:$0xff]  }
 0x564   :  { %v10563_v19 = vadd.f32 %v8115_v16, %v7484_v14  ;;  %v1366_v20 = vpop.f32.mrf.mxu0  ;;  %v8996_v14 = vld [vmem:[#allocation34 + $0xe8] ss:$16 sps:$4 sm:$0xff]   ;;  %v9001_v16 = vld [vmem:[#allocation34 + $0xc4] ss:$16 sps:$4 sm:$0xff]   ;;  %v8999_v18 = vld [vmem:[#allocation34 + $0xc0] ss:$16 sps:$4 sm:$0xff]  }
 0x565   :  { %v10565_v21 = vadd.f32 %v7503_v17, %v1366_v20  ;;  %v8117_v22 = vpop.f32.mrf.mxu1  ;;  %v9004_v17 = vld [vmem:[#allocation34 + $0xcc] ss:$16 sps:$4 sm:$0xff]   ;;  %v9002_v20 = vld [vmem:[#allocation34 + $0xc8] ss:$16 sps:$4 sm:$0xff]   ;;  %v9055_v15 = vld [vmem:[#allocation36 + $0x20] sm:$0xff]  }
 0x566   :  { %v8591_v23 = vpop.f32.mrf.mxu0 }
 0x567   :  { %v1372_v24 = vadd.f32 %v10565_v21, %v10563_v19 }
 0x568   :  { %v1369_v25 = vpop.f32.mrf.mxu0 }
 0x569   :  { %1375 = vadd.xlane.f32.xlu0 %v1372_v24  ;;  %v9007_v25 = vld [vmem:[#allocation34 + $0xa4] ss:$16 sps:$4 sm:$0xff]  }
 0x56a   :  { %v8592_v26 = vpop.f32.mrf.mxu0 }
 0x56b   :  { %v9010_v26 = vld [vmem:[#allocation34 + $0xac] ss:$16 sps:$4 sm:$0xff]  }
 0x5f2   :  { %v1376_v29 = vpop.xlane.xlu0 %1375 }
 0x5f3   :  { %v1378_v30 = vmul.f32 0.0078125, %v1376_v29  ;;  %v9011_v29 = vld [vmem:[#allocation34 + $0x80] ss:$16 sps:$4 sm:$0xff]  }
 0x5f5   :  { %v1379_v31 = vsub.f32 %v1372_v24, %v1378_v30  ;;  %v9013_v30 = vld [vmem:[#allocation34 + $0x84] ss:$16 sps:$4 sm:$0xff]  }
 0x5f7   :  { %v1380_v32 = vmul.f32 %v1379_v31, %v1379_v31 }
 0x5f9   :  { %1381 = vadd.xlane.f32.xlu0 %v1380_v32  ;;  %v9016_v32 = vld [vmem:[#allocation34 + $0x8c] ss:$16 sps:$4 sm:$0xff]  }
 0x682   :  { %v1382_v46 = vpop.xlane.xlu0 %1381 }
 0x683   :  { %v1383_v47 = vmul.f32 0.0078125, %v1382_v46  ;;  %v9040_v46 = vld [vmem:[#allocation34 + $0xc] ss:$16 sps:$4 sm:$0xff]  }
 0x685   :  { %v1384_v50 = vadd.f32 1e-05, %v1383_v47  ;;  %v9035_v47 = vld [vmem:[#allocation34] ss:$16 sps:$4 sm:$0xff]  }
 0x687   :  { %9561 = vrsqrt.f32 %v1384_v50  ;;  %v9038_v50 = vld [vmem:[#allocation34 + $0x8] ss:$16 sps:$4 sm:$0xff]  }
 0x694   :  { %v9562_v52 = vpop.eup %9561 }
 0x695   :  { %v1386_v54 = vmul.f32 %v9562_v52, %v1379_v31  ;;  %v9014_v31 = vld [vmem:[#allocation34 + $0x88] ss:$16 sps:$4 sm:$0xff]  }
 0x697   :  { %v1393_v56 = vmul.f32 %v7512_v53, %v1386_v54 }
 0x699   :  { %v1400_v57 = vadd.f32 %v7513_v55, %v1393_v56  ;;  %v7532_v56 = vld [vmem:[%s10876_s30] ss:$0 sm:$0xff] }
 0x69b   :  { %v1417_v58 = vpack.c.bf16 %v1400_v57, %v1400_v57 }
 0x69d   :  { %8610 = vmatmul.mubr.bf16.vlgmr.msra.gmra.mxu1 %v1417_v58  ;;  %v7533_v58 = vld [vmem:[%s10877_s26] ss:$0 sm:$0xff] }
 0x69e   :  { %1900 = vmatprep.mubr.bf16.mxu1 %v10224_v4  ;;  %1869 = vmatpush1.bf16.msra.mxu1 %v8993_v12  ;;  %v9052_v12 = vld [vmem:[#allocation36 + $0xa8] sm:$0xff]  }
 0x69f   :  { %1870 = vmatprep.subr.bf16.mxu1 %v9001_v16  ;;  %v9056_v16 = vld [vmem:[#allocation36 + $0xa0] sm:$0xff]  }
 0x6a2   :  { %1871 = vmatpush1.bf16.msra.mxu1 %v8999_v18  ;;  %v9058_v18 = vld [vmem:[#allocation36 + $0xd8] sm:$0xff]  }
 0x6a3   :  { %1872 = vmatprep.subr.bf16.mxu1 %v9007_v25  ;;  %v9064_v25 = vld [vmem:[#allocation36 + $0x90] sm:$0xff]  }
 0x6a6   :  { %1873 = vmatpush1.bf16.msra.mxu1 %v9005_v27  ;;  %v9066_v27 = vld [vmem:[#allocation36 + $0xc8] sm:$0xff]  }
 0x6a7   :  { %1874 = vmatprep.subr.bf16.mxu1 %v9013_v30  ;;  %v9069_v30 = vld [vmem:[#allocation36 + $0x40] sm:$0xff]  }
 0x6aa   :  { %1875 = vmatpush1.bf16.msra.mxu1 %v9011_v29  ;;  %v9068_v29 = vld [vmem:[#allocation36 + $0x88] sm:$0xff]  }
 0x6ab   :  { %1876 = vmatprep.subr.bf16.mxu1 %v9019_v33  ;;  %v9072_v33 = vld [vmem:[#allocation36 + $0x80] sm:$0xff]  }
 0x6ae   :  { %1877 = vmatpush1.bf16.msra.mxu1 %v9017_v35  ;;  %v1686_v35 = vld [vmem:[%s10878_s28] sm:$0xf] }
 0x6af   :  { %1878 = vmatprep.subr.bf16.mxu1 %v9025_v37  ;;  %v1691_v37 = vrot.slane %v1686_v35, %v10552_v49 }
 0x6b2   :  { %1879 = vmatpush1.bf16.msra.mxu1 %v9023_v39  ;;  %v1695_v39 = vrot.slane %v1686_v35, %v10555_v51 }
 0x6b3   :  { %1880 = vmatprep.subr.bf16.mxu1 %v9031_v41 }
 0x6b6   :  { %1881 = vmatpush1.bf16.msra.mxu1 %v9029_v43 }
 0x6b7   :  { %1882 = vmatprep.subr.bf16.mxu1 %v9037_v45 }
 0x6ba   :  { %1883 = vmatpush1.bf16.msra.mxu1 %v9035_v47 }
 0x75d   :  { %v1507_v61 = vpop.f32.mrf.mxu1 }
 0x75e   :  { %v1508_v62 = vadd.f32 %v7514_v60, %v1507_v61 }
 0x75f   :  { %v8611_v63 = vpop.f32.mrf.mxu1 }
 0x760   :  { %v1529_v1 = vpack.c.bf16 %v1508_v62, %v1508_v62  ;;  %v9041_v62 = vld [vmem:[#allocation36 + $0x78] sm:$0xff]  }
 0x761   :  { %v1510_v2 = vpop.f32.mrf.mxu1  ;;  %v9042_v63 = vld [vmem:[#allocation36 + $0xf8] sm:$0xff]   ;;  %8148 = vmatprep.subr.bf16.mxu1 %v9041_v62 }
 0x762   :  { %8630 = vmatmul.mubr.bf16.vlgmr.msra.gmra.mxu0 %v1529_v1  ;;  %v9043_v1 = vld [vmem:[#allocation36 + $0x38] sm:$0xff]  }
 0x763   :  { %v8612_v3 = vpop.f32.mrf.mxu1  ;;  %1941 = vmatprep.mubr.bf16.mxu0 %v10224_v4  ;;  %1910 = vmatpush1.bf16.msra.mxu0 %v8996_v14  ;;  %v9044_v2 = vld [vmem:[#allocation36 + $0xb8] sm:$0xff]   ;;  %v9054_v14 = vld [vmem:[#allocation36 + $0xe0] sm:$0xff]  }
 0x764   :  { %1911 = vmatprep.subr.bf16.mxu0 %v9004_v17  ;;  %v9045_v3 = vld [vmem:[#allocation36 + $0x70] sm:$0xff]   ;;  %v9057_v17 = vld [vmem:[#allocation36 + $0x58] sm:$0xff]  }
 0x767   :  { %1912 = vmatpush1.bf16.msra.mxu0 %v9002_v20  ;;  %v9059_v20 = vld [vmem:[#allocation36 + $0x18] sm:$0xff]  }
 0x768   :  { %1913 = vmatprep.subr.bf16.mxu0 %v9010_v26  ;;  %v9065_v26 = vld [vmem:[#allocation36 + $0x48] sm:$0xff]  }
 0x76b   :  { %1914 = vmatpush1.bf16.msra.mxu0 %v9008_v28  ;;  %v9067_v28 = vld [vmem:[#allocation36 + $0x8] sm:$0xff]  }
 0x76c   :  { %1915 = vmatprep.subr.bf16.mxu0 %v9016_v32  ;;  %v9071_v32 = vld [vmem:[#allocation36] sm:$0xff]  }
 0x76f   :  { %1916 = vmatpush1.bf16.msra.mxu0 %v9014_v31  ;;  %v9070_v31 = vld [vmem:[#allocation36 + $0xc0] sm:$0xff]  }
 0x770   :  { %1917 = vmatprep.subr.bf16.mxu0 %v9022_v34  ;;  %v10597_v34 = vsub.s32 2, %v10549_v48 }
 0x773   :  { %1918 = vmatpush1.bf16.msra.mxu0 %v9020_v36  ;;  %v10601_v36 = vsub.s32 3, %v10549_v48 }
 0x774   :  { %1919 = vmatprep.subr.bf16.mxu0 %v9028_v38  ;;  %v1699_v38 = vrot.slane %v1686_v35, %v10597_v34 }
 0x777   :  { %1920 = vmatpush1.bf16.msra.mxu0 %v9026_v40  ;;  %v1703_v40 = vrot.slane %v1686_v35, %v10601_v36 }
 0x778   :  { %1921 = vmatprep.subr.bf16.mxu0 %v9034_v42 }
 0x77b   :  { %1922 = vmatpush1.bf16.msra.mxu0 %v9032_v44 }
 0x77c   :  { %1923 = vmatprep.subr.bf16.mxu0 %v9040_v46 }
 0x77f   :  { %1924 = vmatpush1.bf16.msra.mxu0 %v9038_v50 }
 0x780   :  { %8170 = vmatprep.subr.bf16.mxu0 %v9042_v63 }
 0x822   :  { %v1619_v6 = vpop.f32.mrf.mxu0 }
 0x823   :  { %v1620_v7 = vadd.f32 %v7523_v5, %v1619_v6  ;;  %v9046_v5 = vld [vmem:[#allocation36 + $0xf0] sm:$0xff]  }
 0x824   :  { %v8631_v8 = vpop.f32.mrf.mxu0  ;;  %v9047_v6 = vld [vmem:[#allocation36 + $0x30] sm:$0xff]  }
 0x825   :  { %v10588_v9 = vadd.f32 %v1620_v7, %v10565_v21  ;;  %v9048_v7 = vld [vmem:[#allocation36 + $0xb0] sm:$0xff]   ;;  %v9049_v8 = vld [vmem:[#allocation36 + $0x68] sm:$0xff]  }
 0x826   :  { %v1622_v10 = vpop.f32.mrf.mxu0 }
 0x827   :  { %1628 = vadd.xlane.f32.xlu1 %v10588_v9  ;;  %v9050_v10 = vld [vmem:[#allocation36 + $0xe8] sm:$0xff]  }
 0x828   :  { %v8632_v11 = vpop.f32.mrf.mxu0 }
 0x829   :  { %v9051_v11 = vld [vmem:[#allocation36 + $0x28] sm:$0xff]  }
 0x8b0   :  { %v1629_v21 = vpop.xlane.xlu1 %1628 }
 0x8b1   :  { %v1630_v22 = vmul.f32 0.0078125, %v1629_v21  ;;  %v9060_v21 = vld [vmem:[#allocation36 + $0x98] sm:$0xff]  }
 0x8b3   :  { %v1631_v23 = vsub.f32 %v10588_v9, %v1630_v22  ;;  %v9061_v22 = vld [vmem:[#allocation36 + $0x50] sm:$0xff]  }
 0x8b5   :  { %v1632_v24 = vmul.f32 %v1631_v23, %v1631_v23 }
 0x8b7   :  { %1633 = vadd.xlane.f32.xlu1 %v1632_v24  ;;  %v9063_v24 = vld [vmem:[#allocation36 + $0x10] sm:$0xff]  }
 0x940   :  { %v1634_v52 = vpop.xlane.xlu1 %1633 }
 0x941   :  { %v1635_v53 = vmul.f32 0.0078125, %v1634_v52 }
 0x943   :  { %v1636_v54 = vadd.f32 1e-05, %v1635_v53 }
 0x945   :  { %9563 = vrsqrt.f32 %v1636_v54 }
 0x952   :  { %v9564_v55 = vpop.eup %9563 }
 0x953   :  { %v1638_v57 = vmul.f32 %v9564_v55, %v1631_v23  ;;  %v9062_v23 = vld [vmem:[#allocation36 + $0xd0] sm:$0xff]  }
 0x955   :  { %v1645_v59 = vmul.f32 %v7532_v56, %v1638_v57 }
 0x957   :  { %v1652_v60 = vadd.f32 %v7533_v58, %v1645_v59 }
 0x959   :  { %v1685_v61 = vpack.c.bf16 %v1652_v60, %v1652_v60 }
 0x95b   :  { %1901 = vmatmul.mubr.bf16.vlgmr.msra.gmra.mxu1 %v1685_v61  ;;  %1942 = vmatmul.mubr.bf16.vlgmr.msra.gmra.mxu0 %v1685_v61 }
 0x95c   :  { %8149 = vmatpush3.bf16.msra.mxu1 %v9043_v1  ;;  %8171 = vmatpush3.bf16.msra.mxu0 %v9044_v2 }
 0x95d   :  { %8150 = vmatprep.subr.bf16.mxu1 %v9045_v3  ;;  %8172 = vmatprep.subr.bf16.mxu0 %v9046_v5 }
 0x960   :  { %8151 = vmatpush3.bf16.msra.mxu1 %v9047_v6  ;;  %8173 = vmatpush3.bf16.msra.mxu0 %v9048_v7 }
 0x961   :  { %8152 = vmatprep.subr.bf16.mxu1 %v9049_v8  ;;  %8174 = vmatprep.subr.bf16.mxu0 %v9050_v10 }
 0x964   :  { %8153 = vmatpush3.bf16.msra.mxu1 %v9051_v11  ;;  %8175 = vmatpush3.bf16.msra.mxu0 %v9052_v12 }
 0x965   :  { %8154 = vmatprep.subr.bf16.mxu1 %v9053_v13  ;;  %8176 = vmatprep.subr.bf16.mxu0 %v9054_v14 }
 0x968   :  { %8155 = vmatpush3.bf16.msra.mxu1 %v9055_v15  ;;  %8177 = vmatpush3.bf16.msra.mxu0 %v9056_v16 }
 0x969   :  { %8156 = vmatprep.subr.bf16.mxu1 %v9057_v17  ;;  %8178 = vmatprep.subr.bf16.mxu0 %v9058_v18 }
 0x96c   :  { %8157 = vmatpush3.bf16.msra.mxu1 %v9059_v20  ;;  %8179 = vmatpush3.bf16.msra.mxu0 %v9060_v21 }
 0x96d   :  { %8158 = vmatprep.subr.bf16.mxu1 %v9061_v22  ;;  %8180 = vmatprep.subr.bf16.mxu0 %v9062_v23 }
 0x970   :  { %8159 = vmatpush3.bf16.msra.mxu1 %v9063_v24  ;;  %8181 = vmatpush3.bf16.msra.mxu0 %v9064_v25 }
 0x971   :  { %8160 = vmatprep.subr.bf16.mxu1 %v9065_v26  ;;  %8182 = vmatprep.subr.bf16.mxu0 %v9066_v27 }
 0x974   :  { %8161 = vmatpush3.bf16.msra.mxu1 %v9067_v28  ;;  %8183 = vmatpush3.bf16.msra.mxu0 %v9068_v29 }
 0x975   :  { %8162 = vmatprep.subr.bf16.mxu1 %v9069_v30  ;;  %8184 = vmatprep.subr.bf16.mxu0 %v9070_v31 }
 0x978   :  { %8163 = vmatpush3.bf16.msra.mxu1 %v9071_v32  ;;  %8185 = vmatpush3.bf16.msra.mxu0 %v9072_v33 }
 0x979   :  { %8633 = vmatprep.subr.bf16.mxu1 %v10221_v0  ;;  %8653 = vmatprep.subr.bf16.mxu0 %v10221_v0 }
 0xa1b   :  { %v1902_v41 = vpop.f32.mrf.mxu1  ;;  %v1943_v42 = vpop.f32.mrf.mxu0 }
 0xa1c   :  { %v1903_v43 = vadd.f32 %v1902_v41, %v1691_v37  ;;  %v1944_v44 = vadd.f32 %v1943_v42, %v1699_v38 }
 0xa1d   :  { %v1904_v45 = vpop.f32.mrf.mxu1  ;;  %v1945_v46 = vpop.f32.mrf.mxu0 }
 0xa1e   :  { %v1954_v47 = vmul.f32 0.044715, %v1903_v43  ;;  %v1956_v50 = vmul.f32 0.044715, %v1944_v44  ;;  %v1905_v52 = vadd.f32 %v1904_v45, %v1695_v39  ;;  %v1946_v53 = vadd.f32 %v1945_v46, %v1703_v40  ;;  %v7566_v39 = vld [vmem:[%s10879_s17] ss:$0 sm:$0xff] }
 0xa1f   :  { %v1906_v48 = vpop.f32.mrf.mxu1  ;;  %v1947_v54 = vpop.f32.mrf.mxu0  ;;  %v1950_v18 = vmul.f32 0.5, %v1903_v43  ;;  %v1952_v24 = vmul.f32 0.5, %v1944_v44 }
 0xa20   :  { %v1958_v55 = vmul.f32 %v1954_v47, %v1903_v43  ;;  %v1960_v56 = vmul.f32 %v1956_v50, %v1944_v44  ;;  %v1955_v57 = vmul.f32 0.044715, %v1905_v52  ;;  %v1957_v58 = vmul.f32 0.044715, %v1946_v53 }
 0xa21   :  { %v1907_v59 = vpop.f32.mrf.mxu1  ;;  %v1948_v60 = vpop.f32.mrf.mxu0  ;;  %v1951_v22 = vmul.f32 0.5, %v1905_v52  ;;  %v1953_v25 = vmul.f32 0.5, %v1946_v53 }
 0xa22   :  { %v1962_v61 = vmul.f32 %v1958_v55, %v1903_v43  ;;  %v1964_v62 = vmul.f32 %v1960_v56, %v1944_v44  ;;  %v1959_v63 = vmul.f32 %v1955_v57, %v1905_v52  ;;  %v1961_v1 = vmul.f32 %v1957_v58, %v1946_v53 }
 0xa24   :  { %v1966_v2 = vadd.f32 %v1962_v61, %v1903_v43  ;;  %v1968_v3 = vadd.f32 %v1964_v62, %v1944_v44  ;;  %v1963_v5 = vmul.f32 %v1959_v63, %v1905_v52  ;;  %v1965_v6 = vmul.f32 %v1961_v1, %v1946_v53  ;;  %v9073_v63 = vld [vmem:[#allocation28 + $0x78] sm:$0xff]   ;;  %v9074_v1 = vld [vmem:[#allocation28 + $0x70] sm:$0xff]  }
 0xa26   :  { %v1970_v7 = vmul.f32 0.7978846, %v1966_v2  ;;  %v1972_v8 = vmul.f32 0.7978846, %v1968_v3  ;;  %v1967_v10 = vadd.f32 %v1963_v5, %v1905_v52  ;;  %v1969_v11 = vadd.f32 %v1965_v6, %v1946_v53 }
 0xa28   :  { %v1971_v12 = vmul.f32 0.7978846, %v1967_v10  ;;  %v1973_v13 = vmul.f32 0.7978846, %v1969_v11  ;;  %9565 = vtanh.f32 %v1970_v7  ;;  %v9075_v7 = vld [vmem:[#allocation28 + $0x68] sm:$0xff]   ;;  %v9078_v10 = vld [vmem:[#allocation28 + $0x50] sm:$0xff]  }
 0xa29   :  { %9567 = vtanh.f32 %v1972_v8  ;;  %v9077_v8 = vld [vmem:[#allocation28 + $0x58] sm:$0xff]   ;;  %v9079_v11 = vld [vmem:[#allocation28 + $0x48] sm:$0xff]  }
 0xa2a   :  { %9569 = vtanh.f32 %v1971_v12  ;;  %v9080_v12 = vld [vmem:[#allocation28 + $0x40] sm:$0xff]  }
 0xa2b   :  { %9571 = vtanh.f32 %v1973_v13  ;;  %v9081_v13 = vld [vmem:[#allocation31 + $0x78] sm:$0xff]  }
 0xa35   :  { %v9566_v14 = vpop.eup %9565 }
 0xa36   :  { %v9568_v15 = vpop.eup %9567  ;;  %v1978_v16 = vadd.f32 1.0, %v9566_v14  ;;  %v9082_v14 = vld [vmem:[#allocation31 + $0x70] sm:$0xff]  }
 0xa37   :  { %v9570_v17 = vpop.eup %9569  ;;  %v1980_v20 = vadd.f32 1.0, %v9568_v15  ;;  %v9083_v15 = vld [vmem:[#allocation31 + $0x68] sm:$0xff]  }
 0xa38   :  { %v9572_v21 = vpop.eup %9571  ;;  %v1979_v23 = vadd.f32 1.0, %v9570_v17  ;;  %v1982_v27 = vmul.f32 %v1978_v16, %v1950_v18  ;;  %v9084_v16 = vld [vmem:[#allocation31 + $0x60] sm:$0xff]   ;;  %v9085_v17 = vld [vmem:[#allocation31 + $0x58] sm:$0xff]   ;;  %v9086_v18 = vld [vmem:[#allocation31 + $0x50] sm:$0xff]  }
 0xa39   :  { %v1981_v26 = vadd.f32 1.0, %v9572_v21  ;;  %v1984_v29 = vmul.f32 %v1980_v20, %v1952_v24  ;;  %v9087_v20 = vld [vmem:[#allocation31 + $0x48] sm:$0xff]  }
 0xa3a   :  { %v1983_v28 = vmul.f32 %v1979_v23, %v1951_v22  ;;  %v2050_v33 = vpack.c.bf16 %v1982_v27, %v1982_v27  ;;  %v7602_v27 = vld [vmem:[%s10875_s23 + $0x1] ss:$0 sm:$0xff] }
 0xa3b   :  { %v1985_v30 = vmul.f32 %v1981_v26, %v1953_v25  ;;  %v2052_v35 = vpack.c.bf16 %v1984_v29, %v1984_v29  ;;  %v7601_v25 = vld [vmem:[%s10874_s24 + $0x1] ss:$0 sm:$0xff] }
 0xa3c   :  { %v2051_v31 = vpack.c.bf16 %v1983_v28, %v1983_v28 }
 0xa3d   :  { %v2053_v32 = vpack.c.bf16 %v1985_v30, %v1985_v30 }
 0xa3e   :  { %2285 = vmatprep.mubr.bf16.mxu1 %v2051_v31  ;;  %v9088_v31 = vld [vmem:[#allocation31 + $0x40] sm:$0xff]  }
 0xa3f   :  { %2325 = vmatprep.mubr.bf16.mxu0 %v2053_v32  ;;  %2286 = vmatmul.mubr.bf16.vlgmr.msra.gmra.mxu1 %v2050_v33  ;;  %v7603_v32 = vld [vmem:[#allocation30 + $0x1] ss:$0 sm:$0xff] }
 0xa40   :  { %2326 = vmatmul.mubr.bf16.vlgmr.msra.gmra.mxu0 %v2052_v35  ;;  %8649 = vmatprep.mubr.msk.bf16.mxu1 %vm10222_vm0, %v10221_v0 }
 0xa41   :  { %8669 = vmatprep.mubr.msk.bf16.mxu0 %vm10222_vm0, %v10221_v0  ;;  %8634 = vmatpush3.bf16.msra.mxu1 %v9073_v63  ;;  %v9106_v63 = vld [vmem:[#allocation34 + $0x1ac] ss:$16 sps:$4 sm:$0xff]  }
 0xa42   :  { %8635 = vmatprep.subr.bf16.mxu1 %v10221_v0  ;;  %8654 = vmatpush3.bf16.msra.mxu0 %v9081_v13  ;;  %v9124_v13 = vld [vmem:[#allocation34 + $0x14c] ss:$16 sps:$4 sm:$0xff]  }
 0xa43   :  { %8655 = vmatprep.subr.bf16.mxu0 %v10221_v0 }
 0xa45   :  { %8636 = vmatpush3.bf16.msra.mxu1 %v9074_v1  ;;  %v9101_v1 = vld [vmem:[#allocation34 + $0x1a0] ss:$16 sps:$4 sm:$0xff]  }
 0xa46   :  { %8637 = vmatprep.subr.bf16.mxu1 %v10221_v0  ;;  %8656 = vmatpush3.bf16.msra.mxu0 %v9082_v14  ;;  %v9119_v14 = vld [vmem:[#allocation34 + $0x140] ss:$16 sps:$4 sm:$0xff]  }
 0xa47   :  { %8657 = vmatprep.subr.bf16.mxu0 %v10221_v0 }
 0xa49   :  { %8638 = vmatpush3.bf16.msra.mxu1 %v9075_v7  ;;  %v9112_v7 = vld [vmem:[#allocation34 + $0x18c] ss:$16 sps:$4 sm:$0xff]  }
 0xa4a   :  { %8639 = vmatprep.subr.bf16.mxu1 %v10221_v0  ;;  %8658 = vmatpush3.bf16.msra.mxu0 %v9083_v15  ;;  %v9122_v15 = vld [vmem:[#allocation34 + $0x148] ss:$16 sps:$4 sm:$0xff]  }
 0xa4b   :  { %8659 = vmatprep.subr.bf16.mxu0 %v10221_v0 }
 0xa4e   :  { %8660 = vmatpush3.bf16.msra.mxu0 %v9084_v16  ;;  %v9127_v16 = vld [vmem:[#allocation34 + $0x124] ss:$16 sps:$4 sm:$0xff]  }
 0xa4f   :  { %8661 = vmatprep.subr.bf16.mxu0 %v10221_v0 }
 0xa52   :  { %8662 = vmatpush3.bf16.msra.mxu0 %v9085_v17  ;;  %v9130_v17 = vld [vmem:[#allocation34 + $0x12c] ss:$16 sps:$4 sm:$0xff]  }
 0xa53   :  { %8663 = vmatprep.subr.bf16.mxu0 %v10221_v0 }
 0xa56   :  { %8664 = vmatpush3.bf16.msra.mxu0 %v9086_v18  ;;  %v9125_v18 = vld [vmem:[#allocation34 + $0x120] ss:$16 sps:$4 sm:$0xff]  }
 0xa57   :  { %8665 = vmatprep.subr.bf16.mxu0 %v10221_v0 }
 0xa5a   :  { %8666 = vmatpush3.bf16.msra.mxu0 %v9087_v20  ;;  %v9128_v20 = vld [vmem:[#allocation34 + $0x128] ss:$16 sps:$4 sm:$0xff]  }
 0xa5b   :  { %8667 = vmatprep.subr.bf16.mxu0 %v10221_v0 }
 0xa5e   :  { %8668 = vmatpush3.bf16.msra.mxu0 %v9088_v31  ;;  %v7624_v31 = vld [vmem:[%s10877_s26 + $0x1] ss:$0 sm:$0xff] }
 0xaff   :  { %v8164_v37 = vpop.f32.mrf.mxu1 }
 0xb00   :  { %v8186_v38 = vpop.f32.mrf.mxu0 }
 0xb01   :  { %v8165_v40 = vpop.f32.mrf.mxu1 }
 0xb02   :  { %v8166_v41 = vadd.f32 %v8165_v40, %v8164_v37  ;;  %v8187_v42 = vpop.f32.mrf.mxu0 }
 0xb03   :  { %v8167_v43 = vpop.f32.mrf.mxu1  ;;  %v8188_v45 = vadd.f32 %v8187_v42, %v8186_v38 }
 0xb04   :  { %v2288_v44 = vadd.f32 %v8166_v41, %v7566_v39  ;;  %v8189_v46 = vpop.f32.mrf.mxu0  ;;  %v7612_v41 = vld [vmem:[#allocation33 + $0x1] ss:$0 sm:$0xff] }
 0xb05   :  { %v8168_v47 = vpop.f32.mrf.mxu1 }
 0xb06   :  { %v2328_v50 = vadd.f32 %v8188_v45, %v2288_v44  ;;  %v8190_v52 = vpop.f32.mrf.mxu0 }
 0xb07   :  { %v9091_v52 = vld [vmem:[#allocation34 + $0x1e4] ss:$16 sps:$4 sm:$0xff]  }
 0xb08   :  { %v2334_v53 = vmul.f32 0.044715, %v2328_v50  ;;  %v2333_v58 = vmul.f32 0.5, %v2328_v50 }
 0xb0a   :  { %v2335_v48 = vmul.f32 %v2334_v53, %v2328_v50  ;;  %v9092_v53 = vld [vmem:[#allocation34 + $0x1e8] ss:$16 sps:$4 sm:$0xff]  }
 0xb0c   :  { %v2336_v54 = vmul.f32 %v2335_v48, %v2328_v50  ;;  %v9094_v48 = vld [vmem:[#allocation34 + $0x1ec] ss:$16 sps:$4 sm:$0xff]  }
 0xb0d   :  { %2889 = vmatprep.subr.bf16.mxu0 %v9094_v48  ;;  %v9150_v48 = vld [vmem:[#allocation36 + $0x1e0] sm:$0xff]  }
 0xb0e   :  { %v2337_v55 = vadd.f32 %v2336_v54, %v2328_v50  ;;  %v9089_v50 = vld [vmem:[#allocation34 + $0x1e0] ss:$16 sps:$4 sm:$0xff]   ;;  %v9097_v54 = vld [vmem:[#allocation34 + $0x1c4] ss:$16 sps:$4 sm:$0xff]  }
 0xb10   :  { %v2338_v56 = vmul.f32 0.7978846, %v2337_v55  ;;  %v9100_v55 = vld [vmem:[#allocation34 + $0x1cc] ss:$16 sps:$4 sm:$0xff]  }
 0xb12   :  { %9573 = vtanh.f32 %v2338_v56  ;;  %v9095_v56 = vld [vmem:[#allocation34 + $0x1c0] ss:$16 sps:$4 sm:$0xff]  }
 0xb1f   :  { %v9574_v57 = vpop.eup %9573 }
 0xb20   :  { %v2340_v59 = vadd.f32 1.0, %v9574_v57  ;;  %v9098_v57 = vld [vmem:[#allocation34 + $0x1c8] ss:$16 sps:$4 sm:$0xff]  }
 0xb22   :  { %v2341_v60 = vmul.f32 %v2340_v59, %v2333_v58 }
 0xb24   :  { %v10613_v61 = vadd.f32 %v2341_v60, %v10588_v9  ;;  %v9076_v9 = vld [vmem:[#allocation28 + $0x60] sm:$0xff]  }
 0xb25   :  { %8640 = vmatpush3.bf16.msra.mxu1 %v9076_v9  ;;  %v9115_v9 = vld [vmem:[#allocation34 + $0x164] ss:$16 sps:$4 sm:$0xff]  }
 0xb26   :  { %v2343_v62 = vadd.f32 %v10613_v61, %v10563_v19  ;;  %8641 = vmatprep.subr.bf16.mxu1 %v10221_v0 }
 0xb28   :  { %2348 = vadd.xlane.f32.xlu0 %v2343_v62 }
 0xb29   :  { %8642 = vmatpush3.bf16.msra.mxu1 %v9077_v8  ;;  %v9118_v8 = vld [vmem:[#allocation34 + $0x16c] ss:$16 sps:$4 sm:$0xff]  }
 0xb2a   :  { %8643 = vmatprep.subr.bf16.mxu1 %v10221_v0 }
 0xb2d   :  { %8644 = vmatpush3.bf16.msra.mxu1 %v9078_v10  ;;  %v9113_v10 = vld [vmem:[#allocation34 + $0x160] ss:$16 sps:$4 sm:$0xff]  }
 0xb2e   :  { %8645 = vmatprep.subr.bf16.mxu1 %v10221_v0 }
 0xb31   :  { %8646 = vmatpush3.bf16.msra.mxu1 %v9079_v11  ;;  %v9116_v11 = vld [vmem:[#allocation34 + $0x168] ss:$16 sps:$4 sm:$0xff]  }
 0xb32   :  { %8647 = vmatprep.subr.bf16.mxu1 %v10221_v0 }
 0xb35   :  { %8648 = vmatpush3.bf16.msra.mxu1 %v9080_v12  ;;  %v9121_v12 = vld [vmem:[#allocation34 + $0x144] ss:$16 sps:$4 sm:$0xff]  }
 0xb36   :  { %2848 = vmatprep.subr.bf16.mxu1 %v9091_v52  ;;  %v9148_v52 = vld [vmem:[#allocation36 + $0x1a8] sm:$0xff]  }
 0xbb1   :  { %v2349_v2 = vpop.xlane.xlu0 %2348 }
 0xbb2   :  { %v2350_v3 = vmul.f32 0.0078125, %v2349_v2  ;;  %v9104_v2 = vld [vmem:[#allocation34 + $0x1a8] ss:$16 sps:$4 sm:$0xff]  }
 0xbb4   :  { %v2351_v5 = vsub.f32 %v2343_v62, %v2350_v3  ;;  %v9103_v62 = vld [vmem:[#allocation34 + $0x1a4] ss:$16 sps:$4 sm:$0xff]   ;;  %v9107_v3 = vld [vmem:[#allocation34 + $0x180] ss:$16 sps:$4 sm:$0xff]  }
 0xbb6   :  { %v2352_v6 = vmul.f32 %v2351_v5, %v2351_v5 }
 0xbb8   :  { %2353 = vadd.xlane.f32.xlu1 %v2352_v6  ;;  %v9110_v6 = vld [vmem:[#allocation34 + $0x188] ss:$16 sps:$4 sm:$0xff]  }
 0xc41   :  { %v2354_v21 = vpop.xlane.xlu1 %2353 }
 0xc42   :  { %v2355_v22 = vmul.f32 0.0078125, %v2354_v21  ;;  %v9133_v21 = vld [vmem:[#allocation34 + $0x104] ss:$16 sps:$4 sm:$0xff]  }
 0xc44   :  { %v2356_v23 = vadd.f32 1e-05, %v2355_v22  ;;  %v9136_v22 = vld [vmem:[#allocation34 + $0x10c] ss:$16 sps:$4 sm:$0xff]  }
 0xc46   :  { %9575 = vrsqrt.f32 %v2356_v23  ;;  %v9131_v23 = vld [vmem:[#allocation34 + $0x100] ss:$16 sps:$4 sm:$0xff]  }
 0xc53   :  { %v9576_v24 = vpop.eup %9575 }
 0xc54   :  { %v2358_v26 = vmul.f32 %v9576_v24, %v2351_v5  ;;  %v9109_v5 = vld [vmem:[#allocation34 + $0x184] ss:$16 sps:$4 sm:$0xff]   ;;  %v9134_v24 = vld [vmem:[#allocation34 + $0x108] ss:$16 sps:$4 sm:$0xff]  }
 0xc56   :  { %v2365_v28 = vmul.f32 %v7601_v25, %v2358_v26 }
 0xc58   :  { %v2372_v29 = vadd.f32 %v7602_v27, %v2365_v28 }
 0xc5a   :  { %v2390_v30 = vpack.c.bf16 %v2372_v29, %v2372_v29  ;;  %v7623_v29 = vld [vmem:[%s10876_s30 + $0x1] ss:$0 sm:$0xff] }
 0xc5c   :  { %8650 = vmatmul.mubr.bf16.vlgmr.msra.gmra.mxu1 %v2390_v30 }
 0xc5d   :  { %2880 = vmatprep.mubr.bf16.mxu1 %v10224_v4  ;;  %2849 = vmatpush1.bf16.msra.mxu1 %v9089_v50  ;;  %v9147_v50 = vld [vmem:[#allocation36 + $0x128] sm:$0xff]  }
 0xc5e   :  { %2850 = vmatprep.subr.bf16.mxu1 %v9097_v54  ;;  %v9151_v54 = vld [vmem:[#allocation36 + $0x120] sm:$0xff]  }
 0xc61   :  { %2851 = vmatpush1.bf16.msra.mxu1 %v9095_v56  ;;  %v9153_v56 = vld [vmem:[#allocation36 + $0x158] sm:$0xff]  }
 0xc62   :  { %2852 = vmatprep.subr.bf16.mxu1 %v9103_v62  ;;  %v9159_v62 = vld [vmem:[#allocation36 + $0x110] sm:$0xff]  }
 0xc65   :  { %2853 = vmatpush1.bf16.msra.mxu1 %v9101_v1  ;;  %v9161_v1 = vld [vmem:[#allocation36 + $0x148] sm:$0xff]  }
 0xc66   :  { %2854 = vmatprep.subr.bf16.mxu1 %v9109_v5  ;;  %v9164_v5 = vld [vmem:[#allocation36 + $0x188] sm:$0xff]  }
 0xc69   :  { %2855 = vmatpush1.bf16.msra.mxu1 %v9107_v3  ;;  %v9163_v3 = vld [vmem:[#allocation36 + $0x108] sm:$0xff]  }
 0xc6a   :  { %2856 = vmatprep.subr.bf16.mxu1 %v9115_v9  ;;  %v9167_v9 = vld [vmem:[#allocation36 + $0x100] sm:$0xff]  }
 0xc6d   :  { %2857 = vmatpush1.bf16.msra.mxu1 %v9113_v10  ;;  %v7625_v10 = vld [vmem:[%s10878_s28 + $0x4] sm:$0xf] }
 0xc6e   :  { %2858 = vmatprep.subr.bf16.mxu1 %v9121_v12  ;;  %v2679_v12 = vrot.slane %v7625_v10, %v10597_v34 }
 0xc71   :  { %2859 = vmatpush1.bf16.msra.mxu1 %v9119_v14  ;;  %v2683_v14 = vrot.slane %v7625_v10, %v10601_v36 }
 0xc72   :  { %2860 = vmatprep.subr.bf16.mxu1 %v9127_v16 }
 0xc75   :  { %2861 = vmatpush1.bf16.msra.mxu1 %v9125_v18 }
 0xc76   :  { %2862 = vmatprep.subr.bf16.mxu1 %v9133_v21 }
 0xc79   :  { %2863 = vmatpush1.bf16.msra.mxu1 %v9131_v23 }
 0xd1c   :  { %v2481_v33 = vpop.f32.mrf.mxu1 }
 0xd1d   :  { %v2482_v35 = vadd.f32 %v7603_v32, %v2481_v33 }
 0xd1e   :  { %v8651_v37 = vpop.f32.mrf.mxu1 }
 0xd1f   :  { %v2504_v38 = vpack.c.bf16 %v2482_v35, %v2482_v35  ;;  %v9137_v37 = vld [vmem:[#allocation36 + $0x178] sm:$0xff]  }
 0xd20   :  { %v2484_v39 = vpop.f32.mrf.mxu1  ;;  %8210 = vmatprep.subr.bf16.mxu1 %v9137_v37 }
 0xd21   :  { %8670 = vmatmul.mubr.bf16.vlgmr.msra.gmra.mxu0 %v2504_v38  ;;  %v9138_v38 = vld [vmem:[#allocation36 + $0x1f8] sm:$0xff]  }
 0xd22   :  { %v8652_v40 = vpop.f32.mrf.mxu1  ;;  %2921 = vmatprep.mubr.bf16.mxu0 %v10224_v4  ;;  %2890 = vmatpush1.bf16.msra.mxu0 %v9092_v53  ;;  %v9139_v39 = vld [vmem:[#allocation36 + $0x138] sm:$0xff]   ;;  %v9149_v53 = vld [vmem:[#allocation36 + $0x160] sm:$0xff]  }
 0xd23   :  { %2891 = vmatprep.subr.bf16.mxu0 %v9100_v55  ;;  %v9140_v40 = vld [vmem:[#allocation36 + $0x1b8] sm:$0xff]   ;;  %v9152_v55 = vld [vmem:[#allocation36 + $0x1a0] sm:$0xff]  }
 0xd26   :  { %2892 = vmatpush1.bf16.msra.mxu0 %v9098_v57  ;;  %v9154_v57 = vld [vmem:[#allocation36 + $0x1d8] sm:$0xff]  }
 0xd27   :  { %2893 = vmatprep.subr.bf16.mxu0 %v9106_v63  ;;  %v9160_v63 = vld [vmem:[#allocation36 + $0x190] sm:$0xff]  }
 0xd2a   :  { %2894 = vmatpush1.bf16.msra.mxu0 %v9104_v2  ;;  %v9162_v2 = vld [vmem:[#allocation36 + $0x1c8] sm:$0xff]  }
 0xd2b   :  { %2895 = vmatprep.subr.bf16.mxu0 %v9112_v7  ;;  %v9166_v7 = vld [vmem:[#allocation36 + $0x1c0] sm:$0xff]  }
 0xd2e   :  { %2896 = vmatpush1.bf16.msra.mxu0 %v9110_v6  ;;  %v9165_v6 = vld [vmem:[#allocation36 + $0x140] sm:$0xff]  }
 0xd2f   :  { %2897 = vmatprep.subr.bf16.mxu0 %v9118_v8  ;;  %v9168_v8 = vld [vmem:[#allocation36 + $0x180] sm:$0xff]  }
 0xd32   :  { %2898 = vmatpush1.bf16.msra.mxu0 %v9116_v11  ;;  %v2671_v11 = vrot.slane %v7625_v10, %v10552_v49 }
 0xd33   :  { %2899 = vmatprep.subr.bf16.mxu0 %v9124_v13  ;;  %v2675_v13 = vrot.slane %v7625_v10, %v10555_v51 }
 0xd36   :  { %2900 = vmatpush1.bf16.msra.mxu0 %v9122_v15 }
 0xd37   :  { %2901 = vmatprep.subr.bf16.mxu0 %v9130_v17 }
 0xd3a   :  { %2902 = vmatpush1.bf16.msra.mxu0 %v9128_v20 }
 0xd3b   :  { %2903 = vmatprep.subr.bf16.mxu0 %v9136_v22 }
 0xd3e   :  { %2904 = vmatpush1.bf16.msra.mxu0 %v9134_v24 }
 0xd3f   :  { %8232 = vmatprep.subr.bf16.mxu0 %v9138_v38 }
 0xde1   :  { %v2595_v42 = vpop.f32.mrf.mxu0 }
 0xde2   :  { %v2596_v43 = vadd.f32 %v7612_v41, %v2595_v42  ;;  %v9141_v41 = vld [vmem:[#allocation36 + $0x170] sm:$0xff]  }
 0xde3   :  { %v8671_v44 = vpop.f32.mrf.mxu0  ;;  %v9142_v42 = vld [vmem:[#allocation36 + $0x1f0] sm:$0xff]  }
 0xde4   :  { %v10636_v45 = vadd.f32 %v2596_v43, %v10613_v61  ;;  %v9143_v43 = vld [vmem:[#allocation36 + $0x130] sm:$0xff]  }
 0xde5   :  { %v2598_v46 = vpop.f32.mrf.mxu0  ;;  %v9144_v44 = vld [vmem:[#allocation36 + $0x1b0] sm:$0xff]  }
 0xde6   :  { %2606 = vadd.xlane.f32.xlu0 %v10636_v45  ;;  %v9145_v46 = vld [vmem:[#allocation36 + $0x168] sm:$0xff]  }
 0xde7   :  { %v8672_v47 = vpop.f32.mrf.mxu0 }
 0xde8   :  { %v9146_v47 = vld [vmem:[#allocation36 + $0x1e8] sm:$0xff]  }
 0xe6f   :  { %v2607_v58 = vpop.xlane.xlu0 %2606 }
 0xe70   :  { %v2608_v59 = vmul.f32 0.0078125, %v2607_v58  ;;  %v9155_v58 = vld [vmem:[#allocation36 + $0x118] sm:$0xff]  }
 0xe72   :  { %v2609_v60 = vsub.f32 %v10636_v45, %v2608_v59  ;;  %v9156_v59 = vld [vmem:[#allocation36 + $0x198] sm:$0xff]  }
 0xe74   :  { %v2610_v61 = vmul.f32 %v2609_v60, %v2609_v60 }
 0xe76   :  { %2611 = vadd.xlane.f32.xlu1 %v2610_v61  ;;  %v9158_v61 = vld [vmem:[#allocation36 + $0x1d0] sm:$0xff]  }
 0xeff   :  { %v2612_v25 = vpop.xlane.xlu1 %2611 }
 0xf00   :  { %v2613_v26 = vmul.f32 0.0078125, %v2612_v25 }
 0xf02   :  { %v2614_v27 = vadd.f32 1e-05, %v2613_v26 }
 0xf04   :  { %9577 = vrsqrt.f32 %v2614_v27 }
 0xf11   :  { %v9578_v28 = vpop.eup %9577 }
 0xf12   :  { %v2616_v30 = vmul.f32 %v9578_v28, %v2609_v60  ;;  %v9157_v60 = vld [vmem:[#allocation36 + $0x150] sm:$0xff]  }
 0xf14   :  { %v2623_v32 = vmul.f32 %v7623_v29, %v2616_v30 }
 0xf16   :  { %v2630_v33 = vadd.f32 %v7624_v31, %v2623_v32 }
 0xf18   :  { %v2664_v35 = vpack.c.bf16 %v2630_v33, %v2630_v33 }
 0xf1a   :  { %2881 = vmatmul.mubr.bf16.vlgmr.msra.gmra.mxu1 %v2664_v35  ;;  %2922 = vmatmul.mubr.bf16.vlgmr.msra.gmra.mxu0 %v2664_v35 }
 0xf1b   :  { %8211 = vmatpush3.bf16.msra.mxu1 %v9139_v39  ;;  %8233 = vmatpush3.bf16.msra.mxu0 %v9140_v40 }
 0xf1c   :  { %8212 = vmatprep.subr.bf16.mxu1 %v9141_v41  ;;  %8234 = vmatprep.subr.bf16.mxu0 %v9142_v42 }
 0xf1f   :  { %8213 = vmatpush3.bf16.msra.mxu1 %v9143_v43  ;;  %8235 = vmatpush3.bf16.msra.mxu0 %v9144_v44 }
 0xf20   :  { %8214 = vmatprep.subr.bf16.mxu1 %v9145_v46  ;;  %8236 = vmatprep.subr.bf16.mxu0 %v9146_v47 }
 0xf23   :  { %8215 = vmatpush3.bf16.msra.mxu1 %v9147_v50  ;;  %8237 = vmatpush3.bf16.msra.mxu0 %v9148_v52 }
 0xf24   :  { %8216 = vmatprep.subr.bf16.mxu1 %v9149_v53  ;;  %8238 = vmatprep.subr.bf16.mxu0 %v9150_v48 }
 0xf27   :  { %8217 = vmatpush3.bf16.msra.mxu1 %v9151_v54  ;;  %8239 = vmatpush3.bf16.msra.mxu0 %v9152_v55 }
 0xf28   :  { %8218 = vmatprep.subr.bf16.mxu1 %v9153_v56  ;;  %8240 = vmatprep.subr.bf16.mxu0 %v9154_v57 }
 0xf2b   :  { %8219 = vmatpush3.bf16.msra.mxu1 %v9155_v58  ;;  %8241 = vmatpush3.bf16.msra.mxu0 %v9156_v59 }
 0xf2c   :  { %8220 = vmatprep.subr.bf16.mxu1 %v9157_v60  ;;  %8242 = vmatprep.subr.bf16.mxu0 %v9158_v61 }
 0xf2f   :  { %8221 = vmatpush3.bf16.msra.mxu1 %v9159_v62  ;;  %8243 = vmatpush3.bf16.msra.mxu0 %v9160_v63 }
 0xf30   :  { %8222 = vmatprep.subr.bf16.mxu1 %v9161_v1  ;;  %8244 = vmatprep.subr.bf16.mxu0 %v9162_v2 }
 0xf33   :  { %8223 = vmatpush3.bf16.msra.mxu1 %v9163_v3  ;;  %8245 = vmatpush3.bf16.msra.mxu0 %v9164_v5 }
 0xf34   :  { %8224 = vmatprep.subr.bf16.mxu1 %v9165_v6  ;;  %8246 = vmatprep.subr.bf16.mxu0 %v9166_v7 }
 0xf37   :  { %8225 = vmatpush3.bf16.msra.mxu1 %v9167_v9  ;;  %8247 = vmatpush3.bf16.msra.mxu0 %v9168_v8 }
 0xf38   :  { %8673 = vmatprep.subr.bf16.mxu1 %v10221_v0  ;;  %8693 = vmatprep.subr.bf16.mxu0 %v10221_v0 }
 0xfda   :  { %v2882_v15 = vpop.f32.mrf.mxu1  ;;  %v2923_v16 = vpop.f32.mrf.mxu0 }
 0xfdb   :  { %v2883_v17 = vadd.f32 %v2882_v15, %v2671_v11  ;;  %v2924_v18 = vadd.f32 %v2923_v16, %v2679_v12 }
 0xfdc   :  { %v2884_v20 = vpop.f32.mrf.mxu1  ;;  %v2925_v21 = vpop.f32.mrf.mxu0 }
 0xfdd   :  { %v2934_v22 = vmul.f32 0.044715, %v2883_v17  ;;  %v2936_v23 = vmul.f32 0.044715, %v2924_v18  ;;  %v2885_v24 = vadd.f32 %v2884_v20, %v2675_v13  ;;  %v2926_v25 = vadd.f32 %v2925_v21, %v2683_v14  ;;  %v7659_v13 = vld [vmem:[%s10879_s17 + $0x1] ss:$0 sm:$0xff] }
 0xfde   :  { %v2886_v26 = vpop.f32.mrf.mxu1  ;;  %v2927_v27 = vpop.f32.mrf.mxu0  ;;  %v2930_v57 = vmul.f32 0.5, %v2883_v17  ;;  %v2932_v62 = vmul.f32 0.5, %v2924_v18 }
 0xfdf   :  { %v2938_v28 = vmul.f32 %v2934_v22, %v2883_v17  ;;  %v2940_v29 = vmul.f32 %v2936_v23, %v2924_v18  ;;  %v2935_v30 = vmul.f32 0.044715, %v2885_v24  ;;  %v2937_v31 = vmul.f32 0.044715, %v2926_v25 }
 0xfe0   :  { %v2887_v32 = vpop.f32.mrf.mxu1  ;;  %v2928_v33 = vpop.f32.mrf.mxu0  ;;  %v2931_v60 = vmul.f32 0.5, %v2885_v24  ;;  %v2933_v63 = vmul.f32 0.5, %v2926_v25 }
 0xfe1   :  { %v2942_v35 = vmul.f32 %v2938_v28, %v2883_v17  ;;  %v2944_v37 = vmul.f32 %v2940_v29, %v2924_v18  ;;  %v2939_v38 = vmul.f32 %v2935_v30, %v2885_v24  ;;  %v2941_v39 = vmul.f32 %v2937_v31, %v2926_v25 }
 0xfe3   :  { %v2946_v40 = vadd.f32 %v2942_v35, %v2883_v17  ;;  %v2948_v41 = vadd.f32 %v2944_v37, %v2924_v18  ;;  %v2943_v42 = vmul.f32 %v2939_v38, %v2885_v24  ;;  %v2945_v43 = vmul.f32 %v2941_v39, %v2926_v25  ;;  %v9169_v38 = vld [vmem:[#allocation28 + $0xb8] sm:$0xff]   ;;  %v9170_v39 = vld [vmem:[#allocation28 + $0xb0] sm:$0xff]  }
 0xfe5   :  { %v2950_v44 = vmul.f32 0.7978846, %v2946_v40  ;;  %v2952_v46 = vmul.f32 0.7978846, %v2948_v41  ;;  %v2947_v47 = vadd.f32 %v2943_v42, %v2885_v24  ;;  %v2949_v50 = vadd.f32 %v2945_v43, %v2926_v25 }
 0xfe7   :  { %v2951_v52 = vmul.f32 0.7978846, %v2947_v47  ;;  %v2953_v53 = vmul.f32 0.7978846, %v2949_v50  ;;  %9579 = vtanh.f32 %v2950_v44  ;;  %v9171_v44 = vld [vmem:[#allocation28 + $0xa8] sm:$0xff]   ;;  %v9174_v47 = vld [vmem:[#allocation28 + $0x90] sm:$0xff]  }
 0xfe8   :  { %9581 = vtanh.f32 %v2952_v46  ;;  %v9173_v46 = vld [vmem:[#allocation28 + $0x98] sm:$0xff]   ;;  %v9175_v50 = vld [vmem:[#allocation28 + $0x88] sm:$0xff]  }
 0xfe9   :  { %9583 = vtanh.f32 %v2951_v52  ;;  %v9176_v52 = vld [vmem:[#allocation28 + $0x80] sm:$0xff]  }
 0xfea   :  { %9585 = vtanh.f32 %v2953_v53  ;;  %v9177_v53 = vld [vmem:[#allocation31 + $0xb8] sm:$0xff]  }
 0xff4   :  { %v9580_v48 = vpop.eup %9579 }
 0xff5   :  { %v9582_v54 = vpop.eup %9581  ;;  %v2958_v55 = vadd.f32 1.0, %v9580_v48  ;;  %v9178_v48 = vld [vmem:[#allocation31 + $0xb0] sm:$0xff]  }
 0xff6   :  { %v9584_v56 = vpop.eup %9583  ;;  %v2960_v58 = vadd.f32 1.0, %v9582_v54  ;;  %v9179_v54 = vld [vmem:[#allocation31 + $0xa8] sm:$0xff]  }
 0xff7   :  { %v9586_v59 = vpop.eup %9585  ;;  %v2959_v61 = vadd.f32 1.0, %v9584_v56  ;;  %v2962_v2 = vmul.f32 %v2958_v55, %v2930_v57  ;;  %v9180_v55 = vld [vmem:[#allocation31 + $0xa0] sm:$0xff]   ;;  %v9181_v56 = vld [vmem:[#allocation31 + $0x98] sm:$0xff]   ;;  %v9182_v57 = vld [vmem:[#allocation31 + $0x90] sm:$0xff]  }
 0xff8   :  { %v2961_v1 = vadd.f32 1.0, %v9586_v59  ;;  %v2964_v5 = vmul.f32 %v2960_v58, %v2932_v62  ;;  %v9183_v58 = vld [vmem:[#allocation31 + $0x88] sm:$0xff]  }
 0xff9   :  { %v2963_v3 = vmul.f32 %v2959_v61, %v2931_v60  ;;  %v3031_v8 = vpack.c.bf16 %v2962_v2, %v2962_v2  ;;  %v7695_v2 = vld [vmem:[%s10875_s23 + $0x2] ss:$0 sm:$0xff] }
 0xffa   :  { %v2965_v6 = vmul.f32 %v2961_v1, %v2933_v63  ;;  %v3033_v10 = vpack.c.bf16 %v2964_v5, %v2964_v5  ;;  %v7694_v63 = vld [vmem:[%s10874_s24 + $0x2] ss:$0 sm:$0xff] }
 0xffb   :  { %v3032_v7 = vpack.c.bf16 %v2963_v3, %v2963_v3 }
 0xffc   :  { %v3034_v9 = vpack.c.bf16 %v2965_v6, %v2965_v6 }
 0xffd   :  { %3267 = vmatprep.mubr.bf16.mxu1 %v3032_v7  ;;  %v9184_v7 = vld [vmem:[#allocation31 + $0x80] sm:$0xff]  }
 0xffe   :  { %3307 = vmatprep.mubr.bf16.mxu0 %v3034_v9  ;;  %3268 = vmatmul.mubr.bf16.vlgmr.msra.gmra.mxu1 %v3031_v8  ;;  %v7696_v9 = vld [vmem:[#allocation30 + $0x2] ss:$0 sm:$0xff] }
 0xfff   :  { %3308 = vmatmul.mubr.bf16.vlgmr.msra.gmra.mxu0 %v3033_v10  ;;  %8689 = vmatprep.mubr.msk.bf16.mxu1 %vm10222_vm0, %v10221_v0 }
0x1000   :  { %8709 = vmatprep.mubr.msk.bf16.mxu0 %vm10222_vm0, %v10221_v0  ;;  %8674 = vmatpush3.bf16.msra.mxu1 %v9169_v38  ;;  %v9202_v38 = vld [vmem:[#allocation34 + $0x2ac] ss:$16 sps:$4 sm:$0xff]  }
0x1001   :  { %8675 = vmatprep.subr.bf16.mxu1 %v10221_v0  ;;  %8694 = vmatpush3.bf16.msra.mxu0 %v9177_v53  ;;  %v9220_v53 = vld [vmem:[#allocation34 + $0x24c] ss:$16 sps:$4 sm:$0xff]  }
0x1002   :  { %8695 = vmatprep.subr.bf16.mxu0 %v10221_v0 }
0x1004   :  { %8676 = vmatpush3.bf16.msra.mxu1 %v9170_v39  ;;  %v9197_v39 = vld [vmem:[#allocation34 + $0x2a0] ss:$16 sps:$4 sm:$0xff]  }
0x1005   :  { %8677 = vmatprep.subr.bf16.mxu1 %v10221_v0  ;;  %8696 = vmatpush3.bf16.msra.mxu0 %v9178_v48  ;;  %v9215_v48 = vld [vmem:[#allocation34 + $0x240] ss:$16 sps:$4 sm:$0xff]  }
0x1006   :  { %8697 = vmatprep.subr.bf16.mxu0 %v10221_v0 }
0x1008   :  { %8678 = vmatpush3.bf16.msra.mxu1 %v9171_v44  ;;  %v9208_v44 = vld [vmem:[#allocation34 + $0x28c] ss:$16 sps:$4 sm:$0xff]  }
0x1009   :  { %8679 = vmatprep.subr.bf16.mxu1 %v10221_v0  ;;  %8698 = vmatpush3.bf16.msra.mxu0 %v9179_v54  ;;  %v9218_v54 = vld [vmem:[#allocation34 + $0x248] ss:$16 sps:$4 sm:$0xff]  }
0x100a   :  { %8699 = vmatprep.subr.bf16.mxu0 %v10221_v0 }
0x100d   :  { %8700 = vmatpush3.bf16.msra.mxu0 %v9180_v55  ;;  %v9223_v55 = vld [vmem:[#allocation34 + $0x224] ss:$16 sps:$4 sm:$0xff]  }
0x100e   :  { %8701 = vmatprep.subr.bf16.mxu0 %v10221_v0 }
0x1011   :  { %8702 = vmatpush3.bf16.msra.mxu0 %v9181_v56  ;;  %v9226_v56 = vld [vmem:[#allocation34 + $0x22c] ss:$16 sps:$4 sm:$0xff]  }
0x1012   :  { %8703 = vmatprep.subr.bf16.mxu0 %v10221_v0 }
0x1015   :  { %8704 = vmatpush3.bf16.msra.mxu0 %v9182_v57  ;;  %v9221_v57 = vld [vmem:[#allocation34 + $0x220] ss:$16 sps:$4 sm:$0xff]  }
0x1016   :  { %8705 = vmatprep.subr.bf16.mxu0 %v10221_v0 }
0x1019   :  { %8706 = vmatpush3.bf16.msra.mxu0 %v9183_v58  ;;  %v9224_v58 = vld [vmem:[#allocation34 + $0x228] ss:$16 sps:$4 sm:$0xff]  }
0x101a   :  { %8707 = vmatprep.subr.bf16.mxu0 %v10221_v0 }
0x101d   :  { %8708 = vmatpush3.bf16.msra.mxu0 %v9184_v7  ;;  %v7717_v7 = vld [vmem:[%s10877_s26 + $0x2] ss:$0 sm:$0xff] }
0x10be   :  { %v8226_v11 = vpop.f32.mrf.mxu1 }
0x10bf   :  { %v8248_v12 = vpop.f32.mrf.mxu0 }
0x10c0   :  { %v8227_v14 = vpop.f32.mrf.mxu1 }
0x10c1   :  { %v8228_v15 = vadd.f32 %v8227_v14, %v8226_v11  ;;  %v8249_v16 = vpop.f32.mrf.mxu0 }
0x10c2   :  { %v8229_v17 = vpop.f32.mrf.mxu1  ;;  %v8250_v20 = vadd.f32 %v8249_v16, %v8248_v12 }
0x10c3   :  { %v3270_v18 = vadd.f32 %v8228_v15, %v7659_v13  ;;  %v8251_v21 = vpop.f32.mrf.mxu0  ;;  %v7705_v15 = vld [vmem:[#allocation33 + $0x2] ss:$0 sm:$0xff] }
0x10c4   :  { %v8230_v22 = vpop.f32.mrf.mxu1 }
0x10c5   :  { %v3310_v23 = vadd.f32 %v8250_v20, %v3270_v18  ;;  %v8252_v24 = vpop.f32.mrf.mxu0 }
0x10c6   :  { %v9187_v24 = vld [vmem:[#allocation34 + $0x2e4] ss:$16 sps:$4 sm:$0xff]  }
0x10c7   :  { %v3316_v25 = vmul.f32 0.044715, %v3310_v23  ;;  %v3315_v31 = vmul.f32 0.5, %v3310_v23 }
0x10c9   :  { %v3317_v26 = vmul.f32 %v3316_v25, %v3310_v23  ;;  %v9188_v25 = vld [vmem:[#allocation34 + $0x2e8] ss:$16 sps:$4 sm:$0xff]  }
0x10cb   :  { %v3318_v27 = vmul.f32 %v3317_v26, %v3310_v23  ;;  %v9190_v26 = vld [vmem:[#allocation34 + $0x2ec] ss:$16 sps:$4 sm:$0xff]  }
0x10cc   :  { %3871 = vmatprep.subr.bf16.mxu0 %v9190_v26  ;;  %v9246_v26 = vld [vmem:[#allocation36 + $0x2e0] sm:$0xff]  }
0x10cd   :  { %v3319_v28 = vadd.f32 %v3318_v27, %v3310_v23  ;;  %v9185_v23 = vld [vmem:[#allocation34 + $0x2e0] ss:$16 sps:$4 sm:$0xff]   ;;  %v9193_v27 = vld [vmem:[#allocation34 + $0x2c4] ss:$16 sps:$4 sm:$0xff]  }
0x10cf   :  { %v3320_v29 = vmul.f32 0.7978846, %v3319_v28  ;;  %v9196_v28 = vld [vmem:[#allocation34 + $0x2cc] ss:$16 sps:$4 sm:$0xff]  }
0x10d1   :  { %9587 = vtanh.f32 %v3320_v29  ;;  %v9191_v29 = vld [vmem:[#allocation34 + $0x2c0] ss:$16 sps:$4 sm:$0xff]  }
0x10de   :  { %v9588_v30 = vpop.eup %9587 }
0x10df   :  { %v3322_v32 = vadd.f32 1.0, %v9588_v30  ;;  %v9194_v30 = vld [vmem:[#allocation34 + $0x2c8] ss:$16 sps:$4 sm:$0xff]  }
0x10e1   :  { %v3323_v33 = vmul.f32 %v3322_v32, %v3315_v31 }
0x10e3   :  { %v10655_v35 = vadd.f32 %v3323_v33, %v10636_v45  ;;  %v9172_v45 = vld [vmem:[#allocation28 + $0xa0] sm:$0xff]  }
0x10e4   :  { %8680 = vmatpush3.bf16.msra.mxu1 %v9172_v45  ;;  %v9211_v45 = vld [vmem:[#allocation34 + $0x264] ss:$16 sps:$4 sm:$0xff]  }
0x10e5   :  { %v3325_v37 = vadd.f32 %v10655_v35, %v10563_v19  ;;  %8681 = vmatprep.subr.bf16.mxu1 %v10221_v0 }
0x10e7   :  { %3330 = vadd.xlane.f32.xlu0 %v3325_v37 }
0x10e8   :  { %8682 = vmatpush3.bf16.msra.mxu1 %v9173_v46  ;;  %v9214_v46 = vld [vmem:[#allocation34 + $0x26c] ss:$16 sps:$4 sm:$0xff]  }
0x10e9   :  { %8683 = vmatprep.subr.bf16.mxu1 %v10221_v0 }
0x10ec   :  { %8684 = vmatpush3.bf16.msra.mxu1 %v9174_v47  ;;  %v9209_v47 = vld [vmem:[#allocation34 + $0x260] ss:$16 sps:$4 sm:$0xff]  }
0x10ed   :  { %8685 = vmatprep.subr.bf16.mxu1 %v10221_v0 }
0x10f0   :  { %8686 = vmatpush3.bf16.msra.mxu1 %v9175_v50  ;;  %v9212_v50 = vld [vmem:[#allocation34 + $0x268] ss:$16 sps:$4 sm:$0xff]  }
0x10f1   :  { %8687 = vmatprep.subr.bf16.mxu1 %v10221_v0 }
0x10f4   :  { %8688 = vmatpush3.bf16.msra.mxu1 %v9176_v52  ;;  %v9217_v52 = vld [vmem:[#allocation34 + $0x244] ss:$16 sps:$4 sm:$0xff]  }
0x10f5   :  { %3830 = vmatprep.subr.bf16.mxu1 %v9187_v24  ;;  %v9244_v24 = vld [vmem:[#allocation36 + $0x2a8] sm:$0xff]  }
0x1170   :  { %v3331_v40 = vpop.xlane.xlu0 %3330 }
0x1171   :  { %v3332_v41 = vmul.f32 0.0078125, %v3331_v40  ;;  %v9200_v40 = vld [vmem:[#allocation34 + $0x2a8] ss:$16 sps:$4 sm:$0xff]  }
0x1173   :  { %v3333_v42 = vsub.f32 %v3325_v37, %v3332_v41  ;;  %v9199_v37 = vld [vmem:[#allocation34 + $0x2a4] ss:$16 sps:$4 sm:$0xff]   ;;  %v9203_v41 = vld [vmem:[#allocation34 + $0x280] ss:$16 sps:$4 sm:$0xff]  }
0x1175   :  { %v3334_v43 = vmul.f32 %v3333_v42, %v3333_v42 }
0x1177   :  { %3335 = vadd.xlane.f32.xlu1 %v3334_v43  ;;  %v9206_v43 = vld [vmem:[#allocation34 + $0x288] ss:$16 sps:$4 sm:$0xff]  }
0x1200   :  { %v3336_v59 = vpop.xlane.xlu1 %3335 }
0x1201   :  { %v3337_v60 = vmul.f32 0.0078125, %v3336_v59  ;;  %v9229_v59 = vld [vmem:[#allocation34 + $0x204] ss:$16 sps:$4 sm:$0xff]  }
0x1203   :  { %v3338_v61 = vadd.f32 1e-05, %v3337_v60  ;;  %v9232_v60 = vld [vmem:[#allocation34 + $0x20c] ss:$16 sps:$4 sm:$0xff]  }
0x1205   :  { %9589 = vrsqrt.f32 %v3338_v61  ;;  %v9227_v61 = vld [vmem:[#allocation34 + $0x200] ss:$16 sps:$4 sm:$0xff]  }
0x1212   :  { %v9590_v62 = vpop.eup %9589 }
0x1213   :  { %v3340_v1 = vmul.f32 %v9590_v62, %v3333_v42  ;;  %v9205_v42 = vld [vmem:[#allocation34 + $0x284] ss:$16 sps:$4 sm:$0xff]   ;;  %v9230_v62 = vld [vmem:[#allocation34 + $0x208] ss:$16 sps:$4 sm:$0xff]  }
0x1215   :  { %v3347_v3 = vmul.f32 %v7694_v63, %v3340_v1 }
0x1217   :  { %v3354_v5 = vadd.f32 %v7695_v2, %v3347_v3 }
0x1219   :  { %v3372_v6 = vpack.c.bf16 %v3354_v5, %v3354_v5  ;;  %v7716_v5 = vld [vmem:[%s10876_s30 + $0x2] ss:$0 sm:$0xff] }
0x121b   :  { %8690 = vmatmul.mubr.bf16.vlgmr.msra.gmra.mxu1 %v3372_v6 }
0x121c   :  { %3862 = vmatprep.mubr.bf16.mxu1 %v10224_v4  ;;  %3831 = vmatpush1.bf16.msra.mxu1 %v9185_v23  ;;  %v9243_v23 = vld [vmem:[#allocation36 + $0x228] sm:$0xff]  }
0x121d   :  { %3832 = vmatprep.subr.bf16.mxu1 %v9193_v27  ;;  %v9247_v27 = vld [vmem:[#allocation36 + $0x220] sm:$0xff]  }
0x1220   :  { %3833 = vmatpush1.bf16.msra.mxu1 %v9191_v29  ;;  %v9249_v29 = vld [vmem:[#allocation36 + $0x258] sm:$0xff]  }
0x1221   :  { %3834 = vmatprep.subr.bf16.mxu1 %v9199_v37  ;;  %v9255_v37 = vld [vmem:[#allocation36 + $0x210] sm:$0xff]  }
0x1224   :  { %3835 = vmatpush1.bf16.msra.mxu1 %v9197_v39  ;;  %v9257_v39 = vld [vmem:[#allocation36 + $0x248] sm:$0xff]  }
0x1225   :  { %3836 = vmatprep.subr.bf16.mxu1 %v9205_v42  ;;  %v9260_v42 = vld [vmem:[#allocation36 + $0x288] sm:$0xff]  }
0x1228   :  { %3837 = vmatpush1.bf16.msra.mxu1 %v9203_v41  ;;  %v9259_v41 = vld [vmem:[#allocation36 + $0x208] sm:$0xff]  }
0x1229   :  { %3838 = vmatprep.subr.bf16.mxu1 %v9211_v45  ;;  %v9263_v45 = vld [vmem:[#allocation36 + $0x200] sm:$0xff]  }
0x122c   :  { %3839 = vmatpush1.bf16.msra.mxu1 %v9209_v47  ;;  %v7718_v47 = vld [vmem:[%s10878_s28 + $0x8] sm:$0xf] }
0x122d   :  { %3840 = vmatprep.subr.bf16.mxu1 %v9217_v52  ;;  %v3661_v52 = vrot.slane %v7718_v47, %v10597_v34 }
0x1230   :  { %3841 = vmatpush1.bf16.msra.mxu1 %v9215_v48  ;;  %v3665_v48 = vrot.slane %v7718_v47, %v10601_v36 }
0x1231   :  { %3842 = vmatprep.subr.bf16.mxu1 %v9223_v55 }
0x1234   :  { %3843 = vmatpush1.bf16.msra.mxu1 %v9221_v57 }
0x1235   :  { %3844 = vmatprep.subr.bf16.mxu1 %v9229_v59 }
0x1238   :  { %3845 = vmatpush1.bf16.msra.mxu1 %v9227_v61 }
0x12db   :  { %v3463_v8 = vpop.f32.mrf.mxu1 }
0x12dc   :  { %v3464_v10 = vadd.f32 %v7696_v9, %v3463_v8 }
0x12dd   :  { %v8691_v11 = vpop.f32.mrf.mxu1 }
0x12de   :  { %v3486_v12 = vpack.c.bf16 %v3464_v10, %v3464_v10  ;;  %v9233_v11 = vld [vmem:[#allocation36 + $0x278] sm:$0xff]  }
0x12df   :  { %v3466_v13 = vpop.f32.mrf.mxu1  ;;  %8272 = vmatprep.subr.bf16.mxu1 %v9233_v11 }
0x12e0   :  { %8710 = vmatmul.mubr.bf16.vlgmr.msra.gmra.mxu0 %v3486_v12  ;;  %v9234_v12 = vld [vmem:[#allocation36 + $0x2f8] sm:$0xff]  }
0x12e1   :  { %v8692_v14 = vpop.f32.mrf.mxu1  ;;  %3903 = vmatprep.mubr.bf16.mxu0 %v10224_v4  ;;  %3872 = vmatpush1.bf16.msra.mxu0 %v9188_v25  ;;  %v9235_v13 = vld [vmem:[#allocation36 + $0x238] sm:$0xff]   ;;  %v9245_v25 = vld [vmem:[#allocation36 + $0x260] sm:$0xff]  }
0x12e2   :  { %3873 = vmatprep.subr.bf16.mxu0 %v9196_v28  ;;  %v9236_v14 = vld [vmem:[#allocation36 + $0x2b8] sm:$0xff]   ;;  %v9248_v28 = vld [vmem:[#allocation36 + $0x2a0] sm:$0xff]  }
0x12e5   :  { %3874 = vmatpush1.bf16.msra.mxu0 %v9194_v30  ;;  %v9250_v30 = vld [vmem:[#allocation36 + $0x2d8] sm:$0xff]  }
0x12e6   :  { %3875 = vmatprep.subr.bf16.mxu0 %v9202_v38  ;;  %v9256_v38 = vld [vmem:[#allocation36 + $0x290] sm:$0xff]  }
0x12e9   :  { %3876 = vmatpush1.bf16.msra.mxu0 %v9200_v40  ;;  %v9258_v40 = vld [vmem:[#allocation36 + $0x2c8] sm:$0xff]  }
0x12ea   :  { %3877 = vmatprep.subr.bf16.mxu0 %v9208_v44  ;;  %v9262_v44 = vld [vmem:[#allocation36 + $0x2c0] sm:$0xff]  }
0x12ed   :  { %3878 = vmatpush1.bf16.msra.mxu0 %v9206_v43  ;;  %v9261_v43 = vld [vmem:[#allocation36 + $0x240] sm:$0xff]  }
0x12ee   :  { %3879 = vmatprep.subr.bf16.mxu0 %v9214_v46  ;;  %v9264_v46 = vld [vmem:[#allocation36 + $0x280] sm:$0xff]  }
0x12f1   :  { %3880 = vmatpush1.bf16.msra.mxu0 %v9212_v50  ;;  %v3653_v50 = vrot.slane %v7718_v47, %v10552_v49 }
0x12f2   :  { %3881 = vmatprep.subr.bf16.mxu0 %v9220_v53  ;;  %v3657_v53 = vrot.slane %v7718_v47, %v10555_v51 }
0x12f5   :  { %3882 = vmatpush1.bf16.msra.mxu0 %v9218_v54 }
0x12f6   :  { %3883 = vmatprep.subr.bf16.mxu0 %v9226_v56 }
0x12f9   :  { %3884 = vmatpush1.bf16.msra.mxu0 %v9224_v58 }
0x12fa   :  { %3885 = vmatprep.subr.bf16.mxu0 %v9232_v60 }
0x12fd   :  { %3886 = vmatpush1.bf16.msra.mxu0 %v9230_v62 }
0x12fe   :  { %8294 = vmatprep.subr.bf16.mxu0 %v9234_v12 }
0x13a0   :  { %v3577_v16 = vpop.f32.mrf.mxu0 }
0x13a1   :  { %v3578_v17 = vadd.f32 %v7705_v15, %v3577_v16  ;;  %v9237_v15 = vld [vmem:[#allocation36 + $0x270] sm:$0xff]  }
0x13a2   :  { %v8711_v18 = vpop.f32.mrf.mxu0  ;;  %v9238_v16 = vld [vmem:[#allocation36 + $0x2f0] sm:$0xff]  }
0x13a3   :  { %v10678_v20 = vadd.f32 %v3578_v17, %v10655_v35  ;;  %v9239_v17 = vld [vmem:[#allocation36 + $0x230] sm:$0xff]  }
0x13a4   :  { %v3580_v21 = vpop.f32.mrf.mxu0  ;;  %v9240_v18 = vld [vmem:[#allocation36 + $0x2b0] sm:$0xff]  }
0x13a5   :  { %3588 = vadd.xlane.f32.xlu0 %v10678_v20  ;;  %v9241_v21 = vld [vmem:[#allocation36 + $0x268] sm:$0xff]  }
0x13a6   :  { %v8712_v22 = vpop.f32.mrf.mxu0 }
0x13a7   :  { %v9242_v22 = vld [vmem:[#allocation36 + $0x2e8] sm:$0xff]  }
0x142e   :  { %v3589_v31 = vpop.xlane.xlu0 %3588 }
0x142f   :  { %v3590_v32 = vmul.f32 0.0078125, %v3589_v31  ;;  %v9251_v31 = vld [vmem:[#allocation36 + $0x218] sm:$0xff]  }
0x1431   :  { %v3591_v33 = vsub.f32 %v10678_v20, %v3590_v32  ;;  %v9252_v32 = vld [vmem:[#allocation36 + $0x298] sm:$0xff]  }
0x1433   :  { %v3592_v35 = vmul.f32 %v3591_v33, %v3591_v33 }
0x1435   :  { %3593 = vadd.xlane.f32.xlu1 %v3592_v35  ;;  %v9254_v35 = vld [vmem:[#allocation36 + $0x2d0] sm:$0xff]  }
0x14be   :  { %v3594_v63 = vpop.xlane.xlu1 %3593 }
0x14bf   :  { %v3595_v1 = vmul.f32 0.0078125, %v3594_v63 }
0x14c1   :  { %v3596_v2 = vadd.f32 1e-05, %v3595_v1 }
0x14c3   :  { %9591 = vrsqrt.f32 %v3596_v2 }
0x14d0   :  { %v9592_v3 = vpop.eup %9591 }
0x14d1   :  { %v3598_v6 = vmul.f32 %v9592_v3, %v3591_v33  ;;  %v9253_v33 = vld [vmem:[#allocation36 + $0x250] sm:$0xff]  }
0x14d3   :  { %v3605_v9 = vmul.f32 %v7716_v5, %v3598_v6 }
0x14d5   :  { %v3612_v8 = vadd.f32 %v7717_v7, %v3605_v9 }
0x14d7   :  { %v3646_v10 = vpack.c.bf16 %v3612_v8, %v3612_v8 }
0x14d9   :  { %3863 = vmatmul.mubr.bf16.vlgmr.msra.gmra.mxu1 %v3646_v10  ;;  %3904 = vmatmul.mubr.bf16.vlgmr.msra.gmra.mxu0 %v3646_v10 }
0x14da   :  { %8273 = vmatpush3.bf16.msra.mxu1 %v9235_v13  ;;  %8295 = vmatpush3.bf16.msra.mxu0 %v9236_v14 }
0x14db   :  { %8274 = vmatprep.subr.bf16.mxu1 %v9237_v15  ;;  %8296 = vmatprep.subr.bf16.mxu0 %v9238_v16 }
0x14de   :  { %8275 = vmatpush3.bf16.msra.mxu1 %v9239_v17  ;;  %8297 = vmatpush3.bf16.msra.mxu0 %v9240_v18 }
0x14df   :  { %8276 = vmatprep.subr.bf16.mxu1 %v9241_v21  ;;  %8298 = vmatprep.subr.bf16.mxu0 %v9242_v22 }
0x14e2   :  { %8277 = vmatpush3.bf16.msra.mxu1 %v9243_v23  ;;  %8299 = vmatpush3.bf16.msra.mxu0 %v9244_v24 }
0x14e3   :  { %8278 = vmatprep.subr.bf16.mxu1 %v9245_v25  ;;  %8300 = vmatprep.subr.bf16.mxu0 %v9246_v26 }
0x14e6   :  { %8279 = vmatpush3.bf16.msra.mxu1 %v9247_v27  ;;  %8301 = vmatpush3.bf16.msra.mxu0 %v9248_v28 }
0x14e7   :  { %8280 = vmatprep.subr.bf16.mxu1 %v9249_v29  ;;  %8302 = vmatprep.subr.bf16.mxu0 %v9250_v30 }
0x14ea   :  { %8281 = vmatpush3.bf16.msra.mxu1 %v9251_v31  ;;  %8303 = vmatpush3.bf16.msra.mxu0 %v9252_v32 }
0x14eb   :  { %8282 = vmatprep.subr.bf16.mxu1 %v9253_v33  ;;  %8304 = vmatprep.subr.bf16.mxu0 %v9254_v35 }
0x14ee   :  { %8283 = vmatpush3.bf16.msra.mxu1 %v9255_v37  ;;  %8305 = vmatpush3.bf16.msra.mxu0 %v9256_v38 }
0x14ef   :  { %8284 = vmatprep.subr.bf16.mxu1 %v9257_v39  ;;  %8306 = vmatprep.subr.bf16.mxu0 %v9258_v40 }
0x14f2   :  { %8285 = vmatpush3.bf16.msra.mxu1 %v9259_v41  ;;  %8307 = vmatpush3.bf16.msra.mxu0 %v9260_v42 }
0x14f3   :  { %8286 = vmatprep.subr.bf16.mxu1 %v9261_v43  ;;  %8308 = vmatprep.subr.bf16.mxu0 %v9262_v44 }
0x14f6   :  { %8287 = vmatpush3.bf16.msra.mxu1 %v9263_v45  ;;  %8309 = vmatpush3.bf16.msra.mxu0 %v9264_v46 }
0x14f7   :  { %8713 = vmatprep.subr.bf16.mxu1 %v10221_v0  ;;  %8733 = vmatprep.subr.bf16.mxu0 %v10221_v0 }
0x1599   :  { %v3864_v54 = vpop.f32.mrf.mxu1  ;;  %v3905_v55 = vpop.f32.mrf.mxu0 }
0x159a   :  { %v3865_v56 = vadd.f32 %v3864_v54, %v3653_v50  ;;  %v3906_v57 = vadd.f32 %v3905_v55, %v3661_v52 }
0x159b   :  { %v3866_v58 = vpop.f32.mrf.mxu1  ;;  %v3907_v59 = vpop.f32.mrf.mxu0 }
0x159c   :  { %v3916_v60 = vmul.f32 0.044715, %v3865_v56  ;;  %v3918_v61 = vmul.f32 0.044715, %v3906_v57  ;;  %v3867_v62 = vadd.f32 %v3866_v58, %v3657_v53  ;;  %v3908_v63 = vadd.f32 %v3907_v59, %v3665_v48  ;;  %v7752_v53 = vld [vmem:[%s10879_s17 + $0x2] ss:$0 sm:$0xff] }
0x159d   :  { %v3868_v1 = vpop.f32.mrf.mxu1  ;;  %v3909_v2 = vpop.f32.mrf.mxu0  ;;  %v3912_v30 = vmul.f32 0.5, %v3865_v56  ;;  %v3914_v37 = vmul.f32 0.5, %v3906_v57 }
0x159e   :  { %v3920_v3 = vmul.f32 %v3916_v60, %v3865_v56  ;;  %v3922_v5 = vmul.f32 %v3918_v61, %v3906_v57  ;;  %v3917_v6 = vmul.f32 0.044715, %v3867_v62  ;;  %v3919_v7 = vmul.f32 0.044715, %v3908_v63 }
0x159f   :  { %v3869_v9 = vpop.f32.mrf.mxu1  ;;  %v3910_v8 = vpop.f32.mrf.mxu0  ;;  %v3913_v33 = vmul.f32 0.5, %v3867_v62  ;;  %v3915_v38 = vmul.f32 0.5, %v3908_v63 }
0x15a0   :  { %v3924_v10 = vmul.f32 %v3920_v3, %v3865_v56  ;;  %v3926_v11 = vmul.f32 %v3922_v5, %v3906_v57  ;;  %v3921_v12 = vmul.f32 %v3917_v6, %v3867_v62  ;;  %v3923_v13 = vmul.f32 %v3919_v7, %v3908_v63 }
0x15a2   :  { %v3928_v14 = vadd.f32 %v3924_v10, %v3865_v56  ;;  %v3930_v15 = vadd.f32 %v3926_v11, %v3906_v57  ;;  %v3925_v16 = vmul.f32 %v3921_v12, %v3867_v62  ;;  %v3927_v17 = vmul.f32 %v3923_v13, %v3908_v63  ;;  %v9265_v12 = vld [vmem:[#allocation28 + $0xf8] sm:$0xff]   ;;  %v9266_v13 = vld [vmem:[#allocation28 + $0xf0] sm:$0xff]  }
0x15a4   :  { %v3932_v18 = vmul.f32 0.7978846, %v3928_v14  ;;  %v3934_v21 = vmul.f32 0.7978846, %v3930_v15  ;;  %v3929_v22 = vadd.f32 %v3925_v16, %v3867_v62  ;;  %v3931_v23 = vadd.f32 %v3927_v17, %v3908_v63 }
0x15a6   :  { %v3933_v24 = vmul.f32 0.7978846, %v3929_v22  ;;  %v3935_v25 = vmul.f32 0.7978846, %v3931_v23  ;;  %9593 = vtanh.f32 %v3932_v18  ;;  %v9267_v18 = vld [vmem:[#allocation28 + $0xe8] sm:$0xff]   ;;  %v9270_v22 = vld [vmem:[#allocation28 + $0xd0] sm:$0xff]  }
0x15a7   :  { %9595 = vtanh.f32 %v3934_v21  ;;  %v9269_v21 = vld [vmem:[#allocation28 + $0xd8] sm:$0xff]   ;;  %v9271_v23 = vld [vmem:[#allocation28 + $0xc8] sm:$0xff]  }
0x15a8   :  { %9597 = vtanh.f32 %v3933_v24  ;;  %v9272_v24 = vld [vmem:[#allocation28 + $0xc0] sm:$0xff]  }
0x15a9   :  { %9599 = vtanh.f32 %v3935_v25  ;;  %v9273_v25 = vld [vmem:[#allocation31 + $0xf8] sm:$0xff]  }
0x15b3   :  { %v9594_v26 = vpop.eup %9593 }
0x15b4   :  { %v9596_v27 = vpop.eup %9595  ;;  %v3940_v28 = vadd.f32 1.0, %v9594_v26  ;;  %v9274_v26 = vld [vmem:[#allocation31 + $0xf0] sm:$0xff]  }
0x15b5   :  { %v9598_v29 = vpop.eup %9597  ;;  %v3942_v31 = vadd.f32 1.0, %v9596_v27  ;;  %v9275_v27 = vld [vmem:[#allocation31 + $0xe8] sm:$0xff]  }
0x15b6   :  { %v9600_v32 = vpop.eup %9599  ;;  %v3941_v35 = vadd.f32 1.0, %v9598_v29  ;;  %v3944_v40 = vmul.f32 %v3940_v28, %v3912_v30  ;;  %v9276_v28 = vld [vmem:[#allocation31 + $0xe0] sm:$0xff]   ;;  %v9277_v29 = vld [vmem:[#allocation31 + $0xd8] sm:$0xff]   ;;  %v9278_v30 = vld [vmem:[#allocation31 + $0xd0] sm:$0xff]  }
0x15b7   :  { %v3943_v39 = vadd.f32 1.0, %v9600_v32  ;;  %v3946_v42 = vmul.f32 %v3942_v31, %v3914_v37  ;;  %v9279_v31 = vld [vmem:[#allocation31 + $0xc8] sm:$0xff]  }
0x15b8   :  { %v3945_v41 = vmul.f32 %v3941_v35, %v3913_v33  ;;  %v4013_v46 = vpack.c.bf16 %v3944_v40, %v3944_v40  ;;  %v7788_v40 = vld [vmem:[%s10875_s23 + $0x3] ss:$0 sm:$0xff] }
0x15b9   :  { %v3947_v43 = vmul.f32 %v3943_v39, %v3915_v38  ;;  %v4015_v47 = vpack.c.bf16 %v3946_v42, %v3946_v42  ;;  %v7787_v38 = vld [vmem:[%s10874_s24 + $0x3] ss:$0 sm:$0xff] }
0x15ba   :  { %v4014_v44 = vpack.c.bf16 %v3945_v41, %v3945_v41 }
0x15bb   :  { %v4016_v45 = vpack.c.bf16 %v3947_v43, %v3947_v43 }
0x15bc   :  { %4249 = vmatprep.mubr.bf16.mxu1 %v4014_v44  ;;  %v9280_v44 = vld [vmem:[#allocation31 + $0xc0] sm:$0xff]  }
0x15bd   :  { %4289 = vmatprep.mubr.bf16.mxu0 %v4016_v45  ;;  %4250 = vmatmul.mubr.bf16.vlgmr.msra.gmra.mxu1 %v4013_v46  ;;  %v7789_v45 = vld [vmem:[#allocation30 + $0x3] ss:$0 sm:$0xff] }
0x15be   :  { %4290 = vmatmul.mubr.bf16.vlgmr.msra.gmra.mxu0 %v4015_v47  ;;  %8729 = vmatprep.mubr.msk.bf16.mxu1 %vm10222_vm0, %v10221_v0 }
0x15bf   :  { %8749 = vmatprep.mubr.msk.bf16.mxu0 %vm10222_vm0, %v10221_v0  ;;  %8714 = vmatpush3.bf16.msra.mxu1 %v9265_v12  ;;  %v9298_v12 = vld [vmem:[#allocation34 + $0x3ac] ss:$16 sps:$4 sm:$0xff]  }
0x15c0   :  { %8715 = vmatprep.subr.bf16.mxu1 %v10221_v0  ;;  %8734 = vmatpush3.bf16.msra.mxu0 %v9273_v25  ;;  %v9316_v25 = vld [vmem:[#allocation34 + $0x34c] ss:$16 sps:$4 sm:$0xff]  }
0x15c1   :  { %8735 = vmatprep.subr.bf16.mxu0 %v10221_v0 }
0x15c3   :  { %8716 = vmatpush3.bf16.msra.mxu1 %v9266_v13  ;;  %v9293_v13 = vld [vmem:[#allocation34 + $0x3a0] ss:$16 sps:$4 sm:$0xff]  }
0x15c4   :  { %8717 = vmatprep.subr.bf16.mxu1 %v10221_v0  ;;  %8736 = vmatpush3.bf16.msra.mxu0 %v9274_v26  ;;  %v9311_v26 = vld [vmem:[#allocation34 + $0x340] ss:$16 sps:$4 sm:$0xff]  }
0x15c5   :  { %8737 = vmatprep.subr.bf16.mxu0 %v10221_v0 }
0x15c7   :  { %8718 = vmatpush3.bf16.msra.mxu1 %v9267_v18  ;;  %v9304_v18 = vld [vmem:[#allocation34 + $0x38c] ss:$16 sps:$4 sm:$0xff]  }
0x15c8   :  { %8719 = vmatprep.subr.bf16.mxu1 %v10221_v0  ;;  %8738 = vmatpush3.bf16.msra.mxu0 %v9275_v27  ;;  %v9314_v27 = vld [vmem:[#allocation34 + $0x348] ss:$16 sps:$4 sm:$0xff]  }
0x15c9   :  { %8739 = vmatprep.subr.bf16.mxu0 %v10221_v0 }
0x15cc   :  { %8740 = vmatpush3.bf16.msra.mxu0 %v9276_v28  ;;  %v9319_v28 = vld [vmem:[#allocation34 + $0x324] ss:$16 sps:$4 sm:$0xff]  }
0x15cd   :  { %8741 = vmatprep.subr.bf16.mxu0 %v10221_v0 }
0x15d0   :  { %8742 = vmatpush3.bf16.msra.mxu0 %v9277_v29  ;;  %v9322_v29 = vld [vmem:[#allocation34 + $0x32c] ss:$16 sps:$4 sm:$0xff]  }
0x15d1   :  { %8743 = vmatprep.subr.bf16.mxu0 %v10221_v0 }
0x15d4   :  { %8744 = vmatpush3.bf16.msra.mxu0 %v9278_v30  ;;  %v9317_v30 = vld [vmem:[#allocation34 + $0x320] ss:$16 sps:$4 sm:$0xff]  }
0x15d5   :  { %8745 = vmatprep.subr.bf16.mxu0 %v10221_v0 }
0x15d8   :  { %8746 = vmatpush3.bf16.msra.mxu0 %v9279_v31  ;;  %v9320_v31 = vld [vmem:[#allocation34 + $0x328] ss:$16 sps:$4 sm:$0xff]  }
0x15d9   :  { %8747 = vmatprep.subr.bf16.mxu0 %v10221_v0 }
0x15dc   :  { %8748 = vmatpush3.bf16.msra.mxu0 %v9280_v44  ;;  %v7810_v44 = vld [vmem:[%s10877_s26 + $0x3] ss:$0 sm:$0xff] }
0x167d   :  { %v8288_v50 = vpop.f32.mrf.mxu1 }
0x167e   :  { %v8310_v52 = vpop.f32.mrf.mxu0 }
0x167f   :  { %v8289_v48 = vpop.f32.mrf.mxu1 }
0x1680   :  { %v8290_v54 = vadd.f32 %v8289_v48, %v8288_v50  ;;  %v8311_v55 = vpop.f32.mrf.mxu0 }
0x1681   :  { %v8291_v56 = vpop.f32.mrf.mxu1  ;;  %v8312_v58 = vadd.f32 %v8311_v55, %v8310_v52 }
0x1682   :  { %v4252_v57 = vadd.f32 %v8290_v54, %v7752_v53  ;;  %v8313_v59 = vpop.f32.mrf.mxu0  ;;  %v7798_v54 = vld [vmem:[#allocation33 + $0x3] ss:$0 sm:$0xff] }
0x1683   :  { %v8292_v60 = vpop.f32.mrf.mxu1 }
0x1684   :  { %v4292_v61 = vadd.f32 %v8312_v58, %v4252_v57  ;;  %v8314_v62 = vpop.f32.mrf.mxu0 }
0x1685   :  { %v9283_v62 = vld [vmem:[#allocation34 + $0x3e4] ss:$16 sps:$4 sm:$0xff]  }
0x1686   :  { %v4298_v63 = vmul.f32 0.044715, %v4292_v61  ;;  %v4297_v7 = vmul.f32 0.5, %v4292_v61 }
0x1688   :  { %v4299_v1 = vmul.f32 %v4298_v63, %v4292_v61  ;;  %v9284_v63 = vld [vmem:[#allocation34 + $0x3e8] ss:$16 sps:$4 sm:$0xff]  }
0x168a   :  { %v4300_v2 = vmul.f32 %v4299_v1, %v4292_v61  ;;  %v9286_v1 = vld [vmem:[#allocation34 + $0x3ec] ss:$16 sps:$4 sm:$0xff]  }
0x168b   :  { %4853 = vmatprep.subr.bf16.mxu0 %v9286_v1  ;;  %v9342_v1 = vld [vmem:[#allocation36 + $0x3e0] sm:$0xff]  }
0x168c   :  { %v4301_v3 = vadd.f32 %v4300_v2, %v4292_v61  ;;  %v9281_v61 = vld [vmem:[#allocation34 + $0x3e0] ss:$16 sps:$4 sm:$0xff]   ;;  %v9289_v2 = vld [vmem:[#allocation34 + $0x3c4] ss:$16 sps:$4 sm:$0xff]  }
0x168e   :  { %v4302_v5 = vmul.f32 0.7978846, %v4301_v3  ;;  %v9292_v3 = vld [vmem:[#allocation34 + $0x3cc] ss:$16 sps:$4 sm:$0xff]  }
0x1690   :  { %9601 = vtanh.f32 %v4302_v5  ;;  %v9287_v5 = vld [vmem:[#allocation34 + $0x3c0] ss:$16 sps:$4 sm:$0xff]  }
0x169d   :  { %v9602_v6 = vpop.eup %9601 }
0x169e   :  { %v4304_v9 = vadd.f32 1.0, %v9602_v6  ;;  %v9290_v6 = vld [vmem:[#allocation34 + $0x3c8] ss:$16 sps:$4 sm:$0xff]  }
0x16a0   :  { %v4305_v8 = vmul.f32 %v4304_v9, %v4297_v7 }
0x16a2   :  { %v10697_v10 = vadd.f32 %v4305_v8, %v10678_v20  ;;  %v9268_v20 = vld [vmem:[#allocation28 + $0xe0] sm:$0xff]  }
0x16a3   :  { %8720 = vmatpush3.bf16.msra.mxu1 %v9268_v20  ;;  %v9307_v20 = vld [vmem:[#allocation34 + $0x364] ss:$16 sps:$4 sm:$0xff]  }
0x16a4   :  { %v4307_v11 = vadd.f32 %v10697_v10, %v10563_v19  ;;  %8721 = vmatprep.subr.bf16.mxu1 %v10221_v0 }
0x16a6   :  { %4312 = vadd.xlane.f32.xlu0 %v4307_v11 }
0x16a7   :  { %8722 = vmatpush3.bf16.msra.mxu1 %v9269_v21  ;;  %v9310_v21 = vld [vmem:[#allocation34 + $0x36c] ss:$16 sps:$4 sm:$0xff]  }
0x16a8   :  { %8723 = vmatprep.subr.bf16.mxu1 %v10221_v0 }
0x16ab   :  { %8724 = vmatpush3.bf16.msra.mxu1 %v9270_v22  ;;  %v9305_v22 = vld [vmem:[#allocation34 + $0x360] ss:$16 sps:$4 sm:$0xff]  }
0x16ac   :  { %8725 = vmatprep.subr.bf16.mxu1 %v10221_v0 }
0x16af   :  { %8726 = vmatpush3.bf16.msra.mxu1 %v9271_v23  ;;  %v9308_v23 = vld [vmem:[#allocation34 + $0x368] ss:$16 sps:$4 sm:$0xff]  }
0x16b0   :  { %8727 = vmatprep.subr.bf16.mxu1 %v10221_v0 }
0x16b3   :  { %8728 = vmatpush3.bf16.msra.mxu1 %v9272_v24  ;;  %v9313_v24 = vld [vmem:[#allocation34 + $0x344] ss:$16 sps:$4 sm:$0xff]  }
0x16b4   :  { %4812 = vmatprep.subr.bf16.mxu1 %v9283_v62  ;;  %v9340_v62 = vld [vmem:[#allocation36 + $0x3a8] sm:$0xff]  }
0x172f   :  { %v4313_v14 = vpop.xlane.xlu0 %4312 }
0x1730   :  { %v4314_v15 = vmul.f32 0.0078125, %v4313_v14  ;;  %v9296_v14 = vld [vmem:[#allocation34 + $0x3a8] ss:$16 sps:$4 sm:$0xff]  }
0x1732   :  { %v4315_v16 = vsub.f32 %v4307_v11, %v4314_v15  ;;  %v9295_v11 = vld [vmem:[#allocation34 + $0x3a4] ss:$16 sps:$4 sm:$0xff]   ;;  %v9299_v15 = vld [vmem:[#allocation34 + $0x380] ss:$16 sps:$4 sm:$0xff]  }
0x1734   :  { %v4316_v17 = vmul.f32 %v4315_v16, %v4315_v16 }
0x1736   :  { %4317 = vadd.xlane.f32.xlu1 %v4316_v17  ;;  %v9302_v17 = vld [vmem:[#allocation34 + $0x388] ss:$16 sps:$4 sm:$0xff]  }
0x17bf   :  { %v4318_v32 = vpop.xlane.xlu1 %4317 }
0x17c0   :  { %v4319_v33 = vmul.f32 0.0078125, %v4318_v32  ;;  %v9325_v32 = vld [vmem:[#allocation34 + $0x304] ss:$16 sps:$4 sm:$0xff]  }
0x17c2   :  { %v4320_v35 = vadd.f32 1e-05, %v4319_v33  ;;  %v9328_v33 = vld [vmem:[#allocation34 + $0x30c] ss:$16 sps:$4 sm:$0xff]  }
0x17c4   :  { %9603 = vrsqrt.f32 %v4320_v35  ;;  %v9323_v35 = vld [vmem:[#allocation34 + $0x300] ss:$16 sps:$4 sm:$0xff]  }
0x17d1   :  { %v9604_v37 = vpop.eup %9603 }
0x17d2   :  { %v4322_v39 = vmul.f32 %v9604_v37, %v4315_v16  ;;  %v9301_v16 = vld [vmem:[#allocation34 + $0x384] ss:$16 sps:$4 sm:$0xff]   ;;  %v9326_v37 = vld [vmem:[#allocation34 + $0x308] ss:$16 sps:$4 sm:$0xff]  }
0x17d4   :  { %v4329_v41 = vmul.f32 %v7787_v38, %v4322_v39 }
0x17d6   :  { %v4336_v42 = vadd.f32 %v7788_v40, %v4329_v41 }
0x17d8   :  { %v4354_v43 = vpack.c.bf16 %v4336_v42, %v4336_v42  ;;  %v7809_v42 = vld [vmem:[%s10876_s30 + $0x3] ss:$0 sm:$0xff] }
0x17da   :  { %8730 = vmatmul.mubr.bf16.vlgmr.msra.gmra.mxu1 %v4354_v43 }
0x17db   :  { %4844 = vmatprep.mubr.bf16.mxu1 %v10224_v4  ;;  %4813 = vmatpush1.bf16.msra.mxu1 %v9281_v61  ;;  %v9339_v61 = vld [vmem:[#allocation36 + $0x328] sm:$0xff]  }
0x17dc   :  { %4814 = vmatprep.subr.bf16.mxu1 %v9289_v2  ;;  %v9343_v2 = vld [vmem:[#allocation36 + $0x320] sm:$0xff]  }
0x17df   :  { %4815 = vmatpush1.bf16.msra.mxu1 %v9287_v5  ;;  %v9345_v5 = vld [vmem:[#allocation36 + $0x358] sm:$0xff]  }
0x17e0   :  { %4816 = vmatprep.subr.bf16.mxu1 %v9295_v11  ;;  %v9351_v11 = vld [vmem:[#allocation36 + $0x310] sm:$0xff]  }
0x17e3   :  { %4817 = vmatpush1.bf16.msra.mxu1 %v9293_v13  ;;  %v9353_v13 = vld [vmem:[#allocation36 + $0x348] sm:$0xff]  }
0x17e4   :  { %4818 = vmatprep.subr.bf16.mxu1 %v9301_v16  ;;  %v9356_v16 = vld [vmem:[#allocation36 + $0x388] sm:$0xff]  }
0x17e7   :  { %4819 = vmatpush1.bf16.msra.mxu1 %v9299_v15  ;;  %v9355_v15 = vld [vmem:[#allocation36 + $0x308] sm:$0xff]  }
0x17e8   :  { %4820 = vmatprep.subr.bf16.mxu1 %v9307_v20  ;;  %v9359_v20 = vld [vmem:[#allocation36 + $0x300] sm:$0xff]  }
0x17eb   :  { %4821 = vmatpush1.bf16.msra.mxu1 %v9305_v22  ;;  %v7811_v22 = vld [vmem:[%s10878_s28 + $0xc] sm:$0xf] }
0x17ec   :  { %4822 = vmatprep.subr.bf16.mxu1 %v9313_v24  ;;  %v4643_v24 = vrot.slane %v7811_v22, %v10597_v34 }
0x17ef   :  { %4823 = vmatpush1.bf16.msra.mxu1 %v9311_v26  ;;  %v4647_v26 = vrot.slane %v7811_v22, %v10601_v36 }
0x17f0   :  { %4824 = vmatprep.subr.bf16.mxu1 %v9319_v28 }
0x17f3   :  { %4825 = vmatpush1.bf16.msra.mxu1 %v9317_v30 }
0x17f4   :  { %4826 = vmatprep.subr.bf16.mxu1 %v9325_v32 }
0x17f7   :  { %4827 = vmatpush1.bf16.msra.mxu1 %v9323_v35 }
0x189a   :  { %v4445_v46 = vpop.f32.mrf.mxu1 }
0x189b   :  { %v4446_v47 = vadd.f32 %v7789_v45, %v4445_v46 }
0x189c   :  { %v8731_v50 = vpop.f32.mrf.mxu1 }
0x189d   :  { %v4468_v52 = vpack.c.bf16 %v4446_v47, %v4446_v47  ;;  %v9329_v50 = vld [vmem:[#allocation36 + $0x378] sm:$0xff]  }
0x189e   :  { %v4448_v53 = vpop.f32.mrf.mxu1  ;;  %8334 = vmatprep.subr.bf16.mxu1 %v9329_v50 }
0x189f   :  { %8750 = vmatmul.mubr.bf16.vlgmr.msra.gmra.mxu0 %v4468_v52  ;;  %v9330_v52 = vld [vmem:[#allocation36 + $0x3f8] sm:$0xff]  }
0x18a0   :  { %v8732_v48 = vpop.f32.mrf.mxu1  ;;  %4885 = vmatprep.mubr.bf16.mxu0 %v10224_v4  ;;  %4854 = vmatpush1.bf16.msra.mxu0 %v9284_v63  ;;  %v9331_v53 = vld [vmem:[#allocation36 + $0x338] sm:$0xff]   ;;  %v9341_v63 = vld [vmem:[#allocation36 + $0x360] sm:$0xff]  }
0x18a1   :  { %4855 = vmatprep.subr.bf16.mxu0 %v9292_v3  ;;  %v9332_v48 = vld [vmem:[#allocation36 + $0x3b8] sm:$0xff]   ;;  %v9344_v3 = vld [vmem:[#allocation36 + $0x3a0] sm:$0xff]  }
0x18a4   :  { %4856 = vmatpush1.bf16.msra.mxu0 %v9290_v6  ;;  %v9346_v6 = vld [vmem:[#allocation36 + $0x3d8] sm:$0xff]  }
0x18a5   :  { %4857 = vmatprep.subr.bf16.mxu0 %v9298_v12  ;;  %v9352_v12 = vld [vmem:[#allocation36 + $0x390] sm:$0xff]  }
0x18a8   :  { %4858 = vmatpush1.bf16.msra.mxu0 %v9296_v14  ;;  %v9354_v14 = vld [vmem:[#allocation36 + $0x3c8] sm:$0xff]  }
0x18a9   :  { %4859 = vmatprep.subr.bf16.mxu0 %v9304_v18  ;;  %v9358_v18 = vld [vmem:[#allocation36 + $0x3c0] sm:$0xff]  }
0x18ac   :  { %4860 = vmatpush1.bf16.msra.mxu0 %v9302_v17  ;;  %v9357_v17 = vld [vmem:[#allocation36 + $0x340] sm:$0xff]  }
0x18ad   :  { %4861 = vmatprep.subr.bf16.mxu0 %v9310_v21  ;;  %v9360_v21 = vld [vmem:[#allocation36 + $0x380] sm:$0xff]  }
0x18b0   :  { %4862 = vmatpush1.bf16.msra.mxu0 %v9308_v23  ;;  %v4635_v23 = vrot.slane %v7811_v22, %v10552_v49 }
0x18b1   :  { %4863 = vmatprep.subr.bf16.mxu0 %v9316_v25  ;;  %v4639_v25 = vrot.slane %v7811_v22, %v10555_v51 }
0x18b4   :  { %4864 = vmatpush1.bf16.msra.mxu0 %v9314_v27 }
0x18b5   :  { %4865 = vmatprep.subr.bf16.mxu0 %v9322_v29 }
0x18b8   :  { %4866 = vmatpush1.bf16.msra.mxu0 %v9320_v31 }
0x18b9   :  { %4867 = vmatprep.subr.bf16.mxu0 %v9328_v33 }
0x18bc   :  { %4868 = vmatpush1.bf16.msra.mxu0 %v9326_v37 }
0x18bd   :  { %8356 = vmatprep.subr.bf16.mxu0 %v9330_v52 }
0x195f   :  { %v4559_v55 = vpop.f32.mrf.mxu0 }
0x1960   :  { %v4560_v56 = vadd.f32 %v7798_v54, %v4559_v55  ;;  %v9333_v54 = vld [vmem:[#allocation36 + $0x370] sm:$0xff]  }
0x1961   :  { %v8751_v57 = vpop.f32.mrf.mxu0  ;;  %v9334_v55 = vld [vmem:[#allocation36 + $0x3f0] sm:$0xff]  }
0x1962   :  { %v10720_v58 = vadd.f32 %v4560_v56, %v10697_v10  ;;  %v9335_v56 = vld [vmem:[#allocation36 + $0x330] sm:$0xff]  }
0x1963   :  { %v4562_v59 = vpop.f32.mrf.mxu0  ;;  %v9336_v57 = vld [vmem:[#allocation36 + $0x3b0] sm:$0xff]  }
0x1964   :  { %4570 = vadd.xlane.f32.xlu0 %v10720_v58  ;;  %v9337_v59 = vld [vmem:[#allocation36 + $0x368] sm:$0xff]  }
0x1965   :  { %v8752_v60 = vpop.f32.mrf.mxu0 }
0x1966   :  { %v9338_v60 = vld [vmem:[#allocation36 + $0x3e8] sm:$0xff]  }
0x19ed   :  { %v4571_v7 = vpop.xlane.xlu0 %4570 }
0x19ee   :  { %v4572_v9 = vmul.f32 0.0078125, %v4571_v7  ;;  %v9347_v7 = vld [vmem:[#allocation36 + $0x318] sm:$0xff]  }
0x19f0   :  { %v4573_v8 = vsub.f32 %v10720_v58, %v4572_v9  ;;  %v9348_v9 = vld [vmem:[#allocation36 + $0x398] sm:$0xff]  }
0x19f2   :  { %v4574_v10 = vmul.f32 %v4573_v8, %v4573_v8 }
0x19f4   :  { %4575 = vadd.xlane.f32.xlu1 %v4574_v10  ;;  %v9350_v10 = vld [vmem:[#allocation36 + $0x3d0] sm:$0xff]  }
0x1a7d   :  { %v4576_v38 = vpop.xlane.xlu1 %4575 }
0x1a7e   :  { %v4577_v39 = vmul.f32 0.0078125, %v4576_v38 }
0x1a80   :  { %v4578_v40 = vadd.f32 1e-05, %v4577_v39 }
0x1a82   :  { %9605 = vrsqrt.f32 %v4578_v40 }
0x1a8f   :  { %v9606_v41 = vpop.eup %9605 }
0x1a90   :  { %v4580_v43 = vmul.f32 %v9606_v41, %v4573_v8  ;;  %v9349_v8 = vld [vmem:[#allocation36 + $0x350] sm:$0xff]  }
0x1a92   :  { %v4587_v45 = vmul.f32 %v7809_v42, %v4580_v43 }
0x1a94   :  { %v4594_v46 = vadd.f32 %v7810_v44, %v4587_v45 }
0x1a96   :  { %v4628_v47 = vpack.c.bf16 %v4594_v46, %v4594_v46 }
0x1a98   :  { %4845 = vmatmul.mubr.bf16.vlgmr.msra.gmra.mxu1 %v4628_v47  ;;  %4886 = vmatmul.mubr.bf16.vlgmr.msra.gmra.mxu0 %v4628_v47 }
0x1a99   :  { %8335 = vmatpush3.bf16.msra.mxu1 %v9331_v53  ;;  %8357 = vmatpush3.bf16.msra.mxu0 %v9332_v48 }
0x1a9a   :  { %8336 = vmatprep.subr.bf16.mxu1 %v9333_v54  ;;  %8358 = vmatprep.subr.bf16.mxu0 %v9334_v55 }
0x1a9d   :  { %8337 = vmatpush3.bf16.msra.mxu1 %v9335_v56  ;;  %8359 = vmatpush3.bf16.msra.mxu0 %v9336_v57 }
0x1a9e   :  { %8338 = vmatprep.subr.bf16.mxu1 %v9337_v59  ;;  %8360 = vmatprep.subr.bf16.mxu0 %v9338_v60 }
0x1aa1   :  { %8339 = vmatpush3.bf16.msra.mxu1 %v9339_v61  ;;  %8361 = vmatpush3.bf16.msra.mxu0 %v9340_v62 }
0x1aa2   :  { %8340 = vmatprep.subr.bf16.mxu1 %v9341_v63  ;;  %8362 = vmatprep.subr.bf16.mxu0 %v9342_v1 }
0x1aa5   :  { %8341 = vmatpush3.bf16.msra.mxu1 %v9343_v2  ;;  %8363 = vmatpush3.bf16.msra.mxu0 %v9344_v3 }
0x1aa6   :  { %8342 = vmatprep.subr.bf16.mxu1 %v9345_v5  ;;  %8364 = vmatprep.subr.bf16.mxu0 %v9346_v6 }
0x1aa9   :  { %8343 = vmatpush3.bf16.msra.mxu1 %v9347_v7  ;;  %8365 = vmatpush3.bf16.msra.mxu0 %v9348_v9 }
0x1aaa   :  { %8344 = vmatprep.subr.bf16.mxu1 %v9349_v8  ;;  %8366 = vmatprep.subr.bf16.mxu0 %v9350_v10 }
0x1aad   :  { %8345 = vmatpush3.bf16.msra.mxu1 %v9351_v11  ;;  %8367 = vmatpush3.bf16.msra.mxu0 %v9352_v12 }
0x1aae   :  { %8346 = vmatprep.subr.bf16.mxu1 %v9353_v13  ;;  %8368 = vmatprep.subr.bf16.mxu0 %v9354_v14 }
0x1ab1   :  { %8347 = vmatpush3.bf16.msra.mxu1 %v9355_v15  ;;  %8369 = vmatpush3.bf16.msra.mxu0 %v9356_v16 }
0x1ab2   :  { %8348 = vmatprep.subr.bf16.mxu1 %v9357_v17  ;;  %8370 = vmatprep.subr.bf16.mxu0 %v9358_v18 }
0x1ab5   :  { %8349 = vmatpush3.bf16.msra.mxu1 %v9359_v20  ;;  %8371 = vmatpush3.bf16.msra.mxu0 %v9360_v21 }
0x1ab6   :  { %8753 = vmatprep.subr.bf16.mxu1 %v10221_v0  ;;  %8773 = vmatprep.subr.bf16.mxu0 %v10221_v0 }
0x1b58   :  { %v4846_v27 = vpop.f32.mrf.mxu1  ;;  %v4887_v28 = vpop.f32.mrf.mxu0 }
0x1b59   :  { %v4847_v29 = vadd.f32 %v4846_v27, %v4635_v23  ;;  %v4888_v30 = vadd.f32 %v4887_v28, %v4643_v24 }
0x1b5a   :  { %v4848_v31 = vpop.f32.mrf.mxu1  ;;  %v4889_v32 = vpop.f32.mrf.mxu0 }
0x1b5b   :  { %v4898_v33 = vmul.f32 0.044715, %v4847_v29  ;;  %v4900_v35 = vmul.f32 0.044715, %v4888_v30  ;;  %v4849_v37 = vadd.f32 %v4848_v31, %v4639_v25  ;;  %v4890_v38 = vadd.f32 %v4889_v32, %v4647_v26  ;;  %v7845_v25 = vld [vmem:[%s10879_s17 + $0x3] ss:$0 sm:$0xff] }
0x1b5c   :  { %v4850_v39 = vpop.f32.mrf.mxu1  ;;  %v4891_v40 = vpop.f32.mrf.mxu0  ;;  %v4894_v6 = vmul.f32 0.5, %v4847_v29  ;;  %v4896_v11 = vmul.f32 0.5, %v4888_v30 }
0x1b5d   :  { %v4902_v41 = vmul.f32 %v4898_v33, %v4847_v29  ;;  %v4904_v42 = vmul.f32 %v4900_v35, %v4888_v30  ;;  %v4899_v43 = vmul.f32 0.044715, %v4849_v37  ;;  %v4901_v44 = vmul.f32 0.044715, %v4890_v38 }
0x1b5e   :  { %v4851_v45 = vpop.f32.mrf.mxu1  ;;  %v4892_v46 = vpop.f32.mrf.mxu0  ;;  %v4895_v8 = vmul.f32 0.5, %v4849_v37  ;;  %v4897_v12 = vmul.f32 0.5, %v4890_v38 }
0x1b5f   :  { %v4906_v47 = vmul.f32 %v4902_v41, %v4847_v29  ;;  %v4908_v50 = vmul.f32 %v4904_v42, %v4888_v30  ;;  %v4903_v52 = vmul.f32 %v4899_v43, %v4849_v37  ;;  %v4905_v53 = vmul.f32 %v4901_v44, %v4890_v38 }
0x1b61   :  { %v4910_v48 = vadd.f32 %v4906_v47, %v4847_v29  ;;  %v4912_v54 = vadd.f32 %v4908_v50, %v4888_v30  ;;  %v4907_v55 = vmul.f32 %v4903_v52, %v4849_v37  ;;  %v4909_v56 = vmul.f32 %v4905_v53, %v4890_v38  ;;  %v9361_v52 = vld [vmem:[#allocation28 + $0x138] sm:$0xff]   ;;  %v9362_v53 = vld [vmem:[#allocation28 + $0x130] sm:$0xff]  }
0x1b63   :  { %v4914_v57 = vmul.f32 0.7978846, %v4910_v48  ;;  %v4916_v59 = vmul.f32 0.7978846, %v4912_v54  ;;  %v4911_v60 = vadd.f32 %v4907_v55, %v4849_v37  ;;  %v4913_v61 = vadd.f32 %v4909_v56, %v4890_v38 }
0x1b65   :  { %v4915_v62 = vmul.f32 0.7978846, %v4911_v60  ;;  %v4917_v63 = vmul.f32 0.7978846, %v4913_v61  ;;  %9607 = vtanh.f32 %v4914_v57  ;;  %v9363_v57 = vld [vmem:[#allocation28 + $0x128] sm:$0xff]   ;;  %v9366_v60 = vld [vmem:[#allocation28 + $0x110] sm:$0xff]  }
0x1b66   :  { %9609 = vtanh.f32 %v4916_v59  ;;  %v9365_v59 = vld [vmem:[#allocation28 + $0x118] sm:$0xff]   ;;  %v9367_v61 = vld [vmem:[#allocation28 + $0x108] sm:$0xff]  }
0x1b67   :  { %9611 = vtanh.f32 %v4915_v62  ;;  %v9368_v62 = vld [vmem:[#allocation28 + $0x100] sm:$0xff]  }
0x1b68   :  { %9613 = vtanh.f32 %v4917_v63  ;;  %v9369_v63 = vld [vmem:[#allocation31 + $0x138] sm:$0xff]  }
0x1b72   :  { %v9608_v1 = vpop.eup %9607 }
0x1b73   :  { %v9610_v2 = vpop.eup %9609  ;;  %v4922_v3 = vadd.f32 1.0, %v9608_v1  ;;  %v9370_v1 = vld [vmem:[#allocation31 + $0x130] sm:$0xff]  }
0x1b74   :  { %v9612_v5 = vpop.eup %9611  ;;  %v4924_v7 = vadd.f32 1.0, %v9610_v2  ;;  %v9371_v2 = vld [vmem:[#allocation31 + $0x128] sm:$0xff]  }
0x1b75   :  { %v9614_v9 = vpop.eup %9613  ;;  %v4923_v10 = vadd.f32 1.0, %v9612_v5  ;;  %v4926_v14 = vmul.f32 %v4922_v3, %v4894_v6  ;;  %v9372_v3 = vld [vmem:[#allocation31 + $0x120] sm:$0xff]   ;;  %v9373_v5 = vld [vmem:[#allocation31 + $0x118] sm:$0xff]   ;;  %v9374_v6 = vld [vmem:[#allocation31 + $0x110] sm:$0xff]  }
0x1b76   :  { %v4925_v13 = vadd.f32 1.0, %v9614_v9  ;;  %v4928_v16 = vmul.f32 %v4924_v7, %v4896_v11  ;;  %v9375_v7 = vld [vmem:[#allocation31 + $0x108] sm:$0xff]  }
0x1b77   :  { %v4927_v15 = vmul.f32 %v4923_v10, %v4895_v8  ;;  %v4995_v21 = vpack.c.bf16 %v4926_v14, %v4926_v14  ;;  %v7881_v14 = vld [vmem:[%s10875_s23 + $0x4] ss:$0 sm:$0xff] }
0x1b78   :  { %v4929_v17 = vmul.f32 %v4925_v13, %v4897_v12  ;;  %v4997_v22 = vpack.c.bf16 %v4928_v16, %v4928_v16  ;;  %v7880_v12 = vld [vmem:[%s10874_s24 + $0x4] ss:$0 sm:$0xff] }
0x1b79   :  { %v4996_v18 = vpack.c.bf16 %v4927_v15, %v4927_v15 }
0x1b7a   :  { %v4998_v20 = vpack.c.bf16 %v4929_v17, %v4929_v17 }
0x1b7b   :  { %5231 = vmatprep.mubr.bf16.mxu1 %v4996_v18  ;;  %v9376_v18 = vld [vmem:[#allocation31 + $0x100] sm:$0xff]  }
0x1b7c   :  { %5271 = vmatprep.mubr.bf16.mxu0 %v4998_v20  ;;  %5232 = vmatmul.mubr.bf16.vlgmr.msra.gmra.mxu1 %v4995_v21  ;;  %v7882_v20 = vld [vmem:[#allocation30 + $0x4] ss:$0 sm:$0xff] }
0x1b7d   :  { %5272 = vmatmul.mubr.bf16.vlgmr.msra.gmra.mxu0 %v4997_v22  ;;  %8769 = vmatprep.mubr.msk.bf16.mxu1 %vm10222_vm0, %v10221_v0 }
0x1b7e   :  { %8789 = vmatprep.mubr.msk.bf16.mxu0 %vm10222_vm0, %v10221_v0  ;;  %8754 = vmatpush3.bf16.msra.mxu1 %v9361_v52  ;;  %v9394_v52 = vld [vmem:[#allocation34 + $0x4ac] ss:$16 sps:$4 sm:$0xff]  }
0x1b7f   :  { %8755 = vmatprep.subr.bf16.mxu1 %v10221_v0  ;;  %8774 = vmatpush3.bf16.msra.mxu0 %v9369_v63  ;;  %v9412_v63 = vld [vmem:[#allocation34 + $0x44c] ss:$16 sps:$4 sm:$0xff]  }
0x1b80   :  { %8775 = vmatprep.subr.bf16.mxu0 %v10221_v0 }
0x1b82   :  { %8756 = vmatpush3.bf16.msra.mxu1 %v9362_v53  ;;  %v9389_v53 = vld [vmem:[#allocation34 + $0x4a0] ss:$16 sps:$4 sm:$0xff]  }
0x1b83   :  { %8757 = vmatprep.subr.bf16.mxu1 %v10221_v0  ;;  %8776 = vmatpush3.bf16.msra.mxu0 %v9370_v1  ;;  %v9407_v1 = vld [vmem:[#allocation34 + $0x440] ss:$16 sps:$4 sm:$0xff]  }
0x1b84   :  { %8777 = vmatprep.subr.bf16.mxu0 %v10221_v0 }
0x1b86   :  { %8758 = vmatpush3.bf16.msra.mxu1 %v9363_v57  ;;  %v9400_v57 = vld [vmem:[#allocation34 + $0x48c] ss:$16 sps:$4 sm:$0xff]  }
0x1b87   :  { %8759 = vmatprep.subr.bf16.mxu1 %v10221_v0  ;;  %8778 = vmatpush3.bf16.msra.mxu0 %v9371_v2  ;;  %v9410_v2 = vld [vmem:[#allocation34 + $0x448] ss:$16 sps:$4 sm:$0xff]  }
0x1b88   :  { %8779 = vmatprep.subr.bf16.mxu0 %v10221_v0 }
0x1b8b   :  { %8780 = vmatpush3.bf16.msra.mxu0 %v9372_v3  ;;  %v9415_v3 = vld [vmem:[#allocation34 + $0x424] ss:$16 sps:$4 sm:$0xff]  }
0x1b8c   :  { %8781 = vmatprep.subr.bf16.mxu0 %v10221_v0 }
0x1b8f   :  { %8782 = vmatpush3.bf16.msra.mxu0 %v9373_v5  ;;  %v9418_v5 = vld [vmem:[#allocation34 + $0x42c] ss:$16 sps:$4 sm:$0xff]  }
0x1b90   :  { %8783 = vmatprep.subr.bf16.mxu0 %v10221_v0 }
0x1b93   :  { %8784 = vmatpush3.bf16.msra.mxu0 %v9374_v6  ;;  %v9413_v6 = vld [vmem:[#allocation34 + $0x420] ss:$16 sps:$4 sm:$0xff]  }
0x1b94   :  { %8785 = vmatprep.subr.bf16.mxu0 %v10221_v0 }
0x1b97   :  { %8786 = vmatpush3.bf16.msra.mxu0 %v9375_v7  ;;  %v9416_v7 = vld [vmem:[#allocation34 + $0x428] ss:$16 sps:$4 sm:$0xff]  }
0x1b98   :  { %8787 = vmatprep.subr.bf16.mxu0 %v10221_v0 }
0x1b9b   :  { %8788 = vmatpush3.bf16.msra.mxu0 %v9376_v18  ;;  %v7903_v18 = vld [vmem:[%s10877_s26 + $0x4] ss:$0 sm:$0xff] }
0x1c3c   :  { %v8350_v23 = vpop.f32.mrf.mxu1 }
0x1c3d   :  { %v8372_v24 = vpop.f32.mrf.mxu0 }
0x1c3e   :  { %v8351_v26 = vpop.f32.mrf.mxu1 }
0x1c3f   :  { %v8352_v27 = vadd.f32 %v8351_v26, %v8350_v23  ;;  %v8373_v28 = vpop.f32.mrf.mxu0 }
0x1c40   :  { %v8353_v29 = vpop.f32.mrf.mxu1  ;;  %v8374_v31 = vadd.f32 %v8373_v28, %v8372_v24 }
0x1c41   :  { %v5234_v30 = vadd.f32 %v8352_v27, %v7845_v25  ;;  %v8375_v32 = vpop.f32.mrf.mxu0  ;;  %v7891_v27 = vld [vmem:[#allocation33 + $0x4] ss:$0 sm:$0xff] }
0x1c42   :  { %v8354_v33 = vpop.f32.mrf.mxu1 }
0x1c43   :  { %v5274_v35 = vadd.f32 %v8374_v31, %v5234_v30  ;;  %v8376_v37 = vpop.f32.mrf.mxu0 }
0x1c44   :  { %v9379_v37 = vld [vmem:[#allocation34 + $0x4e4] ss:$16 sps:$4 sm:$0xff]  }
0x1c45   :  { %v5280_v38 = vmul.f32 0.044715, %v5274_v35  ;;  %v5279_v44 = vmul.f32 0.5, %v5274_v35 }
0x1c47   :  { %v5281_v39 = vmul.f32 %v5280_v38, %v5274_v35  ;;  %v9380_v38 = vld [vmem:[#allocation34 + $0x4e8] ss:$16 sps:$4 sm:$0xff]  }
0x1c49   :  { %v5282_v40 = vmul.f32 %v5281_v39, %v5274_v35  ;;  %v9382_v39 = vld [vmem:[#allocation34 + $0x4ec] ss:$16 sps:$4 sm:$0xff]  }
0x1c4a   :  { %5835 = vmatprep.subr.bf16.mxu0 %v9382_v39  ;;  %v9438_v39 = vld [vmem:[#allocation36 + $0x4e0] sm:$0xff]  }
0x1c4b   :  { %v5283_v41 = vadd.f32 %v5282_v40, %v5274_v35  ;;  %v9377_v35 = vld [vmem:[#allocation34 + $0x4e0] ss:$16 sps:$4 sm:$0xff]   ;;  %v9385_v40 = vld [vmem:[#allocation34 + $0x4c4] ss:$16 sps:$4 sm:$0xff]  }
0x1c4d   :  { %v5284_v42 = vmul.f32 0.7978846, %v5283_v41  ;;  %v9388_v41 = vld [vmem:[#allocation34 + $0x4cc] ss:$16 sps:$4 sm:$0xff]  }
0x1c4f   :  { %9615 = vtanh.f32 %v5284_v42  ;;  %v9383_v42 = vld [vmem:[#allocation34 + $0x4c0] ss:$16 sps:$4 sm:$0xff]  }
0x1c5c   :  { %v9616_v43 = vpop.eup %9615 }
0x1c5d   :  { %v5286_v45 = vadd.f32 1.0, %v9616_v43  ;;  %v9386_v43 = vld [vmem:[#allocation34 + $0x4c8] ss:$16 sps:$4 sm:$0xff]  }
0x1c5f   :  { %v5287_v46 = vmul.f32 %v5286_v45, %v5279_v44 }
0x1c61   :  { %v10739_v47 = vadd.f32 %v5287_v46, %v10720_v58  ;;  %v9364_v58 = vld [vmem:[#allocation28 + $0x120] sm:$0xff]  }
0x1c62   :  { %8760 = vmatpush3.bf16.msra.mxu1 %v9364_v58  ;;  %v9403_v58 = vld [vmem:[#allocation34 + $0x464] ss:$16 sps:$4 sm:$0xff]  }
0x1c63   :  { %v5289_v50 = vadd.f32 %v10739_v47, %v10563_v19  ;;  %8761 = vmatprep.subr.bf16.mxu1 %v10221_v0 }
0x1c65   :  { %5294 = vadd.xlane.f32.xlu0 %v5289_v50 }
0x1c66   :  { %8762 = vmatpush3.bf16.msra.mxu1 %v9365_v59  ;;  %v9406_v59 = vld [vmem:[#allocation34 + $0x46c] ss:$16 sps:$4 sm:$0xff]  }
0x1c67   :  { %8763 = vmatprep.subr.bf16.mxu1 %v10221_v0 }
0x1c6a   :  { %8764 = vmatpush3.bf16.msra.mxu1 %v9366_v60  ;;  %v9401_v60 = vld [vmem:[#allocation34 + $0x460] ss:$16 sps:$4 sm:$0xff]  }
0x1c6b   :  { %8765 = vmatprep.subr.bf16.mxu1 %v10221_v0 }
0x1c6e   :  { %8766 = vmatpush3.bf16.msra.mxu1 %v9367_v61  ;;  %v9404_v61 = vld [vmem:[#allocation34 + $0x468] ss:$16 sps:$4 sm:$0xff]  }
0x1c6f   :  { %8767 = vmatprep.subr.bf16.mxu1 %v10221_v0 }
0x1c72   :  { %8768 = vmatpush3.bf16.msra.mxu1 %v9368_v62  ;;  %v9409_v62 = vld [vmem:[#allocation34 + $0x444] ss:$16 sps:$4 sm:$0xff]  }
0x1c73   :  { %5794 = vmatprep.subr.bf16.mxu1 %v9379_v37  ;;  %v9436_v37 = vld [vmem:[#allocation36 + $0x4a8] sm:$0xff]  }
0x1cee   :  { %v5295_v48 = vpop.xlane.xlu0 %5294 }
0x1cef   :  { %v5296_v54 = vmul.f32 0.0078125, %v5295_v48  ;;  %v9392_v48 = vld [vmem:[#allocation34 + $0x4a8] ss:$16 sps:$4 sm:$0xff]  }
0x1cf1   :  { %v5297_v55 = vsub.f32 %v5289_v50, %v5296_v54  ;;  %v9391_v50 = vld [vmem:[#allocation34 + $0x4a4] ss:$16 sps:$4 sm:$0xff]   ;;  %v9395_v54 = vld [vmem:[#allocation34 + $0x480] ss:$16 sps:$4 sm:$0xff]  }
0x1cf3   :  { %v5298_v56 = vmul.f32 %v5297_v55, %v5297_v55 }
0x1cf5   :  { %5299 = vadd.xlane.f32.xlu1 %v5298_v56  ;;  %v9398_v56 = vld [vmem:[#allocation34 + $0x488] ss:$16 sps:$4 sm:$0xff]  }
0x1d7e   :  { %v5300_v9 = vpop.xlane.xlu1 %5299 }
0x1d7f   :  { %v5301_v8 = vmul.f32 0.0078125, %v5300_v9  ;;  %v9421_v9 = vld [vmem:[#allocation34 + $0x404] ss:$16 sps:$4 sm:$0xff]  }
0x1d81   :  { %v5302_v10 = vadd.f32 1e-05, %v5301_v8  ;;  %v9424_v8 = vld [vmem:[#allocation34 + $0x40c] ss:$16 sps:$4 sm:$0xff]  }
0x1d83   :  { %9617 = vrsqrt.f32 %v5302_v10  ;;  %v9419_v10 = vld [vmem:[#allocation34 + $0x400] ss:$16 sps:$4 sm:$0xff]  }
0x1d90   :  { %v9618_v11 = vpop.eup %9617 }
0x1d91   :  { %v5304_v13 = vmul.f32 %v9618_v11, %v5297_v55  ;;  %v9397_v55 = vld [vmem:[#allocation34 + $0x484] ss:$16 sps:$4 sm:$0xff]   ;;  %v9422_v11 = vld [vmem:[#allocation34 + $0x408] ss:$16 sps:$4 sm:$0xff]  }
0x1d93   :  { %v5311_v15 = vmul.f32 %v7880_v12, %v5304_v13 }
0x1d95   :  { %v5318_v16 = vadd.f32 %v7881_v14, %v5311_v15 }
0x1d97   :  { %v5336_v17 = vpack.c.bf16 %v5318_v16, %v5318_v16  ;;  %v7902_v16 = vld [vmem:[%s10876_s30 + $0x4] ss:$0 sm:$0xff] }
0x1d99   :  { %8770 = vmatmul.mubr.bf16.vlgmr.msra.gmra.mxu1 %v5336_v17 }
0x1d9a   :  { %5826 = vmatprep.mubr.bf16.mxu1 %v10224_v4  ;;  %5795 = vmatpush1.bf16.msra.mxu1 %v9377_v35  ;;  %v9435_v35 = vld [vmem:[#allocation36 + $0x428] sm:$0xff]  }
0x1d9b   :  { %5796 = vmatprep.subr.bf16.mxu1 %v9385_v40  ;;  %v9439_v40 = vld [vmem:[#allocation36 + $0x420] sm:$0xff]  }
0x1d9e   :  { %5797 = vmatpush1.bf16.msra.mxu1 %v9383_v42  ;;  %v9441_v42 = vld [vmem:[#allocation36 + $0x458] sm:$0xff]  }
0x1d9f   :  { %5798 = vmatprep.subr.bf16.mxu1 %v9391_v50  ;;  %v9447_v50 = vld [vmem:[#allocation36 + $0x410] sm:$0xff]  }
0x1da2   :  { %5799 = vmatpush1.bf16.msra.mxu1 %v9389_v53  ;;  %v9449_v53 = vld [vmem:[#allocation36 + $0x448] sm:$0xff]  }
0x1da3   :  { %5800 = vmatprep.subr.bf16.mxu1 %v9397_v55  ;;  %v9452_v55 = vld [vmem:[#allocation36 + $0x488] sm:$0xff]  }
0x1da6   :  { %5801 = vmatpush1.bf16.msra.mxu1 %v9395_v54  ;;  %v9451_v54 = vld [vmem:[#allocation36 + $0x408] sm:$0xff]  }
0x1da7   :  { %5802 = vmatprep.subr.bf16.mxu1 %v9403_v58  ;;  %v9455_v58 = vld [vmem:[#allocation36 + $0x400] sm:$0xff]  }
0x1daa   :  { %5803 = vmatpush1.bf16.msra.mxu1 %v9401_v60  ;;  %v7904_v60 = vld [vmem:[%s10878_s28 + $0x10] sm:$0xf] }
0x1dab   :  { %5804 = vmatprep.subr.bf16.mxu1 %v9409_v62  ;;  %v5625_v62 = vrot.slane %v7904_v60, %v10597_v34 }
0x1dae   :  { %5805 = vmatpush1.bf16.msra.mxu1 %v9407_v1  ;;  %v5629_v1 = vrot.slane %v7904_v60, %v10601_v36 }
0x1daf   :  { %5806 = vmatprep.subr.bf16.mxu1 %v9415_v3 }
0x1db2   :  { %5807 = vmatpush1.bf16.msra.mxu1 %v9413_v6 }
0x1db3   :  { %5808 = vmatprep.subr.bf16.mxu1 %v9421_v9 }
0x1db6   :  { %5809 = vmatpush1.bf16.msra.mxu1 %v9419_v10 }
0x1e59   :  { %v5427_v21 = vpop.f32.mrf.mxu1 }
0x1e5a   :  { %v5428_v22 = vadd.f32 %v7882_v20, %v5427_v21 }
0x1e5b   :  { %v8771_v23 = vpop.f32.mrf.mxu1 }
0x1e5c   :  { %v5450_v24 = vpack.c.bf16 %v5428_v22, %v5428_v22  ;;  %v9425_v23 = vld [vmem:[#allocation36 + $0x478] sm:$0xff]  }
0x1e5d   :  { %v5430_v25 = vpop.f32.mrf.mxu1  ;;  %8396 = vmatprep.subr.bf16.mxu1 %v9425_v23 }
0x1e5e   :  { %8790 = vmatmul.mubr.bf16.vlgmr.msra.gmra.mxu0 %v5450_v24  ;;  %v9426_v24 = vld [vmem:[#allocation36 + $0x4f8] sm:$0xff]  }
0x1e5f   :  { %v8772_v26 = vpop.f32.mrf.mxu1  ;;  %5867 = vmatprep.mubr.bf16.mxu0 %v10224_v4  ;;  %5836 = vmatpush1.bf16.msra.mxu0 %v9380_v38  ;;  %v9427_v25 = vld [vmem:[#allocation36 + $0x438] sm:$0xff]   ;;  %v9437_v38 = vld [vmem:[#allocation36 + $0x460] sm:$0xff]  }
0x1e60   :  { %5837 = vmatprep.subr.bf16.mxu0 %v9388_v41  ;;  %v9428_v26 = vld [vmem:[#allocation36 + $0x4b8] sm:$0xff]   ;;  %v9440_v41 = vld [vmem:[#allocation36 + $0x4a0] sm:$0xff]  }
0x1e63   :  { %5838 = vmatpush1.bf16.msra.mxu0 %v9386_v43  ;;  %v9442_v43 = vld [vmem:[#allocation36 + $0x4d8] sm:$0xff]  }
0x1e64   :  { %5839 = vmatprep.subr.bf16.mxu0 %v9394_v52  ;;  %v9448_v52 = vld [vmem:[#allocation36 + $0x490] sm:$0xff]  }
0x1e67   :  { %5840 = vmatpush1.bf16.msra.mxu0 %v9392_v48  ;;  %v9450_v48 = vld [vmem:[#allocation36 + $0x4c8] sm:$0xff]  }
0x1e68   :  { %5841 = vmatprep.subr.bf16.mxu0 %v9400_v57  ;;  %v9454_v57 = vld [vmem:[#allocation36 + $0x4c0] sm:$0xff]  }
0x1e6b   :  { %5842 = vmatpush1.bf16.msra.mxu0 %v9398_v56  ;;  %v9453_v56 = vld [vmem:[#allocation36 + $0x440] sm:$0xff]  }
0x1e6c   :  { %5843 = vmatprep.subr.bf16.mxu0 %v9406_v59  ;;  %v9456_v59 = vld [vmem:[#allocation36 + $0x480] sm:$0xff]  }
0x1e6f   :  { %5844 = vmatpush1.bf16.msra.mxu0 %v9404_v61  ;;  %v5617_v61 = vrot.slane %v7904_v60, %v10552_v49 }
0x1e70   :  { %5845 = vmatprep.subr.bf16.mxu0 %v9412_v63  ;;  %v5621_v63 = vrot.slane %v7904_v60, %v10555_v51 }
0x1e73   :  { %5846 = vmatpush1.bf16.msra.mxu0 %v9410_v2 }
0x1e74   :  { %5847 = vmatprep.subr.bf16.mxu0 %v9418_v5 }
0x1e77   :  { %5848 = vmatpush1.bf16.msra.mxu0 %v9416_v7 }
0x1e78   :  { %5849 = vmatprep.subr.bf16.mxu0 %v9424_v8 }
0x1e7b   :  { %5850 = vmatpush1.bf16.msra.mxu0 %v9422_v11 }
0x1e7c   :  { %8418 = vmatprep.subr.bf16.mxu0 %v9426_v24 }
0x1f1e   :  { %v5541_v28 = vpop.f32.mrf.mxu0 }
0x1f1f   :  { %v5542_v29 = vadd.f32 %v7891_v27, %v5541_v28  ;;  %v9429_v27 = vld [vmem:[#allocation36 + $0x470] sm:$0xff]  }
0x1f20   :  { %v8791_v30 = vpop.f32.mrf.mxu0  ;;  %v9430_v28 = vld [vmem:[#allocation36 + $0x4f0] sm:$0xff]  }
0x1f21   :  { %v10762_v31 = vadd.f32 %v5542_v29, %v10739_v47  ;;  %v9431_v29 = vld [vmem:[#allocation36 + $0x430] sm:$0xff]  }
0x1f22   :  { %v5544_v32 = vpop.f32.mrf.mxu0  ;;  %v9432_v30 = vld [vmem:[#allocation36 + $0x4b0] sm:$0xff]  }
0x1f23   :  { %5552 = vadd.xlane.f32.xlu0 %v10762_v31  ;;  %v9433_v32 = vld [vmem:[#allocation36 + $0x468] sm:$0xff]  }
0x1f24   :  { %v8792_v33 = vpop.f32.mrf.mxu0 }
0x1f25   :  { %v9434_v33 = vld [vmem:[#allocation36 + $0x4e8] sm:$0xff]  }
0x1fac   :  { %v5553_v44 = vpop.xlane.xlu0 %5552 }
0x1fad   :  { %v5554_v45 = vmul.f32 0.0078125, %v5553_v44  ;;  %v9443_v44 = vld [vmem:[#allocation36 + $0x418] sm:$0xff]  }
0x1faf   :  { %v5555_v46 = vsub.f32 %v10762_v31, %v5554_v45  ;;  %v9444_v45 = vld [vmem:[#allocation36 + $0x498] sm:$0xff]  }
0x1fb1   :  { %v5556_v47 = vmul.f32 %v5555_v46, %v5555_v46 }
0x1fb3   :  { %5557 = vadd.xlane.f32.xlu1 %v5556_v47  ;;  %v9446_v47 = vld [vmem:[#allocation36 + $0x4d0] sm:$0xff]  }
0x203c   :  { %v5558_v12 = vpop.xlane.xlu1 %5557 }
0x203d   :  { %v5559_v13 = vmul.f32 0.0078125, %v5558_v12 }
0x203f   :  { %v5560_v14 = vadd.f32 1e-05, %v5559_v13 }
0x2041   :  { %9619 = vrsqrt.f32 %v5560_v14 }
0x204e   :  { %v9620_v15 = vpop.eup %9619 }
0x204f   :  { %v5562_v17 = vmul.f32 %v9620_v15, %v5555_v46  ;;  %v9445_v46 = vld [vmem:[#allocation36 + $0x450] sm:$0xff]  }
0x2051   :  { %v5569_v20 = vmul.f32 %v7902_v16, %v5562_v17 }
0x2053   :  { %v5576_v21 = vadd.f32 %v7903_v18, %v5569_v20 }
0x2055   :  { %v5610_v22 = vpack.c.bf16 %v5576_v21, %v5576_v21 }
0x2057   :  { %5827 = vmatmul.mubr.bf16.vlgmr.msra.gmra.mxu1 %v5610_v22  ;;  %5868 = vmatmul.mubr.bf16.vlgmr.msra.gmra.mxu0 %v5610_v22 }
0x2058   :  { %8397 = vmatpush3.bf16.msra.mxu1 %v9427_v25  ;;  %8419 = vmatpush3.bf16.msra.mxu0 %v9428_v26 }
0x2059   :  { %8398 = vmatprep.subr.bf16.mxu1 %v9429_v27  ;;  %8420 = vmatprep.subr.bf16.mxu0 %v9430_v28 }
0x205c   :  { %8399 = vmatpush3.bf16.msra.mxu1 %v9431_v29  ;;  %8421 = vmatpush3.bf16.msra.mxu0 %v9432_v30 }
0x205d   :  { %8400 = vmatprep.subr.bf16.mxu1 %v9433_v32  ;;  %8422 = vmatprep.subr.bf16.mxu0 %v9434_v33 }
0x2060   :  { %8401 = vmatpush3.bf16.msra.mxu1 %v9435_v35  ;;  %8423 = vmatpush3.bf16.msra.mxu0 %v9436_v37 }
0x2061   :  { %8402 = vmatprep.subr.bf16.mxu1 %v9437_v38  ;;  %8424 = vmatprep.subr.bf16.mxu0 %v9438_v39 }
0x2064   :  { %8403 = vmatpush3.bf16.msra.mxu1 %v9439_v40  ;;  %8425 = vmatpush3.bf16.msra.mxu0 %v9440_v41 }
0x2065   :  { %8404 = vmatprep.subr.bf16.mxu1 %v9441_v42  ;;  %8426 = vmatprep.subr.bf16.mxu0 %v9442_v43 }
0x2068   :  { %8405 = vmatpush3.bf16.msra.mxu1 %v9443_v44  ;;  %8427 = vmatpush3.bf16.msra.mxu0 %v9444_v45 }
0x2069   :  { %8406 = vmatprep.subr.bf16.mxu1 %v9445_v46  ;;  %8428 = vmatprep.subr.bf16.mxu0 %v9446_v47 }
0x206c   :  { %8407 = vmatpush3.bf16.msra.mxu1 %v9447_v50  ;;  %8429 = vmatpush3.bf16.msra.mxu0 %v9448_v52 }
0x206d   :  { %8408 = vmatprep.subr.bf16.mxu1 %v9449_v53  ;;  %8430 = vmatprep.subr.bf16.mxu0 %v9450_v48 }
0x2070   :  { %8409 = vmatpush3.bf16.msra.mxu1 %v9451_v54  ;;  %8431 = vmatpush3.bf16.msra.mxu0 %v9452_v55 }
0x2071   :  { %8410 = vmatprep.subr.bf16.mxu1 %v9453_v56  ;;  %8432 = vmatprep.subr.bf16.mxu0 %v9454_v57 }
0x2074   :  { %8411 = vmatpush3.bf16.msra.mxu1 %v9455_v58  ;;  %8433 = vmatpush3.bf16.msra.mxu0 %v9456_v59 }
0x2075   :  { %8793 = vmatprep.subr.bf16.mxu1 %v10221_v0  ;;  %8813 = vmatprep.subr.bf16.mxu0 %v10221_v0 }
0x2117   :  { %v5828_v2 = vpop.f32.mrf.mxu1  ;;  %v5869_v3 = vpop.f32.mrf.mxu0 }
0x2118   :  { %v5829_v5 = vadd.f32 %v5828_v2, %v5617_v61  ;;  %v5870_v6 = vadd.f32 %v5869_v3, %v5625_v62 }
0x2119   :  { %v5830_v7 = vpop.f32.mrf.mxu1  ;;  %v5871_v9 = vpop.f32.mrf.mxu0 }
0x211a   :  { %v5880_v8 = vmul.f32 0.044715, %v5829_v5  ;;  %v5882_v10 = vmul.f32 0.044715, %v5870_v6  ;;  %v5831_v11 = vadd.f32 %v5830_v7, %v5621_v63  ;;  %v5872_v12 = vadd.f32 %v5871_v9, %v5629_v1  ;;  %v7938_v63 = vld [vmem:[%s10879_s17 + $0x4] ss:$0 sm:$0xff] }
0x211b   :  { %v5832_v13 = vpop.f32.mrf.mxu1  ;;  %v5873_v14 = vpop.f32.mrf.mxu0  ;;  %v5876_v43 = vmul.f32 0.5, %v5829_v5  ;;  %v5878_v50 = vmul.f32 0.5, %v5870_v6 }
0x211c   :  { %v5884_v15 = vmul.f32 %v5880_v8, %v5829_v5  ;;  %v5886_v16 = vmul.f32 %v5882_v10, %v5870_v6  ;;  %v5881_v17 = vmul.f32 0.044715, %v5831_v11  ;;  %v5883_v18 = vmul.f32 0.044715, %v5872_v12 }
0x211d   :  { %v5833_v20 = vpop.f32.mrf.mxu1  ;;  %v5874_v21 = vpop.f32.mrf.mxu0  ;;  %v5877_v46 = vmul.f32 0.5, %v5831_v11  ;;  %v5879_v52 = vmul.f32 0.5, %v5872_v12 }
0x211e   :  { %v5888_v22 = vmul.f32 %v5884_v15, %v5829_v5  ;;  %v5890_v23 = vmul.f32 %v5886_v16, %v5870_v6  ;;  %v5885_v24 = vmul.f32 %v5881_v17, %v5831_v11  ;;  %v5887_v25 = vmul.f32 %v5883_v18, %v5872_v12 }
0x2120   :  { %v5892_v26 = vadd.f32 %v5888_v22, %v5829_v5  ;;  %v5894_v27 = vadd.f32 %v5890_v23, %v5870_v6  ;;  %v5889_v28 = vmul.f32 %v5885_v24, %v5831_v11  ;;  %v5891_v29 = vmul.f32 %v5887_v25, %v5872_v12  ;;  %v9457_v24 = vld [vmem:[#allocation28 + $0x178] sm:$0xff]   ;;  %v9458_v25 = vld [vmem:[#allocation28 + $0x170] sm:$0xff]  }
0x2122   :  { %v5896_v30 = vmul.f32 0.7978846, %v5892_v26  ;;  %v5898_v32 = vmul.f32 0.7978846, %v5894_v27  ;;  %v5893_v33 = vadd.f32 %v5889_v28, %v5831_v11  ;;  %v5895_v35 = vadd.f32 %v5891_v29, %v5872_v12 }
0x2124   :  { %v5897_v37 = vmul.f32 0.7978846, %v5893_v33  ;;  %v5899_v38 = vmul.f32 0.7978846, %v5895_v35  ;;  %9621 = vtanh.f32 %v5896_v30  ;;  %v9459_v30 = vld [vmem:[#allocation28 + $0x168] sm:$0xff]   ;;  %v9462_v33 = vld [vmem:[#allocation28 + $0x150] sm:$0xff]  }
0x2125   :  { %9623 = vtanh.f32 %v5898_v32  ;;  %v9461_v32 = vld [vmem:[#allocation28 + $0x158] sm:$0xff]   ;;  %v9463_v35 = vld [vmem:[#allocation28 + $0x148] sm:$0xff]  }
0x2126   :  { %9625 = vtanh.f32 %v5897_v37  ;;  %v9464_v37 = vld [vmem:[#allocation28 + $0x140] sm:$0xff]  }
0x2127   :  { %9627 = vtanh.f32 %v5899_v38  ;;  %v9465_v38 = vld [vmem:[#allocation31 + $0x178] sm:$0xff]  }
0x2131   :  { %v9622_v39 = vpop.eup %9621 }
0x2132   :  { %v9624_v40 = vpop.eup %9623  ;;  %v5904_v41 = vadd.f32 1.0, %v9622_v39  ;;  %v9466_v39 = vld [vmem:[#allocation31 + $0x170] sm:$0xff]  }
0x2133   :  { %v9626_v42 = vpop.eup %9625  ;;  %v5906_v44 = vadd.f32 1.0, %v9624_v40  ;;  %v9467_v40 = vld [vmem:[#allocation31 + $0x168] sm:$0xff]  }
0x2134   :  { %v9628_v45 = vpop.eup %9627  ;;  %v5905_v47 = vadd.f32 1.0, %v9626_v42  ;;  %v5908_v48 = vmul.f32 %v5904_v41, %v5876_v43  ;;  %v9468_v41 = vld [vmem:[#allocation31 + $0x160] sm:$0xff]   ;;  %v9469_v42 = vld [vmem:[#allocation31 + $0x158] sm:$0xff]   ;;  %v9470_v43 = vld [vmem:[#allocation31 + $0x150] sm:$0xff]  }
0x2135   :  { %v5907_v53 = vadd.f32 1.0, %v9628_v45  ;;  %v5910_v55 = vmul.f32 %v5906_v44, %v5878_v50  ;;  %v9471_v44 = vld [vmem:[#allocation31 + $0x148] sm:$0xff]  }
0x2136   :  { %v5909_v54 = vmul.f32 %v5905_v47, %v5877_v46  ;;  %v5977_v59 = vpack.c.bf16 %v5908_v48, %v5908_v48  ;;  %v7974_v48 = vld [vmem:[%s10875_s23 + $0x5] ss:$0 sm:$0xff] }
0x2137   :  { %v5911_v56 = vmul.f32 %v5907_v53, %v5879_v52  ;;  %v5979_v60 = vpack.c.bf16 %v5910_v55, %v5910_v55  ;;  %v7973_v52 = vld [vmem:[%s10874_s24 + $0x5] ss:$0 sm:$0xff] }
0x2138   :  { %v5978_v57 = vpack.c.bf16 %v5909_v54, %v5909_v54 }
0x2139   :  { %v5980_v58 = vpack.c.bf16 %v5911_v56, %v5911_v56 }
0x213a   :  { %6213 = vmatprep.mubr.bf16.mxu1 %v5978_v57  ;;  %v9472_v57 = vld [vmem:[#allocation31 + $0x140] sm:$0xff]  }
0x213b   :  { %6253 = vmatprep.mubr.bf16.mxu0 %v5980_v58  ;;  %6214 = vmatmul.mubr.bf16.vlgmr.msra.gmra.mxu1 %v5977_v59  ;;  %v7975_v58 = vld [vmem:[#allocation30 + $0x5] ss:$0 sm:$0xff] }
0x213c   :  { %6254 = vmatmul.mubr.bf16.vlgmr.msra.gmra.mxu0 %v5979_v60  ;;  %8809 = vmatprep.mubr.msk.bf16.mxu1 %vm10222_vm0, %v10221_v0 }
0x213d   :  { %8829 = vmatprep.mubr.msk.bf16.mxu0 %vm10222_vm0, %v10221_v0  ;;  %8794 = vmatpush3.bf16.msra.mxu1 %v9457_v24  ;;  %v9485_v24 = vld [vmem:[#allocation34 + $0x5a0] ss:$16 sps:$4 sm:$0xff]  }
0x213e   :  { %8795 = vmatprep.subr.bf16.mxu1 %v10221_v0  ;;  %8814 = vmatpush3.bf16.msra.mxu0 %v9465_v38  ;;  %v9503_v38 = vld [vmem:[#allocation34 + $0x540] ss:$16 sps:$4 sm:$0xff]  }
0x213f   :  { %8815 = vmatprep.subr.bf16.mxu0 %v10221_v0 }
0x2141   :  { %8796 = vmatpush3.bf16.msra.mxu1 %v9458_v25  ;;  %v9488_v25 = vld [vmem:[#allocation34 + $0x5a8] ss:$16 sps:$4 sm:$0xff]  }
0x2142   :  { %8797 = vmatprep.subr.bf16.mxu1 %v10221_v0  ;;  %8816 = vmatpush3.bf16.msra.mxu0 %v9466_v39  ;;  %v9506_v39 = vld [vmem:[#allocation34 + $0x548] ss:$16 sps:$4 sm:$0xff]  }
0x2143   :  { %8817 = vmatprep.subr.bf16.mxu0 %v10221_v0 }
0x2145   :  { %8798 = vmatpush3.bf16.msra.mxu1 %v9459_v30  ;;  %v9499_v30 = vld [vmem:[#allocation34 + $0x564] ss:$16 sps:$4 sm:$0xff]  }
0x2146   :  { %8799 = vmatprep.subr.bf16.mxu1 %v10221_v0  ;;  %8818 = vmatpush3.bf16.msra.mxu0 %v9467_v40  ;;  %v9511_v40 = vld [vmem:[#allocation34 + $0x524] ss:$16 sps:$4 sm:$0xff]  }
0x2147   :  { %8819 = vmatprep.subr.bf16.mxu0 %v10221_v0 }
0x214a   :  { %8820 = vmatpush3.bf16.msra.mxu0 %v9468_v41  ;;  %v9514_v41 = vld [vmem:[#allocation34 + $0x52c] ss:$16 sps:$4 sm:$0xff]  }
0x214b   :  { %8821 = vmatprep.subr.bf16.mxu0 %v10221_v0 }
0x214e   :  { %8822 = vmatpush3.bf16.msra.mxu0 %v9469_v42  ;;  %v9509_v42 = vld [vmem:[#allocation34 + $0x520] ss:$16 sps:$4 sm:$0xff]  }
0x214f   :  { %8823 = vmatprep.subr.bf16.mxu0 %v10221_v0 }
0x2152   :  { %8824 = vmatpush3.bf16.msra.mxu0 %v9470_v43  ;;  %v9512_v43 = vld [vmem:[#allocation34 + $0x528] ss:$16 sps:$4 sm:$0xff]  }
0x2153   :  { %8825 = vmatprep.subr.bf16.mxu0 %v10221_v0 }
0x2156   :  { %8826 = vmatpush3.bf16.msra.mxu0 %v9471_v44  ;;  %v9517_v44 = vld [vmem:[#allocation34 + $0x504] ss:$16 sps:$4 sm:$0xff]  }
0x2157   :  { %8827 = vmatprep.subr.bf16.mxu0 %v10221_v0 }
0x215a   :  { %8828 = vmatpush3.bf16.msra.mxu0 %v9472_v57 }
0x21fb   :  { %v8412_v61 = vpop.f32.mrf.mxu1 }
0x21fc   :  { %v8434_v62 = vpop.f32.mrf.mxu0 }
0x21fd   :  { %v8413_v1 = vpop.f32.mrf.mxu1 }
0x21fe   :  { %v8414_v2 = vadd.f32 %v8413_v1, %v8412_v61  ;;  %v8435_v3 = vpop.f32.mrf.mxu0 }
0x21ff   :  { %v8415_v5 = vpop.f32.mrf.mxu1  ;;  %v8436_v7 = vadd.f32 %v8435_v3, %v8434_v62 }
0x2200   :  { %v6216_v6 = vadd.f32 %v8414_v2, %v7938_v63  ;;  %v8437_v9 = vpop.f32.mrf.mxu0  ;;  %v7984_v2 = vld [vmem:[#allocation33 + $0x5] ss:$0 sm:$0xff] }
0x2201   :  { %v8416_v8 = vpop.f32.mrf.mxu1 }
0x2202   :  { %v6256_v10 = vadd.f32 %v8436_v7, %v6216_v6  ;;  %v8438_v11 = vpop.f32.mrf.mxu0 }
0x2203   :  { %v9475_v11 = vld [vmem:[#allocation34 + $0x5e4] ss:$16 sps:$4 sm:$0xff]  }
0x2204   :  { %v6262_v12 = vmul.f32 0.044715, %v6256_v10  ;;  %v6261_v18 = vmul.f32 0.5, %v6256_v10 }
0x2206   :  { %v6263_v13 = vmul.f32 %v6262_v12, %v6256_v10  ;;  %v9476_v12 = vld [vmem:[#allocation34 + $0x5e8] ss:$16 sps:$4 sm:$0xff]  }
0x2208   :  { %v6264_v14 = vmul.f32 %v6263_v13, %v6256_v10  ;;  %v9478_v13 = vld [vmem:[#allocation34 + $0x5ec] ss:$16 sps:$4 sm:$0xff]  }
0x2209   :  { %6817 = vmatprep.subr.bf16.mxu0 %v9478_v13  ;;  %v9535_v13 = vld [vmem:[#allocation36 + $0x520] sm:$0xff]  }
0x220a   :  { %v6265_v15 = vadd.f32 %v6264_v14, %v6256_v10  ;;  %v9473_v10 = vld [vmem:[#allocation34 + $0x5e0] ss:$16 sps:$4 sm:$0xff]   ;;  %v9481_v14 = vld [vmem:[#allocation34 + $0x5c4] ss:$16 sps:$4 sm:$0xff]  }
0x220c   :  { %v6266_v16 = vmul.f32 0.7978846, %v6265_v15  ;;  %v9484_v15 = vld [vmem:[#allocation34 + $0x5cc] ss:$16 sps:$4 sm:$0xff]  }
0x220e   :  { %9629 = vtanh.f32 %v6266_v16  ;;  %v9482_v16 = vld [vmem:[#allocation34 + $0x5c8] ss:$16 sps:$4 sm:$0xff]  }
0x221b   :  { %v9630_v17 = vpop.eup %9629 }
0x221c   :  { %v6268_v20 = vadd.f32 1.0, %v9630_v17 }
0x221e   :  { %v6269_v21 = vmul.f32 %v6268_v20, %v6261_v18 }
0x2220   :  { %v10781_v22 = vadd.f32 %v6269_v21, %v10762_v31  ;;  %v9460_v31 = vld [vmem:[#allocation28 + $0x160] sm:$0xff]  }
0x2221   :  { %8800 = vmatpush3.bf16.msra.mxu1 %v9460_v31  ;;  %v9502_v31 = vld [vmem:[#allocation34 + $0x56c] ss:$16 sps:$4 sm:$0xff]  }
0x2222   :  { %v6271_v23 = vadd.f32 %v10781_v22, %v10563_v19  ;;  %8801 = vmatprep.subr.bf16.mxu1 %v10221_v0 }
0x2224   :  { %6276 = vadd.xlane.f32.xlu0 %v6271_v23 }
0x2225   :  { %8802 = vmatpush3.bf16.msra.mxu1 %v9461_v32  ;;  %v9497_v32 = vld [vmem:[#allocation34 + $0x560] ss:$16 sps:$4 sm:$0xff]  }
0x2226   :  { %8803 = vmatprep.subr.bf16.mxu1 %v10221_v0 }
0x2229   :  { %8804 = vmatpush3.bf16.msra.mxu1 %v9462_v33  ;;  %v9500_v33 = vld [vmem:[#allocation34 + $0x568] ss:$16 sps:$4 sm:$0xff]  }
0x222a   :  { %8805 = vmatprep.subr.bf16.mxu1 %v10221_v0 }
0x222d   :  { %8806 = vmatpush3.bf16.msra.mxu1 %v9463_v35  ;;  %v9505_v35 = vld [vmem:[#allocation34 + $0x544] ss:$16 sps:$4 sm:$0xff]  }
0x222e   :  { %8807 = vmatprep.subr.bf16.mxu1 %v10221_v0 }
0x2231   :  { %8808 = vmatpush3.bf16.msra.mxu1 %v9464_v37  ;;  %v9508_v37 = vld [vmem:[#allocation34 + $0x54c] ss:$16 sps:$4 sm:$0xff]  }
0x2232   :  { %6776 = vmatprep.subr.bf16.mxu1 %v9475_v11  ;;  %v9533_v11 = vld [vmem:[#allocation36 + $0x560] sm:$0xff]  }
0x22ad   :  { %v6277_v26 = vpop.xlane.xlu0 %6276 }
0x22ae   :  { %v6278_v27 = vmul.f32 0.0078125, %v6277_v26  ;;  %v9491_v26 = vld [vmem:[#allocation34 + $0x580] ss:$16 sps:$4 sm:$0xff]  }
0x22b0   :  { %v6279_v28 = vsub.f32 %v6271_v23, %v6278_v27  ;;  %v9490_v23 = vld [vmem:[#allocation34 + $0x5ac] ss:$16 sps:$4 sm:$0xff]   ;;  %v9493_v27 = vld [vmem:[#allocation34 + $0x584] ss:$16 sps:$4 sm:$0xff]  }
0x22b2   :  { %v6280_v29 = vmul.f32 %v6279_v28, %v6279_v28 }
0x22b4   :  { %6281 = vadd.xlane.f32.xlu1 %v6280_v29  ;;  %v9496_v29 = vld [vmem:[#allocation34 + $0x58c] ss:$16 sps:$4 sm:$0xff]  }
0x233d   :  { %v6282_v45 = vpop.xlane.xlu1 %6281 }
0x233e   :  { %v6283_v46 = vmul.f32 0.0078125, %v6282_v45  ;;  %v9520_v45 = vld [vmem:[#allocation34 + $0x50c] ss:$16 sps:$4 sm:$0xff]  }
0x2340   :  { %v6284_v47 = vadd.f32 1e-05, %v6283_v46  ;;  %v9515_v46 = vld [vmem:[#allocation34 + $0x500] ss:$16 sps:$4 sm:$0xff]  }
0x2342   :  { %9631 = vrsqrt.f32 %v6284_v47  ;;  %v9518_v47 = vld [vmem:[#allocation34 + $0x508] ss:$16 sps:$4 sm:$0xff]  }
0x234f   :  { %v9632_v50 = vpop.eup %9631 }
0x2350   :  { %v6286_v53 = vmul.f32 %v9632_v50, %v6279_v28  ;;  %v9494_v28 = vld [vmem:[#allocation34 + $0x588] ss:$16 sps:$4 sm:$0xff]  }
0x2352   :  { %v6293_v54 = vmul.f32 %v7973_v52, %v6286_v53 }
0x2354   :  { %v6300_v55 = vadd.f32 %v7974_v48, %v6293_v54  ;;  %v7995_v54 = vld [vmem:[%s10876_s30 + $0x5] ss:$0 sm:$0xff] }
0x2356   :  { %v6318_v56 = vpack.c.bf16 %v6300_v55, %v6300_v55 }
0x2358   :  { %8810 = vmatmul.mubr.bf16.vlgmr.msra.gmra.mxu1 %v6318_v56  ;;  %v7996_v56 = vld [vmem:[%s10877_s26 + $0x5] ss:$0 sm:$0xff] }
0x2359   :  { %6808 = vmatprep.mubr.bf16.mxu1 %v10224_v4  ;;  %6777 = vmatpush1.bf16.msra.mxu1 %v9473_v10  ;;  %v9532_v10 = vld [vmem:[#allocation36 + $0x5a8] sm:$0xff]  }
0x235a   :  { %6778 = vmatprep.subr.bf16.mxu1 %v9481_v14  ;;  %v9536_v14 = vld [vmem:[#allocation36 + $0x5a0] sm:$0xff]  }
0x2418   :  { %v6409_v59 = vpop.f32.mrf.mxu1 }
0x2419   :  { %v6410_v60 = vadd.f32 %v7975_v58, %v6409_v59 }
0x241a   :  { %v8811_v61 = vpop.f32.mrf.mxu1 }
0x241b   :  { %v6432_v62 = vpack.c.bf16 %v6410_v60, %v6410_v60  ;;  %v9521_v60 = vld [vmem:[#allocation36 + $0x578] sm:$0xff]  }
0x241c   :  { %v6412_v63 = vpop.f32.mrf.mxu1  ;;  %v9522_v61 = vld [vmem:[#allocation36 + $0x5f8] sm:$0xff]  }
0x241d   :  { %8830 = vmatmul.mubr.bf16.vlgmr.msra.gmra.mxu0 %v6432_v62  ;;  %v9523_v62 = vld [vmem:[#allocation36 + $0x538] sm:$0xff]  }
0x241e   :  { %v8812_v1 = vpop.f32.mrf.mxu1  ;;  %6849 = vmatprep.mubr.bf16.mxu0 %v10224_v4  ;;  %v9479_v4 = vld [vmem:[#allocation34 + $0x5c0] ss:$16 sps:$4 sm:$0xff]   ;;  %6818 = vmatpush1.bf16.msra.mxu0 %v9476_v12  ;;  %v9524_v63 = vld [vmem:[#allocation36 + $0x5b8] sm:$0xff]  }
0x241f   :  { %6819 = vmatprep.subr.bf16.mxu0 %v9484_v15  ;;  %6779 = vmatpush1.bf16.msra.mxu1 %v9479_v4  ;;  %v9525_v1 = vld [vmem:[#allocation36 + $0x570] sm:$0xff]   ;;  %v9534_v12 = vld [vmem:[#allocation36 + $0x5e0] sm:$0xff]   ;;  %v9537_v15 = vld [vmem:[#allocation36 + $0x558] sm:$0xff]  }
0x2420   :  { %v9538_v4 = vld [vmem:[#allocation36 + $0x5d8] sm:$0xff]  }
0x2422   :  { %6820 = vmatpush1.bf16.msra.mxu0 %v9482_v16  ;;  %v9539_v16 = vld [vmem:[#allocation36 + $0x518] sm:$0xff]  }
0x2423   :  { %6821 = vmatprep.subr.bf16.mxu0 %v9490_v23  ;;  %v9545_v23 = vld [vmem:[#allocation36 + $0x548] sm:$0xff]  }
0x2426   :  { %6822 = vmatpush1.bf16.msra.mxu0 %v9488_v25  ;;  %v9547_v25 = vld [vmem:[#allocation36 + $0x508] sm:$0xff]  }
0x2427   :  { %6823 = vmatprep.subr.bf16.mxu0 %v9496_v29  ;;  %v9551_v29 = vld [vmem:[#allocation36 + $0x500] sm:$0xff]  }
0x242a   :  { %6824 = vmatpush1.bf16.msra.mxu0 %v9494_v28  ;;  %v9550_v28 = vld [vmem:[#allocation36 + $0x5c0] sm:$0xff]  }
0x242b   :  { %6825 = vmatprep.subr.bf16.mxu0 %v9502_v31  ;;  %v7997_v31 = vld [vmem:[%s10878_s28 + $0x14] sm:$0xf] }
0x242e   :  { %6826 = vmatpush1.bf16.msra.mxu0 %v9500_v33  ;;  %v6607_v33 = vrot.slane %v7997_v31, %v10597_v34 }
0x242f   :  { %6827 = vmatprep.subr.bf16.mxu0 %v9508_v37  ;;  %v6611_v37 = vrot.slane %v7997_v31, %v10601_v36 }
0x2432   :  { %6828 = vmatpush1.bf16.msra.mxu0 %v9506_v39 }
0x2433   :  { %6829 = vmatprep.subr.bf16.mxu0 %v9514_v41 }
0x2436   :  { %6830 = vmatpush1.bf16.msra.mxu0 %v9512_v43 }
0x2437   :  { %6831 = vmatprep.subr.bf16.mxu0 %v9520_v45 }
0x243a   :  { %6832 = vmatpush1.bf16.msra.mxu0 %v9518_v47 }
0x243b   :  { %8480 = vmatprep.subr.bf16.mxu0 %v9522_v61 }
0x24dd   :  { %v6523_v3 = vpop.f32.mrf.mxu0 }
0x24de   :  { %v6524_v5 = vadd.f32 %v7984_v2, %v6523_v3  ;;  %v9526_v2 = vld [vmem:[#allocation36 + $0x5f0] sm:$0xff]  }
0x24df   :  { %v8831_v6 = vpop.f32.mrf.mxu0  ;;  %v9527_v3 = vld [vmem:[#allocation36 + $0x530] sm:$0xff]  }
0x24e0   :  { %v10804_v7 = vadd.f32 %v6524_v5, %v10781_v22  ;;  %v9487_v22 = vld [vmem:[#allocation34 + $0x5a4] ss:$16 sps:$4 sm:$0xff]   ;;  %v9529_v6 = vld [vmem:[#allocation36 + $0x568] sm:$0xff]  }
0x24e1   :  { %v6526_v9 = vpop.f32.mrf.mxu0  ;;  %6780 = vmatprep.subr.bf16.mxu1 %v9487_v22  ;;  %v9528_v5 = vld [vmem:[#allocation36 + $0x5b0] sm:$0xff]  }
0x24e2   :  { %6534 = vadd.xlane.f32.xlu0 %v10804_v7  ;;  %6781 = vmatpush1.bf16.msra.mxu1 %v9485_v24  ;;  %v9530_v9 = vld [vmem:[#allocation36 + $0x5e8] sm:$0xff]   ;;  %v9544_v22 = vld [vmem:[#allocation36 + $0x590] sm:$0xff]  }
0x24e3   :  { %v8832_v8 = vpop.f32.mrf.mxu0  ;;  %6782 = vmatprep.subr.bf16.mxu1 %v9493_v27  ;;  %v9546_v24 = vld [vmem:[#allocation36 + $0x5c8] sm:$0xff]   ;;  %v9549_v27 = vld [vmem:[#allocation36 + $0x540] sm:$0xff]  }
0x24e4   :  { %v9531_v8 = vld [vmem:[#allocation36 + $0x528] sm:$0xff]  }
0x24e6   :  { %6783 = vmatpush1.bf16.msra.mxu1 %v9491_v26  ;;  %v9548_v26 = vld [vmem:[#allocation36 + $0x588] sm:$0xff]  }
0x24e7   :  { %6784 = vmatprep.subr.bf16.mxu1 %v9499_v30  ;;  %v9552_v30 = vld [vmem:[#allocation36 + $0x580] sm:$0xff]  }
0x24ea   :  { %6785 = vmatpush1.bf16.msra.mxu1 %v9497_v32  ;;  %v6599_v32 = vrot.slane %v7997_v31, %v10552_v49 }
0x24eb   :  { %6786 = vmatprep.subr.bf16.mxu1 %v9505_v35  ;;  %v6603_v35 = vrot.slane %v7997_v31, %v10555_v51 }
0x24ee   :  { %6787 = vmatpush1.bf16.msra.mxu1 %v9503_v38 }
0x24ef   :  { %6788 = vmatprep.subr.bf16.mxu1 %v9511_v40 }
0x24f2   :  { %6789 = vmatpush1.bf16.msra.mxu1 %v9509_v42 }
0x24f3   :  { %6790 = vmatprep.subr.bf16.mxu1 %v9517_v44 }
0x24f6   :  { %6791 = vmatpush1.bf16.msra.mxu1 %v9515_v46 }
0x24f7   :  { %8458 = vmatprep.subr.bf16.mxu1 %v9521_v60 }
0x256b   :  { %v6535_v17 = vpop.xlane.xlu0 %6534 }
0x256c   :  { %v6536_v18 = vmul.f32 0.0078125, %v6535_v17  ;;  %v9540_v17 = vld [vmem:[#allocation36 + $0x598] sm:$0xff]  }
0x256e   :  { %v6537_v20 = vsub.f32 %v10804_v7, %v6536_v18  ;;  %v9541_v18 = vld [vmem:[#allocation36 + $0x550] sm:$0xff]  }
0x2570   :  { %v6538_v21 = vmul.f32 %v6537_v20, %v6537_v20 }
0x2572   :  { %6539 = vadd.xlane.f32.xlu1 %v6538_v21  ;;  %v9543_v21 = vld [vmem:[#allocation36 + $0x510] sm:$0xff]  }
0x25fb   :  { %v6540_v50 = vpop.xlane.xlu1 %6539 }
0x25fc   :  { %v6541_v52 = vmul.f32 0.0078125, %v6540_v50 }
0x25fe   :  { %v6542_v53 = vadd.f32 1e-05, %v6541_v52 }
0x2600   :  { %9633 = vrsqrt.f32 %v6542_v53 }
0x260d   :  { %v9634_v48 = vpop.eup %9633 }
0x260e   :  { %v6544_v55 = vmul.f32 %v9634_v48, %v6537_v20  ;;  %v9542_v20 = vld [vmem:[#allocation36 + $0x5d0] sm:$0xff]  }
0x2610   :  { %v6551_v57 = vmul.f32 %v7995_v54, %v6544_v55 }
0x2612   :  { %v6558_v58 = vadd.f32 %v7996_v56, %v6551_v57 }
0x2614   :  { %v6592_v59 = vpack.c.bf16 %v6558_v58, %v6558_v58 }
0x2616   :  { %6809 = vmatmul.mubr.bf16.vlgmr.msra.gmra.mxu1 %v6592_v59  ;;  %6850 = vmatmul.mubr.bf16.vlgmr.msra.gmra.mxu0 %v6592_v59 }
0x2617   :  { %8459 = vmatpush3.bf16.msra.mxu1 %v9523_v62  ;;  %8481 = vmatpush3.bf16.msra.mxu0 %v9524_v63 }
0x2618   :  { %8460 = vmatprep.subr.bf16.mxu1 %v9525_v1  ;;  %8482 = vmatprep.subr.bf16.mxu0 %v9526_v2 }
0x261b   :  { %8461 = vmatpush3.bf16.msra.mxu1 %v9527_v3  ;;  %8483 = vmatpush3.bf16.msra.mxu0 %v9528_v5 }
0x261c   :  { %8462 = vmatprep.subr.bf16.mxu1 %v9529_v6  ;;  %8484 = vmatprep.subr.bf16.mxu0 %v9530_v9 }
0x261f   :  { %8463 = vmatpush3.bf16.msra.mxu1 %v9531_v8  ;;  %8485 = vmatpush3.bf16.msra.mxu0 %v9532_v10 }
0x2620   :  { %8464 = vmatprep.subr.bf16.mxu1 %v9533_v11  ;;  %8486 = vmatprep.subr.bf16.mxu0 %v9534_v12 }
0x2623   :  { %8465 = vmatpush3.bf16.msra.mxu1 %v9535_v13  ;;  %8487 = vmatpush3.bf16.msra.mxu0 %v9536_v14 }
0x2624   :  { %8466 = vmatprep.subr.bf16.mxu1 %v9537_v15  ;;  %8488 = vmatprep.subr.bf16.mxu0 %v9538_v4 }
0x2627   :  { %8467 = vmatpush3.bf16.msra.mxu1 %v9539_v16  ;;  %8489 = vmatpush3.bf16.msra.mxu0 %v9540_v17 }
0x2628   :  { %8468 = vmatprep.subr.bf16.mxu1 %v9541_v18  ;;  %8490 = vmatprep.subr.bf16.mxu0 %v9542_v20 }
0x262b   :  { %8469 = vmatpush3.bf16.msra.mxu1 %v9543_v21  ;;  %8491 = vmatpush3.bf16.msra.mxu0 %v9544_v22 }
0x262c   :  { %8470 = vmatprep.subr.bf16.mxu1 %v9545_v23  ;;  %8492 = vmatprep.subr.bf16.mxu0 %v9546_v24 }
0x262f   :  { %8471 = vmatpush3.bf16.msra.mxu1 %v9547_v25  ;;  %8493 = vmatpush3.bf16.msra.mxu0 %v9548_v26 }
0x2630   :  { %8472 = vmatprep.subr.bf16.mxu1 %v9549_v27  ;;  %8494 = vmatprep.subr.bf16.mxu0 %v9550_v28 }
0x2633   :  { %8473 = vmatpush3.bf16.msra.mxu1 %v9551_v29  ;;  %8495 = vmatpush3.bf16.msra.mxu0 %v9552_v30  ;;  %v8031_v29 = vld [vmem:[%s10879_s17 + $0x5] ss:$0 sm:$0xff] }
0x2634   :  { %8833 = vmatprep.subr.bf16.mxu1 %v10221_v0 }
0x26d6   :  { %v6810_v38 = vpop.f32.mrf.mxu1  ;;  %v6851_v39 = vpop.f32.mrf.mxu0 }
0x26d7   :  { %v6811_v40 = vadd.f32 %v6810_v38, %v6599_v32  ;;  %v6852_v41 = vadd.f32 %v6851_v39, %v6607_v33 }
0x26d8   :  { %v6812_v42 = vpop.f32.mrf.mxu1  ;;  %v6853_v43 = vpop.f32.mrf.mxu0 }
0x26d9   :  { %v6862_v44 = vmul.f32 0.044715, %v6811_v40  ;;  %v6864_v45 = vmul.f32 0.044715, %v6852_v41  ;;  %v6813_v46 = vadd.f32 %v6812_v42, %v6603_v35  ;;  %v6854_v47 = vadd.f32 %v6853_v43, %v6611_v37 }
0x26da   :  { %v6814_v50 = vpop.f32.mrf.mxu1  ;;  %v6855_v52 = vpop.f32.mrf.mxu0  ;;  %v6858_v11 = vmul.f32 0.5, %v6811_v40  ;;  %v6860_v4 = vmul.f32 0.5, %v6852_v41 }
0x26db   :  { %v6866_v53 = vmul.f32 %v6862_v44, %v6811_v40  ;;  %v6868_v49 = vmul.f32 %v6864_v45, %v6852_v41  ;;  %v6863_v48 = vmul.f32 0.044715, %v6813_v46  ;;  %v6865_v34 = vmul.f32 0.044715, %v6854_v47 }
0x26dc   :  { %v6815_v54 = vpop.f32.mrf.mxu1  ;;  %v6856_v51 = vpop.f32.mrf.mxu0  ;;  %v6859_v14 = vmul.f32 0.5, %v6813_v46  ;;  %v6861_v16 = vmul.f32 0.5, %v6854_v47 }
0x26dd   :  { %v6870_v55 = vmul.f32 %v6866_v53, %v6811_v40  ;;  %v6872_v36 = vmul.f32 %v6868_v49, %v6852_v41  ;;  %v6867_v56 = vmul.f32 %v6863_v48, %v6813_v46  ;;  %v6869_v57 = vmul.f32 %v6865_v34, %v6854_v47  ;;  %v9553_v34 = vld [vmem:[#allocation37 + $0x38] sm:$0xff]   ;;  %v9554_v54 = vld [vmem:[#allocation37 + $0x30] sm:$0xff]  }
0x26df   :  { %v6874_v58 = vadd.f32 %v6870_v55, %v6811_v40  ;;  %v6876_v59 = vadd.f32 %v6872_v36, %v6852_v41  ;;  %v6871_v60 = vmul.f32 %v6867_v56, %v6813_v46  ;;  %v6873_v61 = vmul.f32 %v6869_v57, %v6854_v47  ;;  %v9555_v57 = vld [vmem:[#allocation37 + $0x28] sm:$0xff]  }
0x26e1   :  { %v6878_v62 = vmul.f32 0.7978846, %v6874_v58  ;;  %v6880_v63 = vmul.f32 0.7978846, %v6876_v59  ;;  %v6875_v1 = vadd.f32 %v6871_v60, %v6813_v46  ;;  %v6877_v2 = vadd.f32 %v6873_v61, %v6854_v47  ;;  %v9556_v58 = vld [vmem:[#allocation37 + $0x20] sm:$0xff]   ;;  %v9559_v59 = vld [vmem:[#allocation37 + $0x8] sm:$0xff]  }
0x26e2   :  { %v9560_v60 = vld [vmem:[#allocation37] sm:$0xff]  }
0x26e3   :  { %v6879_v3 = vmul.f32 0.7978846, %v6875_v1  ;;  %v6881_v5 = vmul.f32 0.7978846, %v6877_v2  ;;  %9635 = vtanh.f32 %v6878_v62  ;;  %v8064_v2 = vld [vmem:[%s10880_s25] ss:$0 sm:$0xff] }
0x26e4   :  { %9637 = vtanh.f32 %v6880_v63 }
0x26e5   :  { %9639 = vtanh.f32 %v6879_v3 }
0x26e6   :  { %9641 = vtanh.f32 %v6881_v5  ;;  %v8065_v5 = vld [vmem:[%s10403_s5] ss:$0 sm:$0xff] }
0x26f0   :  { %v9636_v6 = vpop.eup %9635 }
0x26f1   :  { %v9638_v9 = vpop.eup %9637  ;;  %v6886_v8 = vadd.f32 1.0, %v9636_v6 }
0x26f2   :  { %v9640_v10 = vpop.eup %9639  ;;  %v6888_v12 = vadd.f32 1.0, %v9638_v9 }
0x26f3   :  { %v9642_v13 = vpop.eup %9641  ;;  %v6887_v15 = vadd.f32 1.0, %v9640_v10  ;;  %v6890_v18 = vmul.f32 %v6886_v8, %v6858_v11  ;;  %v8066_v10 = vld [vmem:[%s10413_s13] ss:$0 sm:$0xff] }
0x26f4   :  { %v6889_v17 = vadd.f32 1.0, %v9642_v13  ;;  %v6892_v21 = vmul.f32 %v6888_v12, %v6860_v4 }
0x26f5   :  { %v6891_v20 = vmul.f32 %v6887_v15, %v6859_v14  ;;  %v6959_v25 = vpack.c.bf16 %v6890_v18, %v6890_v18 }
0x26f6   :  { %v6893_v22 = vmul.f32 %v6889_v17, %v6861_v16  ;;  %v6961_v26 = vpack.c.bf16 %v6892_v21, %v6892_v21 }
0x26f7   :  { %v6960_v23 = vpack.c.bf16 %v6891_v20, %v6891_v20 }
0x26f8   :  { %v6962_v24 = vpack.c.bf16 %v6893_v22, %v6893_v22 }
0x26f9   :  { %7195 = vmatprep.mubr.bf16.mxu1 %v6960_v23 }
0x26fa   :  { %7235 = vmatprep.mubr.bf16.mxu0 %v6962_v24  ;;  %7196 = vmatmul.mubr.bf16.vlgmr.msra.gmra.mxu1 %v6959_v25 }
0x26fb   :  { %7236 = vmatmul.mubr.bf16.vlgmr.msra.gmra.mxu0 %v6961_v26  ;;  %8849 = vmatprep.mubr.msk.bf16.mxu1 %vm10222_vm0, %v10221_v0 }
0x26fc   :  { %8834 = vmatpush3.bf16.msra.mxu1 %v9553_v34 }
0x26fd   :  { %8835 = vmatprep.subr.bf16.mxu1 %v10221_v0 }
0x2700   :  { %8836 = vmatpush3.bf16.msra.mxu1 %v9554_v54 }
0x2701   :  { %8837 = vmatprep.subr.bf16.mxu1 %v10221_v0 }
0x2704   :  { %8838 = vmatpush3.bf16.msra.mxu1 %v9555_v57 }
0x2705   :  { %8839 = vmatprep.subr.bf16.mxu1 %v10221_v0 }
0x2708   :  { %8840 = vmatpush3.bf16.msra.mxu1 %v9556_v58 }
0x2709   :  { %8841 = vmatprep.subr.bf16.mxu1 %v10221_v0 }
0x27ba   :  { %v8474_v27 = vpop.f32.mrf.mxu1 }
0x27bb   :  { %v8496_v28 = vpop.f32.mrf.mxu0 }
0x27bc   :  { %v8475_v30 = vpop.f32.mrf.mxu1 }
0x27bd   :  { %v8476_v31 = vadd.f32 %v8475_v30, %v8474_v27  ;;  %v8497_v32 = vpop.f32.mrf.mxu0 }
0x27be   :  { %v8477_v33 = vpop.f32.mrf.mxu1  ;;  %v8498_v37 = vadd.f32 %v8497_v32, %v8496_v28 }
0x27bf   :  { %v7198_v35 = vadd.f32 %v8476_v31, %v8031_v29  ;;  %v8499_v38 = vpop.f32.mrf.mxu0 }
0x27c0   :  { %v8478_v39 = vpop.f32.mrf.mxu1 }
0x27c1   :  { %v7238_v40 = vadd.f32 %v8498_v37, %v7198_v35  ;;  %v8500_v41 = vpop.f32.mrf.mxu0 }
0x27c3   :  { %v7244_v42 = vmul.f32 0.044715, %v7238_v40  ;;  %v7243_v50 = vmul.f32 0.5, %v7238_v40 }
0x27c5   :  { %v7245_v43 = vmul.f32 %v7244_v42, %v7238_v40 }
0x27c7   :  { %v7246_v44 = vmul.f32 %v7245_v43, %v7238_v40 }
0x27c9   :  { %v7247_v45 = vadd.f32 %v7246_v44, %v7238_v40 }
0x27cb   :  { %v7248_v46 = vmul.f32 0.7978846, %v7247_v45 }
0x27cd   :  { %9643 = vtanh.f32 %v7248_v46 }
0x27da   :  { %v9644_v47 = vpop.eup %9643 }
0x27db   :  { %v7250_v52 = vadd.f32 1.0, %v9644_v47 }
0x27dd   :  { %v7251_v53 = vmul.f32 %v7250_v52, %v7243_v50 }
0x27df   :  { %v7252_v49 = vadd.f32 %v7251_v53, %v10804_v7  ;;  %v9558_v7 = vld [vmem:[#allocation37 + $0x10] sm:$0xff]  }
0x27e1   :  { %v7253_v48 = vadd.f32 %v7252_v49, %v10563_v19  ;;  %v9557_v19 = vld [vmem:[#allocation37 + $0x18] sm:$0xff]  }
0x27e2   :  { %8842 = vmatpush3.bf16.msra.mxu1 %v9557_v19 }
0x27e3   :  { %7256 = vadd.xlane.f32.xlu0 %v7253_v48  ;;  %8843 = vmatprep.subr.bf16.mxu1 %v10221_v0 }
0x27e6   :  { %8844 = vmatpush3.bf16.msra.mxu1 %v9558_v7 }
0x27e7   :  { %8845 = vmatprep.subr.bf16.mxu1 %v10221_v0 }
0x27ea   :  { %8846 = vmatpush3.bf16.msra.mxu1 %v9559_v59 }
0x27eb   :  { %8847 = vmatprep.subr.bf16.mxu1 %v10221_v0 }
0x27ee   :  { %8848 = vmatpush3.bf16.msra.mxu1 %v9560_v60 }
0x286c   :  { %v7257_v51 = vpop.xlane.xlu0 %7256 }
0x286d   :  { %v7258_v55 = vmul.f32 0.0078125, %v7257_v51 }
0x286f   :  { %v7259_v36 = vsub.f32 %v7253_v48, %v7258_v55 }
0x2871   :  { %v7260_v56 = vmul.f32 %v7259_v36, %v7259_v36 }
0x2873   :  { %7261 = vadd.xlane.f32.xlu1 %v7260_v56 }
0x28fc   :  { %v7262_v61 = vpop.xlane.xlu1 %7261 }
0x28fd   :  { %v7263_v62 = vmul.f32 0.0078125, %v7262_v61 }
0x28ff   :  { %v7264_v63 = vadd.f32 1e-05, %v7263_v62 }
0x2901   :  { %9645 = vrsqrt.f32 %v7264_v63 }
0x290e   :  { %v9646_v1 = vpop.eup %9645 }
0x290f   :  { %v7266_v3 = vmul.f32 %v9646_v1, %v7259_v36 }
0x2911   :  { %v7273_v6 = vmul.f32 %v8064_v2, %v7266_v3 }
0x2913   :  { %v7280_v9 = vadd.f32 %v8065_v5, %v7273_v6 }
0x2915   :  { %v7297_v8 = vpack.c.bf16 %v7280_v9, %v7280_v9 }
0x2917   :  { %8850 = vmatmul.mubr.bf16.vlgmr.msra.gmra.mxu1 %v7297_v8 }
0x29d7   :  { %v7387_v11 = vpop.f32.mrf.mxu1 }
0x29d8   :  { %v7388_v12 = vadd.f32 %v8066_v10, %v7387_v11 }
0x29d9   :  { %v8851_v13 = vpop.f32.mrf.mxu1 }
0x29da   :  { %7393 = vst.msk [vmem:[%s10418_s14] sm:$0xff] %vm1209_vm11, %v7388_v12 }
0x29db   :  { %v7390_v0 = vpop.f32.mrf.mxu1 }
0x29dd   :  { %v8852_v14 = vpop.f32.mrf.mxu1 }
0x29de   :  { %7398 = vsyncpa [#allocation3], 1 }
0x29df   :  { %7399 = vsyncpa [#allocation5], 1 }
0x29e0   :  { %7400 = vsyncpa [#allocation8], 1 }
0x29e1   :  { %7401 = vsyncpa [#allocation11], 1 }
0x29e2   :  { %7402 = vsyncpa [#allocation14], 1 }
0x29e3   :  { %7403 = vsyncpa [#allocation17], 1 }
0x29e4   :  { %7404 = vsyncpa [#allocation20], 1 }
0x29e5   :  { %7405 = vsyncpa [#allocation23], 1 }
0x29e6   :  { %7406 = vsyncpa [#allocation26], 1 }
0x29e7   :  { %7407 = vsyncpa [#allocation29], 1 }
0x29e8   :  { %7408 = vsyncpa [#allocation32], 1 }
0x29e9   :  { %7409 = vsyncpa [#allocation35], 1 }
0x29ea   :  { %7410 = vsyncpa [#allocation38], 1 }

</bundles_post_ra>
